<compile_context>
chip_gen: v7x
topology: tpu7x:2x2x1
jax: 0.10.0
libtpu: 0.0.40
codegen_flags: <defaults>
</compile_context>

<pallas_src>
import math

import jax
import jax.numpy as jnp
from jax import lax
from jax.experimental import pallas as pl
from jax.experimental.pallas import tpu as pltpu

EPS = 1e-5                       # torch BatchNorm2d default eps
ACT_DTYPE = jnp.bfloat16         # inter-layer activation / matmul operand dtype
VMEM_LIMIT = 32 * 1024 * 1024    # safe on v5e/v6e (128 MiB) and v7x (64 MiB)


def _pick_tile(n, candidates):
    """Largest candidate that evenly divides n, else n (full-extent block)."""
    for c in candidates:
        if c <= n and n % c == 0:
            return c
    return n


# --------------------------------------------------------------------------
# Kernel 1: tiled conv matmul (bf16 MXU, f32 acc) + BN partial statistics
# --------------------------------------------------------------------------

def _conv_matmul_kernel(x_ref, w_ref, y_ref, s_ref, ss_ref, acc_ref):
    k = pl.program_id(1)

    @pl.when(k == 0)
    def _():
        acc_ref[...] = jnp.zeros_like(acc_ref)

    acc_ref[...] += jnp.dot(x_ref[...], w_ref[...],
                            preferred_element_type=jnp.float32)

    @pl.when(k == pl.num_programs(1) - 1)
    def _():
        acc = acc_ref[...]
        y_ref[...] = acc
        s = jnp.sum(acc, axis=0, keepdims=True)            # (1, Cout)
        ss = jnp.sum(acc * acc, axis=0, keepdims=True)      # (1, Cout)
        # Replicate across the 8 sublanes of the stats tile (divided out later).
        s_ref[...] = jnp.broadcast_to(s, s_ref.shape)
        ss_ref[...] = jnp.broadcast_to(ss, ss_ref.shape)


def _conv_matmul(x2d, w2d, tile_m, tile_k):
    M, K = x2d.shape
    Cout = w2d.shape[1]
    m_tiles = M // tile_m
    k_tiles = K // tile_k
    return pl.pallas_call(
        _conv_matmul_kernel,
        grid=(m_tiles, k_tiles),
        in_specs=[
            pl.BlockSpec((tile_m, tile_k), lambda i, k: (i, k)),
            pl.BlockSpec((tile_k, Cout), lambda i, k: (k, 0)),
        ],
        out_specs=[
            pl.BlockSpec((tile_m, Cout), lambda i, k: (i, 0)),
            pl.BlockSpec((8, Cout), lambda i, k: (i, 0)),
            pl.BlockSpec((8, Cout), lambda i, k: (i, 0)),
        ],
        out_shape=[
            jax.ShapeDtypeStruct((M, Cout), jnp.float32),            # pre-BN y
            jax.ShapeDtypeStruct((m_tiles * 8, Cout), jnp.float32),  # sums
            jax.ShapeDtypeStruct((m_tiles * 8, Cout), jnp.float32),  # sumsqs
        ],
        scratch_shapes=[pltpu.VMEM((tile_m, Cout), jnp.float32)],
        compiler_params=pltpu.CompilerParams(
            dimension_semantics=("parallel", "arbitrary"),
            vmem_limit_bytes=VMEM_LIMIT),
    )(x2d, w2d)


# --------------------------------------------------------------------------
# Kernel 2: BN finalize + apply (+ residual add + ReLU), tiled over M
# --------------------------------------------------------------------------

def _make_bn_apply_kernel(count, relu, has_res):
    inv = 1.0 / (8.0 * float(count))   # partials are replicated over 8 sublanes

    def body(y_ref, s_ref, ss_ref, g_ref, b_ref, r_ref, o_ref):
        mean = jnp.sum(s_ref[...], axis=0, keepdims=True) * inv     # (1, C)
        ex2 = jnp.sum(ss_ref[...], axis=0, keepdims=True) * inv     # (1, C)
        var = jnp.maximum(ex2 - mean * mean, 0.0)                   # biased var
        scale = g_ref[...] * lax.rsqrt(var + EPS)
        shift = b_ref[...] - mean * scale
        y = y_ref[...] * scale + shift
        if r_ref is not None:
            y = y + r_ref[...].astype(jnp.float32)
        if relu:
            y = jnp.maximum(y, 0.0)
        o_ref[...] = y.astype(o_ref.dtype)

    if has_res:
        def kernel(y_ref, s_ref, ss_ref, g_ref, b_ref, r_ref, o_ref):
            body(y_ref, s_ref, ss_ref, g_ref, b_ref, r_ref, o_ref)
    else:
        def kernel(y_ref, s_ref, ss_ref, g_ref, b_ref, o_ref):
            body(y_ref, s_ref, ss_ref, g_ref, b_ref, None, o_ref)
    return kernel


def _bn_apply(y, s, ss, gamma, beta, tile_m, relu, residual=None):
    M, Cout = y.shape
    m_tiles = M // tile_m
    srows = s.shape[0]
    in_specs = [
        pl.BlockSpec((tile_m, Cout), lambda i: (i, 0)),
        pl.BlockSpec((srows, Cout), lambda i: (0, 0)),
        pl.BlockSpec((srows, Cout), lambda i: (0, 0)),
        pl.BlockSpec((1, Cout), lambda i: (0, 0)),
        pl.BlockSpec((1, Cout), lambda i: (0, 0)),
    ]
    inputs = [y, s, ss, gamma, beta]
    if residual is not None:
        in_specs.append(pl.BlockSpec((tile_m, Cout), lambda i: (i, 0)))
        inputs.append(residual)
    kernel = _make_bn_apply_kernel(M, relu, residual is not None)
    return pl.pallas_call(
        kernel,
        grid=(m_tiles,),
        in_specs=in_specs,
        out_specs=pl.BlockSpec((tile_m, Cout), lambda i: (i, 0)),
        out_shape=jax.ShapeDtypeStruct((M, Cout), ACT_DTYPE),
        compiler_params=pltpu.CompilerParams(
            dimension_semantics=("parallel",),
            vmem_limit_bytes=VMEM_LIMIT),
    )(*inputs)


# --------------------------------------------------------------------------
# Pool / FC kernels
# --------------------------------------------------------------------------

def _maxpool_kernel(p_ref, o_ref):
    # p_ref: (9, tile_m, C) tap-major -> native max over the leading tap axis.
    o_ref[...] = jnp.max(p_ref[...], axis=0)


def _avgpool_kernel(x_ref, o_ref):
    o_ref[...] = jnp.mean(x_ref[...].astype(jnp.float32), axis=1)


def _fc_kernel(x_ref, w_ref, b_ref, o_ref):
    y = jnp.dot(x_ref[...], w_ref[...], preferred_element_type=jnp.float32)
    o_ref[...] = (y + b_ref[...]).astype(o_ref.dtype)


# --------------------------------------------------------------------------
# Glue: im2col tap extraction (plain JAX, bf16)
# --------------------------------------------------------------------------

def _extract_taps(x, kh, kw, stride, padding, dilation, pad_value=0.0):
    # x: (N, H, W, C) -> list of kh*kw taps, each (N, Ho, Wo, C)
    N, H, W, C = x.shape
    xp = jnp.pad(x, ((0, 0), (padding, padding), (padding, padding), (0, 0)),
                 constant_values=pad_value)
    Hp, Wp = H + 2 * padding, W + 2 * padding
    Ho = (Hp - (dilation * (kh - 1) + 1)) // stride + 1
    Wo = (Wp - (dilation * (kw - 1) + 1)) // stride + 1
    taps = []
    for i in range(kh):
        for j in range(kw):
            r0, c0 = i * dilation, j * dilation
            taps.append(xp[:, r0:r0 + stride * (Ho - 1) + 1:stride,
                              c0:c0 + stride * (Wo - 1) + 1:stride, :])
    return taps, (N, Ho, Wo)


def conv_bn(x, cp, *, relu, residual=None):
    # x: (N,H,W,Cin) bf16 NHWC; cp: pre-transformed conv+bn params.
    kh = kw = cp['k']
    taps, (N, Ho, Wo) = _extract_taps(x, kh, kw, cp['stride'], cp['pad'],
                                      cp['dil'], 0.0)
    C = x.shape[-1]
    M = N * Ho * Wo
    x2d = jnp.stack(taps, axis=3).reshape(M, kh * kw * C).astype(ACT_DTYPE)
    w2d = cp['w']                               # (kh*kw*Cin, Cout) bf16
    Cout = w2d.shape[1]
    tile_m = _pick_tile(M, (256, 128, 64, 32, 16, 8))
    tile_k = _pick_tile(x2d.shape[1], (512, 384, 256, 128))
    y, s, ss = _conv_matmul(x2d, w2d, tile_m, tile_k)
    res2d = residual.reshape(M, Cout) if residual is not None else None
    out2d = _bn_apply(y, s, ss, cp['g'], cp['b'], tile_m, relu, res2d)
    return out2d.reshape(N, Ho, Wo, Cout)


def maxpool_3x3_s2(x):
    # nn.MaxPool2d(kernel_size=3, stride=2, padding=1); pad with -inf.
    taps, (N, Ho, Wo) = _extract_taps(x, 3, 3, 2, 1, 1, pad_value=-jnp.inf)
    C = x.shape[-1]
    M = N * Ho * Wo
    p = jnp.stack(taps, axis=0).reshape(9, M, C)     # tap-major, dense slabs
    tile_m = _pick_tile(M, (512, 256, 128, 64, 32, 16, 8))
    m_tiles = M // tile_m
    y = pl.pallas_call(
        _maxpool_kernel,
        grid=(m_tiles,),
        in_specs=[pl.BlockSpec((9, tile_m, C), lambda i: (0, i, 0))],
        out_specs=pl.BlockSpec((tile_m, C), lambda i: (i, 0)),
        out_shape=jax.ShapeDtypeStruct((M, C), x.dtype),
        compiler_params=pltpu.CompilerParams(
            dimension_semantics=("parallel",),
            vmem_limit_bytes=VMEM_LIMIT),
    )(p)
    return y.reshape(N, Ho, Wo, C)


def global_avg_pool(x):
    N, H, W, C = x.shape
    x3 = x.reshape(N, H * W, C)
    return pl.pallas_call(
        _avgpool_kernel,
        grid=(1,),
        in_specs=[pl.BlockSpec((N, H * W, C), lambda i: (0, 0, 0))],
        out_specs=pl.BlockSpec((N, C), lambda i: (0, 0)),
        out_shape=jax.ShapeDtypeStruct((N, C), jnp.float32),
        compiler_params=pltpu.CompilerParams(vmem_limit_bytes=VMEM_LIMIT),
    )(x3)


def linear(x, w, b):
    # x: (N, in) f32; w: (in, out) bf16 pre-transposed at init; b: (1, out) f32
    N = x.shape[0]
    K, O = w.shape
    return pl.pallas_call(
        _fc_kernel,
        grid=(1,),
        in_specs=[pl.BlockSpec((N, K), lambda i: (0, 0)),
                  pl.BlockSpec((K, O), lambda i: (0, 0)),
                  pl.BlockSpec((1, O), lambda i: (0, 0))],
        out_specs=pl.BlockSpec((N, O), lambda i: (0, 0)),
        out_shape=jax.ShapeDtypeStruct((N, O), jnp.float32),
        compiler_params=pltpu.CompilerParams(vmem_limit_bytes=VMEM_LIMIT),
    )(x.astype(ACT_DTYPE), w, b)


# --------------------------------------------------------------------------
# Model definition (BasicBlock ResNet)
# --------------------------------------------------------------------------

def init_params(key, in_chs=3, num_classes=20, layers=(1, 1, 1, 1)):
    keys = iter(jax.random.split(key, 128))

    def conv(cin, cout, k, stride, pad, dil):
        # matches: m.weight.data.normal_(0, sqrt(2 / (k*k*cout)))
        std = math.sqrt(2.0 / (k * k * cout))
        w = std * jax.random.normal(next(keys), (cout, cin, k, k), jnp.float32)
        # Pre-transform once: (cout,cin,kh,kw) -> (kh*kw*cin, cout) in bf16.
        w2d = jnp.transpose(w, (2, 3, 1, 0)).reshape(k * k * cin, cout)
        return {'w': w2d.astype(ACT_DTYPE), 'k': k, 'stride': stride,
                'pad': pad, 'dil': dil,
                'g': jnp.ones((1, cout), jnp.float32),     # BN weight.fill_(1)
                'b': jnp.zeros((1, cout), jnp.float32)}    # BN bias.zero_()

    params = {'stem': conv(in_chs, 64, 7, 2, 3, 1)}

    inplanes = 64
    layer_cfg = [(64, 1, 1), (128, 2, 1), (256, 2, 1), (512, 1, 2)]
    all_layers = []
    for (planes, stride, dilation), nblocks in zip(layer_cfg, layers):
        blocks = []
        for bi in range(nblocks):
            s = stride if bi == 0 else 1
            d = dilation if bi == 0 else 1
            blk = {'conv1': conv(inplanes, planes, 3, s, d, d),
                   'conv2': conv(planes, planes, 3, 1, d, d)}
            if bi == 0 and (s != 1 or inplanes != planes):
                blk['ds'] = conv(inplanes, planes, 1, s, 0, 1)
            inplanes = planes
            blocks.append(blk)
        all_layers.append(blocks)
    params['layers'] = all_layers

    # nn.Linear(512, num_classes) default init (uniform +/- 1/sqrt(fan_in))
    bound = 1.0 / math.sqrt(512)
    fc_w = jax.random.uniform(next(keys), (num_classes, 512), jnp.float32,
                              -bound, bound)
    params['fc_w'] = jnp.transpose(fc_w).astype(ACT_DTYPE)   # (512, classes)
    params['fc_b'] = jax.random.uniform(next(keys), (1, num_classes),
                                        jnp.float32, -bound, bound)
    return params


def basic_block(x, blk):
    out = conv_bn(x, blk['conv1'], relu=True)
    if 'ds' in blk:
        residual = conv_bn(x, blk['ds'], relu=False)
    else:
        residual = x
    # conv2 matmul; BN + residual add + ReLU fused in the apply kernel.
    out = conv_bn(out, blk['conv2'], relu=True, residual=residual)
    return out


def resnet_forward(params, x_nchw):
    x = jnp.transpose(x_nchw, (0, 2, 3, 1)).astype(ACT_DTYPE)  # NCHW -> NHWC
    x = conv_bn(x, params['stem'], relu=True)    # conv7x7/2 + BN + ReLU
    x = maxpool_3x3_s2(x)
    for blocks in params['layers']:
        for blk in blocks:
            x = basic_block(x, blk)
    x = global_avg_pool(x)                       # pool_type='avg', view(N,-1)
    # drop_rate = 0.0  ->  F.dropout is a no-op
    return linear(x, params['fc_w'], params['fc_b'])


if __name__ == "__main__":
    key = jax.random.PRNGKey(0)
    pkey, xkey = jax.random.split(key)
    params = init_params(pkey, in_chs=3, num_classes=20, layers=(1, 1, 1, 1))
    # small PyTorch-style NCHW input
    x = jax.random.normal(xkey, (2, 3, 32, 32), jnp.float32)
    fwd = jax.jit(lambda inp: resnet_forward(params, inp))
    out = jax.block_until_ready(fwd(x))
    assert out.shape == (2, 20) and out.dtype == jnp.float32
    assert bool(jnp.all(jnp.isfinite(out)))
    print("KERNEL_OK")
</pallas_src>

<mosaic_0001>
module attributes {stable_mosaic.version = 11 : i64} {
  func.func @_conv_matmul_kernel(%arg0: i32, %arg1: i32, %arg2: memref<256x147xbf16, #tpu.memory_space<vmem>>, %arg3: memref<147x64xbf16, #tpu.memory_space<vmem>>, %arg4: memref<256x64xf32, #tpu.memory_space<vmem>>, %arg5: memref<8x64xf32, #tpu.memory_space<vmem>>, %arg6: memref<8x64xf32, #tpu.memory_space<vmem>>, %arg7: memref<256x64xf32, #tpu.memory_space<vmem>>) attributes {dimension_semantics = [#tpu.dimension_semantics<parallel>, #tpu.dimension_semantics<arbitrary>], iteration_bounds = array<i64: 2, 1>, scalar_prefetch = 0 : i64, scratch_operands = 1 : i64, tpu.core_type = #tpu.core_type<tc>, window_params = [{transform_indices = @transform_0, window_bounds = array<i64: 256, 147>}, {transform_indices = @transform_1, window_bounds = array<i64: 147, 64>}, {transform_indices = @transform_2, window_bounds = array<i64: 256, 64>}, {transform_indices = @transform_3, window_bounds = array<i64: 8, 64>}, {transform_indices = @transform_4, window_bounds = array<i64: 8, 64>}]} {
    %c0_i32 = arith.constant 0 : i32
    %0 = arith.cmpi eq, %arg1, %c0_i32 : i32
    %1 = arith.extui %0 : i1 to i32
    %c0_i32_0 = arith.constant 0 : i32
    %2 = arith.cmpi ne, %1, %c0_i32_0 : i32
    scf.if %2 {
      %cst_10 = arith.constant 0.000000e+00 : f32
      %12 = vector.broadcast %cst_10 : f32 to vector<256x64xf32>
      %c0_11 = arith.constant 0 : index
      %c0_12 = arith.constant 0 : index
      %13 = vector.load %arg7[%c0_11, %c0_12] : memref<256x64xf32, #tpu.memory_space<vmem>>, vector<256x64xf32>
      tpu.vector_store %arg7[%c0_11, %c0_12], %12 {strides = array<i32>} : memref<256x64xf32, #tpu.memory_space<vmem>>, vector<256x64xf32>,
    } else {
    }
    %c0 = arith.constant 0 : index
    %c0_1 = arith.constant 0 : index
    %3 = vector.load %arg7[%c0, %c0_1] : memref<256x64xf32, #tpu.memory_space<vmem>>, vector<256x64xf32>
    %c0_2 = arith.constant 0 : index
    %c0_3 = arith.constant 0 : index
    %4 = vector.load %arg2[%c0_2, %c0_3] : memref<256x147xbf16, #tpu.memory_space<vmem>>, vector<256x147xbf16>
    %c0_4 = arith.constant 0 : index
    %c0_5 = arith.constant 0 : index
    %5 = vector.load %arg3[%c0_4, %c0_5] : memref<147x64xbf16, #tpu.memory_space<vmem>>, vector<147x64xbf16>
    %cst = arith.constant dense<0.000000e+00> : vector<256x64xf32>
    %6 = tpu.matmul %4, %5, %cst {dimension_numbers = #tpu.dot_dimension_numbers<[1], [0], [0], [1], [0, 0, 1, 1], [], []>} : vector<256x147xbf16>, vector<147x64xbf16>, vector<256x64xf32> -> vector<256x64xf32>
    %7 = arith.addf %3, %6 : vector<256x64xf32>
    %c0_6 = arith.constant 0 : index
    %c0_7 = arith.constant 0 : index
    %8 = vector.load %arg7[%c0_6, %c0_7] : memref<256x64xf32, #tpu.memory_space<vmem>>, vector<256x64xf32>
    tpu.vector_store %arg7[%c0_6, %c0_7], %7 {strides = array<i32>} : memref<256x64xf32, #tpu.memory_space<vmem>>, vector<256x64xf32>,
    %c0_i32_8 = arith.constant 0 : i32
    %9 = arith.cmpi eq, %arg1, %c0_i32_8 : i32
    %10 = arith.extui %9 : i1 to i32
    %c0_i32_9 = arith.constant 0 : i32
    %11 = arith.cmpi ne, %10, %c0_i32_9 : i32
    scf.if %11 {
      %c0_10 = arith.constant 0 : index
      %c0_11 = arith.constant 0 : index
      %12 = vector.load %arg7[%c0_10, %c0_11] : memref<256x64xf32, #tpu.memory_space<vmem>>, vector<256x64xf32>
      %c0_12 = arith.constant 0 : index
      %c0_13 = arith.constant 0 : index
      %13 = vector.load %arg4[%c0_12, %c0_13] : memref<256x64xf32, #tpu.memory_space<vmem>>, vector<256x64xf32>
      tpu.vector_store %arg4[%c0_12, %c0_13], %12 {strides = array<i32>} : memref<256x64xf32, #tpu.memory_space<vmem>>, vector<256x64xf32>,
      %cst_14 = arith.constant dense<0.000000e+00> : vector<64xf32>
      %14 = vector.multi_reduction <add>, %12, %cst_14 [0] : vector<256x64xf32> to vector<64xf32>
      %15 = vector.shape_cast %14 : vector<64xf32> to vector<1x64xf32>
      %16 = arith.mulf %12, %12 : vector<256x64xf32>
      %cst_15 = arith.constant dense<0.000000e+00> : vector<64xf32>
      %17 = vector.multi_reduction <add>, %16, %cst_15 [0] : vector<256x64xf32> to vector<64xf32>
      %18 = vector.shape_cast %17 : vector<64xf32> to vector<1x64xf32>
      %19 = vector.shape_cast %15 : vector<1x64xf32> to vector<1x64xf32>
      %20 = vector.broadcast %19 : vector<1x64xf32> to vector<8x64xf32>
      %c0_16 = arith.constant 0 : index
      %c0_17 = arith.constant 0 : index
      %21 = vector.load %arg5[%c0_16, %c0_17] : memref<8x64xf32, #tpu.memory_space<vmem>>, vector<8x64xf32>
      tpu.vector_store %arg5[%c0_16, %c0_17], %20 {strides = array<i32>} : memref<8x64xf32, #tpu.memory_space<vmem>>, vector<8x64xf32>,
      %22 = vector.shape_cast %18 : vector<1x64xf32> to vector<1x64xf32>
      %23 = vector.broadcast %22 : vector<1x64xf32> to vector<8x64xf32>
      %c0_18 = arith.constant 0 : index
      %c0_19 = arith.constant 0 : index
      %24 = vector.load %arg6[%c0_18, %c0_19] : memref<8x64xf32, #tpu.memory_space<vmem>>, vector<8x64xf32>
      tpu.vector_store %arg6[%c0_18, %c0_19], %23 {strides = array<i32>} : memref<8x64xf32, #tpu.memory_space<vmem>>, vector<8x64xf32>,
    } else {
    }
    return
  }
  func.func @transform_0(%arg0: i32, %arg1: i32) -> (i32, i32) {
    %c0_i32 = arith.constant 0 : i32
    return %arg0, %arg1 : i32, i32
  }
  func.func @transform_1(%arg0: i32, %arg1: i32) -> (i32, i32) {
    %c0_i32 = arith.constant 0 : i32
    %c0_i32_0 = arith.constant 0 : i32
    return %arg1, %c0_i32 : i32, i32
  }
  func.func @transform_2(%arg0: i32, %arg1: i32) -> (i32, i32) {
    %c0_i32 = arith.constant 0 : i32
    %c0_i32_0 = arith.constant 0 : i32
    return %arg0, %c0_i32 : i32, i32
  }
  func.func @transform_3(%arg0: i32, %arg1: i32) -> (i32, i32) {
    %c0_i32 = arith.constant 0 : i32
    %c0_i32_0 = arith.constant 0 : i32
    return %arg0, %c0_i32 : i32, i32
  }
  func.func @transform_4(%arg0: i32, %arg1: i32) -> (i32, i32) {
    %c0_i32 = arith.constant 0 : i32
    %c0_i32_0 = arith.constant 0 : i32
    return %arg0, %c0_i32 : i32, i32
  }
}

module attributes {stable_mosaic.version = 11 : i64} {
  func.func @kernel(%arg0: i32, %arg1: memref<256x64xf32, #tpu.memory_space<vmem>>, %arg2: memref<16x64xf32, #tpu.memory_space<vmem>>, %arg3: memref<16x64xf32, #tpu.memory_space<vmem>>, %arg4: memref<1x64xf32, #tpu.memory_space<vmem>>, %arg5: memref<1x64xf32, #tpu.memory_space<vmem>>, %arg6: memref<256x64xbf16, #tpu.memory_space<vmem>>) attributes {dimension_semantics = [#tpu.dimension_semantics<parallel>], iteration_bounds = array<i64: 2>, scalar_prefetch = 0 : i64, scratch_operands = 0 : i64, tpu.core_type = #tpu.core_type<tc>, window_params = [{transform_indices = @transform_0, window_bounds = array<i64: 256, 64>}, {pipeline_mode = #tpu.pipeline_mode<synchronous>, transform_indices = @transform_1, window_bounds = array<i64: 16, 64>}, {pipeline_mode = #tpu.pipeline_mode<synchronous>, transform_indices = @transform_2, window_bounds = array<i64: 16, 64>}, {pipeline_mode = #tpu.pipeline_mode<synchronous>, transform_indices = @transform_3, window_bounds = array<i64: 1, 64>}, {pipeline_mode = #tpu.pipeline_mode<synchronous>, transform_indices = @transform_4, window_bounds = array<i64: 1, 64>}, {transform_indices = @transform_5, window_bounds = array<i64: 256, 64>}]} {
    %c0 = arith.constant 0 : index
    %c0_0 = arith.constant 0 : index
    %0 = vector.load %arg2[%c0, %c0_0] : memref<16x64xf32, #tpu.memory_space<vmem>>, vector<16x64xf32>
    %cst = arith.constant dense<0.000000e+00> : vector<64xf32>
    %1 = vector.multi_reduction <add>, %0, %cst [0] : vector<16x64xf32> to vector<64xf32>
    %2 = vector.shape_cast %1 : vector<64xf32> to vector<1x64xf32>
    %cst_1 = arith.constant 2.44140625E-4 : f32
    %3 = vector.broadcast %cst_1 : f32 to vector<1x64xf32>
    %4 = arith.mulf %2, %3 : vector<1x64xf32>
    %c0_2 = arith.constant 0 : index
    %c0_3 = arith.constant 0 : index
    %5 = vector.load %arg3[%c0_2, %c0_3] : memref<16x64xf32, #tpu.memory_space<vmem>>, vector<16x64xf32>
    %cst_4 = arith.constant dense<0.000000e+00> : vector<64xf32>
    %6 = vector.multi_reduction <add>, %5, %cst_4 [0] : vector<16x64xf32> to vector<64xf32>
    %7 = vector.shape_cast %6 : vector<64xf32> to vector<1x64xf32>
    %cst_5 = arith.constant 2.44140625E-4 : f32
    %8 = vector.broadcast %cst_5 : f32 to vector<1x64xf32>
    %9 = arith.mulf %7, %8 : vector<1x64xf32>
    %10 = arith.mulf %4, %4 : vector<1x64xf32>
    %11 = arith.subf %9, %10 : vector<1x64xf32>
    %cst_6 = arith.constant 0.000000e+00 : f32
    %12 = vector.broadcast %cst_6 : f32 to vector<1x64xf32>
    %13 = arith.maximumf %11, %12 : vector<1x64xf32>
    %c0_7 = arith.constant 0 : index
    %c0_8 = arith.constant 0 : index
    %14 = vector.load %arg4[%c0_7, %c0_8] : memref<1x64xf32, #tpu.memory_space<vmem>>, vector<1x64xf32>
    %cst_9 = arith.constant 9.99999974E-6 : f32
    %15 = vector.broadcast %cst_9 : f32 to vector<1x64xf32>
    %16 = arith.addf %13, %15 : vector<1x64xf32>
    %17 = math.rsqrt %16 : vector<1x64xf32>
    %18 = arith.mulf %14, %17 : vector<1x64xf32>
    %c0_10 = arith.constant 0 : index
    %c0_11 = arith.constant 0 : index
    %19 = vector.load %arg5[%c0_10, %c0_11] : memref<1x64xf32, #tpu.memory_space<vmem>>, vector<1x64xf32>
    %20 = arith.mulf %4, %18 : vector<1x64xf32>
    %21 = arith.subf %19, %20 : vector<1x64xf32>
    %c0_12 = arith.constant 0 : index
    %c0_13 = arith.constant 0 : index
    %22 = vector.load %arg1[%c0_12, %c0_13] : memref<256x64xf32, #tpu.memory_space<vmem>>, vector<256x64xf32>
    %23 = vector.broadcast %18 : vector<1x64xf32> to vector<256x64xf32>
    %24 = arith.mulf %22, %23 : vector<256x64xf32>
    %25 = vector.broadcast %21 : vector<1x64xf32> to vector<256x64xf32>
    %26 = arith.addf %24, %25 : vector<256x64xf32>
    %cst_14 = arith.constant 0.000000e+00 : f32
    %27 = vector.broadcast %cst_14 : f32 to vector<256x64xf32>
    %28 = arith.maximumf %26, %27 : vector<256x64xf32>
    %29 = arith.truncf %28 : vector<256x64xf32> to vector<256x64xbf16>
    %c0_15 = arith.constant 0 : index
    %c0_16 = arith.constant 0 : index
    %30 = vector.load %arg6[%c0_15, %c0_16] : memref<256x64xbf16, #tpu.memory_space<vmem>>, vector<256x64xbf16>
    tpu.vector_store %arg6[%c0_15, %c0_16], %29 {strides = array<i32>} : memref<256x64xbf16, #tpu.memory_space<vmem>>, vector<256x64xbf16>,
    return
  }
  func.func @transform_0(%arg0: i32) -> (i32, i32) {
    %c0_i32 = arith.constant 0 : i32
    %c0_i32_0 = arith.constant 0 : i32
    return %arg0, %c0_i32 : i32, i32
  }
  func.func @transform_1(%arg0: i32) -> (i32, i32) {
    %c0_i32 = arith.constant 0 : i32
    %c0_i32_0 = arith.constant 0 : i32
    %c0_i32_1 = arith.constant 0 : i32
    return %c0_i32, %c0_i32_0 : i32, i32
  }
  func.func @transform_2(%arg0: i32) -> (i32, i32) {
    %c0_i32 = arith.constant 0 : i32
    %c0_i32_0 = arith.constant 0 : i32
    %c0_i32_1 = arith.constant 0 : i32
    return %c0_i32, %c0_i32_0 : i32, i32
  }
  func.func @transform_3(%arg0: i32) -> (i32, i32) {
    %c0_i32 = arith.constant 0 : i32
    %c0_i32_0 = arith.constant 0 : i32
    %c0_i32_1 = arith.constant 0 : i32
    return %c0_i32, %c0_i32_0 : i32, i32
  }
  func.func @transform_4(%arg0: i32) -> (i32, i32) {
    %c0_i32 = arith.constant 0 : i32
    %c0_i32_0 = arith.constant 0 : i32
    %c0_i32_1 = arith.constant 0 : i32
    return %c0_i32, %c0_i32_0 : i32, i32
  }
  func.func @transform_5(%arg0: i32) -> (i32, i32) {
    %c0_i32 = arith.constant 0 : i32
    %c0_i32_0 = arith.constant 0 : i32
    return %arg0, %c0_i32 : i32, i32
  }
}

module attributes {stable_mosaic.version = 11 : i64} {
  func.func @_maxpool_kernel(%arg0: i32, %arg1: memref<9x128x64xbf16, #tpu.memory_space<vmem>>, %arg2: memref<128x64xbf16, #tpu.memory_space<vmem>>) attributes {dimension_semantics = [#tpu.dimension_semantics<parallel>], iteration_bounds = array<i64: 1>, scalar_prefetch = 0 : i64, scratch_operands = 0 : i64, tpu.core_type = #tpu.core_type<tc>, window_params = [{transform_indices = @transform_0, window_bounds = array<i64: 9, 128, 64>}, {transform_indices = @transform_1, window_bounds = array<i64: 128, 64>}]} {
    %c0 = arith.constant 0 : index
    %c0_0 = arith.constant 0 : index
    %c0_1 = arith.constant 0 : index
    %0 = vector.load %arg1[%c0, %c0_0, %c0_1] : memref<9x128x64xbf16, #tpu.memory_space<vmem>>, vector<9x128x64xbf16>
    %cst = arith.constant dense<0xFF80> : vector<128x64xbf16>
    %1 = vector.multi_reduction <maximumf>, %0, %cst [0] : vector<9x128x64xbf16> to vector<128x64xbf16>
    %c0_2 = arith.constant 0 : index
    %c0_3 = arith.constant 0 : index
    %2 = vector.load %arg2[%c0_2, %c0_3] : memref<128x64xbf16, #tpu.memory_space<vmem>>, vector<128x64xbf16>
    tpu.vector_store %arg2[%c0_2, %c0_3], %1 {strides = array<i32>} : memref<128x64xbf16, #tpu.memory_space<vmem>>, vector<128x64xbf16>,
    return
  }
  func.func @transform_0(%arg0: i32) -> (i32, i32, i32) {
    %c0_i32 = arith.constant 0 : i32
    %c0_i32_0 = arith.constant 0 : i32
    %c0_i32_1 = arith.constant 0 : i32
    return %c0_i32, %arg0, %c0_i32_0 : i32, i32, i32
  }
  func.func @transform_1(%arg0: i32) -> (i32, i32) {
    %c0_i32 = arith.constant 0 : i32
    %c0_i32_0 = arith.constant 0 : i32
    return %arg0, %c0_i32 : i32, i32
  }
}

module attributes {stable_mosaic.version = 11 : i64} {
  func.func @_conv_matmul_kernel(%arg0: i32, %arg1: i32, %arg2: memref<128x576xbf16, #tpu.memory_space<vmem>>, %arg3: memref<576x64xbf16, #tpu.memory_space<vmem>>, %arg4: memref<128x64xf32, #tpu.memory_space<vmem>>, %arg5: memref<8x64xf32, #tpu.memory_space<vmem>>, %arg6: memref<8x64xf32, #tpu.memory_space<vmem>>, %arg7: memref<128x64xf32, #tpu.memory_space<vmem>>) attributes {dimension_semantics = [#tpu.dimension_semantics<parallel>, #tpu.dimension_semantics<arbitrary>], iteration_bounds = array<i64: 1, 1>, scalar_prefetch = 0 : i64, scratch_operands = 1 : i64, tpu.core_type = #tpu.core_type<tc>, window_params = [{transform_indices = @transform_0, window_bounds = array<i64: 128, 576>}, {transform_indices = @transform_1, window_bounds = array<i64: 576, 64>}, {transform_indices = @transform_2, window_bounds = array<i64: 128, 64>}, {transform_indices = @transform_3, window_bounds = array<i64: 8, 64>}, {transform_indices = @transform_4, window_bounds = array<i64: 8, 64>}]} {
    %c0_i32 = arith.constant 0 : i32
    %0 = arith.cmpi eq, %arg1, %c0_i32 : i32
    %1 = arith.extui %0 : i1 to i32
    %c0_i32_0 = arith.constant 0 : i32
    %2 = arith.cmpi ne, %1, %c0_i32_0 : i32
    scf.if %2 {
      %cst_10 = arith.constant 0.000000e+00 : f32
      %12 = vector.broadcast %cst_10 : f32 to vector<128x64xf32>
      %c0_11 = arith.constant 0 : index
      %c0_12 = arith.constant 0 : index
      %13 = vector.load %arg7[%c0_11, %c0_12] : memref<128x64xf32, #tpu.memory_space<vmem>>, vector<128x64xf32>
      tpu.vector_store %arg7[%c0_11, %c0_12], %12 {strides = array<i32>} : memref<128x64xf32, #tpu.memory_space<vmem>>, vector<128x64xf32>,
    } else {
    }
    %c0 = arith.constant 0 : index
    %c0_1 = arith.constant 0 : index
    %3 = vector.load %arg7[%c0, %c0_1] : memref<128x64xf32, #tpu.memory_space<vmem>>, vector<128x64xf32>
    %c0_2 = arith.constant 0 : index
    %c0_3 = arith.constant 0 : index
    %4 = vector.load %arg2[%c0_2, %c0_3] : memref<128x576xbf16, #tpu.memory_space<vmem>>, vector<128x576xbf16>
    %c0_4 = arith.constant 0 : index
    %c0_5 = arith.constant 0 : index
    %5 = vector.load %arg3[%c0_4, %c0_5] : memref<576x64xbf16, #tpu.memory_space<vmem>>, vector<576x64xbf16>
    %cst = arith.constant dense<0.000000e+00> : vector<128x64xf32>
    %6 = tpu.matmul %4, %5, %cst {dimension_numbers = #tpu.dot_dimension_numbers<[1], [0], [0], [1], [0, 0, 1, 1], [], []>} : vector<128x576xbf16>, vector<576x64xbf16>, vector<128x64xf32> -> vector<128x64xf32>
    %7 = arith.addf %3, %6 : vector<128x64xf32>
    %c0_6 = arith.constant 0 : index
    %c0_7 = arith.constant 0 : index
    %8 = vector.load %arg7[%c0_6, %c0_7] : memref<128x64xf32, #tpu.memory_space<vmem>>, vector<128x64xf32>
    tpu.vector_store %arg7[%c0_6, %c0_7], %7 {strides = array<i32>} : memref<128x64xf32, #tpu.memory_space<vmem>>, vector<128x64xf32>,
    %c0_i32_8 = arith.constant 0 : i32
    %9 = arith.cmpi eq, %arg1, %c0_i32_8 : i32
    %10 = arith.extui %9 : i1 to i32
    %c0_i32_9 = arith.constant 0 : i32
    %11 = arith.cmpi ne, %10, %c0_i32_9 : i32
    scf.if %11 {
      %c0_10 = arith.constant 0 : index
      %c0_11 = arith.constant 0 : index
      %12 = vector.load %arg7[%c0_10, %c0_11] : memref<128x64xf32, #tpu.memory_space<vmem>>, vector<128x64xf32>
      %c0_12 = arith.constant 0 : index
      %c0_13 = arith.constant 0 : index
      %13 = vector.load %arg4[%c0_12, %c0_13] : memref<128x64xf32, #tpu.memory_space<vmem>>, vector<128x64xf32>
      tpu.vector_store %arg4[%c0_12, %c0_13], %12 {strides = array<i32>} : memref<128x64xf32, #tpu.memory_space<vmem>>, vector<128x64xf32>,
      %cst_14 = arith.constant dense<0.000000e+00> : vector<64xf32>
      %14 = vector.multi_reduction <add>, %12, %cst_14 [0] : vector<128x64xf32> to vector<64xf32>
      %15 = vector.shape_cast %14 : vector<64xf32> to vector<1x64xf32>
      %16 = arith.mulf %12, %12 : vector<128x64xf32>
      %cst_15 = arith.constant dense<0.000000e+00> : vector<64xf32>
      %17 = vector.multi_reduction <add>, %16, %cst_15 [0] : vector<128x64xf32> to vector<64xf32>
      %18 = vector.shape_cast %17 : vector<64xf32> to vector<1x64xf32>
      %19 = vector.shape_cast %15 : vector<1x64xf32> to vector<1x64xf32>
      %20 = vector.broadcast %19 : vector<1x64xf32> to vector<8x64xf32>
      %c0_16 = arith.constant 0 : index
      %c0_17 = arith.constant 0 : index
      %21 = vector.load %arg5[%c0_16, %c0_17] : memref<8x64xf32, #tpu.memory_space<vmem>>, vector<8x64xf32>
      tpu.vector_store %arg5[%c0_16, %c0_17], %20 {strides = array<i32>} : memref<8x64xf32, #tpu.memory_space<vmem>>, vector<8x64xf32>,
      %22 = vector.shape_cast %18 : vector<1x64xf32> to vector<1x64xf32>
      %23 = vector.broadcast %22 : vector<1x64xf32> to vector<8x64xf32>
      %c0_18 = arith.constant 0 : index
      %c0_19 = arith.constant 0 : index
      %24 = vector.load %arg6[%c0_18, %c0_19] : memref<8x64xf32, #tpu.memory_space<vmem>>, vector<8x64xf32>
      tpu.vector_store %arg6[%c0_18, %c0_19], %23 {strides = array<i32>} : memref<8x64xf32, #tpu.memory_space<vmem>>, vector<8x64xf32>,
    } else {
    }
    return
  }
  func.func @transform_0(%arg0: i32, %arg1: i32) -> (i32, i32) {
    %c0_i32 = arith.constant 0 : i32
    return %arg0, %arg1 : i32, i32
  }
  func.func @transform_1(%arg0: i32, %arg1: i32) -> (i32, i32) {
    %c0_i32 = arith.constant 0 : i32
    %c0_i32_0 = arith.constant 0 : i32
    return %arg1, %c0_i32 : i32, i32
  }
  func.func @transform_2(%arg0: i32, %arg1: i32) -> (i32, i32) {
    %c0_i32 = arith.constant 0 : i32
    %c0_i32_0 = arith.constant 0 : i32
    return %arg0, %c0_i32 : i32, i32
  }
  func.func @transform_3(%arg0: i32, %arg1: i32) -> (i32, i32) {
    %c0_i32 = arith.constant 0 : i32
    %c0_i32_0 = arith.constant 0 : i32
    return %arg0, %c0_i32 : i32, i32
  }
  func.func @transform_4(%arg0: i32, %arg1: i32) -> (i32, i32) {
    %c0_i32 = arith.constant 0 : i32
    %c0_i32_0 = arith.constant 0 : i32
    return %arg0, %c0_i32 : i32, i32
  }
}

module attributes {stable_mosaic.version = 11 : i64} {
  func.func @kernel(%arg0: i32, %arg1: memref<128x64xf32, #tpu.memory_space<vmem>>, %arg2: memref<8x64xf32, #tpu.memory_space<vmem>>, %arg3: memref<8x64xf32, #tpu.memory_space<vmem>>, %arg4: memref<1x64xf32, #tpu.memory_space<vmem>>, %arg5: memref<1x64xf32, #tpu.memory_space<vmem>>, %arg6: memref<128x64xbf16, #tpu.memory_space<vmem>>) attributes {dimension_semantics = [#tpu.dimension_semantics<parallel>], iteration_bounds = array<i64: 1>, scalar_prefetch = 0 : i64, scratch_operands = 0 : i64, tpu.core_type = #tpu.core_type<tc>, window_params = [{transform_indices = @transform_0, window_bounds = array<i64: 128, 64>}, {pipeline_mode = #tpu.pipeline_mode<synchronous>, transform_indices = @transform_1, window_bounds = array<i64: 8, 64>}, {pipeline_mode = #tpu.pipeline_mode<synchronous>, transform_indices = @transform_2, window_bounds = array<i64: 8, 64>}, {pipeline_mode = #tpu.pipeline_mode<synchronous>, transform_indices = @transform_3, window_bounds = array<i64: 1, 64>}, {pipeline_mode = #tpu.pipeline_mode<synchronous>, transform_indices = @transform_4, window_bounds = array<i64: 1, 64>}, {transform_indices = @transform_5, window_bounds = array<i64: 128, 64>}]} {
    %c0 = arith.constant 0 : index
    %c0_0 = arith.constant 0 : index
    %0 = vector.load %arg2[%c0, %c0_0] : memref<8x64xf32, #tpu.memory_space<vmem>>, vector<8x64xf32>
    %cst = arith.constant dense<0.000000e+00> : vector<64xf32>
    %1 = vector.multi_reduction <add>, %0, %cst [0] : vector<8x64xf32> to vector<64xf32>
    %2 = vector.shape_cast %1 : vector<64xf32> to vector<1x64xf32>
    %cst_1 = arith.constant 9.765625E-4 : f32
    %3 = vector.broadcast %cst_1 : f32 to vector<1x64xf32>
    %4 = arith.mulf %2, %3 : vector<1x64xf32>
    %c0_2 = arith.constant 0 : index
    %c0_3 = arith.constant 0 : index
    %5 = vector.load %arg3[%c0_2, %c0_3] : memref<8x64xf32, #tpu.memory_space<vmem>>, vector<8x64xf32>
    %cst_4 = arith.constant dense<0.000000e+00> : vector<64xf32>
    %6 = vector.multi_reduction <add>, %5, %cst_4 [0] : vector<8x64xf32> to vector<64xf32>
    %7 = vector.shape_cast %6 : vector<64xf32> to vector<1x64xf32>
    %cst_5 = arith.constant 9.765625E-4 : f32
    %8 = vector.broadcast %cst_5 : f32 to vector<1x64xf32>
    %9 = arith.mulf %7, %8 : vector<1x64xf32>
    %10 = arith.mulf %4, %4 : vector<1x64xf32>
    %11 = arith.subf %9, %10 : vector<1x64xf32>
    %cst_6 = arith.constant 0.000000e+00 : f32
    %12 = vector.broadcast %cst_6 : f32 to vector<1x64xf32>
    %13 = arith.maximumf %11, %12 : vector<1x64xf32>
    %c0_7 = arith.constant 0 : index
    %c0_8 = arith.constant 0 : index
    %14 = vector.load %arg4[%c0_7, %c0_8] : memref<1x64xf32, #tpu.memory_space<vmem>>, vector<1x64xf32>
    %cst_9 = arith.constant 9.99999974E-6 : f32
    %15 = vector.broadcast %cst_9 : f32 to vector<1x64xf32>
    %16 = arith.addf %13, %15 : vector<1x64xf32>
    %17 = math.rsqrt %16 : vector<1x64xf32>
    %18 = arith.mulf %14, %17 : vector<1x64xf32>
    %c0_10 = arith.constant 0 : index
    %c0_11 = arith.constant 0 : index
    %19 = vector.load %arg5[%c0_10, %c0_11] : memref<1x64xf32, #tpu.memory_space<vmem>>, vector<1x64xf32>
    %20 = arith.mulf %4, %18 : vector<1x64xf32>
    %21 = arith.subf %19, %20 : vector<1x64xf32>
    %c0_12 = arith.constant 0 : index
    %c0_13 = arith.constant 0 : index
    %22 = vector.load %arg1[%c0_12, %c0_13] : memref<128x64xf32, #tpu.memory_space<vmem>>, vector<128x64xf32>
    %23 = vector.broadcast %18 : vector<1x64xf32> to vector<128x64xf32>
    %24 = arith.mulf %22, %23 : vector<128x64xf32>
    %25 = vector.broadcast %21 : vector<1x64xf32> to vector<128x64xf32>
    %26 = arith.addf %24, %25 : vector<128x64xf32>
    %cst_14 = arith.constant 0.000000e+00 : f32
    %27 = vector.broadcast %cst_14 : f32 to vector<128x64xf32>
    %28 = arith.maximumf %26, %27 : vector<128x64xf32>
    %29 = arith.truncf %28 : vector<128x64xf32> to vector<128x64xbf16>
    %c0_15 = arith.constant 0 : index
    %c0_16 = arith.constant 0 : index
    %30 = vector.load %arg6[%c0_15, %c0_16] : memref<128x64xbf16, #tpu.memory_space<vmem>>, vector<128x64xbf16>
    tpu.vector_store %arg6[%c0_15, %c0_16], %29 {strides = array<i32>} : memref<128x64xbf16, #tpu.memory_space<vmem>>, vector<128x64xbf16>,
    return
  }
  func.func @transform_0(%arg0: i32) -> (i32, i32) {
    %c0_i32 = arith.constant 0 : i32
    %c0_i32_0 = arith.constant 0 : i32
    return %arg0, %c0_i32 : i32, i32
  }
  func.func @transform_1(%arg0: i32) -> (i32, i32) {
    %c0_i32 = arith.constant 0 : i32
    %c0_i32_0 = arith.constant 0 : i32
    %c0_i32_1 = arith.constant 0 : i32
    return %c0_i32, %c0_i32_0 : i32, i32
  }
  func.func @transform_2(%arg0: i32) -> (i32, i32) {
    %c0_i32 = arith.constant 0 : i32
    %c0_i32_0 = arith.constant 0 : i32
    %c0_i32_1 = arith.constant 0 : i32
    return %c0_i32, %c0_i32_0 : i32, i32
  }
  func.func @transform_3(%arg0: i32) -> (i32, i32) {
    %c0_i32 = arith.constant 0 : i32
    %c0_i32_0 = arith.constant 0 : i32
    %c0_i32_1 = arith.constant 0 : i32
    return %c0_i32, %c0_i32_0 : i32, i32
  }
  func.func @transform_4(%arg0: i32) -> (i32, i32) {
    %c0_i32 = arith.constant 0 : i32
    %c0_i32_0 = arith.constant 0 : i32
    %c0_i32_1 = arith.constant 0 : i32
    return %c0_i32, %c0_i32_0 : i32, i32
  }
  func.func @transform_5(%arg0: i32) -> (i32, i32) {
    %c0_i32 = arith.constant 0 : i32
    %c0_i32_0 = arith.constant 0 : i32
    return %arg0, %c0_i32 : i32, i32
  }
}

module attributes {stable_mosaic.version = 11 : i64} {
  func.func @kernel(%arg0: i32, %arg1: memref<128x64xf32, #tpu.memory_space<vmem>>, %arg2: memref<8x64xf32, #tpu.memory_space<vmem>>, %arg3: memref<8x64xf32, #tpu.memory_space<vmem>>, %arg4: memref<1x64xf32, #tpu.memory_space<vmem>>, %arg5: memref<1x64xf32, #tpu.memory_space<vmem>>, %arg6: memref<128x64xbf16, #tpu.memory_space<vmem>>, %arg7: memref<128x64xbf16, #tpu.memory_space<vmem>>) attributes {dimension_semantics = [#tpu.dimension_semantics<parallel>], iteration_bounds = array<i64: 1>, scalar_prefetch = 0 : i64, scratch_operands = 0 : i64, tpu.core_type = #tpu.core_type<tc>, window_params = [{transform_indices = @transform_0, window_bounds = array<i64: 128, 64>}, {pipeline_mode = #tpu.pipeline_mode<synchronous>, transform_indices = @transform_1, window_bounds = array<i64: 8, 64>}, {pipeline_mode = #tpu.pipeline_mode<synchronous>, transform_indices = @transform_2, window_bounds = array<i64: 8, 64>}, {pipeline_mode = #tpu.pipeline_mode<synchronous>, transform_indices = @transform_3, window_bounds = array<i64: 1, 64>}, {pipeline_mode = #tpu.pipeline_mode<synchronous>, transform_indices = @transform_4, window_bounds = array<i64: 1, 64>}, {transform_indices = @transform_5, window_bounds = array<i64: 128, 64>}, {transform_indices = @transform_6, window_bounds = array<i64: 128, 64>}]} {
    %c0 = arith.constant 0 : index
    %c0_0 = arith.constant 0 : index
    %0 = vector.load %arg2[%c0, %c0_0] : memref<8x64xf32, #tpu.memory_space<vmem>>, vector<8x64xf32>
    %cst = arith.constant dense<0.000000e+00> : vector<64xf32>
    %1 = vector.multi_reduction <add>, %0, %cst [0] : vector<8x64xf32> to vector<64xf32>
    %2 = vector.shape_cast %1 : vector<64xf32> to vector<1x64xf32>
    %cst_1 = arith.constant 9.765625E-4 : f32
    %3 = vector.broadcast %cst_1 : f32 to vector<1x64xf32>
    %4 = arith.mulf %2, %3 : vector<1x64xf32>
    %c0_2 = arith.constant 0 : index
    %c0_3 = arith.constant 0 : index
    %5 = vector.load %arg3[%c0_2, %c0_3] : memref<8x64xf32, #tpu.memory_space<vmem>>, vector<8x64xf32>
    %cst_4 = arith.constant dense<0.000000e+00> : vector<64xf32>
    %6 = vector.multi_reduction <add>, %5, %cst_4 [0] : vector<8x64xf32> to vector<64xf32>
    %7 = vector.shape_cast %6 : vector<64xf32> to vector<1x64xf32>
    %cst_5 = arith.constant 9.765625E-4 : f32
    %8 = vector.broadcast %cst_5 : f32 to vector<1x64xf32>
    %9 = arith.mulf %7, %8 : vector<1x64xf32>
    %10 = arith.mulf %4, %4 : vector<1x64xf32>
    %11 = arith.subf %9, %10 : vector<1x64xf32>
    %cst_6 = arith.constant 0.000000e+00 : f32
    %12 = vector.broadcast %cst_6 : f32 to vector<1x64xf32>
    %13 = arith.maximumf %11, %12 : vector<1x64xf32>
    %c0_7 = arith.constant 0 : index
    %c0_8 = arith.constant 0 : index
    %14 = vector.load %arg4[%c0_7, %c0_8] : memref<1x64xf32, #tpu.memory_space<vmem>>, vector<1x64xf32>
    %cst_9 = arith.constant 9.99999974E-6 : f32
    %15 = vector.broadcast %cst_9 : f32 to vector<1x64xf32>
    %16 = arith.addf %13, %15 : vector<1x64xf32>
    %17 = math.rsqrt %16 : vector<1x64xf32>
    %18 = arith.mulf %14, %17 : vector<1x64xf32>
    %c0_10 = arith.constant 0 : index
    %c0_11 = arith.constant 0 : index
    %19 = vector.load %arg5[%c0_10, %c0_11] : memref<1x64xf32, #tpu.memory_space<vmem>>, vector<1x64xf32>
    %20 = arith.mulf %4, %18 : vector<1x64xf32>
    %21 = arith.subf %19, %20 : vector<1x64xf32>
    %c0_12 = arith.constant 0 : index
    %c0_13 = arith.constant 0 : index
    %22 = vector.load %arg1[%c0_12, %c0_13] : memref<128x64xf32, #tpu.memory_space<vmem>>, vector<128x64xf32>
    %23 = vector.broadcast %18 : vector<1x64xf32> to vector<128x64xf32>
    %24 = arith.mulf %22, %23 : vector<128x64xf32>
    %25 = vector.broadcast %21 : vector<1x64xf32> to vector<128x64xf32>
    %26 = arith.addf %24, %25 : vector<128x64xf32>
    %c0_14 = arith.constant 0 : index
    %c0_15 = arith.constant 0 : index
    %27 = vector.load %arg6[%c0_14, %c0_15] : memref<128x64xbf16, #tpu.memory_space<vmem>>, vector<128x64xbf16>
    %28 = arith.extf %27 : vector<128x64xbf16> to vector<128x64xf32>
    %29 = arith.addf %26, %28 : vector<128x64xf32>
    %cst_16 = arith.constant 0.000000e+00 : f32
    %30 = vector.broadcast %cst_16 : f32 to vector<128x64xf32>
    %31 = arith.maximumf %29, %30 : vector<128x64xf32>
    %32 = arith.truncf %31 : vector<128x64xf32> to vector<128x64xbf16>
    %c0_17 = arith.constant 0 : index
    %c0_18 = arith.constant 0 : index
    %33 = vector.load %arg7[%c0_17, %c0_18] : memref<128x64xbf16, #tpu.memory_space<vmem>>, vector<128x64xbf16>
    tpu.vector_store %arg7[%c0_17, %c0_18], %32 {strides = array<i32>} : memref<128x64xbf16, #tpu.memory_space<vmem>>, vector<128x64xbf16>,
    return
  }
  func.func @transform_0(%arg0: i32) -> (i32, i32) {
    %c0_i32 = arith.constant 0 : i32
    %c0_i32_0 = arith.constant 0 : i32
    return %arg0, %c0_i32 : i32, i32
  }
  func.func @transform_1(%arg0: i32) -> (i32, i32) {
    %c0_i32 = arith.constant 0 : i32
    %c0_i32_0 = arith.constant 0 : i32
    %c0_i32_1 = arith.constant 0 : i32
    return %c0_i32, %c0_i32_0 : i32, i32
  }
  func.func @transform_2(%arg0: i32) -> (i32, i32) {
    %c0_i32 = arith.constant 0 : i32
    %c0_i32_0 = arith.constant 0 : i32
    %c0_i32_1 = arith.constant 0 : i32
    return %c0_i32, %c0_i32_0 : i32, i32
  }
  func.func @transform_3(%arg0: i32) -> (i32, i32) {
    %c0_i32 = arith.constant 0 : i32
    %c0_i32_0 = arith.constant 0 : i32
    %c0_i32_1 = arith.constant 0 : i32
    return %c0_i32, %c0_i32_0 : i32, i32
  }
  func.func @transform_4(%arg0: i32) -> (i32, i32) {
    %c0_i32 = arith.constant 0 : i32
    %c0_i32_0 = arith.constant 0 : i32
    %c0_i32_1 = arith.constant 0 : i32
    return %c0_i32, %c0_i32_0 : i32, i32
  }
  func.func @transform_5(%arg0: i32) -> (i32, i32) {
    %c0_i32 = arith.constant 0 : i32
    %c0_i32_0 = arith.constant 0 : i32
    return %arg0, %c0_i32 : i32, i32
  }
  func.func @transform_6(%arg0: i32) -> (i32, i32) {
    %c0_i32 = arith.constant 0 : i32
    %c0_i32_0 = arith.constant 0 : i32
    return %arg0, %c0_i32 : i32, i32
  }
}

module attributes {stable_mosaic.version = 11 : i64} {
  func.func @_conv_matmul_kernel(%arg0: i32, %arg1: i32, %arg2: memref<32x576xbf16, #tpu.memory_space<vmem>>, %arg3: memref<576x128xbf16, #tpu.memory_space<vmem>>, %arg4: memref<32x128xf32, #tpu.memory_space<vmem>>, %arg5: memref<8x128xf32, #tpu.memory_space<vmem>>, %arg6: memref<8x128xf32, #tpu.memory_space<vmem>>, %arg7: memref<32x128xf32, #tpu.memory_space<vmem>>) attributes {dimension_semantics = [#tpu.dimension_semantics<parallel>, #tpu.dimension_semantics<arbitrary>], iteration_bounds = array<i64: 1, 1>, scalar_prefetch = 0 : i64, scratch_operands = 1 : i64, tpu.core_type = #tpu.core_type<tc>, window_params = [{transform_indices = @transform_0, window_bounds = array<i64: 32, 576>}, {transform_indices = @transform_1, window_bounds = array<i64: 576, 128>}, {transform_indices = @transform_2, window_bounds = array<i64: 32, 128>}, {transform_indices = @transform_3, window_bounds = array<i64: 8, 128>}, {transform_indices = @transform_4, window_bounds = array<i64: 8, 128>}]} {
    %c0_i32 = arith.constant 0 : i32
    %0 = arith.cmpi eq, %arg1, %c0_i32 : i32
    %1 = arith.extui %0 : i1 to i32
    %c0_i32_0 = arith.constant 0 : i32
    %2 = arith.cmpi ne, %1, %c0_i32_0 : i32
    scf.if %2 {
      %cst_10 = arith.constant 0.000000e+00 : f32
      %12 = vector.broadcast %cst_10 : f32 to vector<32x128xf32>
      %c0_11 = arith.constant 0 : index
      %c0_12 = arith.constant 0 : index
      %13 = vector.load %arg7[%c0_11, %c0_12] : memref<32x128xf32, #tpu.memory_space<vmem>>, vector<32x128xf32>
      tpu.vector_store %arg7[%c0_11, %c0_12], %12 {strides = array<i32>} : memref<32x128xf32, #tpu.memory_space<vmem>>, vector<32x128xf32>,
    } else {
    }
    %c0 = arith.constant 0 : index
    %c0_1 = arith.constant 0 : index
    %3 = vector.load %arg7[%c0, %c0_1] : memref<32x128xf32, #tpu.memory_space<vmem>>, vector<32x128xf32>
    %c0_2 = arith.constant 0 : index
    %c0_3 = arith.constant 0 : index
    %4 = vector.load %arg2[%c0_2, %c0_3] : memref<32x576xbf16, #tpu.memory_space<vmem>>, vector<32x576xbf16>
    %c0_4 = arith.constant 0 : index
    %c0_5 = arith.constant 0 : index
    %5 = vector.load %arg3[%c0_4, %c0_5] : memref<576x128xbf16, #tpu.memory_space<vmem>>, vector<576x128xbf16>
    %cst = arith.constant dense<0.000000e+00> : vector<32x128xf32>
    %6 = tpu.matmul %4, %5, %cst {dimension_numbers = #tpu.dot_dimension_numbers<[1], [0], [0], [1], [0, 0, 1, 1], [], []>} : vector<32x576xbf16>, vector<576x128xbf16>, vector<32x128xf32> -> vector<32x128xf32>
    %7 = arith.addf %3, %6 : vector<32x128xf32>
    %c0_6 = arith.constant 0 : index
    %c0_7 = arith.constant 0 : index
    %8 = vector.load %arg7[%c0_6, %c0_7] : memref<32x128xf32, #tpu.memory_space<vmem>>, vector<32x128xf32>
    tpu.vector_store %arg7[%c0_6, %c0_7], %7 {strides = array<i32>} : memref<32x128xf32, #tpu.memory_space<vmem>>, vector<32x128xf32>,
    %c0_i32_8 = arith.constant 0 : i32
    %9 = arith.cmpi eq, %arg1, %c0_i32_8 : i32
    %10 = arith.extui %9 : i1 to i32
    %c0_i32_9 = arith.constant 0 : i32
    %11 = arith.cmpi ne, %10, %c0_i32_9 : i32
    scf.if %11 {
      %c0_10 = arith.constant 0 : index
      %c0_11 = arith.constant 0 : index
      %12 = vector.load %arg7[%c0_10, %c0_11] : memref<32x128xf32, #tpu.memory_space<vmem>>, vector<32x128xf32>
      %c0_12 = arith.constant 0 : index
      %c0_13 = arith.constant 0 : index
      %13 = vector.load %arg4[%c0_12, %c0_13] : memref<32x128xf32, #tpu.memory_space<vmem>>, vector<32x128xf32>
      tpu.vector_store %arg4[%c0_12, %c0_13], %12 {strides = array<i32>} : memref<32x128xf32, #tpu.memory_space<vmem>>, vector<32x128xf32>,
      %cst_14 = arith.constant dense<0.000000e+00> : vector<128xf32>
      %14 = vector.multi_reduction <add>, %12, %cst_14 [0] : vector<32x128xf32> to vector<128xf32>
      %15 = vector.shape_cast %14 : vector<128xf32> to vector<1x128xf32>
      %16 = arith.mulf %12, %12 : vector<32x128xf32>
      %cst_15 = arith.constant dense<0.000000e+00> : vector<128xf32>
      %17 = vector.multi_reduction <add>, %16, %cst_15 [0] : vector<32x128xf32> to vector<128xf32>
      %18 = vector.shape_cast %17 : vector<128xf32> to vector<1x128xf32>
      %19 = vector.shape_cast %15 : vector<1x128xf32> to vector<1x128xf32>
      %20 = vector.broadcast %19 : vector<1x128xf32> to vector<8x128xf32>
      %c0_16 = arith.constant 0 : index
      %c0_17 = arith.constant 0 : index
      %21 = vector.load %arg5[%c0_16, %c0_17] : memref<8x128xf32, #tpu.memory_space<vmem>>, vector<8x128xf32>
      tpu.vector_store %arg5[%c0_16, %c0_17], %20 {strides = array<i32>} : memref<8x128xf32, #tpu.memory_space<vmem>>, vector<8x128xf32>,
      %22 = vector.shape_cast %18 : vector<1x128xf32> to vector<1x128xf32>
      %23 = vector.broadcast %22 : vector<1x128xf32> to vector<8x128xf32>
      %c0_18 = arith.constant 0 : index
      %c0_19 = arith.constant 0 : index
      %24 = vector.load %arg6[%c0_18, %c0_19] : memref<8x128xf32, #tpu.memory_space<vmem>>, vector<8x128xf32>
      tpu.vector_store %arg6[%c0_18, %c0_19], %23 {strides = array<i32>} : memref<8x128xf32, #tpu.memory_space<vmem>>, vector<8x128xf32>,
    } else {
    }
    return
  }
  func.func @transform_0(%arg0: i32, %arg1: i32) -> (i32, i32) {
    %c0_i32 = arith.constant 0 : i32
    return %arg0, %arg1 : i32, i32
  }
  func.func @transform_1(%arg0: i32, %arg1: i32) -> (i32, i32) {
    %c0_i32 = arith.constant 0 : i32
    %c0_i32_0 = arith.constant 0 : i32
    return %arg1, %c0_i32 : i32, i32
  }
  func.func @transform_2(%arg0: i32, %arg1: i32) -> (i32, i32) {
    %c0_i32 = arith.constant 0 : i32
    %c0_i32_0 = arith.constant 0 : i32
    return %arg0, %c0_i32 : i32, i32
  }
  func.func @transform_3(%arg0: i32, %arg1: i32) -> (i32, i32) {
    %c0_i32 = arith.constant 0 : i32
    %c0_i32_0 = arith.constant 0 : i32
    return %arg0, %c0_i32 : i32, i32
  }
  func.func @transform_4(%arg0: i32, %arg1: i32) -> (i32, i32) {
    %c0_i32 = arith.constant 0 : i32
    %c0_i32_0 = arith.constant 0 : i32
    return %arg0, %c0_i32 : i32, i32
  }
}

module attributes {stable_mosaic.version = 11 : i64} {
  func.func @kernel(%arg0: i32, %arg1: memref<32x128xf32, #tpu.memory_space<vmem>>, %arg2: memref<8x128xf32, #tpu.memory_space<vmem>>, %arg3: memref<8x128xf32, #tpu.memory_space<vmem>>, %arg4: memref<1x128xf32, #tpu.memory_space<vmem>>, %arg5: memref<1x128xf32, #tpu.memory_space<vmem>>, %arg6: memref<32x128xbf16, #tpu.memory_space<vmem>>) attributes {dimension_semantics = [#tpu.dimension_semantics<parallel>], iteration_bounds = array<i64: 1>, scalar_prefetch = 0 : i64, scratch_operands = 0 : i64, tpu.core_type = #tpu.core_type<tc>, window_params = [{transform_indices = @transform_0, window_bounds = array<i64: 32, 128>}, {pipeline_mode = #tpu.pipeline_mode<synchronous>, transform_indices = @transform_1, window_bounds = array<i64: 8, 128>}, {pipeline_mode = #tpu.pipeline_mode<synchronous>, transform_indices = @transform_2, window_bounds = array<i64: 8, 128>}, {pipeline_mode = #tpu.pipeline_mode<synchronous>, transform_indices = @transform_3, window_bounds = array<i64: 1, 128>}, {pipeline_mode = #tpu.pipeline_mode<synchronous>, transform_indices = @transform_4, window_bounds = array<i64: 1, 128>}, {transform_indices = @transform_5, window_bounds = array<i64: 32, 128>}]} {
    %c0 = arith.constant 0 : index
    %c0_0 = arith.constant 0 : index
    %0 = vector.load %arg2[%c0, %c0_0] : memref<8x128xf32, #tpu.memory_space<vmem>>, vector<8x128xf32>
    %cst = arith.constant dense<0.000000e+00> : vector<128xf32>
    %1 = vector.multi_reduction <add>, %0, %cst [0] : vector<8x128xf32> to vector<128xf32>
    %2 = vector.shape_cast %1 : vector<128xf32> to vector<1x128xf32>
    %cst_1 = arith.constant 3.906250e-03 : f32
    %3 = vector.broadcast %cst_1 : f32 to vector<1x128xf32>
    %4 = arith.mulf %2, %3 : vector<1x128xf32>
    %c0_2 = arith.constant 0 : index
    %c0_3 = arith.constant 0 : index
    %5 = vector.load %arg3[%c0_2, %c0_3] : memref<8x128xf32, #tpu.memory_space<vmem>>, vector<8x128xf32>
    %cst_4 = arith.constant dense<0.000000e+00> : vector<128xf32>
    %6 = vector.multi_reduction <add>, %5, %cst_4 [0] : vector<8x128xf32> to vector<128xf32>
    %7 = vector.shape_cast %6 : vector<128xf32> to vector<1x128xf32>
    %cst_5 = arith.constant 3.906250e-03 : f32
    %8 = vector.broadcast %cst_5 : f32 to vector<1x128xf32>
    %9 = arith.mulf %7, %8 : vector<1x128xf32>
    %10 = arith.mulf %4, %4 : vector<1x128xf32>
    %11 = arith.subf %9, %10 : vector<1x128xf32>
    %cst_6 = arith.constant 0.000000e+00 : f32
    %12 = vector.broadcast %cst_6 : f32 to vector<1x128xf32>
    %13 = arith.maximumf %11, %12 : vector<1x128xf32>
    %c0_7 = arith.constant 0 : index
    %c0_8 = arith.constant 0 : index
    %14 = vector.load %arg4[%c0_7, %c0_8] : memref<1x128xf32, #tpu.memory_space<vmem>>, vector<1x128xf32>
    %cst_9 = arith.constant 9.99999974E-6 : f32
    %15 = vector.broadcast %cst_9 : f32 to vector<1x128xf32>
    %16 = arith.addf %13, %15 : vector<1x128xf32>
    %17 = math.rsqrt %16 : vector<1x128xf32>
    %18 = arith.mulf %14, %17 : vector<1x128xf32>
    %c0_10 = arith.constant 0 : index
    %c0_11 = arith.constant 0 : index
    %19 = vector.load %arg5[%c0_10, %c0_11] : memref<1x128xf32, #tpu.memory_space<vmem>>, vector<1x128xf32>
    %20 = arith.mulf %4, %18 : vector<1x128xf32>
    %21 = arith.subf %19, %20 : vector<1x128xf32>
    %c0_12 = arith.constant 0 : index
    %c0_13 = arith.constant 0 : index
    %22 = vector.load %arg1[%c0_12, %c0_13] : memref<32x128xf32, #tpu.memory_space<vmem>>, vector<32x128xf32>
    %23 = vector.broadcast %18 : vector<1x128xf32> to vector<32x128xf32>
    %24 = arith.mulf %22, %23 : vector<32x128xf32>
    %25 = vector.broadcast %21 : vector<1x128xf32> to vector<32x128xf32>
    %26 = arith.addf %24, %25 : vector<32x128xf32>
    %cst_14 = arith.constant 0.000000e+00 : f32
    %27 = vector.broadcast %cst_14 : f32 to vector<32x128xf32>
    %28 = arith.maximumf %26, %27 : vector<32x128xf32>
    %29 = arith.truncf %28 : vector<32x128xf32> to vector<32x128xbf16>
    %c0_15 = arith.constant 0 : index
    %c0_16 = arith.constant 0 : index
    %30 = vector.load %arg6[%c0_15, %c0_16] : memref<32x128xbf16, #tpu.memory_space<vmem>>, vector<32x128xbf16>
    tpu.vector_store %arg6[%c0_15, %c0_16], %29 {strides = array<i32>} : memref<32x128xbf16, #tpu.memory_space<vmem>>, vector<32x128xbf16>,
    return
  }
  func.func @transform_0(%arg0: i32) -> (i32, i32) {
    %c0_i32 = arith.constant 0 : i32
    %c0_i32_0 = arith.constant 0 : i32
    return %arg0, %c0_i32 : i32, i32
  }
  func.func @transform_1(%arg0: i32) -> (i32, i32) {
    %c0_i32 = arith.constant 0 : i32
    %c0_i32_0 = arith.constant 0 : i32
    %c0_i32_1 = arith.constant 0 : i32
    return %c0_i32, %c0_i32_0 : i32, i32
  }
  func.func @transform_2(%arg0: i32) -> (i32, i32) {
    %c0_i32 = arith.constant 0 : i32
    %c0_i32_0 = arith.constant 0 : i32
    %c0_i32_1 = arith.constant 0 : i32
    return %c0_i32, %c0_i32_0 : i32, i32
  }
  func.func @transform_3(%arg0: i32) -> (i32, i32) {
    %c0_i32 = arith.constant 0 : i32
    %c0_i32_0 = arith.constant 0 : i32
    %c0_i32_1 = arith.constant 0 : i32
    return %c0_i32, %c0_i32_0 : i32, i32
  }
  func.func @transform_4(%arg0: i32) -> (i32, i32) {
    %c0_i32 = arith.constant 0 : i32
    %c0_i32_0 = arith.constant 0 : i32
    %c0_i32_1 = arith.constant 0 : i32
    return %c0_i32, %c0_i32_0 : i32, i32
  }
  func.func @transform_5(%arg0: i32) -> (i32, i32) {
    %c0_i32 = arith.constant 0 : i32
    %c0_i32_0 = arith.constant 0 : i32
    return %arg0, %c0_i32 : i32, i32
  }
}

module attributes {stable_mosaic.version = 11 : i64} {
  func.func @_conv_matmul_kernel(%arg0: i32, %arg1: i32, %arg2: memref<32x384xbf16, #tpu.memory_space<vmem>>, %arg3: memref<384x128xbf16, #tpu.memory_space<vmem>>, %arg4: memref<32x128xf32, #tpu.memory_space<vmem>>, %arg5: memref<8x128xf32, #tpu.memory_space<vmem>>, %arg6: memref<8x128xf32, #tpu.memory_space<vmem>>, %arg7: memref<32x128xf32, #tpu.memory_space<vmem>>) attributes {dimension_semantics = [#tpu.dimension_semantics<parallel>, #tpu.dimension_semantics<arbitrary>], iteration_bounds = array<i64: 1, 3>, scalar_prefetch = 0 : i64, scratch_operands = 1 : i64, tpu.core_type = #tpu.core_type<tc>, window_params = [{transform_indices = @transform_0, window_bounds = array<i64: 32, 384>}, {transform_indices = @transform_1, window_bounds = array<i64: 384, 128>}, {transform_indices = @transform_2, window_bounds = array<i64: 32, 128>}, {transform_indices = @transform_3, window_bounds = array<i64: 8, 128>}, {transform_indices = @transform_4, window_bounds = array<i64: 8, 128>}]} {
    %c0_i32 = arith.constant 0 : i32
    %0 = arith.cmpi eq, %arg1, %c0_i32 : i32
    %1 = arith.extui %0 : i1 to i32
    %c0_i32_0 = arith.constant 0 : i32
    %2 = arith.cmpi ne, %1, %c0_i32_0 : i32
    scf.if %2 {
      %cst_9 = arith.constant 0.000000e+00 : f32
      %12 = vector.broadcast %cst_9 : f32 to vector<32x128xf32>
      %c0_10 = arith.constant 0 : index
      %c0_11 = arith.constant 0 : index
      %13 = vector.load %arg7[%c0_10, %c0_11] : memref<32x128xf32, #tpu.memory_space<vmem>>, vector<32x128xf32>
      tpu.vector_store %arg7[%c0_10, %c0_11], %12 {strides = array<i32>} : memref<32x128xf32, #tpu.memory_space<vmem>>, vector<32x128xf32>,
    } else {
    }
    %c0 = arith.constant 0 : index
    %c0_1 = arith.constant 0 : index
    %3 = vector.load %arg7[%c0, %c0_1] : memref<32x128xf32, #tpu.memory_space<vmem>>, vector<32x128xf32>
    %c0_2 = arith.constant 0 : index
    %c0_3 = arith.constant 0 : index
    %4 = vector.load %arg2[%c0_2, %c0_3] : memref<32x384xbf16, #tpu.memory_space<vmem>>, vector<32x384xbf16>
    %c0_4 = arith.constant 0 : index
    %c0_5 = arith.constant 0 : index
    %5 = vector.load %arg3[%c0_4, %c0_5] : memref<384x128xbf16, #tpu.memory_space<vmem>>, vector<384x128xbf16>
    %cst = arith.constant dense<0.000000e+00> : vector<32x128xf32>
    %6 = tpu.matmul %4, %5, %cst {dimension_numbers = #tpu.dot_dimension_numbers<[1], [0], [0], [1], [0, 0, 1, 1], [], []>} : vector<32x384xbf16>, vector<384x128xbf16>, vector<32x128xf32> -> vector<32x128xf32>
    %7 = arith.addf %3, %6 : vector<32x128xf32>
    %c0_6 = arith.constant 0 : index
    %c0_7 = arith.constant 0 : index
    %8 = vector.load %arg7[%c0_6, %c0_7] : memref<32x128xf32, #tpu.memory_space<vmem>>, vector<32x128xf32>
    tpu.vector_store %arg7[%c0_6, %c0_7], %7 {strides = array<i32>} : memref<32x128xf32, #tpu.memory_space<vmem>>, vector<32x128xf32>,
    %c2_i32 = arith.constant 2 : i32
    %9 = arith.cmpi eq, %arg1, %c2_i32 : i32
    %10 = arith.extui %9 : i1 to i32
    %c0_i32_8 = arith.constant 0 : i32
    %11 = arith.cmpi ne, %10, %c0_i32_8 : i32
    scf.if %11 {
      %c0_9 = arith.constant 0 : index
      %c0_10 = arith.constant 0 : index
      %12 = vector.load %arg7[%c0_9, %c0_10] : memref<32x128xf32, #tpu.memory_space<vmem>>, vector<32x128xf32>
      %c0_11 = arith.constant 0 : index
      %c0_12 = arith.constant 0 : index
      %13 = vector.load %arg4[%c0_11, %c0_12] : memref<32x128xf32, #tpu.memory_space<vmem>>, vector<32x128xf32>
      tpu.vector_store %arg4[%c0_11, %c0_12], %12 {strides = array<i32>} : memref<32x128xf32, #tpu.memory_space<vmem>>, vector<32x128xf32>,
      %cst_13 = arith.constant dense<0.000000e+00> : vector<128xf32>
      %14 = vector.multi_reduction <add>, %12, %cst_13 [0] : vector<32x128xf32> to vector<128xf32>
      %15 = vector.shape_cast %14 : vector<128xf32> to vector<1x128xf32>
      %16 = arith.mulf %12, %12 : vector<32x128xf32>
      %cst_14 = arith.constant dense<0.000000e+00> : vector<128xf32>
      %17 = vector.multi_reduction <add>, %16, %cst_14 [0] : vector<32x128xf32> to vector<128xf32>
      %18 = vector.shape_cast %17 : vector<128xf32> to vector<1x128xf32>
      %19 = vector.shape_cast %15 : vector<1x128xf32> to vector<1x128xf32>
      %20 = vector.broadcast %19 : vector<1x128xf32> to vector<8x128xf32>
      %c0_15 = arith.constant 0 : index
      %c0_16 = arith.constant 0 : index
      %21 = vector.load %arg5[%c0_15, %c0_16] : memref<8x128xf32, #tpu.memory_space<vmem>>, vector<8x128xf32>
      tpu.vector_store %arg5[%c0_15, %c0_16], %20 {strides = array<i32>} : memref<8x128xf32, #tpu.memory_space<vmem>>, vector<8x128xf32>,
      %22 = vector.shape_cast %18 : vector<1x128xf32> to vector<1x128xf32>
      %23 = vector.broadcast %22 : vector<1x128xf32> to vector<8x128xf32>
      %c0_17 = arith.constant 0 : index
      %c0_18 = arith.constant 0 : index
      %24 = vector.load %arg6[%c0_17, %c0_18] : memref<8x128xf32, #tpu.memory_space<vmem>>, vector<8x128xf32>
      tpu.vector_store %arg6[%c0_17, %c0_18], %23 {strides = array<i32>} : memref<8x128xf32, #tpu.memory_space<vmem>>, vector<8x128xf32>,
    } else {
    }
    return
  }
  func.func @transform_0(%arg0: i32, %arg1: i32) -> (i32, i32) {
    %c0_i32 = arith.constant 0 : i32
    return %arg0, %arg1 : i32, i32
  }
  func.func @transform_1(%arg0: i32, %arg1: i32) -> (i32, i32) {
    %c0_i32 = arith.constant 0 : i32
    %c0_i32_0 = arith.constant 0 : i32
    return %arg1, %c0_i32 : i32, i32
  }
  func.func @transform_2(%arg0: i32, %arg1: i32) -> (i32, i32) {
    %c0_i32 = arith.constant 0 : i32
    %c0_i32_0 = arith.constant 0 : i32
    return %arg0, %c0_i32 : i32, i32
  }
  func.func @transform_3(%arg0: i32, %arg1: i32) -> (i32, i32) {
    %c0_i32 = arith.constant 0 : i32
    %c0_i32_0 = arith.constant 0 : i32
    return %arg0, %c0_i32 : i32, i32
  }
  func.func @transform_4(%arg0: i32, %arg1: i32) -> (i32, i32) {
    %c0_i32 = arith.constant 0 : i32
    %c0_i32_0 = arith.constant 0 : i32
    return %arg0, %c0_i32 : i32, i32
  }
}

module attributes {stable_mosaic.version = 11 : i64} {
  func.func @kernel(%arg0: i32, %arg1: memref<32x128xf32, #tpu.memory_space<vmem>>, %arg2: memref<8x128xf32, #tpu.memory_space<vmem>>, %arg3: memref<8x128xf32, #tpu.memory_space<vmem>>, %arg4: memref<1x128xf32, #tpu.memory_space<vmem>>, %arg5: memref<1x128xf32, #tpu.memory_space<vmem>>, %arg6: memref<32x128xbf16, #tpu.memory_space<vmem>>) attributes {dimension_semantics = [#tpu.dimension_semantics<parallel>], iteration_bounds = array<i64: 1>, scalar_prefetch = 0 : i64, scratch_operands = 0 : i64, tpu.core_type = #tpu.core_type<tc>, window_params = [{transform_indices = @transform_0, window_bounds = array<i64: 32, 128>}, {pipeline_mode = #tpu.pipeline_mode<synchronous>, transform_indices = @transform_1, window_bounds = array<i64: 8, 128>}, {pipeline_mode = #tpu.pipeline_mode<synchronous>, transform_indices = @transform_2, window_bounds = array<i64: 8, 128>}, {pipeline_mode = #tpu.pipeline_mode<synchronous>, transform_indices = @transform_3, window_bounds = array<i64: 1, 128>}, {pipeline_mode = #tpu.pipeline_mode<synchronous>, transform_indices = @transform_4, window_bounds = array<i64: 1, 128>}, {transform_indices = @transform_5, window_bounds = array<i64: 32, 128>}]} {
    %c0 = arith.constant 0 : index
    %c0_0 = arith.constant 0 : index
    %0 = vector.load %arg2[%c0, %c0_0] : memref<8x128xf32, #tpu.memory_space<vmem>>, vector<8x128xf32>
    %cst = arith.constant dense<0.000000e+00> : vector<128xf32>
    %1 = vector.multi_reduction <add>, %0, %cst [0] : vector<8x128xf32> to vector<128xf32>
    %2 = vector.shape_cast %1 : vector<128xf32> to vector<1x128xf32>
    %cst_1 = arith.constant 3.906250e-03 : f32
    %3 = vector.broadcast %cst_1 : f32 to vector<1x128xf32>
    %4 = arith.mulf %2, %3 : vector<1x128xf32>
    %c0_2 = arith.constant 0 : index
    %c0_3 = arith.constant 0 : index
    %5 = vector.load %arg3[%c0_2, %c0_3] : memref<8x128xf32, #tpu.memory_space<vmem>>, vector<8x128xf32>
    %cst_4 = arith.constant dense<0.000000e+00> : vector<128xf32>
    %6 = vector.multi_reduction <add>, %5, %cst_4 [0] : vector<8x128xf32> to vector<128xf32>
    %7 = vector.shape_cast %6 : vector<128xf32> to vector<1x128xf32>
    %cst_5 = arith.constant 3.906250e-03 : f32
    %8 = vector.broadcast %cst_5 : f32 to vector<1x128xf32>
    %9 = arith.mulf %7, %8 : vector<1x128xf32>
    %10 = arith.mulf %4, %4 : vector<1x128xf32>
    %11 = arith.subf %9, %10 : vector<1x128xf32>
    %cst_6 = arith.constant 0.000000e+00 : f32
    %12 = vector.broadcast %cst_6 : f32 to vector<1x128xf32>
    %13 = arith.maximumf %11, %12 : vector<1x128xf32>
    %c0_7 = arith.constant 0 : index
    %c0_8 = arith.constant 0 : index
    %14 = vector.load %arg4[%c0_7, %c0_8] : memref<1x128xf32, #tpu.memory_space<vmem>>, vector<1x128xf32>
    %cst_9 = arith.constant 9.99999974E-6 : f32
    %15 = vector.broadcast %cst_9 : f32 to vector<1x128xf32>
    %16 = arith.addf %13, %15 : vector<1x128xf32>
    %17 = math.rsqrt %16 : vector<1x128xf32>
    %18 = arith.mulf %14, %17 : vector<1x128xf32>
    %c0_10 = arith.constant 0 : index
    %c0_11 = arith.constant 0 : index
    %19 = vector.load %arg5[%c0_10, %c0_11] : memref<1x128xf32, #tpu.memory_space<vmem>>, vector<1x128xf32>
    %20 = arith.mulf %4, %18 : vector<1x128xf32>
    %21 = arith.subf %19, %20 : vector<1x128xf32>
    %c0_12 = arith.constant 0 : index
    %c0_13 = arith.constant 0 : index
    %22 = vector.load %arg1[%c0_12, %c0_13] : memref<32x128xf32, #tpu.memory_space<vmem>>, vector<32x128xf32>
    %23 = vector.broadcast %18 : vector<1x128xf32> to vector<32x128xf32>
    %24 = arith.mulf %22, %23 : vector<32x128xf32>
    %25 = vector.broadcast %21 : vector<1x128xf32> to vector<32x128xf32>
    %26 = arith.addf %24, %25 : vector<32x128xf32>
    %27 = arith.truncf %26 : vector<32x128xf32> to vector<32x128xbf16>
    %c0_14 = arith.constant 0 : index
    %c0_15 = arith.constant 0 : index
    %28 = vector.load %arg6[%c0_14, %c0_15] : memref<32x128xbf16, #tpu.memory_space<vmem>>, vector<32x128xbf16>
    tpu.vector_store %arg6[%c0_14, %c0_15], %27 {strides = array<i32>} : memref<32x128xbf16, #tpu.memory_space<vmem>>, vector<32x128xbf16>,
    return
  }
  func.func @transform_0(%arg0: i32) -> (i32, i32) {
    %c0_i32 = arith.constant 0 : i32
    %c0_i32_0 = arith.constant 0 : i32
    return %arg0, %c0_i32 : i32, i32
  }
  func.func @transform_1(%arg0: i32) -> (i32, i32) {
    %c0_i32 = arith.constant 0 : i32
    %c0_i32_0 = arith.constant 0 : i32
    %c0_i32_1 = arith.constant 0 : i32
    return %c0_i32, %c0_i32_0 : i32, i32
  }
  func.func @transform_2(%arg0: i32) -> (i32, i32) {
    %c0_i32 = arith.constant 0 : i32
    %c0_i32_0 = arith.constant 0 : i32
    %c0_i32_1 = arith.constant 0 : i32
    return %c0_i32, %c0_i32_0 : i32, i32
  }
  func.func @transform_3(%arg0: i32) -> (i32, i32) {
    %c0_i32 = arith.constant 0 : i32
    %c0_i32_0 = arith.constant 0 : i32
    %c0_i32_1 = arith.constant 0 : i32
    return %c0_i32, %c0_i32_0 : i32, i32
  }
  func.func @transform_4(%arg0: i32) -> (i32, i32) {
    %c0_i32 = arith.constant 0 : i32
    %c0_i32_0 = arith.constant 0 : i32
    %c0_i32_1 = arith.constant 0 : i32
    return %c0_i32, %c0_i32_0 : i32, i32
  }
  func.func @transform_5(%arg0: i32) -> (i32, i32) {
    %c0_i32 = arith.constant 0 : i32
    %c0_i32_0 = arith.constant 0 : i32
    return %arg0, %c0_i32 : i32, i32
  }
}

module attributes {stable_mosaic.version = 11 : i64} {
  func.func @_conv_matmul_kernel(%arg0: i32, %arg1: i32, %arg2: memref<32x64xbf16, #tpu.memory_space<vmem>>, %arg3: memref<64x128xbf16, #tpu.memory_space<vmem>>, %arg4: memref<32x128xf32, #tpu.memory_space<vmem>>, %arg5: memref<8x128xf32, #tpu.memory_space<vmem>>, %arg6: memref<8x128xf32, #tpu.memory_space<vmem>>, %arg7: memref<32x128xf32, #tpu.memory_space<vmem>>) attributes {dimension_semantics = [#tpu.dimension_semantics<parallel>, #tpu.dimension_semantics<arbitrary>], iteration_bounds = array<i64: 1, 1>, scalar_prefetch = 0 : i64, scratch_operands = 1 : i64, tpu.core_type = #tpu.core_type<tc>, window_params = [{transform_indices = @transform_0, window_bounds = array<i64: 32, 64>}, {transform_indices = @transform_1, window_bounds = array<i64: 64, 128>}, {transform_indices = @transform_2, window_bounds = array<i64: 32, 128>}, {transform_indices = @transform_3, window_bounds = array<i64: 8, 128>}, {transform_indices = @transform_4, window_bounds = array<i64: 8, 128>}]} {
    %c0_i32 = arith.constant 0 : i32
    %0 = arith.cmpi eq, %arg1, %c0_i32 : i32
    %1 = arith.extui %0 : i1 to i32
    %c0_i32_0 = arith.constant 0 : i32
    %2 = arith.cmpi ne, %1, %c0_i32_0 : i32
    scf.if %2 {
      %cst_10 = arith.constant 0.000000e+00 : f32
      %12 = vector.broadcast %cst_10 : f32 to vector<32x128xf32>
      %c0_11 = arith.constant 0 : index
      %c0_12 = arith.constant 0 : index
      %13 = vector.load %arg7[%c0_11, %c0_12] : memref<32x128xf32, #tpu.memory_space<vmem>>, vector<32x128xf32>
      tpu.vector_store %arg7[%c0_11, %c0_12], %12 {strides = array<i32>} : memref<32x128xf32, #tpu.memory_space<vmem>>, vector<32x128xf32>,
    } else {
    }
    %c0 = arith.constant 0 : index
    %c0_1 = arith.constant 0 : index
    %3 = vector.load %arg7[%c0, %c0_1] : memref<32x128xf32, #tpu.memory_space<vmem>>, vector<32x128xf32>
    %c0_2 = arith.constant 0 : index
    %c0_3 = arith.constant 0 : index
    %4 = vector.load %arg2[%c0_2, %c0_3] : memref<32x64xbf16, #tpu.memory_space<vmem>>, vector<32x64xbf16>
    %c0_4 = arith.constant 0 : index
    %c0_5 = arith.constant 0 : index
    %5 = vector.load %arg3[%c0_4, %c0_5] : memref<64x128xbf16, #tpu.memory_space<vmem>>, vector<64x128xbf16>
    %cst = arith.constant dense<0.000000e+00> : vector<32x128xf32>
    %6 = tpu.matmul %4, %5, %cst {dimension_numbers = #tpu.dot_dimension_numbers<[1], [0], [0], [1], [0, 0, 1, 1], [], []>} : vector<32x64xbf16>, vector<64x128xbf16>, vector<32x128xf32> -> vector<32x128xf32>
    %7 = arith.addf %3, %6 : vector<32x128xf32>
    %c0_6 = arith.constant 0 : index
    %c0_7 = arith.constant 0 : index
    %8 = vector.load %arg7[%c0_6, %c0_7] : memref<32x128xf32, #tpu.memory_space<vmem>>, vector<32x128xf32>
    tpu.vector_store %arg7[%c0_6, %c0_7], %7 {strides = array<i32>} : memref<32x128xf32, #tpu.memory_space<vmem>>, vector<32x128xf32>,
    %c0_i32_8 = arith.constant 0 : i32
    %9 = arith.cmpi eq, %arg1, %c0_i32_8 : i32
    %10 = arith.extui %9 : i1 to i32
    %c0_i32_9 = arith.constant 0 : i32
    %11 = arith.cmpi ne, %10, %c0_i32_9 : i32
    scf.if %11 {
      %c0_10 = arith.constant 0 : index
      %c0_11 = arith.constant 0 : index
      %12 = vector.load %arg7[%c0_10, %c0_11] : memref<32x128xf32, #tpu.memory_space<vmem>>, vector<32x128xf32>
      %c0_12 = arith.constant 0 : index
      %c0_13 = arith.constant 0 : index
      %13 = vector.load %arg4[%c0_12, %c0_13] : memref<32x128xf32, #tpu.memory_space<vmem>>, vector<32x128xf32>
      tpu.vector_store %arg4[%c0_12, %c0_13], %12 {strides = array<i32>} : memref<32x128xf32, #tpu.memory_space<vmem>>, vector<32x128xf32>,
      %cst_14 = arith.constant dense<0.000000e+00> : vector<128xf32>
      %14 = vector.multi_reduction <add>, %12, %cst_14 [0] : vector<32x128xf32> to vector<128xf32>
      %15 = vector.shape_cast %14 : vector<128xf32> to vector<1x128xf32>
      %16 = arith.mulf %12, %12 : vector<32x128xf32>
      %cst_15 = arith.constant dense<0.000000e+00> : vector<128xf32>
      %17 = vector.multi_reduction <add>, %16, %cst_15 [0] : vector<32x128xf32> to vector<128xf32>
      %18 = vector.shape_cast %17 : vector<128xf32> to vector<1x128xf32>
      %19 = vector.shape_cast %15 : vector<1x128xf32> to vector<1x128xf32>
      %20 = vector.broadcast %19 : vector<1x128xf32> to vector<8x128xf32>
      %c0_16 = arith.constant 0 : index
      %c0_17 = arith.constant 0 : index
      %21 = vector.load %arg5[%c0_16, %c0_17] : memref<8x128xf32, #tpu.memory_space<vmem>>, vector<8x128xf32>
      tpu.vector_store %arg5[%c0_16, %c0_17], %20 {strides = array<i32>} : memref<8x128xf32, #tpu.memory_space<vmem>>, vector<8x128xf32>,
      %22 = vector.shape_cast %18 : vector<1x128xf32> to vector<1x128xf32>
      %23 = vector.broadcast %22 : vector<1x128xf32> to vector<8x128xf32>
      %c0_18 = arith.constant 0 : index
      %c0_19 = arith.constant 0 : index
      %24 = vector.load %arg6[%c0_18, %c0_19] : memref<8x128xf32, #tpu.memory_space<vmem>>, vector<8x128xf32>
      tpu.vector_store %arg6[%c0_18, %c0_19], %23 {strides = array<i32>} : memref<8x128xf32, #tpu.memory_space<vmem>>, vector<8x128xf32>,
    } else {
    }
    return
  }
  func.func @transform_0(%arg0: i32, %arg1: i32) -> (i32, i32) {
    %c0_i32 = arith.constant 0 : i32
    return %arg0, %arg1 : i32, i32
  }
  func.func @transform_1(%arg0: i32, %arg1: i32) -> (i32, i32) {
    %c0_i32 = arith.constant 0 : i32
    %c0_i32_0 = arith.constant 0 : i32
    return %arg1, %c0_i32 : i32, i32
  }
  func.func @transform_2(%arg0: i32, %arg1: i32) -> (i32, i32) {
    %c0_i32 = arith.constant 0 : i32
    %c0_i32_0 = arith.constant 0 : i32
    return %arg0, %c0_i32 : i32, i32
  }
  func.func @transform_3(%arg0: i32, %arg1: i32) -> (i32, i32) {
    %c0_i32 = arith.constant 0 : i32
    %c0_i32_0 = arith.constant 0 : i32
    return %arg0, %c0_i32 : i32, i32
  }
  func.func @transform_4(%arg0: i32, %arg1: i32) -> (i32, i32) {
    %c0_i32 = arith.constant 0 : i32
    %c0_i32_0 = arith.constant 0 : i32
    return %arg0, %c0_i32 : i32, i32
  }
}

module attributes {stable_mosaic.version = 11 : i64} {
  func.func @kernel(%arg0: i32, %arg1: memref<32x128xf32, #tpu.memory_space<vmem>>, %arg2: memref<8x128xf32, #tpu.memory_space<vmem>>, %arg3: memref<8x128xf32, #tpu.memory_space<vmem>>, %arg4: memref<1x128xf32, #tpu.memory_space<vmem>>, %arg5: memref<1x128xf32, #tpu.memory_space<vmem>>, %arg6: memref<32x128xbf16, #tpu.memory_space<vmem>>, %arg7: memref<32x128xbf16, #tpu.memory_space<vmem>>) attributes {dimension_semantics = [#tpu.dimension_semantics<parallel>], iteration_bounds = array<i64: 1>, scalar_prefetch = 0 : i64, scratch_operands = 0 : i64, tpu.core_type = #tpu.core_type<tc>, window_params = [{transform_indices = @transform_0, window_bounds = array<i64: 32, 128>}, {pipeline_mode = #tpu.pipeline_mode<synchronous>, transform_indices = @transform_1, window_bounds = array<i64: 8, 128>}, {pipeline_mode = #tpu.pipeline_mode<synchronous>, transform_indices = @transform_2, window_bounds = array<i64: 8, 128>}, {pipeline_mode = #tpu.pipeline_mode<synchronous>, transform_indices = @transform_3, window_bounds = array<i64: 1, 128>}, {pipeline_mode = #tpu.pipeline_mode<synchronous>, transform_indices = @transform_4, window_bounds = array<i64: 1, 128>}, {transform_indices = @transform_5, window_bounds = array<i64: 32, 128>}, {transform_indices = @transform_6, window_bounds = array<i64: 32, 128>}]} {
    %c0 = arith.constant 0 : index
    %c0_0 = arith.constant 0 : index
    %0 = vector.load %arg2[%c0, %c0_0] : memref<8x128xf32, #tpu.memory_space<vmem>>, vector<8x128xf32>
    %cst = arith.constant dense<0.000000e+00> : vector<128xf32>
    %1 = vector.multi_reduction <add>, %0, %cst [0] : vector<8x128xf32> to vector<128xf32>
    %2 = vector.shape_cast %1 : vector<128xf32> to vector<1x128xf32>
    %cst_1 = arith.constant 3.906250e-03 : f32
    %3 = vector.broadcast %cst_1 : f32 to vector<1x128xf32>
    %4 = arith.mulf %2, %3 : vector<1x128xf32>
    %c0_2 = arith.constant 0 : index
    %c0_3 = arith.constant 0 : index
    %5 = vector.load %arg3[%c0_2, %c0_3] : memref<8x128xf32, #tpu.memory_space<vmem>>, vector<8x128xf32>
    %cst_4 = arith.constant dense<0.000000e+00> : vector<128xf32>
    %6 = vector.multi_reduction <add>, %5, %cst_4 [0] : vector<8x128xf32> to vector<128xf32>
    %7 = vector.shape_cast %6 : vector<128xf32> to vector<1x128xf32>
    %cst_5 = arith.constant 3.906250e-03 : f32
    %8 = vector.broadcast %cst_5 : f32 to vector<1x128xf32>
    %9 = arith.mulf %7, %8 : vector<1x128xf32>
    %10 = arith.mulf %4, %4 : vector<1x128xf32>
    %11 = arith.subf %9, %10 : vector<1x128xf32>
    %cst_6 = arith.constant 0.000000e+00 : f32
    %12 = vector.broadcast %cst_6 : f32 to vector<1x128xf32>
    %13 = arith.maximumf %11, %12 : vector<1x128xf32>
    %c0_7 = arith.constant 0 : index
    %c0_8 = arith.constant 0 : index
    %14 = vector.load %arg4[%c0_7, %c0_8] : memref<1x128xf32, #tpu.memory_space<vmem>>, vector<1x128xf32>
    %cst_9 = arith.constant 9.99999974E-6 : f32
    %15 = vector.broadcast %cst_9 : f32 to vector<1x128xf32>
    %16 = arith.addf %13, %15 : vector<1x128xf32>
    %17 = math.rsqrt %16 : vector<1x128xf32>
    %18 = arith.mulf %14, %17 : vector<1x128xf32>
    %c0_10 = arith.constant 0 : index
    %c0_11 = arith.constant 0 : index
    %19 = vector.load %arg5[%c0_10, %c0_11] : memref<1x128xf32, #tpu.memory_space<vmem>>, vector<1x128xf32>
    %20 = arith.mulf %4, %18 : vector<1x128xf32>
    %21 = arith.subf %19, %20 : vector<1x128xf32>
    %c0_12 = arith.constant 0 : index
    %c0_13 = arith.constant 0 : index
    %22 = vector.load %arg1[%c0_12, %c0_13] : memref<32x128xf32, #tpu.memory_space<vmem>>, vector<32x128xf32>
    %23 = vector.broadcast %18 : vector<1x128xf32> to vector<32x128xf32>
    %24 = arith.mulf %22, %23 : vector<32x128xf32>
    %25 = vector.broadcast %21 : vector<1x128xf32> to vector<32x128xf32>
    %26 = arith.addf %24, %25 : vector<32x128xf32>
    %c0_14 = arith.constant 0 : index
    %c0_15 = arith.constant 0 : index
    %27 = vector.load %arg6[%c0_14, %c0_15] : memref<32x128xbf16, #tpu.memory_space<vmem>>, vector<32x128xbf16>
    %28 = arith.extf %27 : vector<32x128xbf16> to vector<32x128xf32>
    %29 = arith.addf %26, %28 : vector<32x128xf32>
    %cst_16 = arith.constant 0.000000e+00 : f32
    %30 = vector.broadcast %cst_16 : f32 to vector<32x128xf32>
    %31 = arith.maximumf %29, %30 : vector<32x128xf32>
    %32 = arith.truncf %31 : vector<32x128xf32> to vector<32x128xbf16>
    %c0_17 = arith.constant 0 : index
    %c0_18 = arith.constant 0 : index
    %33 = vector.load %arg7[%c0_17, %c0_18] : memref<32x128xbf16, #tpu.memory_space<vmem>>, vector<32x128xbf16>
    tpu.vector_store %arg7[%c0_17, %c0_18], %32 {strides = array<i32>} : memref<32x128xbf16, #tpu.memory_space<vmem>>, vector<32x128xbf16>,
    return
  }
  func.func @transform_0(%arg0: i32) -> (i32, i32) {
    %c0_i32 = arith.constant 0 : i32
    %c0_i32_0 = arith.constant 0 : i32
    return %arg0, %c0_i32 : i32, i32
  }
  func.func @transform_1(%arg0: i32) -> (i32, i32) {
    %c0_i32 = arith.constant 0 : i32
    %c0_i32_0 = arith.constant 0 : i32
    %c0_i32_1 = arith.constant 0 : i32
    return %c0_i32, %c0_i32_0 : i32, i32
  }
  func.func @transform_2(%arg0: i32) -> (i32, i32) {
    %c0_i32 = arith.constant 0 : i32
    %c0_i32_0 = arith.constant 0 : i32
    %c0_i32_1 = arith.constant 0 : i32
    return %c0_i32, %c0_i32_0 : i32, i32
  }
  func.func @transform_3(%arg0: i32) -> (i32, i32) {
    %c0_i32 = arith.constant 0 : i32
    %c0_i32_0 = arith.constant 0 : i32
    %c0_i32_1 = arith.constant 0 : i32
    return %c0_i32, %c0_i32_0 : i32, i32
  }
  func.func @transform_4(%arg0: i32) -> (i32, i32) {
    %c0_i32 = arith.constant 0 : i32
    %c0_i32_0 = arith.constant 0 : i32
    %c0_i32_1 = arith.constant 0 : i32
    return %c0_i32, %c0_i32_0 : i32, i32
  }
  func.func @transform_5(%arg0: i32) -> (i32, i32) {
    %c0_i32 = arith.constant 0 : i32
    %c0_i32_0 = arith.constant 0 : i32
    return %arg0, %c0_i32 : i32, i32
  }
  func.func @transform_6(%arg0: i32) -> (i32, i32) {
    %c0_i32 = arith.constant 0 : i32
    %c0_i32_0 = arith.constant 0 : i32
    return %arg0, %c0_i32 : i32, i32
  }
}

module attributes {stable_mosaic.version = 11 : i64} {
  func.func @kernel(%arg0: i32, %arg1: memref<8x256xf32, #tpu.memory_space<vmem>>, %arg2: memref<8x256xf32, #tpu.memory_space<vmem>>, %arg3: memref<8x256xf32, #tpu.memory_space<vmem>>, %arg4: memref<1x256xf32, #tpu.memory_space<vmem>>, %arg5: memref<1x256xf32, #tpu.memory_space<vmem>>, %arg6: memref<8x256xbf16, #tpu.memory_space<vmem>>) attributes {dimension_semantics = [#tpu.dimension_semantics<parallel>], iteration_bounds = array<i64: 1>, scalar_prefetch = 0 : i64, scratch_operands = 0 : i64, tpu.core_type = #tpu.core_type<tc>, window_params = [{transform_indices = @transform_0, window_bounds = array<i64: 8, 256>}, {pipeline_mode = #tpu.pipeline_mode<synchronous>, transform_indices = @transform_1, window_bounds = array<i64: 8, 256>}, {pipeline_mode = #tpu.pipeline_mode<synchronous>, transform_indices = @transform_2, window_bounds = array<i64: 8, 256>}, {pipeline_mode = #tpu.pipeline_mode<synchronous>, transform_indices = @transform_3, window_bounds = array<i64: 1, 256>}, {pipeline_mode = #tpu.pipeline_mode<synchronous>, transform_indices = @transform_4, window_bounds = array<i64: 1, 256>}, {transform_indices = @transform_5, window_bounds = array<i64: 8, 256>}]} {
    %c0 = arith.constant 0 : index
    %c0_0 = arith.constant 0 : index
    %0 = vector.load %arg2[%c0, %c0_0] : memref<8x256xf32, #tpu.memory_space<vmem>>, vector<8x256xf32>
    %cst = arith.constant dense<0.000000e+00> : vector<256xf32>
    %1 = vector.multi_reduction <add>, %0, %cst [0] : vector<8x256xf32> to vector<256xf32>
    %2 = vector.shape_cast %1 : vector<256xf32> to vector<1x256xf32>
    %cst_1 = arith.constant 1.562500e-02 : f32
    %3 = vector.broadcast %cst_1 : f32 to vector<1x256xf32>
    %4 = arith.mulf %2, %3 : vector<1x256xf32>
    %c0_2 = arith.constant 0 : index
    %c0_3 = arith.constant 0 : index
    %5 = vector.load %arg3[%c0_2, %c0_3] : memref<8x256xf32, #tpu.memory_space<vmem>>, vector<8x256xf32>
    %cst_4 = arith.constant dense<0.000000e+00> : vector<256xf32>
    %6 = vector.multi_reduction <add>, %5, %cst_4 [0] : vector<8x256xf32> to vector<256xf32>
    %7 = vector.shape_cast %6 : vector<256xf32> to vector<1x256xf32>
    %cst_5 = arith.constant 1.562500e-02 : f32
    %8 = vector.broadcast %cst_5 : f32 to vector<1x256xf32>
    %9 = arith.mulf %7, %8 : vector<1x256xf32>
    %10 = arith.mulf %4, %4 : vector<1x256xf32>
    %11 = arith.subf %9, %10 : vector<1x256xf32>
    %cst_6 = arith.constant 0.000000e+00 : f32
    %12 = vector.broadcast %cst_6 : f32 to vector<1x256xf32>
    %13 = arith.maximumf %11, %12 : vector<1x256xf32>
    %c0_7 = arith.constant 0 : index
    %c0_8 = arith.constant 0 : index
    %14 = vector.load %arg4[%c0_7, %c0_8] : memref<1x256xf32, #tpu.memory_space<vmem>>, vector<1x256xf32>
    %cst_9 = arith.constant 9.99999974E-6 : f32
    %15 = vector.broadcast %cst_9 : f32 to vector<1x256xf32>
    %16 = arith.addf %13, %15 : vector<1x256xf32>
    %17 = math.rsqrt %16 : vector<1x256xf32>
    %18 = arith.mulf %14, %17 : vector<1x256xf32>
    %c0_10 = arith.constant 0 : index
    %c0_11 = arith.constant 0 : index
    %19 = vector.load %arg5[%c0_10, %c0_11] : memref<1x256xf32, #tpu.memory_space<vmem>>, vector<1x256xf32>
    %20 = arith.mulf %4, %18 : vector<1x256xf32>
    %21 = arith.subf %19, %20 : vector<1x256xf32>
    %c0_12 = arith.constant 0 : index
    %c0_13 = arith.constant 0 : index
    %22 = vector.load %arg1[%c0_12, %c0_13] : memref<8x256xf32, #tpu.memory_space<vmem>>, vector<8x256xf32>
    %23 = vector.broadcast %18 : vector<1x256xf32> to vector<8x256xf32>
    %24 = arith.mulf %22, %23 : vector<8x256xf32>
    %25 = vector.broadcast %21 : vector<1x256xf32> to vector<8x256xf32>
    %26 = arith.addf %24, %25 : vector<8x256xf32>
    %cst_14 = arith.constant 0.000000e+00 : f32
    %27 = vector.broadcast %cst_14 : f32 to vector<8x256xf32>
    %28 = arith.maximumf %26, %27 : vector<8x256xf32>
    %29 = arith.truncf %28 : vector<8x256xf32> to vector<8x256xbf16>
    %c0_15 = arith.constant 0 : index
    %c0_16 = arith.constant 0 : index
    %30 = vector.load %arg6[%c0_15, %c0_16] : memref<8x256xbf16, #tpu.memory_space<vmem>>, vector<8x256xbf16>
    tpu.vector_store %arg6[%c0_15, %c0_16], %29 {strides = array<i32>} : memref<8x256xbf16, #tpu.memory_space<vmem>>, vector<8x256xbf16>,
    return
  }
  func.func @transform_0(%arg0: i32) -> (i32, i32) {
    %c0_i32 = arith.constant 0 : i32
    %c0_i32_0 = arith.constant 0 : i32
    return %arg0, %c0_i32 : i32, i32
  }
  func.func @transform_1(%arg0: i32) -> (i32, i32) {
    %c0_i32 = arith.constant 0 : i32
    %c0_i32_0 = arith.constant 0 : i32
    %c0_i32_1 = arith.constant 0 : i32
    return %c0_i32, %c0_i32_0 : i32, i32
  }
  func.func @transform_2(%arg0: i32) -> (i32, i32) {
    %c0_i32 = arith.constant 0 : i32
    %c0_i32_0 = arith.constant 0 : i32
    %c0_i32_1 = arith.constant 0 : i32
    return %c0_i32, %c0_i32_0 : i32, i32
  }
  func.func @transform_3(%arg0: i32) -> (i32, i32) {
    %c0_i32 = arith.constant 0 : i32
    %c0_i32_0 = arith.constant 0 : i32
    %c0_i32_1 = arith.constant 0 : i32
    return %c0_i32, %c0_i32_0 : i32, i32
  }
  func.func @transform_4(%arg0: i32) -> (i32, i32) {
    %c0_i32 = arith.constant 0 : i32
    %c0_i32_0 = arith.constant 0 : i32
    %c0_i32_1 = arith.constant 0 : i32
    return %c0_i32, %c0_i32_0 : i32, i32
  }
  func.func @transform_5(%arg0: i32) -> (i32, i32) {
    %c0_i32 = arith.constant 0 : i32
    %c0_i32_0 = arith.constant 0 : i32
    return %arg0, %c0_i32 : i32, i32
  }
}

module attributes {stable_mosaic.version = 11 : i64} {
  func.func @_conv_matmul_kernel(%arg0: i32, %arg1: i32, %arg2: memref<8x384xbf16, #tpu.memory_space<vmem>>, %arg3: memref<384x256xbf16, #tpu.memory_space<vmem>>, %arg4: memref<8x256xf32, #tpu.memory_space<vmem>>, %arg5: memref<8x256xf32, #tpu.memory_space<vmem>>, %arg6: memref<8x256xf32, #tpu.memory_space<vmem>>, %arg7: memref<8x256xf32, #tpu.memory_space<vmem>>) attributes {dimension_semantics = [#tpu.dimension_semantics<parallel>, #tpu.dimension_semantics<arbitrary>], iteration_bounds = array<i64: 1, 3>, scalar_prefetch = 0 : i64, scratch_operands = 1 : i64, tpu.core_type = #tpu.core_type<tc>, window_params = [{transform_indices = @transform_0, window_bounds = array<i64: 8, 384>}, {transform_indices = @transform_1, window_bounds = array<i64: 384, 256>}, {transform_indices = @transform_2, window_bounds = array<i64: 8, 256>}, {transform_indices = @transform_3, window_bounds = array<i64: 8, 256>}, {transform_indices = @transform_4, window_bounds = array<i64: 8, 256>}]} {
    %c0_i32 = arith.constant 0 : i32
    %0 = arith.cmpi eq, %arg1, %c0_i32 : i32
    %1 = arith.extui %0 : i1 to i32
    %c0_i32_0 = arith.constant 0 : i32
    %2 = arith.cmpi ne, %1, %c0_i32_0 : i32
    scf.if %2 {
      %cst_9 = arith.constant 0.000000e+00 : f32
      %12 = vector.broadcast %cst_9 : f32 to vector<8x256xf32>
      %c0_10 = arith.constant 0 : index
      %c0_11 = arith.constant 0 : index
      %13 = vector.load %arg7[%c0_10, %c0_11] : memref<8x256xf32, #tpu.memory_space<vmem>>, vector<8x256xf32>
      tpu.vector_store %arg7[%c0_10, %c0_11], %12 {strides = array<i32>} : memref<8x256xf32, #tpu.memory_space<vmem>>, vector<8x256xf32>,
    } else {
    }
    %c0 = arith.constant 0 : index
    %c0_1 = arith.constant 0 : index
    %3 = vector.load %arg7[%c0, %c0_1] : memref<8x256xf32, #tpu.memory_space<vmem>>, vector<8x256xf32>
    %c0_2 = arith.constant 0 : index
    %c0_3 = arith.constant 0 : index
    %4 = vector.load %arg2[%c0_2, %c0_3] : memref<8x384xbf16, #tpu.memory_space<vmem>>, vector<8x384xbf16>
    %c0_4 = arith.constant 0 : index
    %c0_5 = arith.constant 0 : index
    %5 = vector.load %arg3[%c0_4, %c0_5] : memref<384x256xbf16, #tpu.memory_space<vmem>>, vector<384x256xbf16>
    %cst = arith.constant dense<0.000000e+00> : vector<8x256xf32>
    %6 = tpu.matmul %4, %5, %cst {dimension_numbers = #tpu.dot_dimension_numbers<[1], [0], [0], [1], [0, 0, 1, 1], [], []>} : vector<8x384xbf16>, vector<384x256xbf16>, vector<8x256xf32> -> vector<8x256xf32>
    %7 = arith.addf %3, %6 : vector<8x256xf32>
    %c0_6 = arith.constant 0 : index
    %c0_7 = arith.constant 0 : index
    %8 = vector.load %arg7[%c0_6, %c0_7] : memref<8x256xf32, #tpu.memory_space<vmem>>, vector<8x256xf32>
    tpu.vector_store %arg7[%c0_6, %c0_7], %7 {strides = array<i32>} : memref<8x256xf32, #tpu.memory_space<vmem>>, vector<8x256xf32>,
    %c2_i32 = arith.constant 2 : i32
    %9 = arith.cmpi eq, %arg1, %c2_i32 : i32
    %10 = arith.extui %9 : i1 to i32
    %c0_i32_8 = arith.constant 0 : i32
    %11 = arith.cmpi ne, %10, %c0_i32_8 : i32
    scf.if %11 {
      %c0_9 = arith.constant 0 : index
      %c0_10 = arith.constant 0 : index
      %12 = vector.load %arg7[%c0_9, %c0_10] : memref<8x256xf32, #tpu.memory_space<vmem>>, vector<8x256xf32>
      %c0_11 = arith.constant 0 : index
      %c0_12 = arith.constant 0 : index
      %13 = vector.load %arg4[%c0_11, %c0_12] : memref<8x256xf32, #tpu.memory_space<vmem>>, vector<8x256xf32>
      tpu.vector_store %arg4[%c0_11, %c0_12], %12 {strides = array<i32>} : memref<8x256xf32, #tpu.memory_space<vmem>>, vector<8x256xf32>,
      %cst_13 = arith.constant dense<0.000000e+00> : vector<256xf32>
      %14 = vector.multi_reduction <add>, %12, %cst_13 [0] : vector<8x256xf32> to vector<256xf32>
      %15 = vector.shape_cast %14 : vector<256xf32> to vector<1x256xf32>
      %16 = arith.mulf %12, %12 : vector<8x256xf32>
      %cst_14 = arith.constant dense<0.000000e+00> : vector<256xf32>
      %17 = vector.multi_reduction <add>, %16, %cst_14 [0] : vector<8x256xf32> to vector<256xf32>
      %18 = vector.shape_cast %17 : vector<256xf32> to vector<1x256xf32>
      %19 = vector.shape_cast %15 : vector<1x256xf32> to vector<1x256xf32>
      %20 = vector.broadcast %19 : vector<1x256xf32> to vector<8x256xf32>
      %c0_15 = arith.constant 0 : index
      %c0_16 = arith.constant 0 : index
      %21 = vector.load %arg5[%c0_15, %c0_16] : memref<8x256xf32, #tpu.memory_space<vmem>>, vector<8x256xf32>
      tpu.vector_store %arg5[%c0_15, %c0_16], %20 {strides = array<i32>} : memref<8x256xf32, #tpu.memory_space<vmem>>, vector<8x256xf32>,
      %22 = vector.shape_cast %18 : vector<1x256xf32> to vector<1x256xf32>
      %23 = vector.broadcast %22 : vector<1x256xf32> to vector<8x256xf32>
      %c0_17 = arith.constant 0 : index
      %c0_18 = arith.constant 0 : index
      %24 = vector.load %arg6[%c0_17, %c0_18] : memref<8x256xf32, #tpu.memory_space<vmem>>, vector<8x256xf32>
      tpu.vector_store %arg6[%c0_17, %c0_18], %23 {strides = array<i32>} : memref<8x256xf32, #tpu.memory_space<vmem>>, vector<8x256xf32>,
    } else {
    }
    return
  }
  func.func @transform_0(%arg0: i32, %arg1: i32) -> (i32, i32) {
    %c0_i32 = arith.constant 0 : i32
    return %arg0, %arg1 : i32, i32
  }
  func.func @transform_1(%arg0: i32, %arg1: i32) -> (i32, i32) {
    %c0_i32 = arith.constant 0 : i32
    %c0_i32_0 = arith.constant 0 : i32
    return %arg1, %c0_i32 : i32, i32
  }
  func.func @transform_2(%arg0: i32, %arg1: i32) -> (i32, i32) {
    %c0_i32 = arith.constant 0 : i32
    %c0_i32_0 = arith.constant 0 : i32
    return %arg0, %c0_i32 : i32, i32
  }
  func.func @transform_3(%arg0: i32, %arg1: i32) -> (i32, i32) {
    %c0_i32 = arith.constant 0 : i32
    %c0_i32_0 = arith.constant 0 : i32
    return %arg0, %c0_i32 : i32, i32
  }
  func.func @transform_4(%arg0: i32, %arg1: i32) -> (i32, i32) {
    %c0_i32 = arith.constant 0 : i32
    %c0_i32_0 = arith.constant 0 : i32
    return %arg0, %c0_i32 : i32, i32
  }
}

module attributes {stable_mosaic.version = 11 : i64} {
  func.func @_conv_matmul_kernel(%arg0: i32, %arg1: i32, %arg2: memref<8x384xbf16, #tpu.memory_space<vmem>>, %arg3: memref<384x256xbf16, #tpu.memory_space<vmem>>, %arg4: memref<8x256xf32, #tpu.memory_space<vmem>>, %arg5: memref<8x256xf32, #tpu.memory_space<vmem>>, %arg6: memref<8x256xf32, #tpu.memory_space<vmem>>, %arg7: memref<8x256xf32, #tpu.memory_space<vmem>>) attributes {dimension_semantics = [#tpu.dimension_semantics<parallel>, #tpu.dimension_semantics<arbitrary>], iteration_bounds = array<i64: 1, 6>, scalar_prefetch = 0 : i64, scratch_operands = 1 : i64, tpu.core_type = #tpu.core_type<tc>, window_params = [{transform_indices = @transform_0, window_bounds = array<i64: 8, 384>}, {transform_indices = @transform_1, window_bounds = array<i64: 384, 256>}, {transform_indices = @transform_2, window_bounds = array<i64: 8, 256>}, {transform_indices = @transform_3, window_bounds = array<i64: 8, 256>}, {transform_indices = @transform_4, window_bounds = array<i64: 8, 256>}]} {
    %c0_i32 = arith.constant 0 : i32
    %0 = arith.cmpi eq, %arg1, %c0_i32 : i32
    %1 = arith.extui %0 : i1 to i32
    %c0_i32_0 = arith.constant 0 : i32
    %2 = arith.cmpi ne, %1, %c0_i32_0 : i32
    scf.if %2 {
      %cst_9 = arith.constant 0.000000e+00 : f32
      %12 = vector.broadcast %cst_9 : f32 to vector<8x256xf32>
      %c0_10 = arith.constant 0 : index
      %c0_11 = arith.constant 0 : index
      %13 = vector.load %arg7[%c0_10, %c0_11] : memref<8x256xf32, #tpu.memory_space<vmem>>, vector<8x256xf32>
      tpu.vector_store %arg7[%c0_10, %c0_11], %12 {strides = array<i32>} : memref<8x256xf32, #tpu.memory_space<vmem>>, vector<8x256xf32>,
    } else {
    }
    %c0 = arith.constant 0 : index
    %c0_1 = arith.constant 0 : index
    %3 = vector.load %arg7[%c0, %c0_1] : memref<8x256xf32, #tpu.memory_space<vmem>>, vector<8x256xf32>
    %c0_2 = arith.constant 0 : index
    %c0_3 = arith.constant 0 : index
    %4 = vector.load %arg2[%c0_2, %c0_3] : memref<8x384xbf16, #tpu.memory_space<vmem>>, vector<8x384xbf16>
    %c0_4 = arith.constant 0 : index
    %c0_5 = arith.constant 0 : index
    %5 = vector.load %arg3[%c0_4, %c0_5] : memref<384x256xbf16, #tpu.memory_space<vmem>>, vector<384x256xbf16>
    %cst = arith.constant dense<0.000000e+00> : vector<8x256xf32>
    %6 = tpu.matmul %4, %5, %cst {dimension_numbers = #tpu.dot_dimension_numbers<[1], [0], [0], [1], [0, 0, 1, 1], [], []>} : vector<8x384xbf16>, vector<384x256xbf16>, vector<8x256xf32> -> vector<8x256xf32>
    %7 = arith.addf %3, %6 : vector<8x256xf32>
    %c0_6 = arith.constant 0 : index
    %c0_7 = arith.constant 0 : index
    %8 = vector.load %arg7[%c0_6, %c0_7] : memref<8x256xf32, #tpu.memory_space<vmem>>, vector<8x256xf32>
    tpu.vector_store %arg7[%c0_6, %c0_7], %7 {strides = array<i32>} : memref<8x256xf32, #tpu.memory_space<vmem>>, vector<8x256xf32>,
    %c5_i32 = arith.constant 5 : i32
    %9 = arith.cmpi eq, %arg1, %c5_i32 : i32
    %10 = arith.extui %9 : i1 to i32
    %c0_i32_8 = arith.constant 0 : i32
    %11 = arith.cmpi ne, %10, %c0_i32_8 : i32
    scf.if %11 {
      %c0_9 = arith.constant 0 : index
      %c0_10 = arith.constant 0 : index
      %12 = vector.load %arg7[%c0_9, %c0_10] : memref<8x256xf32, #tpu.memory_space<vmem>>, vector<8x256xf32>
      %c0_11 = arith.constant 0 : index
      %c0_12 = arith.constant 0 : index
      %13 = vector.load %arg4[%c0_11, %c0_12] : memref<8x256xf32, #tpu.memory_space<vmem>>, vector<8x256xf32>
      tpu.vector_store %arg4[%c0_11, %c0_12], %12 {strides = array<i32>} : memref<8x256xf32, #tpu.memory_space<vmem>>, vector<8x256xf32>,
      %cst_13 = arith.constant dense<0.000000e+00> : vector<256xf32>
      %14 = vector.multi_reduction <add>, %12, %cst_13 [0] : vector<8x256xf32> to vector<256xf32>
      %15 = vector.shape_cast %14 : vector<256xf32> to vector<1x256xf32>
      %16 = arith.mulf %12, %12 : vector<8x256xf32>
      %cst_14 = arith.constant dense<0.000000e+00> : vector<256xf32>
      %17 = vector.multi_reduction <add>, %16, %cst_14 [0] : vector<8x256xf32> to vector<256xf32>
      %18 = vector.shape_cast %17 : vector<256xf32> to vector<1x256xf32>
      %19 = vector.shape_cast %15 : vector<1x256xf32> to vector<1x256xf32>
      %20 = vector.broadcast %19 : vector<1x256xf32> to vector<8x256xf32>
      %c0_15 = arith.constant 0 : index
      %c0_16 = arith.constant 0 : index
      %21 = vector.load %arg5[%c0_15, %c0_16] : memref<8x256xf32, #tpu.memory_space<vmem>>, vector<8x256xf32>
      tpu.vector_store %arg5[%c0_15, %c0_16], %20 {strides = array<i32>} : memref<8x256xf32, #tpu.memory_space<vmem>>, vector<8x256xf32>,
      %22 = vector.shape_cast %18 : vector<1x256xf32> to vector<1x256xf32>
      %23 = vector.broadcast %22 : vector<1x256xf32> to vector<8x256xf32>
      %c0_17 = arith.constant 0 : index
      %c0_18 = arith.constant 0 : index
      %24 = vector.load %arg6[%c0_17, %c0_18] : memref<8x256xf32, #tpu.memory_space<vmem>>, vector<8x256xf32>
      tpu.vector_store %arg6[%c0_17, %c0_18], %23 {strides = array<i32>} : memref<8x256xf32, #tpu.memory_space<vmem>>, vector<8x256xf32>,
    } else {
    }
    return
  }
  func.func @transform_0(%arg0: i32, %arg1: i32) -> (i32, i32) {
    %c0_i32 = arith.constant 0 : i32
    return %arg0, %arg1 : i32, i32
  }
  func.func @transform_1(%arg0: i32, %arg1: i32) -> (i32, i32) {
    %c0_i32 = arith.constant 0 : i32
    %c0_i32_0 = arith.constant 0 : i32
    return %arg1, %c0_i32 : i32, i32
  }
  func.func @transform_2(%arg0: i32, %arg1: i32) -> (i32, i32) {
    %c0_i32 = arith.constant 0 : i32
    %c0_i32_0 = arith.constant 0 : i32
    return %arg0, %c0_i32 : i32, i32
  }
  func.func @transform_3(%arg0: i32, %arg1: i32) -> (i32, i32) {
    %c0_i32 = arith.constant 0 : i32
    %c0_i32_0 = arith.constant 0 : i32
    return %arg0, %c0_i32 : i32, i32
  }
  func.func @transform_4(%arg0: i32, %arg1: i32) -> (i32, i32) {
    %c0_i32 = arith.constant 0 : i32
    %c0_i32_0 = arith.constant 0 : i32
    return %arg0, %c0_i32 : i32, i32
  }
}

module attributes {stable_mosaic.version = 11 : i64} {
  func.func @_conv_matmul_kernel(%arg0: i32, %arg1: i32, %arg2: memref<8x128xbf16, #tpu.memory_space<vmem>>, %arg3: memref<128x256xbf16, #tpu.memory_space<vmem>>, %arg4: memref<8x256xf32, #tpu.memory_space<vmem>>, %arg5: memref<8x256xf32, #tpu.memory_space<vmem>>, %arg6: memref<8x256xf32, #tpu.memory_space<vmem>>, %arg7: memref<8x256xf32, #tpu.memory_space<vmem>>) attributes {dimension_semantics = [#tpu.dimension_semantics<parallel>, #tpu.dimension_semantics<arbitrary>], iteration_bounds = array<i64: 1, 1>, scalar_prefetch = 0 : i64, scratch_operands = 1 : i64, tpu.core_type = #tpu.core_type<tc>, window_params = [{transform_indices = @transform_0, window_bounds = array<i64: 8, 128>}, {transform_indices = @transform_1, window_bounds = array<i64: 128, 256>}, {transform_indices = @transform_2, window_bounds = array<i64: 8, 256>}, {transform_indices = @transform_3, window_bounds = array<i64: 8, 256>}, {transform_indices = @transform_4, window_bounds = array<i64: 8, 256>}]} {
    %c0_i32 = arith.constant 0 : i32
    %0 = arith.cmpi eq, %arg1, %c0_i32 : i32
    %1 = arith.extui %0 : i1 to i32
    %c0_i32_0 = arith.constant 0 : i32
    %2 = arith.cmpi ne, %1, %c0_i32_0 : i32
    scf.if %2 {
      %cst_10 = arith.constant 0.000000e+00 : f32
      %12 = vector.broadcast %cst_10 : f32 to vector<8x256xf32>
      %c0_11 = arith.constant 0 : index
      %c0_12 = arith.constant 0 : index
      %13 = vector.load %arg7[%c0_11, %c0_12] : memref<8x256xf32, #tpu.memory_space<vmem>>, vector<8x256xf32>
      tpu.vector_store %arg7[%c0_11, %c0_12], %12 {strides = array<i32>} : memref<8x256xf32, #tpu.memory_space<vmem>>, vector<8x256xf32>,
    } else {
    }
    %c0 = arith.constant 0 : index
    %c0_1 = arith.constant 0 : index
    %3 = vector.load %arg7[%c0, %c0_1] : memref<8x256xf32, #tpu.memory_space<vmem>>, vector<8x256xf32>
    %c0_2 = arith.constant 0 : index
    %c0_3 = arith.constant 0 : index
    %4 = vector.load %arg2[%c0_2, %c0_3] : memref<8x128xbf16, #tpu.memory_space<vmem>>, vector<8x128xbf16>
    %c0_4 = arith.constant 0 : index
    %c0_5 = arith.constant 0 : index
    %5 = vector.load %arg3[%c0_4, %c0_5] : memref<128x256xbf16, #tpu.memory_space<vmem>>, vector<128x256xbf16>
    %cst = arith.constant dense<0.000000e+00> : vector<8x256xf32>
    %6 = tpu.matmul %4, %5, %cst {dimension_numbers = #tpu.dot_dimension_numbers<[1], [0], [0], [1], [0, 0, 1, 1], [], []>} : vector<8x128xbf16>, vector<128x256xbf16>, vector<8x256xf32> -> vector<8x256xf32>
    %7 = arith.addf %3, %6 : vector<8x256xf32>
    %c0_6 = arith.constant 0 : index
    %c0_7 = arith.constant 0 : index
    %8 = vector.load %arg7[%c0_6, %c0_7] : memref<8x256xf32, #tpu.memory_space<vmem>>, vector<8x256xf32>
    tpu.vector_store %arg7[%c0_6, %c0_7], %7 {strides = array<i32>} : memref<8x256xf32, #tpu.memory_space<vmem>>, vector<8x256xf32>,
    %c0_i32_8 = arith.constant 0 : i32
    %9 = arith.cmpi eq, %arg1, %c0_i32_8 : i32
    %10 = arith.extui %9 : i1 to i32
    %c0_i32_9 = arith.constant 0 : i32
    %11 = arith.cmpi ne, %10, %c0_i32_9 : i32
    scf.if %11 {
      %c0_10 = arith.constant 0 : index
      %c0_11 = arith.constant 0 : index
      %12 = vector.load %arg7[%c0_10, %c0_11] : memref<8x256xf32, #tpu.memory_space<vmem>>, vector<8x256xf32>
      %c0_12 = arith.constant 0 : index
      %c0_13 = arith.constant 0 : index
      %13 = vector.load %arg4[%c0_12, %c0_13] : memref<8x256xf32, #tpu.memory_space<vmem>>, vector<8x256xf32>
      tpu.vector_store %arg4[%c0_12, %c0_13], %12 {strides = array<i32>} : memref<8x256xf32, #tpu.memory_space<vmem>>, vector<8x256xf32>,
      %cst_14 = arith.constant dense<0.000000e+00> : vector<256xf32>
      %14 = vector.multi_reduction <add>, %12, %cst_14 [0] : vector<8x256xf32> to vector<256xf32>
      %15 = vector.shape_cast %14 : vector<256xf32> to vector<1x256xf32>
      %16 = arith.mulf %12, %12 : vector<8x256xf32>
      %cst_15 = arith.constant dense<0.000000e+00> : vector<256xf32>
      %17 = vector.multi_reduction <add>, %16, %cst_15 [0] : vector<8x256xf32> to vector<256xf32>
      %18 = vector.shape_cast %17 : vector<256xf32> to vector<1x256xf32>
      %19 = vector.shape_cast %15 : vector<1x256xf32> to vector<1x256xf32>
      %20 = vector.broadcast %19 : vector<1x256xf32> to vector<8x256xf32>
      %c0_16 = arith.constant 0 : index
      %c0_17 = arith.constant 0 : index
      %21 = vector.load %arg5[%c0_16, %c0_17] : memref<8x256xf32, #tpu.memory_space<vmem>>, vector<8x256xf32>
      tpu.vector_store %arg5[%c0_16, %c0_17], %20 {strides = array<i32>} : memref<8x256xf32, #tpu.memory_space<vmem>>, vector<8x256xf32>,
      %22 = vector.shape_cast %18 : vector<1x256xf32> to vector<1x256xf32>
      %23 = vector.broadcast %22 : vector<1x256xf32> to vector<8x256xf32>
      %c0_18 = arith.constant 0 : index
      %c0_19 = arith.constant 0 : index
      %24 = vector.load %arg6[%c0_18, %c0_19] : memref<8x256xf32, #tpu.memory_space<vmem>>, vector<8x256xf32>
      tpu.vector_store %arg6[%c0_18, %c0_19], %23 {strides = array<i32>} : memref<8x256xf32, #tpu.memory_space<vmem>>, vector<8x256xf32>,
    } else {
    }
    return
  }
  func.func @transform_0(%arg0: i32, %arg1: i32) -> (i32, i32) {
    %c0_i32 = arith.constant 0 : i32
    return %arg0, %arg1 : i32, i32
  }
  func.func @transform_1(%arg0: i32, %arg1: i32) -> (i32, i32) {
    %c0_i32 = arith.constant 0 : i32
    %c0_i32_0 = arith.constant 0 : i32
    return %arg1, %c0_i32 : i32, i32
  }
  func.func @transform_2(%arg0: i32, %arg1: i32) -> (i32, i32) {
    %c0_i32 = arith.constant 0 : i32
    %c0_i32_0 = arith.constant 0 : i32
    return %arg0, %c0_i32 : i32, i32
  }
  func.func @transform_3(%arg0: i32, %arg1: i32) -> (i32, i32) {
    %c0_i32 = arith.constant 0 : i32
    %c0_i32_0 = arith.constant 0 : i32
    return %arg0, %c0_i32 : i32, i32
  }
  func.func @transform_4(%arg0: i32, %arg1: i32) -> (i32, i32) {
    %c0_i32 = arith.constant 0 : i32
    %c0_i32_0 = arith.constant 0 : i32
    return %arg0, %c0_i32 : i32, i32
  }
}

module attributes {stable_mosaic.version = 11 : i64} {
  func.func @kernel(%arg0: i32, %arg1: memref<8x256xf32, #tpu.memory_space<vmem>>, %arg2: memref<8x256xf32, #tpu.memory_space<vmem>>, %arg3: memref<8x256xf32, #tpu.memory_space<vmem>>, %arg4: memref<1x256xf32, #tpu.memory_space<vmem>>, %arg5: memref<1x256xf32, #tpu.memory_space<vmem>>, %arg6: memref<8x256xbf16, #tpu.memory_space<vmem>>) attributes {dimension_semantics = [#tpu.dimension_semantics<parallel>], iteration_bounds = array<i64: 1>, scalar_prefetch = 0 : i64, scratch_operands = 0 : i64, tpu.core_type = #tpu.core_type<tc>, window_params = [{transform_indices = @transform_0, window_bounds = array<i64: 8, 256>}, {pipeline_mode = #tpu.pipeline_mode<synchronous>, transform_indices = @transform_1, window_bounds = array<i64: 8, 256>}, {pipeline_mode = #tpu.pipeline_mode<synchronous>, transform_indices = @transform_2, window_bounds = array<i64: 8, 256>}, {pipeline_mode = #tpu.pipeline_mode<synchronous>, transform_indices = @transform_3, window_bounds = array<i64: 1, 256>}, {pipeline_mode = #tpu.pipeline_mode<synchronous>, transform_indices = @transform_4, window_bounds = array<i64: 1, 256>}, {transform_indices = @transform_5, window_bounds = array<i64: 8, 256>}]} {
    %c0 = arith.constant 0 : index
    %c0_0 = arith.constant 0 : index
    %0 = vector.load %arg2[%c0, %c0_0] : memref<8x256xf32, #tpu.memory_space<vmem>>, vector<8x256xf32>
    %cst = arith.constant dense<0.000000e+00> : vector<256xf32>
    %1 = vector.multi_reduction <add>, %0, %cst [0] : vector<8x256xf32> to vector<256xf32>
    %2 = vector.shape_cast %1 : vector<256xf32> to vector<1x256xf32>
    %cst_1 = arith.constant 1.562500e-02 : f32
    %3 = vector.broadcast %cst_1 : f32 to vector<1x256xf32>
    %4 = arith.mulf %2, %3 : vector<1x256xf32>
    %c0_2 = arith.constant 0 : index
    %c0_3 = arith.constant 0 : index
    %5 = vector.load %arg3[%c0_2, %c0_3] : memref<8x256xf32, #tpu.memory_space<vmem>>, vector<8x256xf32>
    %cst_4 = arith.constant dense<0.000000e+00> : vector<256xf32>
    %6 = vector.multi_reduction <add>, %5, %cst_4 [0] : vector<8x256xf32> to vector<256xf32>
    %7 = vector.shape_cast %6 : vector<256xf32> to vector<1x256xf32>
    %cst_5 = arith.constant 1.562500e-02 : f32
    %8 = vector.broadcast %cst_5 : f32 to vector<1x256xf32>
    %9 = arith.mulf %7, %8 : vector<1x256xf32>
    %10 = arith.mulf %4, %4 : vector<1x256xf32>
    %11 = arith.subf %9, %10 : vector<1x256xf32>
    %cst_6 = arith.constant 0.000000e+00 : f32
    %12 = vector.broadcast %cst_6 : f32 to vector<1x256xf32>
    %13 = arith.maximumf %11, %12 : vector<1x256xf32>
    %c0_7 = arith.constant 0 : index
    %c0_8 = arith.constant 0 : index
    %14 = vector.load %arg4[%c0_7, %c0_8] : memref<1x256xf32, #tpu.memory_space<vmem>>, vector<1x256xf32>
    %cst_9 = arith.constant 9.99999974E-6 : f32
    %15 = vector.broadcast %cst_9 : f32 to vector<1x256xf32>
    %16 = arith.addf %13, %15 : vector<1x256xf32>
    %17 = math.rsqrt %16 : vector<1x256xf32>
    %18 = arith.mulf %14, %17 : vector<1x256xf32>
    %c0_10 = arith.constant 0 : index
    %c0_11 = arith.constant 0 : index
    %19 = vector.load %arg5[%c0_10, %c0_11] : memref<1x256xf32, #tpu.memory_space<vmem>>, vector<1x256xf32>
    %20 = arith.mulf %4, %18 : vector<1x256xf32>
    %21 = arith.subf %19, %20 : vector<1x256xf32>
    %c0_12 = arith.constant 0 : index
    %c0_13 = arith.constant 0 : index
    %22 = vector.load %arg1[%c0_12, %c0_13] : memref<8x256xf32, #tpu.memory_space<vmem>>, vector<8x256xf32>
    %23 = vector.broadcast %18 : vector<1x256xf32> to vector<8x256xf32>
    %24 = arith.mulf %22, %23 : vector<8x256xf32>
    %25 = vector.broadcast %21 : vector<1x256xf32> to vector<8x256xf32>
    %26 = arith.addf %24, %25 : vector<8x256xf32>
    %27 = arith.truncf %26 : vector<8x256xf32> to vector<8x256xbf16>
    %c0_14 = arith.constant 0 : index
    %c0_15 = arith.constant 0 : index
    %28 = vector.load %arg6[%c0_14, %c0_15] : memref<8x256xbf16, #tpu.memory_space<vmem>>, vector<8x256xbf16>
    tpu.vector_store %arg6[%c0_14, %c0_15], %27 {strides = array<i32>} : memref<8x256xbf16, #tpu.memory_space<vmem>>, vector<8x256xbf16>,
    return
  }
  func.func @transform_0(%arg0: i32) -> (i32, i32) {
    %c0_i32 = arith.constant 0 : i32
    %c0_i32_0 = arith.constant 0 : i32
    return %arg0, %c0_i32 : i32, i32
  }
  func.func @transform_1(%arg0: i32) -> (i32, i32) {
    %c0_i32 = arith.constant 0 : i32
    %c0_i32_0 = arith.constant 0 : i32
    %c0_i32_1 = arith.constant 0 : i32
    return %c0_i32, %c0_i32_0 : i32, i32
  }
  func.func @transform_2(%arg0: i32) -> (i32, i32) {
    %c0_i32 = arith.constant 0 : i32
    %c0_i32_0 = arith.constant 0 : i32
    %c0_i32_1 = arith.constant 0 : i32
    return %c0_i32, %c0_i32_0 : i32, i32
  }
  func.func @transform_3(%arg0: i32) -> (i32, i32) {
    %c0_i32 = arith.constant 0 : i32
    %c0_i32_0 = arith.constant 0 : i32
    %c0_i32_1 = arith.constant 0 : i32
    return %c0_i32, %c0_i32_0 : i32, i32
  }
  func.func @transform_4(%arg0: i32) -> (i32, i32) {
    %c0_i32 = arith.constant 0 : i32
    %c0_i32_0 = arith.constant 0 : i32
    %c0_i32_1 = arith.constant 0 : i32
    return %c0_i32, %c0_i32_0 : i32, i32
  }
  func.func @transform_5(%arg0: i32) -> (i32, i32) {
    %c0_i32 = arith.constant 0 : i32
    %c0_i32_0 = arith.constant 0 : i32
    return %arg0, %c0_i32 : i32, i32
  }
}

module attributes {stable_mosaic.version = 11 : i64} {
  func.func @kernel(%arg0: i32, %arg1: memref<8x256xf32, #tpu.memory_space<vmem>>, %arg2: memref<8x256xf32, #tpu.memory_space<vmem>>, %arg3: memref<8x256xf32, #tpu.memory_space<vmem>>, %arg4: memref<1x256xf32, #tpu.memory_space<vmem>>, %arg5: memref<1x256xf32, #tpu.memory_space<vmem>>, %arg6: memref<8x256xbf16, #tpu.memory_space<vmem>>, %arg7: memref<8x256xbf16, #tpu.memory_space<vmem>>) attributes {dimension_semantics = [#tpu.dimension_semantics<parallel>], iteration_bounds = array<i64: 1>, scalar_prefetch = 0 : i64, scratch_operands = 0 : i64, tpu.core_type = #tpu.core_type<tc>, window_params = [{transform_indices = @transform_0, window_bounds = array<i64: 8, 256>}, {pipeline_mode = #tpu.pipeline_mode<synchronous>, transform_indices = @transform_1, window_bounds = array<i64: 8, 256>}, {pipeline_mode = #tpu.pipeline_mode<synchronous>, transform_indices = @transform_2, window_bounds = array<i64: 8, 256>}, {pipeline_mode = #tpu.pipeline_mode<synchronous>, transform_indices = @transform_3, window_bounds = array<i64: 1, 256>}, {pipeline_mode = #tpu.pipeline_mode<synchronous>, transform_indices = @transform_4, window_bounds = array<i64: 1, 256>}, {transform_indices = @transform_5, window_bounds = array<i64: 8, 256>}, {transform_indices = @transform_6, window_bounds = array<i64: 8, 256>}]} {
    %c0 = arith.constant 0 : index
    %c0_0 = arith.constant 0 : index
    %0 = vector.load %arg2[%c0, %c0_0] : memref<8x256xf32, #tpu.memory_space<vmem>>, vector<8x256xf32>
    %cst = arith.constant dense<0.000000e+00> : vector<256xf32>
    %1 = vector.multi_reduction <add>, %0, %cst [0] : vector<8x256xf32> to vector<256xf32>
    %2 = vector.shape_cast %1 : vector<256xf32> to vector<1x256xf32>
    %cst_1 = arith.constant 1.562500e-02 : f32
    %3 = vector.broadcast %cst_1 : f32 to vector<1x256xf32>
    %4 = arith.mulf %2, %3 : vector<1x256xf32>
    %c0_2 = arith.constant 0 : index
    %c0_3 = arith.constant 0 : index
    %5 = vector.load %arg3[%c0_2, %c0_3] : memref<8x256xf32, #tpu.memory_space<vmem>>, vector<8x256xf32>
    %cst_4 = arith.constant dense<0.000000e+00> : vector<256xf32>
    %6 = vector.multi_reduction <add>, %5, %cst_4 [0] : vector<8x256xf32> to vector<256xf32>
    %7 = vector.shape_cast %6 : vector<256xf32> to vector<1x256xf32>
    %cst_5 = arith.constant 1.562500e-02 : f32
    %8 = vector.broadcast %cst_5 : f32 to vector<1x256xf32>
    %9 = arith.mulf %7, %8 : vector<1x256xf32>
    %10 = arith.mulf %4, %4 : vector<1x256xf32>
    %11 = arith.subf %9, %10 : vector<1x256xf32>
    %cst_6 = arith.constant 0.000000e+00 : f32
    %12 = vector.broadcast %cst_6 : f32 to vector<1x256xf32>
    %13 = arith.maximumf %11, %12 : vector<1x256xf32>
    %c0_7 = arith.constant 0 : index
    %c0_8 = arith.constant 0 : index
    %14 = vector.load %arg4[%c0_7, %c0_8] : memref<1x256xf32, #tpu.memory_space<vmem>>, vector<1x256xf32>
    %cst_9 = arith.constant 9.99999974E-6 : f32
    %15 = vector.broadcast %cst_9 : f32 to vector<1x256xf32>
    %16 = arith.addf %13, %15 : vector<1x256xf32>
    %17 = math.rsqrt %16 : vector<1x256xf32>
    %18 = arith.mulf %14, %17 : vector<1x256xf32>
    %c0_10 = arith.constant 0 : index
    %c0_11 = arith.constant 0 : index
    %19 = vector.load %arg5[%c0_10, %c0_11] : memref<1x256xf32, #tpu.memory_space<vmem>>, vector<1x256xf32>
    %20 = arith.mulf %4, %18 : vector<1x256xf32>
    %21 = arith.subf %19, %20 : vector<1x256xf32>
    %c0_12 = arith.constant 0 : index
    %c0_13 = arith.constant 0 : index
    %22 = vector.load %arg1[%c0_12, %c0_13] : memref<8x256xf32, #tpu.memory_space<vmem>>, vector<8x256xf32>
    %23 = vector.broadcast %18 : vector<1x256xf32> to vector<8x256xf32>
    %24 = arith.mulf %22, %23 : vector<8x256xf32>
    %25 = vector.broadcast %21 : vector<1x256xf32> to vector<8x256xf32>
    %26 = arith.addf %24, %25 : vector<8x256xf32>
    %c0_14 = arith.constant 0 : index
    %c0_15 = arith.constant 0 : index
    %27 = vector.load %arg6[%c0_14, %c0_15] : memref<8x256xbf16, #tpu.memory_space<vmem>>, vector<8x256xbf16>
    %28 = arith.extf %27 : vector<8x256xbf16> to vector<8x256xf32>
    %29 = arith.addf %26, %28 : vector<8x256xf32>
    %cst_16 = arith.constant 0.000000e+00 : f32
    %30 = vector.broadcast %cst_16 : f32 to vector<8x256xf32>
    %31 = arith.maximumf %29, %30 : vector<8x256xf32>
    %32 = arith.truncf %31 : vector<8x256xf32> to vector<8x256xbf16>
    %c0_17 = arith.constant 0 : index
    %c0_18 = arith.constant 0 : index
    %33 = vector.load %arg7[%c0_17, %c0_18] : memref<8x256xbf16, #tpu.memory_space<vmem>>, vector<8x256xbf16>
    tpu.vector_store %arg7[%c0_17, %c0_18], %32 {strides = array<i32>} : memref<8x256xbf16, #tpu.memory_space<vmem>>, vector<8x256xbf16>,
    return
  }
  func.func @transform_0(%arg0: i32) -> (i32, i32) {
    %c0_i32 = arith.constant 0 : i32
    %c0_i32_0 = arith.constant 0 : i32
    return %arg0, %c0_i32 : i32, i32
  }
  func.func @transform_1(%arg0: i32) -> (i32, i32) {
    %c0_i32 = arith.constant 0 : i32
    %c0_i32_0 = arith.constant 0 : i32
    %c0_i32_1 = arith.constant 0 : i32
    return %c0_i32, %c0_i32_0 : i32, i32
  }
  func.func @transform_2(%arg0: i32) -> (i32, i32) {
    %c0_i32 = arith.constant 0 : i32
    %c0_i32_0 = arith.constant 0 : i32
    %c0_i32_1 = arith.constant 0 : i32
    return %c0_i32, %c0_i32_0 : i32, i32
  }
  func.func @transform_3(%arg0: i32) -> (i32, i32) {
    %c0_i32 = arith.constant 0 : i32
    %c0_i32_0 = arith.constant 0 : i32
    %c0_i32_1 = arith.constant 0 : i32
    return %c0_i32, %c0_i32_0 : i32, i32
  }
  func.func @transform_4(%arg0: i32) -> (i32, i32) {
    %c0_i32 = arith.constant 0 : i32
    %c0_i32_0 = arith.constant 0 : i32
    %c0_i32_1 = arith.constant 0 : i32
    return %c0_i32, %c0_i32_0 : i32, i32
  }
  func.func @transform_5(%arg0: i32) -> (i32, i32) {
    %c0_i32 = arith.constant 0 : i32
    %c0_i32_0 = arith.constant 0 : i32
    return %arg0, %c0_i32 : i32, i32
  }
  func.func @transform_6(%arg0: i32) -> (i32, i32) {
    %c0_i32 = arith.constant 0 : i32
    %c0_i32_0 = arith.constant 0 : i32
    return %arg0, %c0_i32 : i32, i32
  }
}

module attributes {stable_mosaic.version = 11 : i64} {
  func.func @_conv_matmul_kernel(%arg0: i32, %arg1: i32, %arg2: memref<8x384xbf16, #tpu.memory_space<vmem>>, %arg3: memref<384x512xbf16, #tpu.memory_space<vmem>>, %arg4: memref<8x512xf32, #tpu.memory_space<vmem>>, %arg5: memref<8x512xf32, #tpu.memory_space<vmem>>, %arg6: memref<8x512xf32, #tpu.memory_space<vmem>>, %arg7: memref<8x512xf32, #tpu.memory_space<vmem>>) attributes {dimension_semantics = [#tpu.dimension_semantics<parallel>, #tpu.dimension_semantics<arbitrary>], iteration_bounds = array<i64: 1, 6>, scalar_prefetch = 0 : i64, scratch_operands = 1 : i64, tpu.core_type = #tpu.core_type<tc>, window_params = [{transform_indices = @transform_0, window_bounds = array<i64: 8, 384>}, {transform_indices = @transform_1, window_bounds = array<i64: 384, 512>}, {transform_indices = @transform_2, window_bounds = array<i64: 8, 512>}, {transform_indices = @transform_3, window_bounds = array<i64: 8, 512>}, {transform_indices = @transform_4, window_bounds = array<i64: 8, 512>}]} {
    %c0_i32 = arith.constant 0 : i32
    %0 = arith.cmpi eq, %arg1, %c0_i32 : i32
    %1 = arith.extui %0 : i1 to i32
    %c0_i32_0 = arith.constant 0 : i32
    %2 = arith.cmpi ne, %1, %c0_i32_0 : i32
    scf.if %2 {
      %cst_9 = arith.constant 0.000000e+00 : f32
      %12 = vector.broadcast %cst_9 : f32 to vector<8x512xf32>
      %c0_10 = arith.constant 0 : index
      %c0_11 = arith.constant 0 : index
      %13 = vector.load %arg7[%c0_10, %c0_11] : memref<8x512xf32, #tpu.memory_space<vmem>>, vector<8x512xf32>
      tpu.vector_store %arg7[%c0_10, %c0_11], %12 {strides = array<i32>} : memref<8x512xf32, #tpu.memory_space<vmem>>, vector<8x512xf32>,
    } else {
    }
    %c0 = arith.constant 0 : index
    %c0_1 = arith.constant 0 : index
    %3 = vector.load %arg7[%c0, %c0_1] : memref<8x512xf32, #tpu.memory_space<vmem>>, vector<8x512xf32>
    %c0_2 = arith.constant 0 : index
    %c0_3 = arith.constant 0 : index
    %4 = vector.load %arg2[%c0_2, %c0_3] : memref<8x384xbf16, #tpu.memory_space<vmem>>, vector<8x384xbf16>
    %c0_4 = arith.constant 0 : index
    %c0_5 = arith.constant 0 : index
    %5 = vector.load %arg3[%c0_4, %c0_5] : memref<384x512xbf16, #tpu.memory_space<vmem>>, vector<384x512xbf16>
    %cst = arith.constant dense<0.000000e+00> : vector<8x512xf32>
    %6 = tpu.matmul %4, %5, %cst {dimension_numbers = #tpu.dot_dimension_numbers<[1], [0], [0], [1], [0, 0, 1, 1], [], []>} : vector<8x384xbf16>, vector<384x512xbf16>, vector<8x512xf32> -> vector<8x512xf32>
    %7 = arith.addf %3, %6 : vector<8x512xf32>
    %c0_6 = arith.constant 0 : index
    %c0_7 = arith.constant 0 : index
    %8 = vector.load %arg7[%c0_6, %c0_7] : memref<8x512xf32, #tpu.memory_space<vmem>>, vector<8x512xf32>
    tpu.vector_store %arg7[%c0_6, %c0_7], %7 {strides = array<i32>} : memref<8x512xf32, #tpu.memory_space<vmem>>, vector<8x512xf32>,
    %c5_i32 = arith.constant 5 : i32
    %9 = arith.cmpi eq, %arg1, %c5_i32 : i32
    %10 = arith.extui %9 : i1 to i32
    %c0_i32_8 = arith.constant 0 : i32
    %11 = arith.cmpi ne, %10, %c0_i32_8 : i32
    scf.if %11 {
      %c0_9 = arith.constant 0 : index
      %c0_10 = arith.constant 0 : index
      %12 = vector.load %arg7[%c0_9, %c0_10] : memref<8x512xf32, #tpu.memory_space<vmem>>, vector<8x512xf32>
      %c0_11 = arith.constant 0 : index
      %c0_12 = arith.constant 0 : index
      %13 = vector.load %arg4[%c0_11, %c0_12] : memref<8x512xf32, #tpu.memory_space<vmem>>, vector<8x512xf32>
      tpu.vector_store %arg4[%c0_11, %c0_12], %12 {strides = array<i32>} : memref<8x512xf32, #tpu.memory_space<vmem>>, vector<8x512xf32>,
      %cst_13 = arith.constant dense<0.000000e+00> : vector<512xf32>
      %14 = vector.multi_reduction <add>, %12, %cst_13 [0] : vector<8x512xf32> to vector<512xf32>
      %15 = vector.shape_cast %14 : vector<512xf32> to vector<1x512xf32>
      %16 = arith.mulf %12, %12 : vector<8x512xf32>
      %cst_14 = arith.constant dense<0.000000e+00> : vector<512xf32>
      %17 = vector.multi_reduction <add>, %16, %cst_14 [0] : vector<8x512xf32> to vector<512xf32>
      %18 = vector.shape_cast %17 : vector<512xf32> to vector<1x512xf32>
      %19 = vector.shape_cast %15 : vector<1x512xf32> to vector<1x512xf32>
      %20 = vector.broadcast %19 : vector<1x512xf32> to vector<8x512xf32>
      %c0_15 = arith.constant 0 : index
      %c0_16 = arith.constant 0 : index
      %21 = vector.load %arg5[%c0_15, %c0_16] : memref<8x512xf32, #tpu.memory_space<vmem>>, vector<8x512xf32>
      tpu.vector_store %arg5[%c0_15, %c0_16], %20 {strides = array<i32>} : memref<8x512xf32, #tpu.memory_space<vmem>>, vector<8x512xf32>,
      %22 = vector.shape_cast %18 : vector<1x512xf32> to vector<1x512xf32>
      %23 = vector.broadcast %22 : vector<1x512xf32> to vector<8x512xf32>
      %c0_17 = arith.constant 0 : index
      %c0_18 = arith.constant 0 : index
      %24 = vector.load %arg6[%c0_17, %c0_18] : memref<8x512xf32, #tpu.memory_space<vmem>>, vector<8x512xf32>
      tpu.vector_store %arg6[%c0_17, %c0_18], %23 {strides = array<i32>} : memref<8x512xf32, #tpu.memory_space<vmem>>, vector<8x512xf32>,
    } else {
    }
    return
  }
  func.func @transform_0(%arg0: i32, %arg1: i32) -> (i32, i32) {
    %c0_i32 = arith.constant 0 : i32
    return %arg0, %arg1 : i32, i32
  }
  func.func @transform_1(%arg0: i32, %arg1: i32) -> (i32, i32) {
    %c0_i32 = arith.constant 0 : i32
    %c0_i32_0 = arith.constant 0 : i32
    return %arg1, %c0_i32 : i32, i32
  }
  func.func @transform_2(%arg0: i32, %arg1: i32) -> (i32, i32) {
    %c0_i32 = arith.constant 0 : i32
    %c0_i32_0 = arith.constant 0 : i32
    return %arg0, %c0_i32 : i32, i32
  }
  func.func @transform_3(%arg0: i32, %arg1: i32) -> (i32, i32) {
    %c0_i32 = arith.constant 0 : i32
    %c0_i32_0 = arith.constant 0 : i32
    return %arg0, %c0_i32 : i32, i32
  }
  func.func @transform_4(%arg0: i32, %arg1: i32) -> (i32, i32) {
    %c0_i32 = arith.constant 0 : i32
    %c0_i32_0 = arith.constant 0 : i32
    return %arg0, %c0_i32 : i32, i32
  }
}

module attributes {stable_mosaic.version = 11 : i64} {
  func.func @kernel(%arg0: i32, %arg1: memref<8x512xf32, #tpu.memory_space<vmem>>, %arg2: memref<8x512xf32, #tpu.memory_space<vmem>>, %arg3: memref<8x512xf32, #tpu.memory_space<vmem>>, %arg4: memref<1x512xf32, #tpu.memory_space<vmem>>, %arg5: memref<1x512xf32, #tpu.memory_space<vmem>>, %arg6: memref<8x512xbf16, #tpu.memory_space<vmem>>) attributes {dimension_semantics = [#tpu.dimension_semantics<parallel>], iteration_bounds = array<i64: 1>, scalar_prefetch = 0 : i64, scratch_operands = 0 : i64, tpu.core_type = #tpu.core_type<tc>, window_params = [{transform_indices = @transform_0, window_bounds = array<i64: 8, 512>}, {pipeline_mode = #tpu.pipeline_mode<synchronous>, transform_indices = @transform_1, window_bounds = array<i64: 8, 512>}, {pipeline_mode = #tpu.pipeline_mode<synchronous>, transform_indices = @transform_2, window_bounds = array<i64: 8, 512>}, {pipeline_mode = #tpu.pipeline_mode<synchronous>, transform_indices = @transform_3, window_bounds = array<i64: 1, 512>}, {pipeline_mode = #tpu.pipeline_mode<synchronous>, transform_indices = @transform_4, window_bounds = array<i64: 1, 512>}, {transform_indices = @transform_5, window_bounds = array<i64: 8, 512>}]} {
    %c0 = arith.constant 0 : index
    %c0_0 = arith.constant 0 : index
    %0 = vector.load %arg2[%c0, %c0_0] : memref<8x512xf32, #tpu.memory_space<vmem>>, vector<8x512xf32>
    %cst = arith.constant dense<0.000000e+00> : vector<512xf32>
    %1 = vector.multi_reduction <add>, %0, %cst [0] : vector<8x512xf32> to vector<512xf32>
    %2 = vector.shape_cast %1 : vector<512xf32> to vector<1x512xf32>
    %cst_1 = arith.constant 1.562500e-02 : f32
    %3 = vector.broadcast %cst_1 : f32 to vector<1x512xf32>
    %4 = arith.mulf %2, %3 : vector<1x512xf32>
    %c0_2 = arith.constant 0 : index
    %c0_3 = arith.constant 0 : index
    %5 = vector.load %arg3[%c0_2, %c0_3] : memref<8x512xf32, #tpu.memory_space<vmem>>, vector<8x512xf32>
    %cst_4 = arith.constant dense<0.000000e+00> : vector<512xf32>
    %6 = vector.multi_reduction <add>, %5, %cst_4 [0] : vector<8x512xf32> to vector<512xf32>
    %7 = vector.shape_cast %6 : vector<512xf32> to vector<1x512xf32>
    %cst_5 = arith.constant 1.562500e-02 : f32
    %8 = vector.broadcast %cst_5 : f32 to vector<1x512xf32>
    %9 = arith.mulf %7, %8 : vector<1x512xf32>
    %10 = arith.mulf %4, %4 : vector<1x512xf32>
    %11 = arith.subf %9, %10 : vector<1x512xf32>
    %cst_6 = arith.constant 0.000000e+00 : f32
    %12 = vector.broadcast %cst_6 : f32 to vector<1x512xf32>
    %13 = arith.maximumf %11, %12 : vector<1x512xf32>
    %c0_7 = arith.constant 0 : index
    %c0_8 = arith.constant 0 : index
    %14 = vector.load %arg4[%c0_7, %c0_8] : memref<1x512xf32, #tpu.memory_space<vmem>>, vector<1x512xf32>
    %cst_9 = arith.constant 9.99999974E-6 : f32
    %15 = vector.broadcast %cst_9 : f32 to vector<1x512xf32>
    %16 = arith.addf %13, %15 : vector<1x512xf32>
    %17 = math.rsqrt %16 : vector<1x512xf32>
    %18 = arith.mulf %14, %17 : vector<1x512xf32>
    %c0_10 = arith.constant 0 : index
    %c0_11 = arith.constant 0 : index
    %19 = vector.load %arg5[%c0_10, %c0_11] : memref<1x512xf32, #tpu.memory_space<vmem>>, vector<1x512xf32>
    %20 = arith.mulf %4, %18 : vector<1x512xf32>
    %21 = arith.subf %19, %20 : vector<1x512xf32>
    %c0_12 = arith.constant 0 : index
    %c0_13 = arith.constant 0 : index
    %22 = vector.load %arg1[%c0_12, %c0_13] : memref<8x512xf32, #tpu.memory_space<vmem>>, vector<8x512xf32>
    %23 = vector.broadcast %18 : vector<1x512xf32> to vector<8x512xf32>
    %24 = arith.mulf %22, %23 : vector<8x512xf32>
    %25 = vector.broadcast %21 : vector<1x512xf32> to vector<8x512xf32>
    %26 = arith.addf %24, %25 : vector<8x512xf32>
    %cst_14 = arith.constant 0.000000e+00 : f32
    %27 = vector.broadcast %cst_14 : f32 to vector<8x512xf32>
    %28 = arith.maximumf %26, %27 : vector<8x512xf32>
    %29 = arith.truncf %28 : vector<8x512xf32> to vector<8x512xbf16>
    %c0_15 = arith.constant 0 : index
    %c0_16 = arith.constant 0 : index
    %30 = vector.load %arg6[%c0_15, %c0_16] : memref<8x512xbf16, #tpu.memory_space<vmem>>, vector<8x512xbf16>
    tpu.vector_store %arg6[%c0_15, %c0_16], %29 {strides = array<i32>} : memref<8x512xbf16, #tpu.memory_space<vmem>>, vector<8x512xbf16>,
    return
  }
  func.func @transform_0(%arg0: i32) -> (i32, i32) {
    %c0_i32 = arith.constant 0 : i32
    %c0_i32_0 = arith.constant 0 : i32
    return %arg0, %c0_i32 : i32, i32
  }
  func.func @transform_1(%arg0: i32) -> (i32, i32) {
    %c0_i32 = arith.constant 0 : i32
    %c0_i32_0 = arith.constant 0 : i32
    %c0_i32_1 = arith.constant 0 : i32
    return %c0_i32, %c0_i32_0 : i32, i32
  }
  func.func @transform_2(%arg0: i32) -> (i32, i32) {
    %c0_i32 = arith.constant 0 : i32
    %c0_i32_0 = arith.constant 0 : i32
    %c0_i32_1 = arith.constant 0 : i32
    return %c0_i32, %c0_i32_0 : i32, i32
  }
  func.func @transform_3(%arg0: i32) -> (i32, i32) {
    %c0_i32 = arith.constant 0 : i32
    %c0_i32_0 = arith.constant 0 : i32
    %c0_i32_1 = arith.constant 0 : i32
    return %c0_i32, %c0_i32_0 : i32, i32
  }
  func.func @transform_4(%arg0: i32) -> (i32, i32) {
    %c0_i32 = arith.constant 0 : i32
    %c0_i32_0 = arith.constant 0 : i32
    %c0_i32_1 = arith.constant 0 : i32
    return %c0_i32, %c0_i32_0 : i32, i32
  }
  func.func @transform_5(%arg0: i32) -> (i32, i32) {
    %c0_i32 = arith.constant 0 : i32
    %c0_i32_0 = arith.constant 0 : i32
    return %arg0, %c0_i32 : i32, i32
  }
}

module attributes {stable_mosaic.version = 11 : i64} {
  func.func @_conv_matmul_kernel(%arg0: i32, %arg1: i32, %arg2: memref<8x512xbf16, #tpu.memory_space<vmem>>, %arg3: memref<512x512xbf16, #tpu.memory_space<vmem>>, %arg4: memref<8x512xf32, #tpu.memory_space<vmem>>, %arg5: memref<8x512xf32, #tpu.memory_space<vmem>>, %arg6: memref<8x512xf32, #tpu.memory_space<vmem>>, %arg7: memref<8x512xf32, #tpu.memory_space<vmem>>) attributes {dimension_semantics = [#tpu.dimension_semantics<parallel>, #tpu.dimension_semantics<arbitrary>], iteration_bounds = array<i64: 1, 9>, scalar_prefetch = 0 : i64, scratch_operands = 1 : i64, tpu.core_type = #tpu.core_type<tc>, window_params = [{transform_indices = @transform_0, window_bounds = array<i64: 8, 512>}, {transform_indices = @transform_1, window_bounds = array<i64: 512, 512>}, {transform_indices = @transform_2, window_bounds = array<i64: 8, 512>}, {transform_indices = @transform_3, window_bounds = array<i64: 8, 512>}, {transform_indices = @transform_4, window_bounds = array<i64: 8, 512>}]} {
    %c0_i32 = arith.constant 0 : i32
    %0 = arith.cmpi eq, %arg1, %c0_i32 : i32
    %1 = arith.extui %0 : i1 to i32
    %c0_i32_0 = arith.constant 0 : i32
    %2 = arith.cmpi ne, %1, %c0_i32_0 : i32
    scf.if %2 {
      %cst_9 = arith.constant 0.000000e+00 : f32
      %12 = vector.broadcast %cst_9 : f32 to vector<8x512xf32>
      %c0_10 = arith.constant 0 : index
      %c0_11 = arith.constant 0 : index
      %13 = vector.load %arg7[%c0_10, %c0_11] : memref<8x512xf32, #tpu.memory_space<vmem>>, vector<8x512xf32>
      tpu.vector_store %arg7[%c0_10, %c0_11], %12 {strides = array<i32>} : memref<8x512xf32, #tpu.memory_space<vmem>>, vector<8x512xf32>,
    } else {
    }
    %c0 = arith.constant 0 : index
    %c0_1 = arith.constant 0 : index
    %3 = vector.load %arg7[%c0, %c0_1] : memref<8x512xf32, #tpu.memory_space<vmem>>, vector<8x512xf32>
    %c0_2 = arith.constant 0 : index
    %c0_3 = arith.constant 0 : index
    %4 = vector.load %arg2[%c0_2, %c0_3] : memref<8x512xbf16, #tpu.memory_space<vmem>>, vector<8x512xbf16>
    %c0_4 = arith.constant 0 : index
    %c0_5 = arith.constant 0 : index
    %5 = vector.load %arg3[%c0_4, %c0_5] : memref<512x512xbf16, #tpu.memory_space<vmem>>, vector<512x512xbf16>
    %cst = arith.constant dense<0.000000e+00> : vector<8x512xf32>
    %6 = tpu.matmul %4, %5, %cst {dimension_numbers = #tpu.dot_dimension_numbers<[1], [0], [0], [1], [0, 0, 1, 1], [], []>} : vector<8x512xbf16>, vector<512x512xbf16>, vector<8x512xf32> -> vector<8x512xf32>
    %7 = arith.addf %3, %6 : vector<8x512xf32>
    %c0_6 = arith.constant 0 : index
    %c0_7 = arith.constant 0 : index
    %8 = vector.load %arg7[%c0_6, %c0_7] : memref<8x512xf32, #tpu.memory_space<vmem>>, vector<8x512xf32>
    tpu.vector_store %arg7[%c0_6, %c0_7], %7 {strides = array<i32>} : memref<8x512xf32, #tpu.memory_space<vmem>>, vector<8x512xf32>,
    %c8_i32 = arith.constant 8 : i32
    %9 = arith.cmpi eq, %arg1, %c8_i32 : i32
    %10 = arith.extui %9 : i1 to i32
    %c0_i32_8 = arith.constant 0 : i32
    %11 = arith.cmpi ne, %10, %c0_i32_8 : i32
    scf.if %11 {
      %c0_9 = arith.constant 0 : index
      %c0_10 = arith.constant 0 : index
      %12 = vector.load %arg7[%c0_9, %c0_10] : memref<8x512xf32, #tpu.memory_space<vmem>>, vector<8x512xf32>
      %c0_11 = arith.constant 0 : index
      %c0_12 = arith.constant 0 : index
      %13 = vector.load %arg4[%c0_11, %c0_12] : memref<8x512xf32, #tpu.memory_space<vmem>>, vector<8x512xf32>
      tpu.vector_store %arg4[%c0_11, %c0_12], %12 {strides = array<i32>} : memref<8x512xf32, #tpu.memory_space<vmem>>, vector<8x512xf32>,
      %cst_13 = arith.constant dense<0.000000e+00> : vector<512xf32>
      %14 = vector.multi_reduction <add>, %12, %cst_13 [0] : vector<8x512xf32> to vector<512xf32>
      %15 = vector.shape_cast %14 : vector<512xf32> to vector<1x512xf32>
      %16 = arith.mulf %12, %12 : vector<8x512xf32>
      %cst_14 = arith.constant dense<0.000000e+00> : vector<512xf32>
      %17 = vector.multi_reduction <add>, %16, %cst_14 [0] : vector<8x512xf32> to vector<512xf32>
      %18 = vector.shape_cast %17 : vector<512xf32> to vector<1x512xf32>
      %19 = vector.shape_cast %15 : vector<1x512xf32> to vector<1x512xf32>
      %20 = vector.broadcast %19 : vector<1x512xf32> to vector<8x512xf32>
      %c0_15 = arith.constant 0 : index
      %c0_16 = arith.constant 0 : index
      %21 = vector.load %arg5[%c0_15, %c0_16] : memref<8x512xf32, #tpu.memory_space<vmem>>, vector<8x512xf32>
      tpu.vector_store %arg5[%c0_15, %c0_16], %20 {strides = array<i32>} : memref<8x512xf32, #tpu.memory_space<vmem>>, vector<8x512xf32>,
      %22 = vector.shape_cast %18 : vector<1x512xf32> to vector<1x512xf32>
      %23 = vector.broadcast %22 : vector<1x512xf32> to vector<8x512xf32>
      %c0_17 = arith.constant 0 : index
      %c0_18 = arith.constant 0 : index
      %24 = vector.load %arg6[%c0_17, %c0_18] : memref<8x512xf32, #tpu.memory_space<vmem>>, vector<8x512xf32>
      tpu.vector_store %arg6[%c0_17, %c0_18], %23 {strides = array<i32>} : memref<8x512xf32, #tpu.memory_space<vmem>>, vector<8x512xf32>,
    } else {
    }
    return
  }
  func.func @transform_0(%arg0: i32, %arg1: i32) -> (i32, i32) {
    %c0_i32 = arith.constant 0 : i32
    return %arg0, %arg1 : i32, i32
  }
  func.func @transform_1(%arg0: i32, %arg1: i32) -> (i32, i32) {
    %c0_i32 = arith.constant 0 : i32
    %c0_i32_0 = arith.constant 0 : i32
    return %arg1, %c0_i32 : i32, i32
  }
  func.func @transform_2(%arg0: i32, %arg1: i32) -> (i32, i32) {
    %c0_i32 = arith.constant 0 : i32
    %c0_i32_0 = arith.constant 0 : i32
    return %arg0, %c0_i32 : i32, i32
  }
  func.func @transform_3(%arg0: i32, %arg1: i32) -> (i32, i32) {
    %c0_i32 = arith.constant 0 : i32
    %c0_i32_0 = arith.constant 0 : i32
    return %arg0, %c0_i32 : i32, i32
  }
  func.func @transform_4(%arg0: i32, %arg1: i32) -> (i32, i32) {
    %c0_i32 = arith.constant 0 : i32
    %c0_i32_0 = arith.constant 0 : i32
    return %arg0, %c0_i32 : i32, i32
  }
}

module attributes {stable_mosaic.version = 11 : i64} {
  func.func @_conv_matmul_kernel(%arg0: i32, %arg1: i32, %arg2: memref<8x256xbf16, #tpu.memory_space<vmem>>, %arg3: memref<256x512xbf16, #tpu.memory_space<vmem>>, %arg4: memref<8x512xf32, #tpu.memory_space<vmem>>, %arg5: memref<8x512xf32, #tpu.memory_space<vmem>>, %arg6: memref<8x512xf32, #tpu.memory_space<vmem>>, %arg7: memref<8x512xf32, #tpu.memory_space<vmem>>) attributes {dimension_semantics = [#tpu.dimension_semantics<parallel>, #tpu.dimension_semantics<arbitrary>], iteration_bounds = array<i64: 1, 1>, scalar_prefetch = 0 : i64, scratch_operands = 1 : i64, tpu.core_type = #tpu.core_type<tc>, window_params = [{transform_indices = @transform_0, window_bounds = array<i64: 8, 256>}, {transform_indices = @transform_1, window_bounds = array<i64: 256, 512>}, {transform_indices = @transform_2, window_bounds = array<i64: 8, 512>}, {transform_indices = @transform_3, window_bounds = array<i64: 8, 512>}, {transform_indices = @transform_4, window_bounds = array<i64: 8, 512>}]} {
    %c0_i32 = arith.constant 0 : i32
    %0 = arith.cmpi eq, %arg1, %c0_i32 : i32
    %1 = arith.extui %0 : i1 to i32
    %c0_i32_0 = arith.constant 0 : i32
    %2 = arith.cmpi ne, %1, %c0_i32_0 : i32
    scf.if %2 {
      %cst_10 = arith.constant 0.000000e+00 : f32
      %12 = vector.broadcast %cst_10 : f32 to vector<8x512xf32>
      %c0_11 = arith.constant 0 : index
      %c0_12 = arith.constant 0 : index
      %13 = vector.load %arg7[%c0_11, %c0_12] : memref<8x512xf32, #tpu.memory_space<vmem>>, vector<8x512xf32>
      tpu.vector_store %arg7[%c0_11, %c0_12], %12 {strides = array<i32>} : memref<8x512xf32, #tpu.memory_space<vmem>>, vector<8x512xf32>,
    } else {
    }
    %c0 = arith.constant 0 : index
    %c0_1 = arith.constant 0 : index
    %3 = vector.load %arg7[%c0, %c0_1] : memref<8x512xf32, #tpu.memory_space<vmem>>, vector<8x512xf32>
    %c0_2 = arith.constant 0 : index
    %c0_3 = arith.constant 0 : index
    %4 = vector.load %arg2[%c0_2, %c0_3] : memref<8x256xbf16, #tpu.memory_space<vmem>>, vector<8x256xbf16>
    %c0_4 = arith.constant 0 : index
    %c0_5 = arith.constant 0 : index
    %5 = vector.load %arg3[%c0_4, %c0_5] : memref<256x512xbf16, #tpu.memory_space<vmem>>, vector<256x512xbf16>
    %cst = arith.constant dense<0.000000e+00> : vector<8x512xf32>
    %6 = tpu.matmul %4, %5, %cst {dimension_numbers = #tpu.dot_dimension_numbers<[1], [0], [0], [1], [0, 0, 1, 1], [], []>} : vector<8x256xbf16>, vector<256x512xbf16>, vector<8x512xf32> -> vector<8x512xf32>
    %7 = arith.addf %3, %6 : vector<8x512xf32>
    %c0_6 = arith.constant 0 : index
    %c0_7 = arith.constant 0 : index
    %8 = vector.load %arg7[%c0_6, %c0_7] : memref<8x512xf32, #tpu.memory_space<vmem>>, vector<8x512xf32>
    tpu.vector_store %arg7[%c0_6, %c0_7], %7 {strides = array<i32>} : memref<8x512xf32, #tpu.memory_space<vmem>>, vector<8x512xf32>,
    %c0_i32_8 = arith.constant 0 : i32
    %9 = arith.cmpi eq, %arg1, %c0_i32_8 : i32
    %10 = arith.extui %9 : i1 to i32
    %c0_i32_9 = arith.constant 0 : i32
    %11 = arith.cmpi ne, %10, %c0_i32_9 : i32
    scf.if %11 {
      %c0_10 = arith.constant 0 : index
      %c0_11 = arith.constant 0 : index
      %12 = vector.load %arg7[%c0_10, %c0_11] : memref<8x512xf32, #tpu.memory_space<vmem>>, vector<8x512xf32>
      %c0_12 = arith.constant 0 : index
      %c0_13 = arith.constant 0 : index
      %13 = vector.load %arg4[%c0_12, %c0_13] : memref<8x512xf32, #tpu.memory_space<vmem>>, vector<8x512xf32>
      tpu.vector_store %arg4[%c0_12, %c0_13], %12 {strides = array<i32>} : memref<8x512xf32, #tpu.memory_space<vmem>>, vector<8x512xf32>,
      %cst_14 = arith.constant dense<0.000000e+00> : vector<512xf32>
      %14 = vector.multi_reduction <add>, %12, %cst_14 [0] : vector<8x512xf32> to vector<512xf32>
      %15 = vector.shape_cast %14 : vector<512xf32> to vector<1x512xf32>
      %16 = arith.mulf %12, %12 : vector<8x512xf32>
      %cst_15 = arith.constant dense<0.000000e+00> : vector<512xf32>
      %17 = vector.multi_reduction <add>, %16, %cst_15 [0] : vector<8x512xf32> to vector<512xf32>
      %18 = vector.shape_cast %17 : vector<512xf32> to vector<1x512xf32>
      %19 = vector.shape_cast %15 : vector<1x512xf32> to vector<1x512xf32>
      %20 = vector.broadcast %19 : vector<1x512xf32> to vector<8x512xf32>
      %c0_16 = arith.constant 0 : index
      %c0_17 = arith.constant 0 : index
      %21 = vector.load %arg5[%c0_16, %c0_17] : memref<8x512xf32, #tpu.memory_space<vmem>>, vector<8x512xf32>
      tpu.vector_store %arg5[%c0_16, %c0_17], %20 {strides = array<i32>} : memref<8x512xf32, #tpu.memory_space<vmem>>, vector<8x512xf32>,
      %22 = vector.shape_cast %18 : vector<1x512xf32> to vector<1x512xf32>
      %23 = vector.broadcast %22 : vector<1x512xf32> to vector<8x512xf32>
      %c0_18 = arith.constant 0 : index
      %c0_19 = arith.constant 0 : index
      %24 = vector.load %arg6[%c0_18, %c0_19] : memref<8x512xf32, #tpu.memory_space<vmem>>, vector<8x512xf32>
      tpu.vector_store %arg6[%c0_18, %c0_19], %23 {strides = array<i32>} : memref<8x512xf32, #tpu.memory_space<vmem>>, vector<8x512xf32>,
    } else {
    }
    return
  }
  func.func @transform_0(%arg0: i32, %arg1: i32) -> (i32, i32) {
    %c0_i32 = arith.constant 0 : i32
    return %arg0, %arg1 : i32, i32
  }
  func.func @transform_1(%arg0: i32, %arg1: i32) -> (i32, i32) {
    %c0_i32 = arith.constant 0 : i32
    %c0_i32_0 = arith.constant 0 : i32
    return %arg1, %c0_i32 : i32, i32
  }
  func.func @transform_2(%arg0: i32, %arg1: i32) -> (i32, i32) {
    %c0_i32 = arith.constant 0 : i32
    %c0_i32_0 = arith.constant 0 : i32
    return %arg0, %c0_i32 : i32, i32
  }
  func.func @transform_3(%arg0: i32, %arg1: i32) -> (i32, i32) {
    %c0_i32 = arith.constant 0 : i32
    %c0_i32_0 = arith.constant 0 : i32
    return %arg0, %c0_i32 : i32, i32
  }
  func.func @transform_4(%arg0: i32, %arg1: i32) -> (i32, i32) {
    %c0_i32 = arith.constant 0 : i32
    %c0_i32_0 = arith.constant 0 : i32
    return %arg0, %c0_i32 : i32, i32
  }
}

module attributes {stable_mosaic.version = 11 : i64} {
  func.func @kernel(%arg0: i32, %arg1: memref<8x512xf32, #tpu.memory_space<vmem>>, %arg2: memref<8x512xf32, #tpu.memory_space<vmem>>, %arg3: memref<8x512xf32, #tpu.memory_space<vmem>>, %arg4: memref<1x512xf32, #tpu.memory_space<vmem>>, %arg5: memref<1x512xf32, #tpu.memory_space<vmem>>, %arg6: memref<8x512xbf16, #tpu.memory_space<vmem>>) attributes {dimension_semantics = [#tpu.dimension_semantics<parallel>], iteration_bounds = array<i64: 1>, scalar_prefetch = 0 : i64, scratch_operands = 0 : i64, tpu.core_type = #tpu.core_type<tc>, window_params = [{transform_indices = @transform_0, window_bounds = array<i64: 8, 512>}, {pipeline_mode = #tpu.pipeline_mode<synchronous>, transform_indices = @transform_1, window_bounds = array<i64: 8, 512>}, {pipeline_mode = #tpu.pipeline_mode<synchronous>, transform_indices = @transform_2, window_bounds = array<i64: 8, 512>}, {pipeline_mode = #tpu.pipeline_mode<synchronous>, transform_indices = @transform_3, window_bounds = array<i64: 1, 512>}, {pipeline_mode = #tpu.pipeline_mode<synchronous>, transform_indices = @transform_4, window_bounds = array<i64: 1, 512>}, {transform_indices = @transform_5, window_bounds = array<i64: 8, 512>}]} {
    %c0 = arith.constant 0 : index
    %c0_0 = arith.constant 0 : index
    %0 = vector.load %arg2[%c0, %c0_0] : memref<8x512xf32, #tpu.memory_space<vmem>>, vector<8x512xf32>
    %cst = arith.constant dense<0.000000e+00> : vector<512xf32>
    %1 = vector.multi_reduction <add>, %0, %cst [0] : vector<8x512xf32> to vector<512xf32>
    %2 = vector.shape_cast %1 : vector<512xf32> to vector<1x512xf32>
    %cst_1 = arith.constant 1.562500e-02 : f32
    %3 = vector.broadcast %cst_1 : f32 to vector<1x512xf32>
    %4 = arith.mulf %2, %3 : vector<1x512xf32>
    %c0_2 = arith.constant 0 : index
    %c0_3 = arith.constant 0 : index
    %5 = vector.load %arg3[%c0_2, %c0_3] : memref<8x512xf32, #tpu.memory_space<vmem>>, vector<8x512xf32>
    %cst_4 = arith.constant dense<0.000000e+00> : vector<512xf32>
    %6 = vector.multi_reduction <add>, %5, %cst_4 [0] : vector<8x512xf32> to vector<512xf32>
    %7 = vector.shape_cast %6 : vector<512xf32> to vector<1x512xf32>
    %cst_5 = arith.constant 1.562500e-02 : f32
    %8 = vector.broadcast %cst_5 : f32 to vector<1x512xf32>
    %9 = arith.mulf %7, %8 : vector<1x512xf32>
    %10 = arith.mulf %4, %4 : vector<1x512xf32>
    %11 = arith.subf %9, %10 : vector<1x512xf32>
    %cst_6 = arith.constant 0.000000e+00 : f32
    %12 = vector.broadcast %cst_6 : f32 to vector<1x512xf32>
    %13 = arith.maximumf %11, %12 : vector<1x512xf32>
    %c0_7 = arith.constant 0 : index
    %c0_8 = arith.constant 0 : index
    %14 = vector.load %arg4[%c0_7, %c0_8] : memref<1x512xf32, #tpu.memory_space<vmem>>, vector<1x512xf32>
    %cst_9 = arith.constant 9.99999974E-6 : f32
    %15 = vector.broadcast %cst_9 : f32 to vector<1x512xf32>
    %16 = arith.addf %13, %15 : vector<1x512xf32>
    %17 = math.rsqrt %16 : vector<1x512xf32>
    %18 = arith.mulf %14, %17 : vector<1x512xf32>
    %c0_10 = arith.constant 0 : index
    %c0_11 = arith.constant 0 : index
    %19 = vector.load %arg5[%c0_10, %c0_11] : memref<1x512xf32, #tpu.memory_space<vmem>>, vector<1x512xf32>
    %20 = arith.mulf %4, %18 : vector<1x512xf32>
    %21 = arith.subf %19, %20 : vector<1x512xf32>
    %c0_12 = arith.constant 0 : index
    %c0_13 = arith.constant 0 : index
    %22 = vector.load %arg1[%c0_12, %c0_13] : memref<8x512xf32, #tpu.memory_space<vmem>>, vector<8x512xf32>
    %23 = vector.broadcast %18 : vector<1x512xf32> to vector<8x512xf32>
    %24 = arith.mulf %22, %23 : vector<8x512xf32>
    %25 = vector.broadcast %21 : vector<1x512xf32> to vector<8x512xf32>
    %26 = arith.addf %24, %25 : vector<8x512xf32>
    %27 = arith.truncf %26 : vector<8x512xf32> to vector<8x512xbf16>
    %c0_14 = arith.constant 0 : index
    %c0_15 = arith.constant 0 : index
    %28 = vector.load %arg6[%c0_14, %c0_15] : memref<8x512xbf16, #tpu.memory_space<vmem>>, vector<8x512xbf16>
    tpu.vector_store %arg6[%c0_14, %c0_15], %27 {strides = array<i32>} : memref<8x512xbf16, #tpu.memory_space<vmem>>, vector<8x512xbf16>,
    return
  }
  func.func @transform_0(%arg0: i32) -> (i32, i32) {
    %c0_i32 = arith.constant 0 : i32
    %c0_i32_0 = arith.constant 0 : i32
    return %arg0, %c0_i32 : i32, i32
  }
  func.func @transform_1(%arg0: i32) -> (i32, i32) {
    %c0_i32 = arith.constant 0 : i32
    %c0_i32_0 = arith.constant 0 : i32
    %c0_i32_1 = arith.constant 0 : i32
    return %c0_i32, %c0_i32_0 : i32, i32
  }
  func.func @transform_2(%arg0: i32) -> (i32, i32) {
    %c0_i32 = arith.constant 0 : i32
    %c0_i32_0 = arith.constant 0 : i32
    %c0_i32_1 = arith.constant 0 : i32
    return %c0_i32, %c0_i32_0 : i32, i32
  }
  func.func @transform_3(%arg0: i32) -> (i32, i32) {
    %c0_i32 = arith.constant 0 : i32
    %c0_i32_0 = arith.constant 0 : i32
    %c0_i32_1 = arith.constant 0 : i32
    return %c0_i32, %c0_i32_0 : i32, i32
  }
  func.func @transform_4(%arg0: i32) -> (i32, i32) {
    %c0_i32 = arith.constant 0 : i32
    %c0_i32_0 = arith.constant 0 : i32
    %c0_i32_1 = arith.constant 0 : i32
    return %c0_i32, %c0_i32_0 : i32, i32
  }
  func.func @transform_5(%arg0: i32) -> (i32, i32) {
    %c0_i32 = arith.constant 0 : i32
    %c0_i32_0 = arith.constant 0 : i32
    return %arg0, %c0_i32 : i32, i32
  }
}

module attributes {stable_mosaic.version = 11 : i64} {
  func.func @kernel(%arg0: i32, %arg1: memref<8x512xf32, #tpu.memory_space<vmem>>, %arg2: memref<8x512xf32, #tpu.memory_space<vmem>>, %arg3: memref<8x512xf32, #tpu.memory_space<vmem>>, %arg4: memref<1x512xf32, #tpu.memory_space<vmem>>, %arg5: memref<1x512xf32, #tpu.memory_space<vmem>>, %arg6: memref<8x512xbf16, #tpu.memory_space<vmem>>, %arg7: memref<8x512xbf16, #tpu.memory_space<vmem>>) attributes {dimension_semantics = [#tpu.dimension_semantics<parallel>], iteration_bounds = array<i64: 1>, scalar_prefetch = 0 : i64, scratch_operands = 0 : i64, tpu.core_type = #tpu.core_type<tc>, window_params = [{transform_indices = @transform_0, window_bounds = array<i64: 8, 512>}, {pipeline_mode = #tpu.pipeline_mode<synchronous>, transform_indices = @transform_1, window_bounds = array<i64: 8, 512>}, {pipeline_mode = #tpu.pipeline_mode<synchronous>, transform_indices = @transform_2, window_bounds = array<i64: 8, 512>}, {pipeline_mode = #tpu.pipeline_mode<synchronous>, transform_indices = @transform_3, window_bounds = array<i64: 1, 512>}, {pipeline_mode = #tpu.pipeline_mode<synchronous>, transform_indices = @transform_4, window_bounds = array<i64: 1, 512>}, {transform_indices = @transform_5, window_bounds = array<i64: 8, 512>}, {transform_indices = @transform_6, window_bounds = array<i64: 8, 512>}]} {
    %c0 = arith.constant 0 : index
    %c0_0 = arith.constant 0 : index
    %0 = vector.load %arg2[%c0, %c0_0] : memref<8x512xf32, #tpu.memory_space<vmem>>, vector<8x512xf32>
    %cst = arith.constant dense<0.000000e+00> : vector<512xf32>
    %1 = vector.multi_reduction <add>, %0, %cst [0] : vector<8x512xf32> to vector<512xf32>
    %2 = vector.shape_cast %1 : vector<512xf32> to vector<1x512xf32>
    %cst_1 = arith.constant 1.562500e-02 : f32
    %3 = vector.broadcast %cst_1 : f32 to vector<1x512xf32>
    %4 = arith.mulf %2, %3 : vector<1x512xf32>
    %c0_2 = arith.constant 0 : index
    %c0_3 = arith.constant 0 : index
    %5 = vector.load %arg3[%c0_2, %c0_3] : memref<8x512xf32, #tpu.memory_space<vmem>>, vector<8x512xf32>
    %cst_4 = arith.constant dense<0.000000e+00> : vector<512xf32>
    %6 = vector.multi_reduction <add>, %5, %cst_4 [0] : vector<8x512xf32> to vector<512xf32>
    %7 = vector.shape_cast %6 : vector<512xf32> to vector<1x512xf32>
    %cst_5 = arith.constant 1.562500e-02 : f32
    %8 = vector.broadcast %cst_5 : f32 to vector<1x512xf32>
    %9 = arith.mulf %7, %8 : vector<1x512xf32>
    %10 = arith.mulf %4, %4 : vector<1x512xf32>
    %11 = arith.subf %9, %10 : vector<1x512xf32>
    %cst_6 = arith.constant 0.000000e+00 : f32
    %12 = vector.broadcast %cst_6 : f32 to vector<1x512xf32>
    %13 = arith.maximumf %11, %12 : vector<1x512xf32>
    %c0_7 = arith.constant 0 : index
    %c0_8 = arith.constant 0 : index
    %14 = vector.load %arg4[%c0_7, %c0_8] : memref<1x512xf32, #tpu.memory_space<vmem>>, vector<1x512xf32>
    %cst_9 = arith.constant 9.99999974E-6 : f32
    %15 = vector.broadcast %cst_9 : f32 to vector<1x512xf32>
    %16 = arith.addf %13, %15 : vector<1x512xf32>
    %17 = math.rsqrt %16 : vector<1x512xf32>
    %18 = arith.mulf %14, %17 : vector<1x512xf32>
    %c0_10 = arith.constant 0 : index
    %c0_11 = arith.constant 0 : index
    %19 = vector.load %arg5[%c0_10, %c0_11] : memref<1x512xf32, #tpu.memory_space<vmem>>, vector<1x512xf32>
    %20 = arith.mulf %4, %18 : vector<1x512xf32>
    %21 = arith.subf %19, %20 : vector<1x512xf32>
    %c0_12 = arith.constant 0 : index
    %c0_13 = arith.constant 0 : index
    %22 = vector.load %arg1[%c0_12, %c0_13] : memref<8x512xf32, #tpu.memory_space<vmem>>, vector<8x512xf32>
    %23 = vector.broadcast %18 : vector<1x512xf32> to vector<8x512xf32>
    %24 = arith.mulf %22, %23 : vector<8x512xf32>
    %25 = vector.broadcast %21 : vector<1x512xf32> to vector<8x512xf32>
    %26 = arith.addf %24, %25 : vector<8x512xf32>
    %c0_14 = arith.constant 0 : index
    %c0_15 = arith.constant 0 : index
    %27 = vector.load %arg6[%c0_14, %c0_15] : memref<8x512xbf16, #tpu.memory_space<vmem>>, vector<8x512xbf16>
    %28 = arith.extf %27 : vector<8x512xbf16> to vector<8x512xf32>
    %29 = arith.addf %26, %28 : vector<8x512xf32>
    %cst_16 = arith.constant 0.000000e+00 : f32
    %30 = vector.broadcast %cst_16 : f32 to vector<8x512xf32>
    %31 = arith.maximumf %29, %30 : vector<8x512xf32>
    %32 = arith.truncf %31 : vector<8x512xf32> to vector<8x512xbf16>
    %c0_17 = arith.constant 0 : index
    %c0_18 = arith.constant 0 : index
    %33 = vector.load %arg7[%c0_17, %c0_18] : memref<8x512xbf16, #tpu.memory_space<vmem>>, vector<8x512xbf16>
    tpu.vector_store %arg7[%c0_17, %c0_18], %32 {strides = array<i32>} : memref<8x512xbf16, #tpu.memory_space<vmem>>, vector<8x512xbf16>,
    return
  }
  func.func @transform_0(%arg0: i32) -> (i32, i32) {
    %c0_i32 = arith.constant 0 : i32
    %c0_i32_0 = arith.constant 0 : i32
    return %arg0, %c0_i32 : i32, i32
  }
  func.func @transform_1(%arg0: i32) -> (i32, i32) {
    %c0_i32 = arith.constant 0 : i32
    %c0_i32_0 = arith.constant 0 : i32
    %c0_i32_1 = arith.constant 0 : i32
    return %c0_i32, %c0_i32_0 : i32, i32
  }
  func.func @transform_2(%arg0: i32) -> (i32, i32) {
    %c0_i32 = arith.constant 0 : i32
    %c0_i32_0 = arith.constant 0 : i32
    %c0_i32_1 = arith.constant 0 : i32
    return %c0_i32, %c0_i32_0 : i32, i32
  }
  func.func @transform_3(%arg0: i32) -> (i32, i32) {
    %c0_i32 = arith.constant 0 : i32
    %c0_i32_0 = arith.constant 0 : i32
    %c0_i32_1 = arith.constant 0 : i32
    return %c0_i32, %c0_i32_0 : i32, i32
  }
  func.func @transform_4(%arg0: i32) -> (i32, i32) {
    %c0_i32 = arith.constant 0 : i32
    %c0_i32_0 = arith.constant 0 : i32
    %c0_i32_1 = arith.constant 0 : i32
    return %c0_i32, %c0_i32_0 : i32, i32
  }
  func.func @transform_5(%arg0: i32) -> (i32, i32) {
    %c0_i32 = arith.constant 0 : i32
    %c0_i32_0 = arith.constant 0 : i32
    return %arg0, %c0_i32 : i32, i32
  }
  func.func @transform_6(%arg0: i32) -> (i32, i32) {
    %c0_i32 = arith.constant 0 : i32
    %c0_i32_0 = arith.constant 0 : i32
    return %arg0, %c0_i32 : i32, i32
  }
}

module attributes {stable_mosaic.version = 11 : i64} {
  func.func @_avgpool_kernel(%arg0: i32, %arg1: memref<2x4x512xbf16, #tpu.memory_space<vmem>>, %arg2: memref<2x512xf32, #tpu.memory_space<vmem>>) attributes {dimension_semantics = [#tpu.dimension_semantics<arbitrary>], iteration_bounds = array<i64: 1>, scalar_prefetch = 0 : i64, scratch_operands = 0 : i64, tpu.core_type = #tpu.core_type<tc>, window_params = [{pipeline_mode = #tpu.pipeline_mode<synchronous>, transform_indices = @transform_0, window_bounds = array<i64: 2, 4, 512>}, {pipeline_mode = #tpu.pipeline_mode<synchronous>, transform_indices = @transform_1, window_bounds = array<i64: 2, 512>}]} {
    %c0 = arith.constant 0 : index
    %c0_0 = arith.constant 0 : index
    %c0_1 = arith.constant 0 : index
    %0 = vector.load %arg1[%c0, %c0_0, %c0_1] : memref<2x4x512xbf16, #tpu.memory_space<vmem>>, vector<2x4x512xbf16>
    %1 = arith.extf %0 : vector<2x4x512xbf16> to vector<2x4x512xf32>
    %cst = arith.constant dense<0.000000e+00> : vector<2x512xf32>
    %2 = vector.multi_reduction <add>, %1, %cst [1] : vector<2x4x512xf32> to vector<2x512xf32>
    %cst_2 = arith.constant 4.000000e+00 : f32
    %3 = vector.broadcast %cst_2 : f32 to vector<2x512xf32>
    %4 = arith.divf %2, %3 : vector<2x512xf32>
    %c0_3 = arith.constant 0 : index
    %c0_4 = arith.constant 0 : index
    %5 = vector.load %arg2[%c0_3, %c0_4] : memref<2x512xf32, #tpu.memory_space<vmem>>, vector<2x512xf32>
    tpu.vector_store %arg2[%c0_3, %c0_4], %4 {strides = array<i32>} : memref<2x512xf32, #tpu.memory_space<vmem>>, vector<2x512xf32>,
    return
  }
  func.func @transform_0(%arg0: i32) -> (i32, i32, i32) {
    %c0_i32 = arith.constant 0 : i32
    %c0_i32_0 = arith.constant 0 : i32
    %c0_i32_1 = arith.constant 0 : i32
    %c0_i32_2 = arith.constant 0 : i32
    return %c0_i32, %c0_i32_0, %c0_i32_1 : i32, i32, i32
  }
  func.func @transform_1(%arg0: i32) -> (i32, i32) {
    %c0_i32 = arith.constant 0 : i32
    %c0_i32_0 = arith.constant 0 : i32
    %c0_i32_1 = arith.constant 0 : i32
    return %c0_i32, %c0_i32_0 : i32, i32
  }
}

module attributes {stable_mosaic.version = 11 : i64} {
  func.func @_fc_kernel(%arg0: i32, %arg1: memref<2x512xbf16, #tpu.memory_space<vmem>>, %arg2: memref<512x20xbf16, #tpu.memory_space<vmem>>, %arg3: memref<1x20xf32, #tpu.memory_space<vmem>>, %arg4: memref<2x20xf32, #tpu.memory_space<vmem>>) attributes {dimension_semantics = [#tpu.dimension_semantics<arbitrary>], iteration_bounds = array<i64: 1>, scalar_prefetch = 0 : i64, scratch_operands = 0 : i64, tpu.core_type = #tpu.core_type<tc>, window_params = [{pipeline_mode = #tpu.pipeline_mode<synchronous>, transform_indices = @transform_0, window_bounds = array<i64: 2, 512>}, {pipeline_mode = #tpu.pipeline_mode<synchronous>, transform_indices = @transform_1, window_bounds = array<i64: 512, 20>}, {pipeline_mode = #tpu.pipeline_mode<synchronous>, transform_indices = @transform_2, window_bounds = array<i64: 1, 20>}, {pipeline_mode = #tpu.pipeline_mode<synchronous>, transform_indices = @transform_3, window_bounds = array<i64: 2, 20>}]} {
    %c0 = arith.constant 0 : index
    %c0_0 = arith.constant 0 : index
    %0 = vector.load %arg1[%c0, %c0_0] : memref<2x512xbf16, #tpu.memory_space<vmem>>, vector<2x512xbf16>
    %c0_1 = arith.constant 0 : index
    %c0_2 = arith.constant 0 : index
    %1 = vector.load %arg2[%c0_1, %c0_2] : memref<512x20xbf16, #tpu.memory_space<vmem>>, vector<512x20xbf16>
    %cst = arith.constant dense<0.000000e+00> : vector<2x20xf32>
    %2 = tpu.matmul %0, %1, %cst {dimension_numbers = #tpu.dot_dimension_numbers<[1], [0], [0], [1], [0, 0, 1, 1], [], []>} : vector<2x512xbf16>, vector<512x20xbf16>, vector<2x20xf32> -> vector<2x20xf32>
    %c0_3 = arith.constant 0 : index
    %c0_4 = arith.constant 0 : index
    %3 = vector.load %arg3[%c0_3, %c0_4] : memref<1x20xf32, #tpu.memory_space<vmem>>, vector<1x20xf32>
    %4 = vector.broadcast %3 : vector<1x20xf32> to vector<2x20xf32>
    %5 = arith.addf %2, %4 : vector<2x20xf32>
    %c0_5 = arith.constant 0 : index
    %c0_6 = arith.constant 0 : index
    %6 = vector.load %arg4[%c0_5, %c0_6] : memref<2x20xf32, #tpu.memory_space<vmem>>, vector<2x20xf32>
    tpu.vector_store %arg4[%c0_5, %c0_6], %5 {strides = array<i32>} : memref<2x20xf32, #tpu.memory_space<vmem>>, vector<2x20xf32>,
    return
  }
  func.func @transform_0(%arg0: i32) -> (i32, i32) {
    %c0_i32 = arith.constant 0 : i32
    %c0_i32_0 = arith.constant 0 : i32
    %c0_i32_1 = arith.constant 0 : i32
    return %c0_i32, %c0_i32_0 : i32, i32
  }
  func.func @transform_1(%arg0: i32) -> (i32, i32) {
    %c0_i32 = arith.constant 0 : i32
    %c0_i32_0 = arith.constant 0 : i32
    %c0_i32_1 = arith.constant 0 : i32
    return %c0_i32, %c0_i32_0 : i32, i32
  }
  func.func @transform_2(%arg0: i32) -> (i32, i32) {
    %c0_i32 = arith.constant 0 : i32
    %c0_i32_0 = arith.constant 0 : i32
    %c0_i32_1 = arith.constant 0 : i32
    return %c0_i32, %c0_i32_0 : i32, i32
  }
  func.func @transform_3(%arg0: i32) -> (i32, i32) {
    %c0_i32 = arith.constant 0 : i32
    %c0_i32_0 = arith.constant 0 : i32
    %c0_i32_1 = arith.constant 0 : i32
    return %c0_i32, %c0_i32_0 : i32, i32
  }
}

</mosaic_0001>

<bundles_post_ra>
// kernel: _lambda_.28
= control target key start
LH: loop header
LB: loop body
LE: loop exit
PB: predicated region body
PF: predicated region fallthrough
CT: control target
= control target key end

     0   :  { %s743_s18 = smov 0   ;;  %s952_s0 = inlined_call_operand.vmem [shape: f32[512,64], index: 0, kind: input, shape index: {}]   ;;  %s953_s1 = inlined_call_operand.vmem [shape: f32[16,64], index: 1, kind: input, shape index: {}]   ;;  %s954_s2 = inlined_call_operand.vmem [shape: f32[16,64], index: 2, kind: input, shape index: {}]   ;;  %s955_s3 = inlined_call_operand.vmem [shape: f32[1,64], index: 3, kind: input, shape index: {}]   ;;  %s956_s4 = inlined_call_operand.vmem [shape: f32[1,64], index: 4, kind: input, shape index: {}]   ;;  %s957_s5 = inlined_call_operand.vmem [shape: bf16[512,64], index: 5, kind: output, shape index: {}]  }
   0x1 LB: > { %s620_s19 = sadd.s32 4294967295, %s711_s18   ;;  %p624_p0 = scmp.ge.s32.totalorder %s711_s18, 1  ;;  %s711_s18 = sphi %s743_s18, %s15_s18  }
   0x2   : > { %p188_p1 = scmp.lt.s32.totalorder %s711_s18, 3 }
   0x4   : > { %p189_p2 = pnand %p624_p0, %p188_p1 }
   0x5   : > { %v228_v0 = vld [vmem:[%s953_s1] sm:$0xff] (!%p189_p2)  ;;  %v229_v1 = vld [vmem:[%s953_s1 + $0x8] sm:$0xff] (!%p189_p2)  ;;  %vm230_vm0 = vcmask (!%p189_p2), 523264   ;;  %s625_s28 = sshll.u32 (!%p189_p2), %s620_s19, 5  ;;  %v296_v28 = vlaneseq (!%p189_p2)  ;;  %vm531_vm1 = vcmask (!%p189_p2), 519168  }
   0x6   : > { %192 = sbr.rel (%p189_p2) target bundleno = 85 (0x55), region = 40  ;;  %v241_v2 = vld [vmem:[%s954_s2] sm:$0xff] (!%p189_p2)  ;;  %v231_v3 = vsel (!%p189_p2), %vm230_vm0, %v228_v0, 0.0  ;;  %v232_v4 = vsel (!%p189_p2), %vm230_vm0, %v229_v1, 0.0  ;;  %v242_v5 = vld [vmem:[%s954_s2 + $0x8] sm:$0xff] (!%p189_p2)  ;;  %p217_p3 = scmp.lt.s32.totalorder (!%p189_p2), %s625_s28, 63 }
   0x7   : > { %v243_v6 = vsel (!%p189_p2), %vm230_vm0, %v241_v2, 0.0  ;;  %v233_v7 = vadd.f32 (!%p189_p2), %v232_v4, %v231_v3  ;;  %v244_v8 = vsel (!%p189_p2), %vm230_vm0, %v242_v5, 0.0  ;;  %v297_v29 = vshrl.u32 (!%p189_p2), %v296_v28, 7  ;;  %v256_v30 = vld [vmem:[%s955_s3] sm:$0x1] (!%p189_p2) }
   0x8   : > { %v245_v9 = vadd.f32 (!%p189_p2), %v244_v8, %v243_v6  ;;  %v260_v34 = vld [vmem:[%s956_s4] sm:$0x1] (!%p189_p2) }
   0x9   : > { %v234_v10 = vrot.slane (!%p189_p2), %v233_v7, 4  ;;  %v298_v31 = vsub.s32 (!%p189_p2), 0, %v297_v29 }
   0xa   : > { %v246_v11 = vrot.slane (!%p189_p2), %v245_v9, 4 }
   0xb   : > { %v235_v12 = vadd.f32 (!%p189_p2), %v234_v10, %v233_v7 }
   0xc   : > { %v247_v13 = vadd.f32 (!%p189_p2), %v246_v11, %v245_v9 }
   0xd   : > { %v236_v14 = vrot.slane %v235_v12, 2  ;;  %s959_s28 = smov (!%p217_p3, %s625_s28), 63 }
   0xe   : > { %v248_v15 = vrot.slane %v247_v13, 2  ;;  %s626_s29 = sshll.u32 %s959_s28, 3  ;;  %s628_s12 = sshll.u32 %s959_s28, 2 }
   0xf   : > { %v237_v16 = vadd.f32 %v236_v14, %v235_v12  ;;  %s771_s7 = scalar_lea.vmem %s952_s0, %s626_s29  ;;  %s823_s15 = scalar_lea.vmem %s957_s5, %s628_s12 }
  0x10   : > { %v249_v17 = vadd.f32 %v248_v15, %v247_v13  ;;  %v263_v35 = vld [vmem:[%s771_s7] sm:$0xff]  ;;  %v264_v36 = vld [vmem:[%s771_s7 + $0x8] sm:$0xff]  ;;  %v265_v37 = vld [vmem:[%s771_s7 + $0x10] sm:$0xff] }
  0x11   : > { %v238_v18 = vrot.slane %v237_v16, 1  ;;  %v266_v38 = vld [vmem:[%s771_s7 + $0x18] sm:$0xff]  ;;  %v267_v39 = vld [vmem:[%s771_s7 + $0x20] sm:$0xff]  ;;  %v268_v42 = vld [vmem:[%s771_s7 + $0x28] sm:$0xff] }
  0x12   : > { %v250_v19 = vrot.slane %v249_v17, 1  ;;  %v269_v43 = vld [vmem:[%s771_s7 + $0x30] sm:$0xff]  ;;  %v270_v44 = vld [vmem:[%s771_s7 + $0x38] sm:$0xff]  ;;  %v271_v45 = vld [vmem:[%s771_s7 + $0x40] sm:$0xff] }
  0x13   : > { %v239_v20 = vadd.f32 %v238_v18, %v237_v16  ;;  %v272_v46 = vld [vmem:[%s771_s7 + $0x48] sm:$0xff]  ;;  %v273_v47 = vld [vmem:[%s771_s7 + $0x50] sm:$0xff]  ;;  %v274_v52 = vld [vmem:[%s771_s7 + $0x58] sm:$0xff] }
  0x14   : > { %v251_v21 = vadd.f32 %v250_v19, %v249_v17  ;;  %v275_v53 = vld [vmem:[%s771_s7 + $0x60] sm:$0xff]  ;;  %v276_v54 = vld [vmem:[%s771_s7 + $0x68] sm:$0xff] }
  0x15   : > { %v240_v22 = vmul.f32 0.00024414063, %v239_v20 }
  0x16   : > { %v252_v23 = vmul.f32 0.00024414063, %v251_v21 }
  0x17   : > { %v253_v24 = vmul.f32 %v240_v22, %v240_v22 }
  0x19   : > { %v254_v25 = vsub.f32 %v252_v23, %v253_v24  ;;  %v277_v23 = vld [vmem:[%s771_s7 + $0x70] sm:$0xff]  ;;  %v278_v24 = vld [vmem:[%s771_s7 + $0x78] sm:$0xff] }
  0x1b   : > { %v255_v26 = vmax.f32 %v254_v25, 0.0 }
  0x1d   : > { %v257_v27 = vadd.f32 1e-05, %v255_v26 }
  0x1f   : > { %703 = vrsqrt.f32 %v257_v27 }
  0x29   : > { %v704_v32 = vpop.eup %703 }
  0x2a   : > { %v259_v33 = vmul.f32 %v704_v32, %v256_v30 }
  0x2c   : > { %v261_v40 = vmul.f32 %v259_v33, %v240_v22  ;;  %v784_v41 = vrot.slane %v259_v33, %v298_v31 }
  0x2e   : > { %v262_v48 = vsub.f32 %v260_v34, %v261_v40  ;;  %v301_v49 = vmul.f32 %v784_v41, %v263_v35  ;;  %v302_v50 = vmul.f32 %v784_v41, %v264_v36  ;;  %v303_v51 = vmul.f32 %v784_v41, %v265_v37 }
  0x2f   : > { %v304_v55 = vmul.f32 %v784_v41, %v266_v38  ;;  %v305_v56 = vmul.f32 %v784_v41, %v267_v39  ;;  %v306_v57 = vmul.f32 %v784_v41, %v268_v42  ;;  %v307_v58 = vmul.f32 %v784_v41, %v269_v43  ;;  %v279_v42 = vld [vmem:[%s771_s7 + $0x80] sm:$0xff] }
  0x30   : > { %v802_v59 = vrot.slane %v262_v48, %v298_v31  ;;  %v308_v60 = vmul.f32 %v784_v41, %v270_v44  ;;  %v309_v61 = vmul.f32 %v784_v41, %v271_v45  ;;  %v310_v62 = vmul.f32 %v784_v41, %v272_v46  ;;  %v281_v48 = vld [vmem:[%s771_s7 + $0x90] sm:$0xff] }
  0x31   : > { %v311_v63 = vmul.f32 %v784_v41, %v273_v47  ;;  %v312_v0 = vmul.f32 %v784_v41, %v274_v52  ;;  %v313_v1 = vmul.f32 %v784_v41, %v275_v53  ;;  %v314_v2 = vmul.f32 %v784_v41, %v276_v54  ;;  %v280_v47 = vld [vmem:[%s771_s7 + $0x88] sm:$0xff]  ;;  %v283_v54 = vld [vmem:[%s771_s7 + $0xa0] sm:$0xff] }
  0x32   : > { %v339_v3 = vadd.f32 %v802_v59, %v301_v49  ;;  %v340_v4 = vadd.f32 %v802_v59, %v302_v50  ;;  %v341_v5 = vadd.f32 %v802_v59, %v303_v51  ;;  %v342_v6 = vadd.f32 %v802_v59, %v304_v55  ;;  %v282_v49 = vld [vmem:[%s771_s7 + $0x98] sm:$0xff]  ;;  %v284_v55 = vld [vmem:[%s771_s7 + $0xa8] sm:$0xff] }
  0x33   : > { %v343_v7 = vadd.f32 %v802_v59, %v305_v56  ;;  %v344_v8 = vadd.f32 %v802_v59, %v306_v57  ;;  %v345_v9 = vadd.f32 %v802_v59, %v307_v58  ;;  %v346_v10 = vadd.f32 %v802_v59, %v308_v60 }
  0x34   : > { %v371_v11 = vmax.f32 %v339_v3, 0.0  ;;  %v372_v12 = vmax.f32 %v340_v4, 0.0  ;;  %v373_v13 = vmax.f32 %v341_v5, 0.0  ;;  %v374_v14 = vmax.f32 %v342_v6, 0.0 }
  0x35   : > { %v375_v15 = vmax.f32 %v343_v7, 0.0  ;;  %v376_v16 = vmax.f32 %v344_v8, 0.0  ;;  %v377_v17 = vmax.f32 %v345_v9, 0.0  ;;  %v378_v18 = vmax.f32 %v346_v10, 0.0 }
  0x36   : > { %v663_v19 = vpack.c.bf16 %v371_v11, %v371_v11  ;;  %v664_v20 = vpack.c.bf16 %v372_v12, %v372_v12  ;;  %v665_v21 = vpack.c.bf16 %v373_v13, %v373_v13  ;;  %v666_v22 = vpack.c.bf16 %v374_v14, %v374_v14 }
  0x37   : > { %v667_v25 = vpack.c.bf16 %v375_v15, %v375_v15  ;;  %v668_v26 = vpack.c.bf16 %v376_v16, %v376_v16  ;;  %v669_v27 = vpack.c.bf16 %v377_v17, %v377_v17  ;;  %v670_v28 = vpack.c.bf16 %v378_v18, %v378_v18 }
  0x38   : > { %532 = vst.msk [vmem:[%s823_s15] sm:$0xf] %vm531_vm1, %v663_v19  ;;  %533 = vst.msk [vmem:[%s823_s15 + $0x4] sm:$0xf] %vm531_vm1, %v664_v20  ;;  %v347_v29 = vadd.f32 %v802_v59, %v309_v61  ;;  %v348_v30 = vadd.f32 %v802_v59, %v310_v62  ;;  %v349_v31 = vadd.f32 %v802_v59, %v311_v63  ;;  %v287_v19 = vld [vmem:[%s771_s7 + $0xc0] sm:$0xff] }
  0x39   : > { %534 = vst.msk [vmem:[%s823_s15 + $0x8] sm:$0xf] %vm531_vm1, %v665_v21  ;;  %535 = vst.msk [vmem:[%s823_s15 + $0xc] sm:$0xf] %vm531_vm1, %v666_v22  ;;  %v350_v32 = vadd.f32 %v802_v59, %v312_v0  ;;  %v351_v33 = vadd.f32 %v802_v59, %v313_v1  ;;  %v352_v34 = vadd.f32 %v802_v59, %v314_v2  ;;  %v285_v1 = vld [vmem:[%s771_s7 + $0xb0] sm:$0xff]  ;;  %v286_v2 = vld [vmem:[%s771_s7 + $0xb8] sm:$0xff] }
  0x3a   : > { %536 = vst.msk [vmem:[%s823_s15 + $0x10] sm:$0xf] %vm531_vm1, %v667_v25  ;;  %537 = vst.msk [vmem:[%s823_s15 + $0x14] sm:$0xf] %vm531_vm1, %v668_v26  ;;  %v315_v35 = vmul.f32 %v784_v41, %v277_v23  ;;  %v316_v36 = vmul.f32 %v784_v41, %v278_v24  ;;  %v379_v37 = vmax.f32 %v347_v29, 0.0  ;;  %v380_v38 = vmax.f32 %v348_v30, 0.0 }
  0x3b   : > { %538 = vst.msk [vmem:[%s823_s15 + $0x18] sm:$0xf] %vm531_vm1, %v669_v27  ;;  %539 = vst.msk [vmem:[%s823_s15 + $0x1c] sm:$0xf] %vm531_vm1, %v670_v28  ;;  %v381_v39 = vmax.f32 %v349_v31, 0.0  ;;  %v382_v40 = vmax.f32 %v350_v32, 0.0  ;;  %v317_v61 = vmul.f32 %v784_v41, %v279_v42  ;;  %v318_v62 = vmul.f32 %v784_v41, %v280_v47 }
  0x3c   : > { %v383_v43 = vmax.f32 %v351_v33, 0.0  ;;  %v384_v44 = vmax.f32 %v352_v34, 0.0  ;;  %v353_v45 = vadd.f32 %v802_v59, %v315_v35  ;;  %v354_v46 = vadd.f32 %v802_v59, %v316_v36  ;;  %v288_v24 = vld [vmem:[%s771_s7 + $0xc8] sm:$0xff]  ;;  %v289_v25 = vld [vmem:[%s771_s7 + $0xd0] sm:$0xff]  ;;  %v290_v26 = vld [vmem:[%s771_s7 + $0xd8] sm:$0xff] }
  0x3d   : > { %v671_v50 = vpack.c.bf16 %v379_v37, %v379_v37  ;;  %v672_v51 = vpack.c.bf16 %v380_v38, %v380_v38  ;;  %v673_v52 = vpack.c.bf16 %v381_v39, %v381_v39  ;;  %v674_v53 = vpack.c.bf16 %v382_v40, %v382_v40  ;;  %v291_v31 = vld [vmem:[%s771_s7 + $0xe0] sm:$0xff]  ;;  %v292_v32 = vld [vmem:[%s771_s7 + $0xe8] sm:$0xff]  ;;  %v293_v42 = vld [vmem:[%s771_s7 + $0xf0] sm:$0xff] }
  0x3e   : > { %v675_v56 = vpack.c.bf16 %v383_v43, %v383_v43  ;;  %v676_v57 = vpack.c.bf16 %v384_v44, %v384_v44  ;;  %v385_v58 = vmax.f32 %v353_v45, 0.0  ;;  %v386_v60 = vmax.f32 %v354_v46, 0.0  ;;  %v294_v43 = vld [vmem:[%s771_s7 + $0xf8] sm:$0xff] }
  0x3f   : > { %540 = vst.msk [vmem:[%s823_s15 + $0x20] sm:$0xf] %vm531_vm1, %v671_v50  ;;  %541 = vst.msk [vmem:[%s823_s15 + $0x24] sm:$0xf] %vm531_vm1, %v672_v51  ;;  %v319_v63 = vmul.f32 %v784_v41, %v281_v48  ;;  %v320_v0 = vmul.f32 %v784_v41, %v282_v49  ;;  %v321_v5 = vmul.f32 %v784_v41, %v283_v54 }
  0x40   : > { %542 = vst.msk [vmem:[%s823_s15 + $0x28] sm:$0xf] %vm531_vm1, %v673_v52  ;;  %543 = vst.msk [vmem:[%s823_s15 + $0x2c] sm:$0xf] %vm531_vm1, %v674_v53  ;;  %v677_v3 = vpack.c.bf16 %v385_v58, %v385_v58  ;;  %v678_v4 = vpack.c.bf16 %v386_v60, %v386_v60  ;;  %v322_v6 = vmul.f32 %v784_v41, %v284_v55 }
  0x41   : > { %544 = vst.msk [vmem:[%s823_s15 + $0x30] sm:$0xf] %vm531_vm1, %v675_v56  ;;  %545 = vst.msk [vmem:[%s823_s15 + $0x34] sm:$0xf] %vm531_vm1, %v676_v57  ;;  %v355_v7 = vadd.f32 %v802_v59, %v317_v61  ;;  %v356_v8 = vadd.f32 %v802_v59, %v318_v62  ;;  %v357_v9 = vadd.f32 %v802_v59, %v319_v63 }
  0x42   : > { %v358_v10 = vadd.f32 %v802_v59, %v320_v0  ;;  %546 = vst.msk [vmem:[%s823_s15 + $0x38] sm:$0xf] %vm531_vm1, %v677_v3  ;;  %547 = vst.msk [vmem:[%s823_s15 + $0x3c] sm:$0xf] %vm531_vm1, %v678_v4  ;;  %v359_v11 = vadd.f32 %v802_v59, %v321_v5  ;;  %v360_v12 = vadd.f32 %v802_v59, %v322_v6 }
  0x43   : > { %v323_v13 = vmul.f32 %v784_v41, %v285_v1  ;;  %v324_v14 = vmul.f32 %v784_v41, %v286_v2  ;;  %v387_v15 = vmax.f32 %v355_v7, 0.0  ;;  %v388_v16 = vmax.f32 %v356_v8, 0.0 }
  0x44   : > { %v389_v17 = vmax.f32 %v357_v9, 0.0  ;;  %v390_v18 = vmax.f32 %v358_v10, 0.0  ;;  %v391_v20 = vmax.f32 %v359_v11, 0.0  ;;  %v392_v21 = vmax.f32 %v360_v12, 0.0 }
  0x45   : > { %v361_v22 = vadd.f32 %v802_v59, %v323_v13  ;;  %v362_v23 = vadd.f32 %v802_v59, %v324_v14  ;;  %v679_v27 = vpack.c.bf16 %v387_v15, %v387_v15  ;;  %v680_v28 = vpack.c.bf16 %v388_v16, %v388_v16 }
  0x46   : > { %v681_v29 = vpack.c.bf16 %v389_v17, %v389_v17  ;;  %v682_v30 = vpack.c.bf16 %v390_v18, %v390_v18  ;;  %v683_v33 = vpack.c.bf16 %v391_v20, %v391_v20  ;;  %v684_v34 = vpack.c.bf16 %v392_v21, %v392_v21 }
  0x47   : > { %v393_v35 = vmax.f32 %v361_v22, 0.0  ;;  %v394_v36 = vmax.f32 %v362_v23, 0.0  ;;  %548 = vst.msk [vmem:[%s823_s15 + $0x40] sm:$0xf] %vm531_vm1, %v679_v27  ;;  %549 = vst.msk [vmem:[%s823_s15 + $0x44] sm:$0xf] %vm531_vm1, %v680_v28  ;;  %v325_v37 = vmul.f32 %v784_v41, %v287_v19  ;;  %v326_v38 = vmul.f32 %v784_v41, %v288_v24 }
  0x48   : > { %550 = vst.msk [vmem:[%s823_s15 + $0x48] sm:$0xf] %vm531_vm1, %v681_v29  ;;  %551 = vst.msk [vmem:[%s823_s15 + $0x4c] sm:$0xf] %vm531_vm1, %v682_v30  ;;  %v327_v39 = vmul.f32 %v784_v41, %v289_v25  ;;  %v328_v40 = vmul.f32 %v784_v41, %v290_v26  ;;  %v329_v46 = vmul.f32 %v784_v41, %v291_v31 }
  0x49   : > { %552 = vst.msk [vmem:[%s823_s15 + $0x50] sm:$0xf] %vm531_vm1, %v683_v33  ;;  %553 = vst.msk [vmem:[%s823_s15 + $0x54] sm:$0xf] %vm531_vm1, %v684_v34  ;;  %v685_v44 = vpack.c.bf16 %v393_v35, %v393_v35  ;;  %v686_v45 = vpack.c.bf16 %v394_v36, %v394_v36  ;;  %v330_v47 = vmul.f32 %v784_v41, %v292_v32 }
  0x4a   : > { %v363_v48 = vadd.f32 %v802_v59, %v325_v37  ;;  %v364_v49 = vadd.f32 %v802_v59, %v326_v38  ;;  %v365_v50 = vadd.f32 %v802_v59, %v327_v39  ;;  %v366_v51 = vadd.f32 %v802_v59, %v328_v40 }
  0x4b   : > { %554 = vst.msk [vmem:[%s823_s15 + $0x58] sm:$0xf] %vm531_vm1, %v685_v44  ;;  %555 = vst.msk [vmem:[%s823_s15 + $0x5c] sm:$0xf] %vm531_vm1, %v686_v45  ;;  %v367_v52 = vadd.f32 %v802_v59, %v329_v46  ;;  %v368_v53 = vadd.f32 %v802_v59, %v330_v47  ;;  %v331_v54 = vmul.f32 %v784_v41, %v293_v42 }
  0x4c   : > { %v332_v55 = vmul.f32 %v784_v41, %v294_v43  ;;  %v395_v56 = vmax.f32 %v363_v48, 0.0  ;;  %v396_v57 = vmax.f32 %v364_v49, 0.0  ;;  %v397_v58 = vmax.f32 %v365_v50, 0.0 }
  0x4d   : > { %v398_v60 = vmax.f32 %v366_v51, 0.0  ;;  %v399_v61 = vmax.f32 %v367_v52, 0.0  ;;  %v400_v62 = vmax.f32 %v368_v53, 0.0  ;;  %v369_v63 = vadd.f32 %v802_v59, %v331_v54 }
  0x4e   : > { %v370_v0 = vadd.f32 %v802_v59, %v332_v55  ;;  %v687_v1 = vpack.c.bf16 %v395_v56, %v395_v56  ;;  %v688_v2 = vpack.c.bf16 %v396_v57, %v396_v57  ;;  %v689_v41 = vpack.c.bf16 %v397_v58, %v397_v58 }
  0x4f   : > { %v690_v3 = vpack.c.bf16 %v398_v60, %v398_v60  ;;  %v691_v4 = vpack.c.bf16 %v399_v61, %v399_v61  ;;  %v692_v5 = vpack.c.bf16 %v400_v62, %v400_v62  ;;  %v401_v6 = vmax.f32 %v369_v63, 0.0 }
  0x50   : > { %v402_v7 = vmax.f32 %v370_v0, 0.0  ;;  %556 = vst.msk [vmem:[%s823_s15 + $0x60] sm:$0xf] %vm531_vm1, %v687_v1  ;;  %557 = vst.msk [vmem:[%s823_s15 + $0x64] sm:$0xf] %vm531_vm1, %v688_v2 }
  0x51   : > { %558 = vst.msk [vmem:[%s823_s15 + $0x68] sm:$0xf] %vm531_vm1, %v689_v41  ;;  %559 = vst.msk [vmem:[%s823_s15 + $0x6c] sm:$0xf] %vm531_vm1, %v690_v3  ;;  %v693_v59 = vpack.c.bf16 %v401_v6, %v401_v6 }
  0x52   : > { %560 = vst.msk [vmem:[%s823_s15 + $0x70] sm:$0xf] %vm531_vm1, %v691_v4  ;;  %561 = vst.msk [vmem:[%s823_s15 + $0x74] sm:$0xf] %vm531_vm1, %v692_v5  ;;  %v694_v8 = vpack.c.bf16 %v402_v7, %v402_v7 }
  0x53   : > { %562 = vst.msk [vmem:[%s823_s15 + $0x78] sm:$0xf] %vm531_vm1, %v693_v59 }
  0x54   : > { %563 = vst.msk [vmem:[%s823_s15 + $0x7c] sm:$0xf] %vm531_vm1, %v694_v8 }
  0x55 PF: > { %s15_s18 = sadd.s32 1, %s711_s18  }
  0x56   : > { %p12_p4 = scmp.ge.s32.totalorder %s15_s18, 4  }
  0x58   :  { %14 = sbr.rel (!%p12_p4) target bundleno = 1 (0x1), region = 70 }

// kernel: _lambda_.27
= control target key start
LH: loop header
LB: loop body
LE: loop exit
PB: predicated region body
PF: predicated region fallthrough
CT: control target
= control target key end

     0   :  { %s1497_s15 = smov 0   ;;  %s1499_s16 = smov 0   ;;  %s1946_s0 = inlined_call_operand.vmem [shape: bf16[512,147], index: 0, kind: input, shape index: {}]   ;;  %s1947_s1 = inlined_call_operand.vmem [shape: bf16[147,64], index: 1, kind: input, shape index: {}]   ;;  %s1948_s2 = inlined_call_operand.vmem [shape: f32[512,64], index: 2, kind: output, shape index: {0}]   ;;  %s1949_s3 = inlined_call_operand.vmem [shape: f32[16,64], index: 3, kind: output, shape index: {1}]   ;;  %s1950_s4 = inlined_call_operand.vmem [shape: f32[16,64], index: 4, kind: output, shape index: {2}]  }
   0x1   :  { %s1501_s17 = smov 0  }
   0x2 LB: > { %s27_s18 = sadd.s32 1, %s1463_s16  ;;  %p1271_p0 = scmp.ge.s32.totalorder %s1467_s17, 1  ;;  %s1467_s17 = sphi %s1501_s17, %s15_s17   ;;  %s1463_s16 = sphi %s1499_s16, %s1952_s16   ;;  %s1459_s15 = sphi %s1497_s15, %s1951_s15  }
   0x3   : > { %p29_p1 = scmp.ge.s32.totalorder %s27_s18, 2  ;;  %p199_p2 = scmp.lt.s32.totalorder %s1467_s17, 3 }
   0x5   : > { %s1954_s18 = smov (%p29_p1, %s27_s18), 0  ;;  %p200_p3 = pnand %p1271_p0, %p199_p2 }
   0x6   : > { %v1387_v0 = vld [vmem:[%s1947_s1] sm:$0xff] (!%p200_p3)   ;;  %v1469_v1 = vmov (!%p200_p3), 0   ;;  %v1388_v2 = vld [vmem:[%s1947_s1 + $0x8] sm:$0xff] (!%p200_p3)   ;;  %v1389_v3 = vld [vmem:[%s1947_s1 + $0x10] sm:$0xff] (!%p200_p3)   ;;  %s1272_s25 = sshll.u32 (!%p200_p3), %s1459_s15, 5  ;;  %vm280_vm0 = vcmask (!%p200_p3), 523264  }
   0x7   : > { %203 = sbr.rel (%p200_p3) target bundleno = 377 (0x179), region = 28  ;;  %653 = vmatprep.subr.bf16.mxu0 (!%p200_p3), %v1469_v1  ;;  %1340 = vmatprep.subr.bf16.mxu1 (!%p200_p3), %v1469_v1  ;;  %p245_p4 = scmp.lt.s32.totalorder (!%p200_p3), %s1272_s25, 63  ;;  %v1390_v4 = vld [vmem:[%s1947_s1 + $0x18] sm:$0xff] (!%p200_p3)   ;;  %v1470_v5 = vmov (!%p200_p3), 0.0   ;;  %v1391_v6 = vld [vmem:[%s1947_s1 + $0x20] sm:$0xff] (!%p200_p3)   ;;  %vm597_vm1 = vcmask (!%p200_p3), 154624  }
   0x8   : > { %654 = vmatpush1.bf16.msra.mxu0 (!%p200_p3), %v1387_v0  ;;  %1350 = vmatpush1.bf16.msra.mxu1 (!%p200_p3), %v1387_v0  ;;  %281 = vst.msk [vmem:[#allocation2] sm:$0xff] (!%p200_p3), %vm280_vm0, %v1470_v5  ;;  %282 = vst.msk [vmem:[#allocation2 + $0x8] sm:$0xff] (!%p200_p3), %vm280_vm0, %v1470_v5  ;;  %v1392_v8 = vld [vmem:[%s1947_s1 + $0x28] sm:$0xff] (!%p200_p3)   ;;  %v1393_v10 = vld [vmem:[%s1947_s1 + $0x30] sm:$0xff] (!%p200_p3)   ;;  %vm646_vm2 = vcmask (!%p200_p3), 1040384   ;;  %vm647_vm3 = vcmask (!%p200_p3), 1041408  }
   0x9   : > { %655 = vmatprep.subr.bf16.mxu0 (!%p200_p3), %v1469_v1  ;;  %1341 = vmatprep.subr.bf16.mxu1 (!%p200_p3), %v1469_v1  ;;  %283 = vst.msk [vmem:[#allocation2 + $0x10] sm:$0xff] (!%p200_p3), %vm280_vm0, %v1470_v5  ;;  %284 = vst.msk [vmem:[#allocation2 + $0x18] sm:$0xff] (!%p200_p3), %vm280_vm0, %v1470_v5  ;;  %v1394_v11 = vld [vmem:[%s1947_s1 + $0x38] sm:$0xff] (!%p200_p3)   ;;  %v1471_v12 = vmov (!%p200_p3), 65535   ;;  %v1395_v14 = vld [vmem:[%s1947_s1 + $0x40] sm:$0xff] (!%p200_p3)   ;;  %p267_p5 = scmp.lt.s32.totalorder (!%p200_p3), %s1459_s15, 1 }
   0xa   : > { %285 = vst.msk [vmem:[#allocation2 + $0x20] sm:$0xff] (!%p200_p3), %vm280_vm0, %v1470_v5  ;;  %286 = vst.msk [vmem:[#allocation2 + $0x28] sm:$0xff] (!%p200_p3), %vm280_vm0, %v1470_v5  ;;  %v648_v13 = vsel (!%p200_p3), %vm646_vm2, 4294967295, %v1471_v12  ;;  %v1396_v15 = vld [vmem:[%s1947_s1 + $0x48] ss:$0 sps:$4 sm:$0x33] (!%p200_p3)  }
   0xb   : > { %287 = vst.msk [vmem:[#allocation2 + $0x30] sm:$0xff] (!%p200_p3), %vm280_vm0, %v1470_v5  ;;  %288 = vst.msk [vmem:[#allocation2 + $0x38] sm:$0xff] (!%p200_p3), %vm280_vm0, %v1470_v5  ;;  %v649_v16 = vsel (!%p200_p3), %vm647_vm3, %v648_v13, 0 }
   0xc   : > { %656 = vmatpush1.bf16.msra.mxu0 (!%p200_p3), %v1388_v2  ;;  %1351 = vmatpush1.bf16.msra.mxu1 (!%p200_p3), %v1388_v2  ;;  %289 = vst.msk [vmem:[#allocation2 + $0x40] sm:$0xff] (!%p200_p3), %vm280_vm0, %v1470_v5  ;;  %290 = vst.msk [vmem:[#allocation2 + $0x48] sm:$0xff] (!%p200_p3), %vm280_vm0, %v1470_v5  ;;  %v651_v17 = vand.u32 (!%p200_p3), %v1396_v15, %v649_v16 }
   0xd   : > { %657 = vmatprep.subr.bf16.mxu0 (!%p200_p3), %v1469_v1  ;;  %1342 = vmatprep.subr.bf16.mxu1 (!%p200_p3), %v1469_v1  ;;  %291 = vst.msk [vmem:[#allocation2 + $0x50] sm:$0xff] (!%p200_p3), %vm280_vm0, %v1470_v5  ;;  %292 = vst.msk [vmem:[#allocation2 + $0x58] sm:$0xff] (!%p200_p3), %vm280_vm0, %v1470_v5 }
   0xe   : > { %s1956_s25 = smov (!%p245_p4, %s1272_s25), 63  ;;  %293 = vst.msk [vmem:[#allocation2 + $0x60] sm:$0xff] %vm280_vm0, %v1470_v5  ;;  %294 = vst.msk [vmem:[#allocation2 + $0x68] sm:$0xff] %vm280_vm0, %v1470_v5  ;;  %s1958_s15 = smov (!%p267_p5, %s1459_s15), 1 }
   0xf   : > { %s1339_s28 = sshll.u32 %s1956_s25, 3  ;;  %295 = vst.msk [vmem:[#allocation2 + $0x70] sm:$0xff] %vm280_vm0, %v1470_v5  ;;  %296 = vst.msk [vmem:[#allocation2 + $0x78] sm:$0xff] %vm280_vm0, %v1470_v5  ;;  %v313_v48 = vld [vmem:[#allocation2] sm:$0xff]  ;;  %v314_v51 = vld [vmem:[#allocation2 + $0x8] sm:$0xff]  ;;  %s1277_s25 = sshll.u32 %s1958_s15, 3 }
  0x10   : > { %658 = vmatpush1.bf16.msra.mxu0 %v1389_v3  ;;  %1352 = vmatpush1.bf16.msra.mxu1 %v1389_v3  ;;  %297 = vst.msk [vmem:[#allocation2 + $0x80] sm:$0xff] %vm280_vm0, %v1470_v5  ;;  %298 = vst.msk [vmem:[#allocation2 + $0x88] sm:$0xff] %vm280_vm0, %v1470_v5  ;;  %s1578_s5 = scalar_lea.vmem %s1946_s0, %s1339_s28  ;;  %v315_v0 = vld [vmem:[#allocation2 + $0x10] sm:$0xff]  ;;  %s1667_s24 = scalar_lea.vmem %s1948_s2, %s1339_s28  ;;  %v316_v3 = vld [vmem:[#allocation2 + $0x18] sm:$0xff] }
  0x11   : > { %659 = vmatprep.subr.bf16.mxu0 %v1469_v1  ;;  %1343 = vmatprep.subr.bf16.mxu1 %v1469_v1  ;;  %299 = vst.msk [vmem:[#allocation2 + $0x90] sm:$0xff] %vm280_vm0, %v1470_v5  ;;  %300 = vst.msk [vmem:[#allocation2 + $0x98] sm:$0xff] %vm280_vm0, %v1470_v5  ;;  %v1399_v7 = vld [vmem:[%s1578_s5 + $0x4] ss:$8 sps:$4 sm:$0xff]   ;;  %v1397_v18 = vld [vmem:[%s1578_s5] ss:$8 sps:$4 sm:$0xff]   ;;  %s270_s28 = scalar_lea.vmem %s1949_s3, %s1277_s25 }
  0x12   : > { %301 = vst.msk [vmem:[#allocation2 + $0xa0] sm:$0xff] %vm280_vm0, %v1470_v5  ;;  %302 = vst.msk [vmem:[#allocation2 + $0xa8] sm:$0xff] %vm280_vm0, %v1470_v5  ;;  %1321 = vmatprep.mubr.msk.bf16.mxu0 %vm597_vm1, %v1399_v7  ;;  %v1411_v9 = vld [vmem:[%s1578_s5 + $0x84] ss:$8 sps:$4 sm:$0xff]   ;;  %v1409_v19 = vld [vmem:[%s1578_s5 + $0x80] ss:$8 sps:$4 sm:$0xff]  }
  0x13   : > { %303 = vst.msk [vmem:[#allocation2 + $0xb0] sm:$0xff] %vm280_vm0, %v1470_v5  ;;  %304 = vst.msk [vmem:[#allocation2 + $0xb8] sm:$0xff] %vm280_vm0, %v1470_v5  ;;  %1329 = vmatprep.mubr.msk.bf16.mxu1 %vm597_vm1, %v1411_v9  ;;  %v1400_v20 = vld [vmem:[%s1578_s5 + $0x14] ss:$8 sps:$4 sm:$0xff]   ;;  %v1402_v22 = vld [vmem:[%s1578_s5 + $0x10] ss:$8 sps:$4 sm:$0xff]  }
  0x14   : > { %305 = vst.msk [vmem:[#allocation2 + $0xc0] sm:$0xff] %vm280_vm0, %v1470_v5  ;;  %306 = vst.msk [vmem:[#allocation2 + $0xc8] sm:$0xff] %vm280_vm0, %v1470_v5  ;;  %660 = vmatpush1.bf16.msra.mxu0 %v1390_v4  ;;  %1353 = vmatpush1.bf16.msra.mxu1 %v1390_v4  ;;  %v1415_v21 = vld [vmem:[%s1578_s5 + $0x94] ss:$8 sps:$4 sm:$0xff]   ;;  %v1417_v23 = vld [vmem:[%s1578_s5 + $0x90] ss:$8 sps:$4 sm:$0xff]  }
  0x15   : > { %307 = vst.msk [vmem:[#allocation2 + $0xd0] sm:$0xff] %vm280_vm0, %v1470_v5  ;;  %308 = vst.msk [vmem:[#allocation2 + $0xd8] sm:$0xff] %vm280_vm0, %v1470_v5  ;;  %661 = vmatprep.subr.bf16.mxu0 %v1469_v1  ;;  %1344 = vmatprep.subr.bf16.mxu1 %v1469_v1  ;;  %v1403_v24 = vld [vmem:[%s1578_s5 + $0x24] ss:$8 sps:$4 sm:$0xff]   ;;  %v1405_v26 = vld [vmem:[%s1578_s5 + $0x20] ss:$8 sps:$4 sm:$0xff]  }
  0x16   : > { %309 = vst.msk [vmem:[#allocation2 + $0xe0] sm:$0xff] %vm280_vm0, %v1470_v5  ;;  %310 = vst.msk [vmem:[#allocation2 + $0xe8] sm:$0xff] %vm280_vm0, %v1470_v5  ;;  %v1421_v25 = vld [vmem:[%s1578_s5 + $0xa4] ss:$8 sps:$4 sm:$0xff]   ;;  %v1423_v27 = vld [vmem:[%s1578_s5 + $0xa0] ss:$8 sps:$4 sm:$0xff]  }
  0x17   : > { %311 = vst.msk [vmem:[#allocation2 + $0xf0] sm:$0xff] %vm280_vm0, %v1470_v5  ;;  %312 = vst.msk [vmem:[#allocation2 + $0xf8] sm:$0xff] %vm280_vm0, %v1470_v5  ;;  %v1406_v28 = vld [vmem:[%s1578_s5 + $0x34] ss:$8 sps:$4 sm:$0xff]   ;;  %v1408_v30 = vld [vmem:[%s1578_s5 + $0x30] ss:$8 sps:$4 sm:$0xff]  }
  0x18   : > { %662 = vmatpush1.bf16.msra.mxu0 %v1391_v6  ;;  %1354 = vmatpush1.bf16.msra.mxu1 %v1391_v6  ;;  %v1427_v29 = vld [vmem:[%s1578_s5 + $0xb4] ss:$8 sps:$4 sm:$0xff]   ;;  %v1429_v31 = vld [vmem:[%s1578_s5 + $0xb0] ss:$8 sps:$4 sm:$0xff]   ;;  %v1412_v32 = vld [vmem:[%s1578_s5 + $0x44] ss:$8 sps:$4 sm:$0xff]  }
  0x19   : > { %663 = vmatprep.subr.bf16.mxu0 %v1469_v1  ;;  %1345 = vmatprep.subr.bf16.mxu1 %v1469_v1  ;;  %v1433_v33 = vld [vmem:[%s1578_s5 + $0xc4] ss:$8 sps:$4 sm:$0xff]   ;;  %v1414_v34 = vld [vmem:[%s1578_s5 + $0x40] ss:$8 sps:$4 sm:$0xff]   ;;  %v1418_v36 = vld [vmem:[%s1578_s5 + $0x54] ss:$8 sps:$4 sm:$0xff]  }
  0x1a   : > { %v1435_v35 = vld [vmem:[%s1578_s5 + $0xc0] ss:$8 sps:$4 sm:$0xff]   ;;  %v1436_v37 = vld [vmem:[%s1578_s5 + $0xd4] ss:$8 sps:$4 sm:$0xff]   ;;  %v1420_v38 = vld [vmem:[%s1578_s5 + $0x50] ss:$8 sps:$4 sm:$0xff]  }
  0x1b   : > { %v1438_v39 = vld [vmem:[%s1578_s5 + $0xd0] ss:$8 sps:$4 sm:$0xff]   ;;  %v1424_v40 = vld [vmem:[%s1578_s5 + $0x64] ss:$8 sps:$4 sm:$0xff]   ;;  %v1426_v42 = vld [vmem:[%s1578_s5 + $0x60] ss:$8 sps:$4 sm:$0xff]  }
  0x1c   : > { %664 = vmatpush1.bf16.msra.mxu0 %v1392_v8  ;;  %1355 = vmatpush1.bf16.msra.mxu1 %v1392_v8  ;;  %v1439_v41 = vld [vmem:[%s1578_s5 + $0xe4] ss:$8 sps:$4 sm:$0xff]   ;;  %v1441_v43 = vld [vmem:[%s1578_s5 + $0xe0] ss:$8 sps:$4 sm:$0xff]   ;;  %v1430_v44 = vld [vmem:[%s1578_s5 + $0x74] ss:$8 sps:$4 sm:$0xff]  }
  0x1d   : > { %665 = vmatprep.subr.bf16.mxu0 %v1469_v1  ;;  %1346 = vmatprep.subr.bf16.mxu1 %v1469_v1  ;;  %v1442_v45 = vld [vmem:[%s1578_s5 + $0xf4] ss:$8 sps:$4 sm:$0xff]   ;;  %v1432_v46 = vld [vmem:[%s1578_s5 + $0x70] ss:$8 sps:$4 sm:$0xff]   ;;  %v329_v49 = vld [vmem:[#allocation2 + $0x80] sm:$0xff] }
  0x1e   : > { %v1444_v47 = vld [vmem:[%s1578_s5 + $0xf0] ss:$8 sps:$4 sm:$0xff]   ;;  %v330_v53 = vld [vmem:[#allocation2 + $0x88] sm:$0xff]  ;;  %s274_s5 = scalar_lea.vmem %s1950_s4, %s1277_s25 }
  0x1f   : > { %v332_v9 = vld [vmem:[#allocation2 + $0x98] sm:$0xff] }
  0x20   : > { %666 = vmatpush1.bf16.msra.mxu0 %v1393_v10  ;;  %1356 = vmatpush1.bf16.msra.mxu1 %v1393_v10 }
  0x21   : > { %667 = vmatprep.subr.bf16.mxu0 %v1469_v1  ;;  %1347 = vmatprep.subr.bf16.mxu1 %v1469_v1 }
  0x24   : > { %668 = vmatpush1.bf16.msra.mxu0 %v1394_v11  ;;  %1357 = vmatpush1.bf16.msra.mxu1 %v1394_v11 }
  0x25   : > { %669 = vmatprep.subr.bf16.mxu0 %v1469_v1  ;;  %1348 = vmatprep.subr.bf16.mxu1 %v1469_v1 }
  0x28   : > { %670 = vmatpush1.bf16.msra.mxu0 %v1395_v14  ;;  %1358 = vmatpush1.bf16.msra.mxu1 %v1395_v14 }
  0x29   : > { %671 = vmatprep.subr.bf16.mxu0 %v1469_v1  ;;  %1349 = vmatprep.subr.bf16.mxu1 %v1469_v1  ;;  %v331_v1 = vld [vmem:[#allocation2 + $0x90] sm:$0xff] }
  0x2c   : > { %672 = vmatpush1.bf16.msra.mxu0 %v651_v17  ;;  %1359 = vmatpush1.bf16.msra.mxu1 %v651_v17 }
  0x2f   : > { %686 = vmatmul.mubr.bf16.vlgmr.msra.gmra.mrb[0].mxu0 %v1397_v18  ;;  %750 = vmatmul.mubr.bf16.vlgmr.msra.gmra.mrb[0].mxu1 %v1409_v19 }
  0x30   : > { %1322 = vmatprep.mubr.msk.bf16.mxu0 %vm597_vm1, %v1400_v20  ;;  %1330 = vmatprep.mubr.msk.bf16.mxu1 %vm597_vm1, %v1415_v21  ;;  %v317_v20 = vld [vmem:[#allocation2 + $0x20] sm:$0xff] }
  0x31   : > { %v333_v21 = vld [vmem:[#allocation2 + $0xa0] sm:$0xff] }
  0x37   : > { %694 = vmatmul.mubr.bf16.gmra.mrb[4].mxu0 %v1402_v22  ;;  %758 = vmatmul.mubr.bf16.gmra.mrb[4].mxu1 %v1417_v23  ;;  %v318_v23 = vld [vmem:[#allocation2 + $0x28] sm:$0xff] }
  0x38   : > { %1323 = vmatprep.mubr.msk.bf16.mxu0 %vm597_vm1, %v1403_v24  ;;  %1331 = vmatprep.mubr.msk.bf16.mxu1 %vm597_vm1, %v1421_v25 }
  0x3f   : > { %702 = vmatmul.mubr.bf16.gmra.mrb[8].mxu0 %v1405_v26  ;;  %766 = vmatmul.mubr.bf16.gmra.mrb[8].mxu1 %v1423_v27 }
  0x40   : > { %1324 = vmatprep.mubr.msk.bf16.mxu0 %vm597_vm1, %v1406_v28  ;;  %1332 = vmatprep.mubr.msk.bf16.mxu1 %vm597_vm1, %v1427_v29  ;;  %v334_v29 = vld [vmem:[#allocation2 + $0xa8] sm:$0xff] }
  0x47   : > { %710 = vmatmul.mubr.bf16.gmra.mrb[12].mxu0 %v1408_v30  ;;  %774 = vmatmul.mubr.bf16.gmra.mrb[12].mxu1 %v1429_v31 }
  0x48   : > { %1325 = vmatprep.mubr.msk.bf16.mxu0 %vm597_vm1, %v1412_v32  ;;  %1333 = vmatprep.mubr.msk.bf16.mxu1 %vm597_vm1, %v1433_v33 }
  0x4f   : > { %718 = vmatmul.mubr.bf16.gmra.mrb[16].mxu0 %v1414_v34  ;;  %782 = vmatmul.mubr.bf16.gmra.mrb[16].mxu1 %v1435_v35 }
  0x50   : > { %1326 = vmatprep.mubr.msk.bf16.mxu0 %vm597_vm1, %v1418_v36  ;;  %1334 = vmatprep.mubr.msk.bf16.mxu1 %vm597_vm1, %v1436_v37 }
  0x57   : > { %726 = vmatmul.mubr.bf16.gmra.mrb[20].mxu0 %v1420_v38  ;;  %790 = vmatmul.mubr.bf16.gmra.mrb[20].mxu1 %v1438_v39 }
  0x58   : > { %1327 = vmatprep.mubr.msk.bf16.mxu0 %vm597_vm1, %v1424_v40  ;;  %1335 = vmatprep.mubr.msk.bf16.mxu1 %vm597_vm1, %v1439_v41  ;;  %v319_v40 = vld [vmem:[#allocation2 + $0x30] sm:$0xff] }
  0x59   : > { %v335_v41 = vld [vmem:[#allocation2 + $0xb0] sm:$0xff] }
  0x5f   : > { %734 = vmatmul.mubr.bf16.gmra.mrb[24].mxu0 %v1426_v42  ;;  %798 = vmatmul.mubr.bf16.gmra.mrb[24].mxu1 %v1441_v43  ;;  %v320_v43 = vld [vmem:[#allocation2 + $0x38] sm:$0xff] }
  0x60   : > { %1328 = vmatprep.mubr.msk.bf16.mxu0 %vm597_vm1, %v1430_v44  ;;  %1336 = vmatprep.mubr.msk.bf16.mxu1 %vm597_vm1, %v1442_v45 }
  0x67   : > { %742 = vmatmul.mubr.bf16.gmra.mrb[28].mxu0 %v1432_v46  ;;  %806 = vmatmul.mubr.bf16.gmra.mrb[28].mxu1 %v1444_v47 }
 0x102   : > { %v687_v50 = vpop.f32.mrb[0].mxu0  ;;  %v751_v52 = vpop.f32.mrb[0].mxu1 }
 0x103   : > { %v814_v54 = vadd.f32 %v687_v50, %v313_v48  ;;  %v689_v55 = vpop.f32.mrb[1].mxu0  ;;  %v830_v56 = vadd.f32 %v751_v52, %v329_v49  ;;  %v753_v57 = vpop.f32.mrb[1].mxu1  ;;  %v336_v50 = vld [vmem:[#allocation2 + $0xb8] sm:$0xff] }
 0x104   : > { %v690_v58 = vpop.f32.mrb[2].mxu0  ;;  %v754_v59 = vpop.f32.mrb[2].mxu1 }
 0x105   : > { %847 = vst.msk [vmem:[#allocation2] sm:$0xff] %vm280_vm0, %v814_v54  ;;  %v815_v60 = vadd.f32 %v690_v58, %v314_v51  ;;  %v692_v61 = vpop.f32.mrb[3].mxu0  ;;  %863 = vst.msk [vmem:[#allocation2 + $0x80] sm:$0xff] %vm280_vm0, %v830_v56  ;;  %v831_v62 = vadd.f32 %v754_v59, %v330_v53  ;;  %v756_v63 = vpop.f32.mrb[3].mxu1 }
 0x107   : > { %848 = vst.msk [vmem:[#allocation2 + $0x8] sm:$0xff] %vm280_vm0, %v815_v60  ;;  %864 = vst.msk [vmem:[#allocation2 + $0x88] sm:$0xff] %vm280_vm0, %v831_v62 }
 0x10a   : > { %v695_v2 = vpop.f32.mrb[4].mxu0  ;;  %v759_v4 = vpop.f32.mrb[4].mxu1 }
 0x10b   : > { %v816_v5 = vadd.f32 %v695_v2, %v315_v0  ;;  %v697_v6 = vpop.f32.mrb[5].mxu0  ;;  %v832_v7 = vadd.f32 %v759_v4, %v331_v1  ;;  %v761_v8 = vpop.f32.mrb[5].mxu1  ;;  %v321_v4 = vld [vmem:[#allocation2 + $0x40] sm:$0xff] }
 0x10c   : > { %v1669_v10 = vld [vmem:[#allocation2] sm:$0xff]  ;;  %v698_v11 = vpop.f32.mrb[6].mxu0  ;;  %v762_v13 = vpop.f32.mrb[6].mxu1 }
 0x10d   : > { %v1671_v12 = vld [vmem:[#allocation2 + $0x80] sm:$0xff]  ;;  %914 = vst.msk [vmem:[%s1667_s24] sm:$0xff] %vm280_vm0, %v1669_v10  ;;  %849 = vst.msk [vmem:[#allocation2 + $0x10] sm:$0xff] %vm280_vm0, %v816_v5  ;;  %v817_v14 = vadd.f32 %v698_v11, %v316_v3  ;;  %v700_v15 = vpop.f32.mrb[7].mxu0  ;;  %v764_v16 = vpop.f32.mrb[7].mxu1  ;;  %v833_v19 = vadd.f32 %v762_v13, %v332_v9  ;;  %v1015_v55 = vmul.f32 %v1669_v10, %v1669_v10  ;;  %v946_v63 = vsel %vm280_vm0, %v1669_v10, 0.0 }
 0x10e   : > { %930 = vst.msk [vmem:[%s1667_s24 + $0x80] sm:$0xff] %vm280_vm0, %v1671_v12  ;;  %865 = vst.msk [vmem:[#allocation2 + $0x90] sm:$0xff] %vm280_vm0, %v832_v7  ;;  %v883_v17 = vld [vmem:[#allocation2 + $0x8] sm:$0xff]  ;;  %v337_v5 = vld [vmem:[#allocation2 + $0xc0] sm:$0xff] }
 0x10f   : > { %v1681_v18 = vld [vmem:[#allocation2 + $0x88] sm:$0xff]  ;;  %915 = vst.msk [vmem:[%s1667_s24 + $0x8] sm:$0xff] %vm280_vm0, %v883_v17  ;;  %850 = vst.msk [vmem:[#allocation2 + $0x18] sm:$0xff] %vm280_vm0, %v817_v14  ;;  %v1016_v45 = vmul.f32 %v883_v17, %v883_v17  ;;  %v947_v56 = vsel %vm280_vm0, %v883_v17, 0.0  ;;  %v1047_v6 = vsel %vm280_vm0, %v1015_v55, 0.0 }
 0x110   : > { %931 = vst.msk [vmem:[%s1667_s24 + $0x88] sm:$0xff] %vm280_vm0, %v1681_v18  ;;  %866 = vst.msk [vmem:[#allocation2 + $0x98] sm:$0xff] %vm280_vm0, %v833_v19  ;;  %v948_v3 = vadd.f32 %v947_v56, %v946_v63  ;;  %v322_v13 = vld [vmem:[#allocation2 + $0x48] sm:$0xff] }
 0x111   : > { %v1048_v0 = vsel %vm280_vm0, %v1016_v45, 0.0 }
 0x112   : > { %v703_v22 = vpop.f32.mrb[8].mxu0  ;;  %v767_v24 = vpop.f32.mrb[8].mxu1  ;;  %v1049_v9 = vadd.f32 %v1048_v0, %v1047_v6 }
 0x113   : > { %v818_v25 = vadd.f32 %v703_v22, %v317_v20  ;;  %v705_v26 = vpop.f32.mrb[9].mxu0  ;;  %v834_v27 = vadd.f32 %v767_v24, %v333_v21  ;;  %v769_v28 = vpop.f32.mrb[9].mxu1  ;;  %v338_v22 = vld [vmem:[#allocation2 + $0xc8] sm:$0xff] }
 0x114   : > { %v884_v30 = vld [vmem:[#allocation2 + $0x10] sm:$0xff]  ;;  %v706_v31 = vpop.f32.mrb[10].mxu0  ;;  %v770_v33 = vpop.f32.mrb[10].mxu1 }
 0x115   : > { %v1690_v32 = vld [vmem:[#allocation2 + $0x90] sm:$0xff]  ;;  %916 = vst.msk [vmem:[%s1667_s24 + $0x10] sm:$0xff] %vm280_vm0, %v884_v30  ;;  %851 = vst.msk [vmem:[#allocation2 + $0x20] sm:$0xff] %vm280_vm0, %v818_v25  ;;  %v819_v34 = vadd.f32 %v706_v31, %v318_v23  ;;  %v708_v35 = vpop.f32.mrb[11].mxu0  ;;  %v772_v36 = vpop.f32.mrb[11].mxu1  ;;  %v835_v38 = vadd.f32 %v770_v33, %v334_v29  ;;  %v1017_v57 = vmul.f32 %v884_v30, %v884_v30  ;;  %v949_v1 = vsel %vm280_vm0, %v884_v30, 0.0 }
 0x116   : > { %932 = vst.msk [vmem:[%s1667_s24 + $0x90] sm:$0xff] %vm280_vm0, %v1690_v32  ;;  %867 = vst.msk [vmem:[#allocation2 + $0xa0] sm:$0xff] %vm280_vm0, %v834_v27  ;;  %v885_v37 = vld [vmem:[#allocation2 + $0x18] sm:$0xff]  ;;  %v950_v10 = vadd.f32 %v949_v1, %v948_v3 }
 0x117   : > { %917 = vst.msk [vmem:[%s1667_s24 + $0x18] sm:$0xff] %vm280_vm0, %v885_v37  ;;  %852 = vst.msk [vmem:[#allocation2 + $0x28] sm:$0xff] %vm280_vm0, %v819_v34  ;;  %v1702_v39 = vld [vmem:[#allocation2 + $0x98] sm:$0xff]  ;;  %v1050_v7 = vsel %vm280_vm0, %v1017_v57, 0.0  ;;  %v1018_v8 = vmul.f32 %v885_v37, %v885_v37  ;;  %v951_v15 = vsel %vm280_vm0, %v885_v37, 0.0 }
 0x118   : > { %933 = vst.msk [vmem:[%s1667_s24 + $0x98] sm:$0xff] %vm280_vm0, %v1702_v39  ;;  %868 = vst.msk [vmem:[#allocation2 + $0xa8] sm:$0xff] %vm280_vm0, %v835_v38  ;;  %v1051_v23 = vadd.f32 %v1050_v7, %v1049_v9  ;;  %v952_v34 = vadd.f32 %v951_v15, %v950_v10  ;;  %v325_v15 = vld [vmem:[#allocation2 + $0x60] sm:$0xff] }
 0x119   : > { %v1052_v28 = vsel %vm280_vm0, %v1018_v8, 0.0 }
 0x11a   : > { %v711_v42 = vpop.f32.mrb[12].mxu0  ;;  %v775_v44 = vpop.f32.mrb[12].mxu1 }
 0x11b   : > { %v820_v46 = vadd.f32 %v711_v42, %v319_v40  ;;  %v713_v47 = vpop.f32.mrb[13].mxu0  ;;  %v836_v48 = vadd.f32 %v775_v44, %v335_v41  ;;  %v777_v49 = vpop.f32.mrb[13].mxu1  ;;  %v1053_v41 = vadd.f32 %v1052_v28, %v1051_v23  ;;  %v339_v44 = vld [vmem:[#allocation2 + $0xd0] sm:$0xff] }
 0x11c   : > { %v886_v51 = vld [vmem:[#allocation2 + $0x20] sm:$0xff]  ;;  %v714_v52 = vpop.f32.mrb[14].mxu0  ;;  %v778_v54 = vpop.f32.mrb[14].mxu1  ;;  %v324_v49 = vld [vmem:[#allocation2 + $0x58] sm:$0xff] }
 0x11d   : > { %v1708_v53 = vld [vmem:[#allocation2 + $0xa0] sm:$0xff]  ;;  %918 = vst.msk [vmem:[%s1667_s24 + $0x20] sm:$0xff] %vm280_vm0, %v886_v51  ;;  %853 = vst.msk [vmem:[#allocation2 + $0x30] sm:$0xff] %vm280_vm0, %v820_v46  ;;  %v821_v58 = vadd.f32 %v714_v52, %v320_v43  ;;  %v716_v59 = vpop.f32.mrb[15].mxu0  ;;  %v780_v60 = vpop.f32.mrb[15].mxu1  ;;  %v837_v62 = vadd.f32 %v778_v54, %v336_v50  ;;  %v1019_v16 = vmul.f32 %v886_v51, %v886_v51  ;;  %v953_v29 = vsel %vm280_vm0, %v886_v51, 0.0 }
 0x11e   : > { %934 = vst.msk [vmem:[%s1667_s24 + $0xa0] sm:$0xff] %vm280_vm0, %v1708_v53  ;;  %869 = vst.msk [vmem:[#allocation2 + $0xb0] sm:$0xff] %vm280_vm0, %v836_v48  ;;  %v887_v61 = vld [vmem:[#allocation2 + $0x28] sm:$0xff]  ;;  %v954_v42 = vadd.f32 %v953_v29, %v952_v34  ;;  %v323_v43 = vld [vmem:[#allocation2 + $0x50] sm:$0xff] }
 0x11f   : > { %919 = vst.msk [vmem:[%s1667_s24 + $0x28] sm:$0xff] %vm280_vm0, %v887_v61  ;;  %854 = vst.msk [vmem:[#allocation2 + $0x38] sm:$0xff] %vm280_vm0, %v821_v58  ;;  %v1727_v2 = vld [vmem:[#allocation2 + $0xa8] sm:$0xff]  ;;  %v1054_v37 = vsel %vm280_vm0, %v1019_v16, 0.0  ;;  %v1020_v38 = vmul.f32 %v887_v61, %v887_v61  ;;  %v955_v45 = vsel %vm280_vm0, %v887_v61, 0.0  ;;  %v340_v58 = vld [vmem:[#allocation2 + $0xd8] sm:$0xff] }
 0x120   : > { %935 = vst.msk [vmem:[%s1667_s24 + $0xa8] sm:$0xff] %vm280_vm0, %v1727_v2  ;;  %870 = vst.msk [vmem:[#allocation2 + $0xb8] sm:$0xff] %vm280_vm0, %v837_v62  ;;  %v1055_v47 = vadd.f32 %v1054_v37, %v1053_v41  ;;  %v956_v59 = vadd.f32 %v955_v45, %v954_v42  ;;  %v341_v16 = vld [vmem:[#allocation2 + $0xe0] sm:$0xff] }
 0x121   : > { %v1056_v51 = vsel %vm280_vm0, %v1020_v38, 0.0 }
 0x122   : > { %v719_v11 = vpop.f32.mrb[16].mxu0  ;;  %v783_v14 = vpop.f32.mrb[16].mxu1  ;;  %v1057_v6 = vadd.f32 %v1056_v51, %v1055_v47 }
 0x123   : > { %v822_v17 = vadd.f32 %v719_v11, %v321_v4  ;;  %v721_v19 = vpop.f32.mrb[17].mxu0  ;;  %v838_v20 = vadd.f32 %v783_v14, %v337_v5  ;;  %v785_v21 = vpop.f32.mrb[17].mxu1 }
 0x124   : > { %v888_v24 = vld [vmem:[#allocation2 + $0x30] sm:$0xff]  ;;  %v722_v25 = vpop.f32.mrb[18].mxu0  ;;  %v786_v27 = vpop.f32.mrb[18].mxu1 }
 0x125   : > { %v1736_v26 = vld [vmem:[#allocation2 + $0xb0] sm:$0xff]  ;;  %920 = vst.msk [vmem:[%s1667_s24 + $0x30] sm:$0xff] %vm280_vm0, %v888_v24  ;;  %855 = vst.msk [vmem:[#allocation2 + $0x40] sm:$0xff] %vm280_vm0, %v822_v17  ;;  %v823_v30 = vadd.f32 %v722_v25, %v322_v13  ;;  %v724_v31 = vpop.f32.mrb[19].mxu0  ;;  %v788_v33 = vpop.f32.mrb[19].mxu1  ;;  %v839_v36 = vadd.f32 %v786_v27, %v338_v22  ;;  %v1021_v46 = vmul.f32 %v888_v24, %v888_v24  ;;  %v957_v52 = vsel %vm280_vm0, %v888_v24, 0.0 }
 0x126   : > { %936 = vst.msk [vmem:[%s1667_s24 + $0xb0] sm:$0xff] %vm280_vm0, %v1736_v26  ;;  %871 = vst.msk [vmem:[#allocation2 + $0xc0] sm:$0xff] %vm280_vm0, %v838_v20  ;;  %v889_v35 = vld [vmem:[#allocation2 + $0x38] sm:$0xff]  ;;  %v958_v7 = vadd.f32 %v957_v52, %v956_v59  ;;  %v326_v22 = vld [vmem:[#allocation2 + $0x68] sm:$0xff] }
 0x127   : > { %921 = vst.msk [vmem:[%s1667_s24 + $0x38] sm:$0xff] %vm280_vm0, %v889_v35  ;;  %856 = vst.msk [vmem:[#allocation2 + $0x48] sm:$0xff] %vm280_vm0, %v823_v30  ;;  %v1751_v40 = vld [vmem:[#allocation2 + $0xb8] sm:$0xff]  ;;  %v1058_v0 = vsel %vm280_vm0, %v1021_v46, 0.0  ;;  %v1022_v1 = vmul.f32 %v889_v35, %v889_v35  ;;  %v959_v10 = vsel %vm280_vm0, %v889_v35, 0.0  ;;  %v342_v31 = vld [vmem:[#allocation2 + $0xe8] sm:$0xff] }
 0x128   : > { %937 = vst.msk [vmem:[%s1667_s24 + $0xb8] sm:$0xff] %vm280_vm0, %v1751_v40  ;;  %872 = vst.msk [vmem:[#allocation2 + $0xc8] sm:$0xff] %vm280_vm0, %v839_v36  ;;  %v1059_v14 = vadd.f32 %v1058_v0, %v1057_v6  ;;  %v960_v20 = vadd.f32 %v959_v10, %v958_v7  ;;  %v344_v6 = vld [vmem:[#allocation2 + $0xf8] sm:$0xff] }
 0x129   : > { %v1060_v17 = vsel %vm280_vm0, %v1022_v1, 0.0 }
 0x12a   : > { %v727_v48 = vpop.f32.mrb[20].mxu0  ;;  %v791_v50 = vpop.f32.mrb[20].mxu1  ;;  %v1061_v33 = vadd.f32 %v1060_v17, %v1059_v14 }
 0x12b   : > { %v824_v54 = vadd.f32 %v727_v48, %v323_v43  ;;  %v729_v55 = vpop.f32.mrb[21].mxu0  ;;  %v840_v56 = vadd.f32 %v791_v50, %v339_v44  ;;  %v793_v57 = vpop.f32.mrb[21].mxu1 }
 0x12c   : > { %v890_v60 = vld [vmem:[#allocation2 + $0x40] sm:$0xff]  ;;  %v730_v62 = vpop.f32.mrb[22].mxu0  ;;  %v794_v63 = vpop.f32.mrb[22].mxu1  ;;  %v343_v55 = vld [vmem:[#allocation2 + $0xf0] sm:$0xff] }
 0x12d   : > { %v1760_v61 = vld [vmem:[#allocation2 + $0xc0] sm:$0xff]  ;;  %922 = vst.msk [vmem:[%s1667_s24 + $0x40] sm:$0xff] %vm280_vm0, %v890_v60  ;;  %857 = vst.msk [vmem:[#allocation2 + $0x50] sm:$0xff] %vm280_vm0, %v824_v54  ;;  %v825_v3 = vadd.f32 %v730_v62, %v324_v49  ;;  %v732_v4 = vpop.f32.mrb[23].mxu0  ;;  %v796_v5 = vpop.f32.mrb[23].mxu1  ;;  %v841_v9 = vadd.f32 %v794_v63, %v340_v58  ;;  %v1023_v11 = vmul.f32 %v890_v60, %v890_v60  ;;  %v961_v19 = vsel %vm280_vm0, %v890_v60, 0.0 }
 0x12e   : > { %938 = vst.msk [vmem:[%s1667_s24 + $0xc0] sm:$0xff] %vm280_vm0, %v1760_v61  ;;  %873 = vst.msk [vmem:[#allocation2 + $0xd0] sm:$0xff] %vm280_vm0, %v840_v56  ;;  %v891_v8 = vld [vmem:[#allocation2 + $0x48] sm:$0xff]  ;;  %v962_v34 = vadd.f32 %v961_v19, %v960_v20  ;;  %v327_v54 = vld [vmem:[#allocation2 + $0x70] sm:$0xff] }
 0x12f   : > { %923 = vst.msk [vmem:[%s1667_s24 + $0x48] sm:$0xff] %vm280_vm0, %v891_v8  ;;  %858 = vst.msk [vmem:[#allocation2 + $0x58] sm:$0xff] %vm280_vm0, %v825_v3  ;;  %v1774_v13 = vld [vmem:[#allocation2 + $0xc8] sm:$0xff]  ;;  %v1062_v24 = vsel %vm280_vm0, %v1023_v11, 0.0  ;;  %v1024_v25 = vmul.f32 %v891_v8, %v891_v8  ;;  %v963_v41 = vsel %vm280_vm0, %v891_v8, 0.0  ;;  %v328_v62 = vld [vmem:[#allocation2 + $0x78] sm:$0xff] }
 0x130   : > { %939 = vst.msk [vmem:[%s1667_s24 + $0xc8] sm:$0xff] %vm280_vm0, %v1774_v13  ;;  %874 = vst.msk [vmem:[#allocation2 + $0xd8] sm:$0xff] %vm280_vm0, %v841_v9  ;;  %v1063_v46 = vadd.f32 %v1062_v24, %v1061_v33  ;;  %v964_v52 = vadd.f32 %v963_v41, %v962_v34 }
 0x131   : > { %v1064_v49 = vsel %vm280_vm0, %v1024_v25, 0.0 }
 0x132   : > { %v735_v21 = vpop.f32.mrb[24].mxu0  ;;  %v799_v23 = vpop.f32.mrb[24].mxu1  ;;  %v1065_v58 = vadd.f32 %v1064_v49, %v1063_v46 }
 0x133   : > { %v826_v27 = vadd.f32 %v735_v21, %v325_v15  ;;  %v737_v28 = vpop.f32.mrb[25].mxu0  ;;  %v842_v29 = vadd.f32 %v799_v23, %v341_v16  ;;  %v801_v30 = vpop.f32.mrb[25].mxu1 }
 0x134   : > { %v892_v35 = vld [vmem:[#allocation2 + $0x50] sm:$0xff]  ;;  %v738_v36 = vpop.f32.mrb[26].mxu0  ;;  %v802_v38 = vpop.f32.mrb[26].mxu1 }
 0x135   : > { %v1783_v37 = vld [vmem:[#allocation2 + $0xd0] sm:$0xff]  ;;  %924 = vst.msk [vmem:[%s1667_s24 + $0x50] sm:$0xff] %vm280_vm0, %v892_v35  ;;  %v1025_v42 = vmul.f32 %v892_v35, %v892_v35  ;;  %859 = vst.msk [vmem:[#allocation2 + $0x60] sm:$0xff] %vm280_vm0, %v826_v27  ;;  %v827_v43 = vadd.f32 %v738_v36, %v326_v22  ;;  %v740_v44 = vpop.f32.mrb[27].mxu0  ;;  %v804_v45 = vpop.f32.mrb[27].mxu1  ;;  %v843_v48 = vadd.f32 %v802_v38, %v342_v31  ;;  %v965_v50 = vsel %vm280_vm0, %v892_v35, 0.0 }
 0x136   : > { %940 = vst.msk [vmem:[%s1667_s24 + $0xd0] sm:$0xff] %vm280_vm0, %v1783_v37  ;;  %875 = vst.msk [vmem:[#allocation2 + $0xe0] sm:$0xff] %vm280_vm0, %v842_v29  ;;  %v893_v47 = vld [vmem:[#allocation2 + $0x58] sm:$0xff]  ;;  %v966_v59 = vadd.f32 %v965_v50, %v964_v52  ;;  %v1031_v45 = vmul.f32 %v1671_v12, %v1671_v12 }
 0x137   : > { %925 = vst.msk [vmem:[%s1667_s24 + $0x58] sm:$0xff] %vm280_vm0, %v893_v47  ;;  %860 = vst.msk [vmem:[#allocation2 + $0x68] sm:$0xff] %vm280_vm0, %v827_v43  ;;  %v1798_v51 = vld [vmem:[#allocation2 + $0xd8] sm:$0xff]  ;;  %v1066_v56 = vsel %vm280_vm0, %v1025_v42, 0.0  ;;  %v1026_v57 = vmul.f32 %v893_v47, %v893_v47  ;;  %v967_v0 = vsel %vm280_vm0, %v893_v47, 0.0 }
 0x138   : > { %941 = vst.msk [vmem:[%s1667_s24 + $0xd8] sm:$0xff] %vm280_vm0, %v1798_v51  ;;  %876 = vst.msk [vmem:[#allocation2 + $0xe8] sm:$0xff] %vm280_vm0, %v843_v48  ;;  %v1067_v7 = vadd.f32 %v1066_v56, %v1065_v58  ;;  %v968_v21 = vadd.f32 %v967_v0, %v966_v59  ;;  %v1078_v59 = vsel %vm280_vm0, %v1031_v45, 0.0 }
 0x139   : > { %v1068_v14 = vsel %vm280_vm0, %v1026_v57, 0.0 }
 0x13a   : > { %v743_v60 = vpop.f32.mrb[28].mxu0  ;;  %v807_v63 = vpop.f32.mrb[28].mxu1  ;;  %v1069_v28 = vadd.f32 %v1068_v14, %v1067_v7  ;;  %v1035_v7 = vmul.f32 %v1708_v53, %v1708_v53  ;;  %v1036_v14 = vmul.f32 %v1727_v2, %v1727_v2 }
 0x13b   : > { %v828_v1 = vadd.f32 %v743_v60, %v327_v54  ;;  %v745_v3 = vpop.f32.mrb[29].mxu0  ;;  %v844_v4 = vadd.f32 %v807_v63, %v343_v55  ;;  %v809_v5 = vpop.f32.mrb[29].mxu1  ;;  %v977_v54 = vsel %vm280_vm0, %v1671_v12, 0.0  ;;  %v1032_v55 = vmul.f32 %v1681_v18, %v1681_v18 }
 0x13c   : > { %v894_v8 = vld [vmem:[#allocation2 + $0x60] sm:$0xff]  ;;  %v746_v9 = vpop.f32.mrb[30].mxu0  ;;  %v810_v11 = vpop.f32.mrb[30].mxu1  ;;  %v979_v60 = vsel %vm280_vm0, %v1681_v18, 0.0  ;;  %v981_v12 = vsel %vm280_vm0, %v1690_v32, 0.0  ;;  %v1034_v3 = vmul.f32 %v1702_v39, %v1702_v39  ;;  %v983_v18 = vsel %vm280_vm0, %v1702_v39, 0.0 }
 0x13d   : > { %v1806_v10 = vld [vmem:[#allocation2 + $0xe0] sm:$0xff]  ;;  %926 = vst.msk [vmem:[%s1667_s24 + $0x60] sm:$0xff] %vm280_vm0, %v894_v8  ;;  %v969_v15 = vsel %vm280_vm0, %v894_v8, 0.0  ;;  %v1027_v16 = vmul.f32 %v894_v8, %v894_v8  ;;  %861 = vst.msk [vmem:[#allocation2 + $0x70] sm:$0xff] %vm280_vm0, %v828_v1  ;;  %v829_v17 = vadd.f32 %v746_v9, %v328_v62  ;;  %v748_v19 = vpop.f32.mrb[31].mxu0  ;;  %v812_v20 = vpop.f32.mrb[31].mxu1  ;;  %v845_v23 = vadd.f32 %v810_v11, %v344_v6 }
 0x13e   : > { %942 = vst.msk [vmem:[%s1667_s24 + $0xe0] sm:$0xff] %vm280_vm0, %v1806_v10  ;;  %877 = vst.msk [vmem:[#allocation2 + $0xf0] sm:$0xff] %vm280_vm0, %v844_v4  ;;  %v895_v22 = vld [vmem:[#allocation2 + $0x68] sm:$0xff]  ;;  %v970_v29 = vadd.f32 %v969_v15, %v968_v21  ;;  %v1033_v62 = vmul.f32 %v1690_v32, %v1690_v32  ;;  %v1080_v1 = vsel %vm280_vm0, %v1032_v55, 0.0  ;;  %v1084_v11 = vsel %vm280_vm0, %v1034_v3, 0.0 }
 0x13f   : > { %v1070_v24 = vsel %vm280_vm0, %v1027_v16, 0.0  ;;  %927 = vst.msk [vmem:[%s1667_s24 + $0x68] sm:$0xff] %vm280_vm0, %v895_v22  ;;  %v1028_v25 = vmul.f32 %v895_v22, %v895_v22  ;;  %862 = vst.msk [vmem:[#allocation2 + $0x78] sm:$0xff] %vm280_vm0, %v829_v17  ;;  %v1821_v27 = vld [vmem:[#allocation2 + $0xe8] sm:$0xff]  ;;  %v971_v30 = vsel %vm280_vm0, %v895_v22, 0.0  ;;  %v985_v32 = vsel %vm280_vm0, %v1708_v53, 0.0 }
 0x140   : > { %943 = vst.msk [vmem:[%s1667_s24 + $0xe8] sm:$0xff] %vm280_vm0, %v1821_v27  ;;  %878 = vst.msk [vmem:[#allocation2 + $0xf8] sm:$0xff] %vm280_vm0, %v845_v23  ;;  %v1071_v31 = vadd.f32 %v1070_v24, %v1069_v28  ;;  %v972_v34 = vadd.f32 %v971_v30, %v970_v29  ;;  %v1082_v6 = vsel %vm280_vm0, %v1033_v62, 0.0  ;;  %v1086_v17 = vsel %vm280_vm0, %v1035_v7, 0.0 }
 0x141   : > { %v1072_v33 = vsel %vm280_vm0, %v1028_v25, 0.0  ;;  %v987_v39 = vsel %vm280_vm0, %v1727_v2, 0.0  ;;  %v1037_v19 = vmul.f32 %v1736_v26, %v1736_v26  ;;  %v1088_v22 = vsel %vm280_vm0, %v1036_v14, 0.0 }
 0x142   : > { %v1073_v42 = vadd.f32 %v1072_v33, %v1071_v31  ;;  %v989_v53 = vsel %vm280_vm0, %v1736_v26, 0.0  ;;  %v1038_v23 = vmul.f32 %v1751_v40, %v1751_v40  ;;  %v991_v2 = vsel %vm280_vm0, %v1751_v40, 0.0 }
 0x143   : > { %v1090_v28 = vsel %vm280_vm0, %v1037_v19, 0.0  ;;  %v1039_v29 = vmul.f32 %v1760_v61, %v1760_v61  ;;  %v993_v26 = vsel %vm280_vm0, %v1760_v61, 0.0  ;;  %v995_v40 = vsel %vm280_vm0, %v1774_v13, 0.0 }
 0x144   : > { %v896_v35 = vld [vmem:[#allocation2 + $0x70] sm:$0xff]  ;;  %v1092_v33 = vsel %vm280_vm0, %v1038_v23, 0.0  ;;  %v997_v61 = vsel %vm280_vm0, %v1783_v37, 0.0  ;;  %v1003_v62 = vsel %vm280_vm0, %v1821_v27, 0.0 }
 0x145   : > { %v1829_v36 = vld [vmem:[#allocation2 + $0xf0] sm:$0xff]  ;;  %928 = vst.msk [vmem:[%s1667_s24 + $0x70] sm:$0xff] %vm280_vm0, %v896_v35  ;;  %v973_v38 = vsel %vm280_vm0, %v896_v35, 0.0  ;;  %v1029_v41 = vmul.f32 %v896_v35, %v896_v35 }
 0x146   : > { %944 = vst.msk [vmem:[%s1667_s24 + $0xf0] sm:$0xff] %vm280_vm0, %v1829_v36  ;;  %v974_v43 = vadd.f32 %v973_v38, %v972_v34  ;;  %v897_v44 = vld [vmem:[#allocation2 + $0x78] sm:$0xff]  ;;  %v1040_v34 = vmul.f32 %v1774_v13, %v1774_v13  ;;  %v999_v13 = vsel %vm280_vm0, %v1798_v51, 0.0 }
 0x147   : > { %v1074_v46 = vsel %vm280_vm0, %v1029_v41, 0.0  ;;  %929 = vst.msk [vmem:[%s1667_s24 + $0x78] sm:$0xff] %vm280_vm0, %v897_v44  ;;  %v975_v47 = vsel %vm280_vm0, %v897_v44, 0.0  ;;  %v1030_v48 = vmul.f32 %v897_v44, %v897_v44  ;;  %v1843_v49 = vld [vmem:[#allocation2 + $0xf8] sm:$0xff]  ;;  %v1094_v41 = vsel %vm280_vm0, %v1039_v29, 0.0 }
 0x148   : > { %v1075_v50 = vadd.f32 %v1074_v46, %v1073_v42  ;;  %v976_v52 = vadd.f32 %v975_v47, %v974_v43  ;;  %945 = vst.msk [vmem:[%s1667_s24 + $0xf8] sm:$0xff] %vm280_vm0, %v1843_v49  ;;  %v1041_v42 = vmul.f32 %v1783_v37, %v1783_v37  ;;  %v1096_v45 = vsel %vm280_vm0, %v1040_v34, 0.0 }
 0x149   : > { %v1076_v56 = vsel %vm280_vm0, %v1030_v48, 0.0  ;;  %v1042_v46 = vmul.f32 %v1798_v51, %v1798_v51  ;;  %v1001_v37 = vsel %vm280_vm0, %v1806_v10, 0.0  ;;  %v1046_v3 = vmul.f32 %v1843_v49, %v1843_v49 }
 0x14a   : > { %v978_v57 = vadd.f32 %v977_v54, %v976_v52  ;;  %v1077_v58 = vadd.f32 %v1076_v56, %v1075_v50  ;;  %v1098_v50 = vsel %vm280_vm0, %v1041_v42, 0.0  ;;  %v1043_v52 = vmul.f32 %v1806_v10, %v1806_v10 }
 0x14b   : > { %v1100_v56 = vsel %vm280_vm0, %v1042_v46, 0.0  ;;  %v1108_v7 = vsel %vm280_vm0, %v1046_v3, 0.0 }
 0x14c   : > { %v980_v63 = vadd.f32 %v979_v60, %v978_v57  ;;  %v1079_v0 = vadd.f32 %v1078_v59, %v1077_v58  ;;  %v1044_v57 = vmul.f32 %v1821_v27, %v1821_v27  ;;  %v1045_v58 = vmul.f32 %v1829_v36, %v1829_v36 }
 0x14d   : > { %v1102_v51 = vsel %vm280_vm0, %v1043_v52, 0.0 }
 0x14e   : > { %v982_v4 = vadd.f32 %v981_v12, %v980_v63  ;;  %v1081_v5 = vadd.f32 %v1080_v1, %v1079_v0  ;;  %v1005_v63 = vsel %vm280_vm0, %v1829_v36, 0.0  ;;  %v1104_v1 = vsel %vm280_vm0, %v1044_v57, 0.0 }
 0x14f   : > { %v1106_v12 = vsel %vm280_vm0, %v1045_v58, 0.0 }
 0x150   : > { %v984_v8 = vadd.f32 %v983_v18, %v982_v4  ;;  %v1083_v9 = vadd.f32 %v1082_v6, %v1081_v5  ;;  %v1007_v6 = vsel %vm280_vm0, %v1843_v49, 0.0 }
 0x152   : > { %v1085_v15 = vadd.f32 %v1084_v11, %v1083_v9  ;;  %v986_v16 = vadd.f32 %v985_v32, %v984_v8 }
 0x154   : > { %v988_v20 = vadd.f32 %v987_v39, %v986_v16  ;;  %v1087_v21 = vadd.f32 %v1086_v17, %v1085_v15 }
 0x156   : > { %v990_v24 = vadd.f32 %v989_v53, %v988_v20  ;;  %v1089_v25 = vadd.f32 %v1088_v22, %v1087_v21 }
 0x158   : > { %v992_v30 = vadd.f32 %v991_v2, %v990_v24  ;;  %v1091_v31 = vadd.f32 %v1090_v28, %v1089_v25 }
 0x15a   : > { %v994_v35 = vadd.f32 %v993_v26, %v992_v30  ;;  %v1093_v38 = vadd.f32 %v1092_v33, %v1091_v31 }
 0x15c   : > { %v1095_v43 = vadd.f32 %v1094_v41, %v1093_v38  ;;  %v996_v44 = vadd.f32 %v995_v40, %v994_v35 }
 0x15e   : > { %v1097_v47 = vadd.f32 %v1096_v45, %v1095_v43  ;;  %v998_v48 = vadd.f32 %v997_v61, %v996_v44 }
 0x160   : > { %v1099_v54 = vadd.f32 %v1098_v50, %v1097_v47  ;;  %v1000_v55 = vadd.f32 %v999_v13, %v998_v48 }
 0x162   : > { %v1101_v59 = vadd.f32 %v1100_v56, %v1099_v54  ;;  %v1002_v60 = vadd.f32 %v1001_v37, %v1000_v55 }
 0x164   : > { %v1103_v0 = vadd.f32 %v1102_v51, %v1101_v59  ;;  %v1004_v10 = vadd.f32 %v1003_v62, %v1002_v60 }
 0x166   : > { %v1105_v4 = vadd.f32 %v1104_v1, %v1103_v0  ;;  %v1006_v5 = vadd.f32 %v1005_v63, %v1004_v10 }
 0x168   : > { %v1107_v18 = vadd.f32 %v1106_v12, %v1105_v4  ;;  %v1008_v27 = vadd.f32 %v1007_v6, %v1006_v5 }
 0x16a   : > { %v1009_v36 = vrot.slane %v1008_v27, 4  ;;  %v1109_v8 = vadd.f32 %v1108_v7, %v1107_v18 }
 0x16c   : > { %v1010_v9 = vadd.f32 %v1009_v36, %v1008_v27  ;;  %v1110_v11 = vrot.slane %v1109_v8, 4 }
 0x16e   : > { %v1011_v32 = vrot.slane %v1010_v9, 2  ;;  %v1111_v14 = vadd.f32 %v1110_v11, %v1109_v8 }
 0x170   : > { %v1012_v15 = vadd.f32 %v1011_v32, %v1010_v9  ;;  %v1112_v16 = vrot.slane %v1111_v14, 2 }
 0x172   : > { %v1013_v17 = vrot.slane %v1012_v15, 1  ;;  %v1113_v39 = vadd.f32 %v1112_v16, %v1111_v14 }
 0x174   : > { %v1014_v49 = vadd.f32 %v1013_v17, %v1012_v15  ;;  %v1114_v19 = vrot.slane %v1113_v39, 1 }
 0x176   : > { %v1115_v20 = vadd.f32 %v1114_v19, %v1113_v39  ;;  %1116 = vst.msk [vmem:[%s270_s28] sm:$0xff] %vm280_vm0, %v1014_v49 }
 0x178   : > { %1117 = vst.msk [vmem:[%s274_s5] sm:$0xff] %vm280_vm0, %v1115_v20 }
 0x179 PF: > { %s15_s17 = sadd.s32 1, %s1467_s17   ;;  %s1951_s15 = smov %s1463_s16 }
 0x17a   : > { %p12_p6 = scmp.ge.s32.totalorder %s15_s17, 4   ;;  %s1952_s16 = smov %s1954_s18 }
 0x17c   :  { %14 = sbr.rel (!%p12_p6) target bundleno = 2 (0x2), region = 93 }

// kernel: _lambda_.29
= control target key start
LH: loop header
LB: loop body
LE: loop exit
PB: predicated region body
PF: predicated region fallthrough
CT: control target
= control target key end

     0   :  { %vm153_vm0 = vcmask 519168   ;;  %s1385_s0 = inlined_call_operand.vmem [shape: bf16[9,128,64], index: 0, kind: input, shape index: {}]   ;;  %s1386_s1 = inlined_call_operand.vmem [shape: bf16[128,64], index: 1, kind: output, shape index: {}]  }
   0x1   :  { %v9_v0 = vld [vmem:[%s1385_s0] sm:$0xf]  ;;  %v10_v12 = vld [vmem:[%s1385_s0 + $0x4] sm:$0xf]  ;;  %v11_v33 = vld [vmem:[%s1385_s0 + $0x8] sm:$0xf] }
   0x2   :  { %v25_v1 = vld [vmem:[%s1385_s0 + $0x40] sm:$0xf]  ;;  %v156_v4 = vsel %vm153_vm0, %v9_v0, 4286644096  ;;  %v26_v13 = vld [vmem:[%s1385_s0 + $0x44] sm:$0xf] }
   0x3   :  { %v41_v2 = vld [vmem:[%s1385_s0 + $0x80] sm:$0xf]  ;;  %v159_v5 = vsel %vm153_vm0, %v25_v1, 4286644096  ;;  %v42_v14 = vld [vmem:[%s1385_s0 + $0x84] sm:$0xf] }
   0x4   :  { %v57_v3 = vld [vmem:[%s1385_s0 + $0xc0] sm:$0xf]  ;;  %v163_v6 = vsel %vm153_vm0, %v41_v2, 4286644096  ;;  %v161_v8 = vmax.bf16 %v159_v5, %v156_v4  ;;  %v58_v19 = vld [vmem:[%s1385_s0 + $0xc4] sm:$0xf] }
   0x5   :  { %v73_v7 = vld [vmem:[%s1385_s0 + $0x100] sm:$0xf]  ;;  %v167_v10 = vsel %vm153_vm0, %v57_v3, 4286644096  ;;  %v191_v20 = vsel %vm153_vm0, %v10_v12, 4286644096 }
   0x6   :  { %v89_v9 = vld [vmem:[%s1385_s0 + $0x140] sm:$0xf]  ;;  %v165_v11 = vmax.bf16 %v163_v6, %v161_v8  ;;  %v171_v15 = vsel %vm153_vm0, %v73_v7, 4286644096  ;;  %v194_v21 = vsel %vm153_vm0, %v26_v13, 4286644096 }
   0x7   :  { %v105_v16 = vld [vmem:[%s1385_s0 + $0x180] sm:$0xf]  ;;  %v175_v18 = vsel %vm153_vm0, %v89_v9, 4286644096  ;;  %v198_v22 = vsel %vm153_vm0, %v42_v14, 4286644096  ;;  %v196_v27 = vmax.bf16 %v194_v21, %v191_v20 }
   0x8   :  { %v169_v17 = vmax.bf16 %v167_v10, %v165_v11  ;;  %v121_v23 = vld [vmem:[%s1385_s0 + $0x1c0] sm:$0xf]  ;;  %v74_v26 = vld [vmem:[%s1385_s0 + $0x104] sm:$0xf]  ;;  %v179_v28 = vsel %vm153_vm0, %v105_v16, 4286644096 }
   0x9   :  { %v137_v24 = vld [vmem:[%s1385_s0 + $0x200] sm:$0xf]  ;;  %v90_v29 = vld [vmem:[%s1385_s0 + $0x144] sm:$0xf]  ;;  %v202_v30 = vsel %vm153_vm0, %v58_v19, 4286644096  ;;  %v200_v32 = vmax.bf16 %v198_v22, %v196_v27 }
   0xa   :  { %v173_v25 = vmax.bf16 %v171_v15, %v169_v17  ;;  %v27_v34 = vld [vmem:[%s1385_s0 + $0x48] sm:$0xf]  ;;  %v183_v36 = vsel %vm153_vm0, %v121_v23, 4286644096  ;;  %v187_v37 = vsel %vm153_vm0, %v137_v24, 4286644096 }
   0xb   :  { %v43_v35 = vld [vmem:[%s1385_s0 + $0x88] sm:$0xf]  ;;  %v206_v38 = vsel %vm153_vm0, %v74_v26, 4286644096  ;;  %v106_v40 = vld [vmem:[%s1385_s0 + $0x184] sm:$0xf]  ;;  %v204_v41 = vmax.bf16 %v202_v30, %v200_v32 }
   0xc   :  { %v177_v31 = vmax.bf16 %v175_v18, %v173_v25  ;;  %v210_v42 = vsel %vm153_vm0, %v90_v29, 4286644096  ;;  %v59_v43 = vld [vmem:[%s1385_s0 + $0xc8] sm:$0xf]  ;;  %v226_v44 = vsel %vm153_vm0, %v11_v33, 4286644096 }
   0xd   :  { %v229_v45 = vsel %vm153_vm0, %v27_v34, 4286644096  ;;  %v233_v46 = vsel %vm153_vm0, %v43_v35, 4286644096  ;;  %v122_v48 = vld [vmem:[%s1385_s0 + $0x1c4] sm:$0xf]  ;;  %v208_v50 = vmax.bf16 %v206_v38, %v204_v41 }
   0xe   :  { %v181_v39 = vmax.bf16 %v179_v28, %v177_v31  ;;  %v138_v49 = vld [vmem:[%s1385_s0 + $0x204] sm:$0xf]  ;;  %v75_v51 = vld [vmem:[%s1385_s0 + $0x108] sm:$0xf]  ;;  %v231_v52 = vmax.bf16 %v229_v45, %v226_v44  ;;  %v214_v53 = vsel %vm153_vm0, %v106_v40, 4286644096 }
   0xf   :  { %v91_v54 = vld [vmem:[%s1385_s0 + $0x148] sm:$0xf]  ;;  %v237_v55 = vsel %vm153_vm0, %v59_v43, 4286644096  ;;  %v212_v57 = vmax.bf16 %v210_v42, %v208_v50  ;;  %v12_v59 = vld [vmem:[%s1385_s0 + $0xc] sm:$0xf] }
  0x10   :  { %v185_v47 = vmax.bf16 %v183_v36, %v181_v39  ;;  %v235_v58 = vmax.bf16 %v233_v46, %v231_v52  ;;  %v28_v60 = vld [vmem:[%s1385_s0 + $0x4c] sm:$0xf]  ;;  %v218_v62 = vsel %vm153_vm0, %v122_v48, 4286644096  ;;  %v222_v63 = vsel %vm153_vm0, %v138_v49, 4286644096 }
  0x11   :  { %v44_v61 = vld [vmem:[%s1385_s0 + $0x8c] sm:$0xf]  ;;  %v241_v0 = vsel %vm153_vm0, %v75_v51, 4286644096  ;;  %v216_v1 = vmax.bf16 %v214_v53, %v212_v57  ;;  %v107_v2 = vld [vmem:[%s1385_s0 + $0x188] sm:$0xf] }
  0x12   :  { %v189_v56 = vmax.bf16 %v187_v37, %v185_v47  ;;  %v239_v3 = vmax.bf16 %v237_v55, %v235_v58  ;;  %v245_v4 = vsel %vm153_vm0, %v91_v54, 4286644096  ;;  %v60_v5 = vld [vmem:[%s1385_s0 + $0xcc] sm:$0xf]  ;;  %v261_v6 = vsel %vm153_vm0, %v12_v59, 4286644096 }
  0x13   :  { %v264_v7 = vsel %vm153_vm0, %v28_v60, 4286644096  ;;  %v268_v8 = vsel %vm153_vm0, %v44_v61, 4286644096  ;;  %v220_v9 = vmax.bf16 %v218_v62, %v216_v1  ;;  %v123_v10 = vld [vmem:[%s1385_s0 + $0x1c8] sm:$0xf] }
  0x14   :  { %715 = vst.msk [vmem:[%s1386_s1] sm:$0xf] %vm153_vm0, %v189_v56  ;;  %v139_v11 = vld [vmem:[%s1385_s0 + $0x208] sm:$0xf]  ;;  %v243_v12 = vmax.bf16 %v241_v0, %v239_v3  ;;  %v76_v13 = vld [vmem:[%s1385_s0 + $0x10c] sm:$0xf]  ;;  %v266_v14 = vmax.bf16 %v264_v7, %v261_v6 }
  0x15   :  { %v249_v15 = vsel %vm153_vm0, %v107_v2, 4286644096  ;;  %v92_v16 = vld [vmem:[%s1385_s0 + $0x14c] sm:$0xf]  ;;  %v272_v17 = vsel %vm153_vm0, %v60_v5, 4286644096  ;;  %v224_v18 = vmax.bf16 %v222_v63, %v220_v9 }
  0x16   :  { %v247_v19 = vmax.bf16 %v245_v4, %v243_v12  ;;  %v270_v20 = vmax.bf16 %v268_v8, %v266_v14  ;;  %v13_v21 = vld [vmem:[%s1385_s0 + $0x10] sm:$0xf]  ;;  %v253_v24 = vsel %vm153_vm0, %v123_v10, 4286644096  ;;  %v257_v25 = vsel %vm153_vm0, %v139_v11, 4286644096 }
  0x17   :  { %v29_v22 = vld [vmem:[%s1385_s0 + $0x50] sm:$0xf]  ;;  %v276_v26 = vsel %vm153_vm0, %v76_v13, 4286644096  ;;  %716 = vst.msk [vmem:[%s1386_s1 + $0x4] sm:$0xf] %vm153_vm0, %v224_v18 }
  0x18   :  { %v45_v23 = vld [vmem:[%s1385_s0 + $0x90] sm:$0xf]  ;;  %v251_v27 = vmax.bf16 %v249_v15, %v247_v19  ;;  %v108_v28 = vld [vmem:[%s1385_s0 + $0x18c] sm:$0xf]  ;;  %v274_v29 = vmax.bf16 %v272_v17, %v270_v20  ;;  %v280_v30 = vsel %vm153_vm0, %v92_v16, 4286644096 }
  0x19   :  { %v61_v31 = vld [vmem:[%s1385_s0 + $0xd0] sm:$0xf]  ;;  %v296_v32 = vsel %vm153_vm0, %v13_v21, 4286644096  ;;  %v299_v33 = vsel %vm153_vm0, %v29_v22, 4286644096 }
  0x1a   :  { %v303_v34 = vsel %vm153_vm0, %v45_v23, 4286644096  ;;  %v255_v35 = vmax.bf16 %v253_v24, %v251_v27  ;;  %v124_v36 = vld [vmem:[%s1385_s0 + $0x1cc] sm:$0xf]  ;;  %v278_v38 = vmax.bf16 %v276_v26, %v274_v29  ;;  %v77_v39 = vld [vmem:[%s1385_s0 + $0x110] sm:$0xf]  ;;  %v301_v40 = vmax.bf16 %v299_v33, %v296_v32 }
  0x1b   :  { %v140_v37 = vld [vmem:[%s1385_s0 + $0x20c] sm:$0xf]  ;;  %v284_v41 = vsel %vm153_vm0, %v108_v28, 4286644096  ;;  %v93_v42 = vld [vmem:[%s1385_s0 + $0x150] sm:$0xf] }
  0x1c   :  { %v307_v43 = vsel %vm153_vm0, %v61_v31, 4286644096  ;;  %v259_v44 = vmax.bf16 %v257_v25, %v255_v35  ;;  %v282_v45 = vmax.bf16 %v280_v30, %v278_v38  ;;  %v305_v46 = vmax.bf16 %v303_v34, %v301_v40  ;;  %v14_v47 = vld [vmem:[%s1385_s0 + $0x14] sm:$0xf]  ;;  %v109_v54 = vld [vmem:[%s1385_s0 + $0x190] sm:$0xf] }
  0x1d   :  { %v30_v48 = vld [vmem:[%s1385_s0 + $0x54] sm:$0xf]  ;;  %v288_v50 = vsel %vm153_vm0, %v124_v36, 4286644096  ;;  %v292_v51 = vsel %vm153_vm0, %v140_v37, 4286644096 }
  0x1e   :  { %v46_v49 = vld [vmem:[%s1385_s0 + $0x94] sm:$0xf]  ;;  %v311_v52 = vsel %vm153_vm0, %v77_v39, 4286644096  ;;  %717 = vst.msk [vmem:[%s1386_s1 + $0x8] sm:$0xf] %vm153_vm0, %v259_v44  ;;  %v286_v53 = vmax.bf16 %v284_v41, %v282_v45  ;;  %v309_v55 = vmax.bf16 %v307_v43, %v305_v46 }
  0x1f   :  { %v315_v56 = vsel %vm153_vm0, %v93_v42, 4286644096  ;;  %v62_v57 = vld [vmem:[%s1385_s0 + $0xd4] sm:$0xf]  ;;  %v331_v58 = vsel %vm153_vm0, %v14_v47, 4286644096 }
  0x20   :  { %v334_v59 = vsel %vm153_vm0, %v30_v48, 4286644096  ;;  %v338_v60 = vsel %vm153_vm0, %v46_v49, 4286644096  ;;  %v290_v61 = vmax.bf16 %v288_v50, %v286_v53  ;;  %v125_v62 = vld [vmem:[%s1385_s0 + $0x1d0] sm:$0xf]  ;;  %v313_v0 = vmax.bf16 %v311_v52, %v309_v55 }
  0x21   :  { %v141_v63 = vld [vmem:[%s1385_s0 + $0x210] sm:$0xf]  ;;  %v78_v1 = vld [vmem:[%s1385_s0 + $0x114] sm:$0xf]  ;;  %v336_v2 = vmax.bf16 %v334_v59, %v331_v58  ;;  %v319_v3 = vsel %vm153_vm0, %v109_v54, 4286644096 }
  0x22   :  { %v94_v4 = vld [vmem:[%s1385_s0 + $0x154] sm:$0xf]  ;;  %v342_v5 = vsel %vm153_vm0, %v62_v57, 4286644096  ;;  %v294_v6 = vmax.bf16 %v292_v51, %v290_v61  ;;  %v317_v7 = vmax.bf16 %v315_v56, %v313_v0  ;;  %v15_v9 = vld [vmem:[%s1385_s0 + $0x18] sm:$0xf] }
  0x23   :  { %v340_v8 = vmax.bf16 %v338_v60, %v336_v2  ;;  %v31_v10 = vld [vmem:[%s1385_s0 + $0x58] sm:$0xf]  ;;  %v323_v12 = vsel %vm153_vm0, %v125_v62, 4286644096  ;;  %v327_v13 = vsel %vm153_vm0, %v141_v63, 4286644096 }
  0x24   :  { %v47_v11 = vld [vmem:[%s1385_s0 + $0x98] sm:$0xf]  ;;  %v346_v14 = vsel %vm153_vm0, %v78_v1, 4286644096  ;;  %718 = vst.msk [vmem:[%s1386_s1 + $0xc] sm:$0xf] %vm153_vm0, %v294_v6  ;;  %v321_v15 = vmax.bf16 %v319_v3, %v317_v7 }
  0x25   :  { %v110_v16 = vld [vmem:[%s1385_s0 + $0x194] sm:$0xf]  ;;  %v344_v17 = vmax.bf16 %v342_v5, %v340_v8  ;;  %v350_v18 = vsel %vm153_vm0, %v94_v4, 4286644096  ;;  %v63_v19 = vld [vmem:[%s1385_s0 + $0xd8] sm:$0xf] }
  0x26   :  { %v366_v20 = vsel %vm153_vm0, %v15_v9, 4286644096  ;;  %v369_v21 = vsel %vm153_vm0, %v31_v10, 4286644096  ;;  %v373_v22 = vsel %vm153_vm0, %v47_v11, 4286644096  ;;  %v325_v23 = vmax.bf16 %v323_v12, %v321_v15 }
  0x27   :  { %v126_v24 = vld [vmem:[%s1385_s0 + $0x1d4] sm:$0xf]  ;;  %v348_v26 = vmax.bf16 %v346_v14, %v344_v17  ;;  %v79_v27 = vld [vmem:[%s1385_s0 + $0x118] sm:$0xf]  ;;  %v371_v28 = vmax.bf16 %v369_v21, %v366_v20  ;;  %v354_v29 = vsel %vm153_vm0, %v110_v16, 4286644096 }
  0x28   :  { %v142_v25 = vld [vmem:[%s1385_s0 + $0x214] sm:$0xf]  ;;  %v95_v30 = vld [vmem:[%s1385_s0 + $0x158] sm:$0xf]  ;;  %v377_v31 = vsel %vm153_vm0, %v63_v19, 4286644096  ;;  %v329_v32 = vmax.bf16 %v327_v13, %v325_v23 }
  0x29   :  { %v352_v33 = vmax.bf16 %v350_v18, %v348_v26  ;;  %v375_v34 = vmax.bf16 %v373_v22, %v371_v28  ;;  %v16_v35 = vld [vmem:[%s1385_s0 + $0x1c] sm:$0xf]  ;;  %v358_v38 = vsel %vm153_vm0, %v126_v24, 4286644096  ;;  %v362_v39 = vsel %vm153_vm0, %v142_v25, 4286644096 }
  0x2a   :  { %v32_v36 = vld [vmem:[%s1385_s0 + $0x5c] sm:$0xf]  ;;  %v381_v40 = vsel %vm153_vm0, %v79_v27, 4286644096  ;;  %719 = vst.msk [vmem:[%s1386_s1 + $0x10] sm:$0xf] %vm153_vm0, %v329_v32 }
  0x2b   :  { %v48_v37 = vld [vmem:[%s1385_s0 + $0x9c] sm:$0xf]  ;;  %v356_v41 = vmax.bf16 %v354_v29, %v352_v33  ;;  %v111_v42 = vld [vmem:[%s1385_s0 + $0x198] sm:$0xf]  ;;  %v379_v43 = vmax.bf16 %v377_v31, %v375_v34  ;;  %v385_v44 = vsel %vm153_vm0, %v95_v30, 4286644096 }
  0x2c   :  { %v64_v45 = vld [vmem:[%s1385_s0 + $0xdc] sm:$0xf]  ;;  %v401_v46 = vsel %vm153_vm0, %v16_v35, 4286644096  ;;  %v404_v47 = vsel %vm153_vm0, %v32_v36, 4286644096 }
  0x2d   :  { %v408_v48 = vsel %vm153_vm0, %v48_v37, 4286644096  ;;  %v360_v49 = vmax.bf16 %v358_v38, %v356_v41  ;;  %v127_v50 = vld [vmem:[%s1385_s0 + $0x1d8] sm:$0xf]  ;;  %v383_v52 = vmax.bf16 %v381_v40, %v379_v43  ;;  %v80_v53 = vld [vmem:[%s1385_s0 + $0x11c] sm:$0xf]  ;;  %v406_v54 = vmax.bf16 %v404_v47, %v401_v46 }
  0x2e   :  { %v143_v51 = vld [vmem:[%s1385_s0 + $0x218] sm:$0xf]  ;;  %v389_v55 = vsel %vm153_vm0, %v111_v42, 4286644096  ;;  %v96_v56 = vld [vmem:[%s1385_s0 + $0x15c] sm:$0xf] }
  0x2f   :  { %v412_v57 = vsel %vm153_vm0, %v64_v45, 4286644096  ;;  %v364_v58 = vmax.bf16 %v362_v39, %v360_v49  ;;  %v387_v59 = vmax.bf16 %v385_v44, %v383_v52  ;;  %v410_v60 = vmax.bf16 %v408_v48, %v406_v54  ;;  %v17_v61 = vld [vmem:[%s1385_s0 + $0x20] sm:$0xf]  ;;  %v112_v4 = vld [vmem:[%s1385_s0 + $0x19c] sm:$0xf] }
  0x30   :  { %v33_v62 = vld [vmem:[%s1385_s0 + $0x60] sm:$0xf]  ;;  %v393_v0 = vsel %vm153_vm0, %v127_v50, 4286644096  ;;  %v397_v1 = vsel %vm153_vm0, %v143_v51, 4286644096 }
  0x31   :  { %v49_v63 = vld [vmem:[%s1385_s0 + $0xa0] sm:$0xf]  ;;  %v416_v2 = vsel %vm153_vm0, %v80_v53, 4286644096  ;;  %720 = vst.msk [vmem:[%s1386_s1 + $0x14] sm:$0xf] %vm153_vm0, %v364_v58  ;;  %v391_v3 = vmax.bf16 %v389_v55, %v387_v59  ;;  %v414_v5 = vmax.bf16 %v412_v57, %v410_v60 }
  0x32   :  { %v420_v6 = vsel %vm153_vm0, %v96_v56, 4286644096  ;;  %v65_v7 = vld [vmem:[%s1385_s0 + $0xe0] sm:$0xf]  ;;  %v436_v8 = vsel %vm153_vm0, %v17_v61, 4286644096 }
  0x33   :  { %v439_v9 = vsel %vm153_vm0, %v33_v62, 4286644096  ;;  %v443_v10 = vsel %vm153_vm0, %v49_v63, 4286644096  ;;  %v395_v11 = vmax.bf16 %v393_v0, %v391_v3  ;;  %v128_v12 = vld [vmem:[%s1385_s0 + $0x1dc] sm:$0xf]  ;;  %v418_v14 = vmax.bf16 %v416_v2, %v414_v5 }
  0x34   :  { %v144_v13 = vld [vmem:[%s1385_s0 + $0x21c] sm:$0xf]  ;;  %v81_v15 = vld [vmem:[%s1385_s0 + $0x120] sm:$0xf]  ;;  %v441_v16 = vmax.bf16 %v439_v9, %v436_v8  ;;  %v424_v17 = vsel %vm153_vm0, %v112_v4, 4286644096 }
  0x35   :  { %v97_v18 = vld [vmem:[%s1385_s0 + $0x160] sm:$0xf]  ;;  %v447_v19 = vsel %vm153_vm0, %v65_v7, 4286644096  ;;  %v399_v20 = vmax.bf16 %v397_v1, %v395_v11  ;;  %v422_v21 = vmax.bf16 %v420_v6, %v418_v14  ;;  %v18_v23 = vld [vmem:[%s1385_s0 + $0x24] sm:$0xf] }
  0x36   :  { %v445_v22 = vmax.bf16 %v443_v10, %v441_v16  ;;  %v34_v24 = vld [vmem:[%s1385_s0 + $0x64] sm:$0xf]  ;;  %v428_v26 = vsel %vm153_vm0, %v128_v12, 4286644096  ;;  %v432_v27 = vsel %vm153_vm0, %v144_v13, 4286644096 }
  0x37   :  { %v50_v25 = vld [vmem:[%s1385_s0 + $0xa4] sm:$0xf]  ;;  %v451_v28 = vsel %vm153_vm0, %v81_v15, 4286644096  ;;  %721 = vst.msk [vmem:[%s1386_s1 + $0x18] sm:$0xf] %vm153_vm0, %v399_v20  ;;  %v426_v29 = vmax.bf16 %v424_v17, %v422_v21 }
  0x38   :  { %v113_v30 = vld [vmem:[%s1385_s0 + $0x1a0] sm:$0xf]  ;;  %v449_v31 = vmax.bf16 %v447_v19, %v445_v22  ;;  %v455_v32 = vsel %vm153_vm0, %v97_v18, 4286644096  ;;  %v66_v33 = vld [vmem:[%s1385_s0 + $0xe4] sm:$0xf] }
  0x39   :  { %v471_v34 = vsel %vm153_vm0, %v18_v23, 4286644096  ;;  %v474_v35 = vsel %vm153_vm0, %v34_v24, 4286644096  ;;  %v478_v36 = vsel %vm153_vm0, %v50_v25, 4286644096  ;;  %v430_v37 = vmax.bf16 %v428_v26, %v426_v29 }
  0x3a   :  { %v129_v38 = vld [vmem:[%s1385_s0 + $0x1e0] sm:$0xf]  ;;  %v453_v40 = vmax.bf16 %v451_v28, %v449_v31  ;;  %v82_v41 = vld [vmem:[%s1385_s0 + $0x124] sm:$0xf]  ;;  %v476_v42 = vmax.bf16 %v474_v35, %v471_v34  ;;  %v459_v43 = vsel %vm153_vm0, %v113_v30, 4286644096 }
  0x3b   :  { %v145_v39 = vld [vmem:[%s1385_s0 + $0x220] sm:$0xf]  ;;  %v98_v44 = vld [vmem:[%s1385_s0 + $0x164] sm:$0xf]  ;;  %v482_v45 = vsel %vm153_vm0, %v66_v33, 4286644096  ;;  %v434_v46 = vmax.bf16 %v432_v27, %v430_v37 }
  0x3c   :  { %v457_v47 = vmax.bf16 %v455_v32, %v453_v40  ;;  %v480_v48 = vmax.bf16 %v478_v36, %v476_v42  ;;  %v19_v49 = vld [vmem:[%s1385_s0 + $0x28] sm:$0xf]  ;;  %v463_v52 = vsel %vm153_vm0, %v129_v38, 4286644096  ;;  %v467_v53 = vsel %vm153_vm0, %v145_v39, 4286644096 }
  0x3d   :  { %v35_v50 = vld [vmem:[%s1385_s0 + $0x68] sm:$0xf]  ;;  %v486_v54 = vsel %vm153_vm0, %v82_v41, 4286644096  ;;  %722 = vst.msk [vmem:[%s1386_s1 + $0x1c] sm:$0xf] %vm153_vm0, %v434_v46 }
  0x3e   :  { %v51_v51 = vld [vmem:[%s1385_s0 + $0xa8] sm:$0xf]  ;;  %v461_v55 = vmax.bf16 %v459_v43, %v457_v47  ;;  %v114_v56 = vld [vmem:[%s1385_s0 + $0x1a4] sm:$0xf]  ;;  %v484_v57 = vmax.bf16 %v482_v45, %v480_v48  ;;  %v490_v58 = vsel %vm153_vm0, %v98_v44, 4286644096 }
  0x3f   :  { %v67_v59 = vld [vmem:[%s1385_s0 + $0xe8] sm:$0xf]  ;;  %v506_v60 = vsel %vm153_vm0, %v19_v49, 4286644096  ;;  %v509_v61 = vsel %vm153_vm0, %v35_v50, 4286644096 }
  0x40   :  { %v513_v62 = vsel %vm153_vm0, %v51_v51, 4286644096  ;;  %v465_v63 = vmax.bf16 %v463_v52, %v461_v55  ;;  %v130_v0 = vld [vmem:[%s1385_s0 + $0x1e4] sm:$0xf]  ;;  %v488_v2 = vmax.bf16 %v486_v54, %v484_v57  ;;  %v83_v3 = vld [vmem:[%s1385_s0 + $0x128] sm:$0xf]  ;;  %v511_v4 = vmax.bf16 %v509_v61, %v506_v60 }
  0x41   :  { %v146_v1 = vld [vmem:[%s1385_s0 + $0x224] sm:$0xf]  ;;  %v494_v5 = vsel %vm153_vm0, %v114_v56, 4286644096  ;;  %v99_v6 = vld [vmem:[%s1385_s0 + $0x168] sm:$0xf] }
  0x42   :  { %v517_v7 = vsel %vm153_vm0, %v67_v59, 4286644096  ;;  %v469_v8 = vmax.bf16 %v467_v53, %v465_v63  ;;  %v492_v9 = vmax.bf16 %v490_v58, %v488_v2  ;;  %v515_v10 = vmax.bf16 %v513_v62, %v511_v4  ;;  %v20_v11 = vld [vmem:[%s1385_s0 + $0x2c] sm:$0xf]  ;;  %v115_v18 = vld [vmem:[%s1385_s0 + $0x1a8] sm:$0xf] }
  0x43   :  { %v36_v12 = vld [vmem:[%s1385_s0 + $0x6c] sm:$0xf]  ;;  %v498_v14 = vsel %vm153_vm0, %v130_v0, 4286644096  ;;  %v502_v15 = vsel %vm153_vm0, %v146_v1, 4286644096 }
  0x44   :  { %v52_v13 = vld [vmem:[%s1385_s0 + $0xac] sm:$0xf]  ;;  %v521_v16 = vsel %vm153_vm0, %v83_v3, 4286644096  ;;  %723 = vst.msk [vmem:[%s1386_s1 + $0x20] sm:$0xf] %vm153_vm0, %v469_v8  ;;  %v496_v17 = vmax.bf16 %v494_v5, %v492_v9  ;;  %v519_v19 = vmax.bf16 %v517_v7, %v515_v10 }
  0x45   :  { %v525_v20 = vsel %vm153_vm0, %v99_v6, 4286644096  ;;  %v68_v21 = vld [vmem:[%s1385_s0 + $0xec] sm:$0xf]  ;;  %v541_v22 = vsel %vm153_vm0, %v20_v11, 4286644096 }
  0x46   :  { %v544_v23 = vsel %vm153_vm0, %v36_v12, 4286644096  ;;  %v548_v24 = vsel %vm153_vm0, %v52_v13, 4286644096  ;;  %v500_v25 = vmax.bf16 %v498_v14, %v496_v17  ;;  %v131_v26 = vld [vmem:[%s1385_s0 + $0x1e8] sm:$0xf]  ;;  %v523_v28 = vmax.bf16 %v521_v16, %v519_v19 }
  0x47   :  { %v147_v27 = vld [vmem:[%s1385_s0 + $0x228] sm:$0xf]  ;;  %v84_v29 = vld [vmem:[%s1385_s0 + $0x12c] sm:$0xf]  ;;  %v546_v30 = vmax.bf16 %v544_v23, %v541_v22  ;;  %v529_v31 = vsel %vm153_vm0, %v115_v18, 4286644096 }
  0x48   :  { %v100_v32 = vld [vmem:[%s1385_s0 + $0x16c] sm:$0xf]  ;;  %v552_v33 = vsel %vm153_vm0, %v68_v21, 4286644096  ;;  %v504_v34 = vmax.bf16 %v502_v15, %v500_v25  ;;  %v527_v35 = vmax.bf16 %v525_v20, %v523_v28  ;;  %v21_v37 = vld [vmem:[%s1385_s0 + $0x30] sm:$0xf] }
  0x49   :  { %v550_v36 = vmax.bf16 %v548_v24, %v546_v30  ;;  %v37_v38 = vld [vmem:[%s1385_s0 + $0x70] sm:$0xf]  ;;  %v533_v40 = vsel %vm153_vm0, %v131_v26, 4286644096  ;;  %v537_v41 = vsel %vm153_vm0, %v147_v27, 4286644096 }
  0x4a   :  { %v53_v39 = vld [vmem:[%s1385_s0 + $0xb0] sm:$0xf]  ;;  %v556_v42 = vsel %vm153_vm0, %v84_v29, 4286644096  ;;  %724 = vst.msk [vmem:[%s1386_s1 + $0x24] sm:$0xf] %vm153_vm0, %v504_v34  ;;  %v531_v43 = vmax.bf16 %v529_v31, %v527_v35 }
  0x4b   :  { %v116_v44 = vld [vmem:[%s1385_s0 + $0x1ac] sm:$0xf]  ;;  %v554_v45 = vmax.bf16 %v552_v33, %v550_v36  ;;  %v560_v46 = vsel %vm153_vm0, %v100_v32, 4286644096  ;;  %v69_v47 = vld [vmem:[%s1385_s0 + $0xf0] sm:$0xf] }
  0x4c   :  { %v576_v48 = vsel %vm153_vm0, %v21_v37, 4286644096  ;;  %v579_v49 = vsel %vm153_vm0, %v37_v38, 4286644096  ;;  %v583_v50 = vsel %vm153_vm0, %v53_v39, 4286644096  ;;  %v535_v51 = vmax.bf16 %v533_v40, %v531_v43 }
  0x4d   :  { %v132_v52 = vld [vmem:[%s1385_s0 + $0x1ec] sm:$0xf]  ;;  %v558_v54 = vmax.bf16 %v556_v42, %v554_v45  ;;  %v85_v55 = vld [vmem:[%s1385_s0 + $0x130] sm:$0xf]  ;;  %v581_v56 = vmax.bf16 %v579_v49, %v576_v48  ;;  %v564_v57 = vsel %vm153_vm0, %v116_v44, 4286644096 }
  0x4e   :  { %v148_v53 = vld [vmem:[%s1385_s0 + $0x22c] sm:$0xf]  ;;  %v101_v58 = vld [vmem:[%s1385_s0 + $0x170] sm:$0xf]  ;;  %v587_v59 = vsel %vm153_vm0, %v69_v47, 4286644096  ;;  %v539_v60 = vmax.bf16 %v537_v41, %v535_v51 }
  0x4f   :  { %v562_v61 = vmax.bf16 %v560_v46, %v558_v54  ;;  %v585_v62 = vmax.bf16 %v583_v50, %v581_v56  ;;  %v22_v63 = vld [vmem:[%s1385_s0 + $0x34] sm:$0xf]  ;;  %v568_v2 = vsel %vm153_vm0, %v132_v52, 4286644096  ;;  %v572_v3 = vsel %vm153_vm0, %v148_v53, 4286644096 }
  0x50   :  { %v38_v0 = vld [vmem:[%s1385_s0 + $0x74] sm:$0xf]  ;;  %v591_v4 = vsel %vm153_vm0, %v85_v55, 4286644096  ;;  %725 = vst.msk [vmem:[%s1386_s1 + $0x28] sm:$0xf] %vm153_vm0, %v539_v60 }
  0x51   :  { %v54_v1 = vld [vmem:[%s1385_s0 + $0xb4] sm:$0xf]  ;;  %v566_v5 = vmax.bf16 %v564_v57, %v562_v61  ;;  %v117_v6 = vld [vmem:[%s1385_s0 + $0x1b0] sm:$0xf]  ;;  %v589_v7 = vmax.bf16 %v587_v59, %v585_v62  ;;  %v595_v8 = vsel %vm153_vm0, %v101_v58, 4286644096 }
  0x52   :  { %v70_v9 = vld [vmem:[%s1385_s0 + $0xf4] sm:$0xf]  ;;  %v611_v10 = vsel %vm153_vm0, %v22_v63, 4286644096  ;;  %v614_v11 = vsel %vm153_vm0, %v38_v0, 4286644096 }
  0x53   :  { %v618_v12 = vsel %vm153_vm0, %v54_v1, 4286644096  ;;  %v570_v13 = vmax.bf16 %v568_v2, %v566_v5  ;;  %v133_v14 = vld [vmem:[%s1385_s0 + $0x1f0] sm:$0xf]  ;;  %v593_v16 = vmax.bf16 %v591_v4, %v589_v7  ;;  %v86_v17 = vld [vmem:[%s1385_s0 + $0x134] sm:$0xf]  ;;  %v616_v18 = vmax.bf16 %v614_v11, %v611_v10 }
  0x54   :  { %v149_v15 = vld [vmem:[%s1385_s0 + $0x230] sm:$0xf]  ;;  %v599_v19 = vsel %vm153_vm0, %v117_v6, 4286644096  ;;  %v102_v20 = vld [vmem:[%s1385_s0 + $0x174] sm:$0xf] }
  0x55   :  { %v622_v21 = vsel %vm153_vm0, %v70_v9, 4286644096  ;;  %v574_v22 = vmax.bf16 %v572_v3, %v570_v13  ;;  %v597_v23 = vmax.bf16 %v595_v8, %v593_v16  ;;  %v620_v24 = vmax.bf16 %v618_v12, %v616_v18  ;;  %v23_v25 = vld [vmem:[%s1385_s0 + $0x38] sm:$0xf]  ;;  %v118_v32 = vld [vmem:[%s1385_s0 + $0x1b4] sm:$0xf] }
  0x56   :  { %v39_v26 = vld [vmem:[%s1385_s0 + $0x78] sm:$0xf]  ;;  %v603_v28 = vsel %vm153_vm0, %v133_v14, 4286644096  ;;  %v607_v29 = vsel %vm153_vm0, %v149_v15, 4286644096 }
  0x57   :  { %v55_v27 = vld [vmem:[%s1385_s0 + $0xb8] sm:$0xf]  ;;  %v626_v30 = vsel %vm153_vm0, %v86_v17, 4286644096  ;;  %726 = vst.msk [vmem:[%s1386_s1 + $0x2c] sm:$0xf] %vm153_vm0, %v574_v22  ;;  %v601_v31 = vmax.bf16 %v599_v19, %v597_v23  ;;  %v624_v33 = vmax.bf16 %v622_v21, %v620_v24 }
  0x58   :  { %v630_v34 = vsel %vm153_vm0, %v102_v20, 4286644096  ;;  %v71_v35 = vld [vmem:[%s1385_s0 + $0xf8] sm:$0xf]  ;;  %v646_v36 = vsel %vm153_vm0, %v23_v25, 4286644096 }
  0x59   :  { %v649_v37 = vsel %vm153_vm0, %v39_v26, 4286644096  ;;  %v653_v38 = vsel %vm153_vm0, %v55_v27, 4286644096  ;;  %v605_v39 = vmax.bf16 %v603_v28, %v601_v31  ;;  %v134_v40 = vld [vmem:[%s1385_s0 + $0x1f4] sm:$0xf]  ;;  %v628_v42 = vmax.bf16 %v626_v30, %v624_v33 }
  0x5a   :  { %v150_v41 = vld [vmem:[%s1385_s0 + $0x234] sm:$0xf]  ;;  %v87_v43 = vld [vmem:[%s1385_s0 + $0x138] sm:$0xf]  ;;  %v651_v44 = vmax.bf16 %v649_v37, %v646_v36  ;;  %v634_v45 = vsel %vm153_vm0, %v118_v32, 4286644096 }
  0x5b   :  { %v103_v46 = vld [vmem:[%s1385_s0 + $0x178] sm:$0xf]  ;;  %v657_v47 = vsel %vm153_vm0, %v71_v35, 4286644096  ;;  %v609_v48 = vmax.bf16 %v607_v29, %v605_v39  ;;  %v632_v49 = vmax.bf16 %v630_v34, %v628_v42  ;;  %v24_v51 = vld [vmem:[%s1385_s0 + $0x3c] sm:$0xf] }
  0x5c   :  { %v655_v50 = vmax.bf16 %v653_v38, %v651_v44  ;;  %v40_v52 = vld [vmem:[%s1385_s0 + $0x7c] sm:$0xf]  ;;  %v638_v54 = vsel %vm153_vm0, %v134_v40, 4286644096  ;;  %v642_v55 = vsel %vm153_vm0, %v150_v41, 4286644096 }
  0x5d   :  { %v56_v53 = vld [vmem:[%s1385_s0 + $0xbc] sm:$0xf]  ;;  %v661_v56 = vsel %vm153_vm0, %v87_v43, 4286644096  ;;  %727 = vst.msk [vmem:[%s1386_s1 + $0x30] sm:$0xf] %vm153_vm0, %v609_v48  ;;  %v636_v57 = vmax.bf16 %v634_v45, %v632_v49 }
  0x5e   :  { %v119_v58 = vld [vmem:[%s1385_s0 + $0x1b8] sm:$0xf]  ;;  %v659_v59 = vmax.bf16 %v657_v47, %v655_v50  ;;  %v665_v60 = vsel %vm153_vm0, %v103_v46, 4286644096  ;;  %v72_v61 = vld [vmem:[%s1385_s0 + $0xfc] sm:$0xf] }
  0x5f   :  { %v681_v62 = vsel %vm153_vm0, %v24_v51, 4286644096  ;;  %v684_v63 = vsel %vm153_vm0, %v40_v52, 4286644096  ;;  %v688_v0 = vsel %vm153_vm0, %v56_v53, 4286644096  ;;  %v640_v1 = vmax.bf16 %v638_v54, %v636_v57 }
  0x60   :  { %v135_v2 = vld [vmem:[%s1385_s0 + $0x1f8] sm:$0xf]  ;;  %v663_v3 = vmax.bf16 %v661_v56, %v659_v59  ;;  %v88_v4 = vld [vmem:[%s1385_s0 + $0x13c] sm:$0xf]  ;;  %v686_v5 = vmax.bf16 %v684_v63, %v681_v62  ;;  %v669_v6 = vsel %vm153_vm0, %v119_v58, 4286644096 }
  0x61   :  { %v692_v7 = vsel %vm153_vm0, %v72_v61, 4286644096  ;;  %v644_v8 = vmax.bf16 %v642_v55, %v640_v1  ;;  %v151_v9 = vld [vmem:[%s1385_s0 + $0x238] sm:$0xf]  ;;  %v104_v11 = vld [vmem:[%s1385_s0 + $0x17c] sm:$0xf] }
  0x62   :  { %v667_v10 = vmax.bf16 %v665_v60, %v663_v3  ;;  %v690_v12 = vmax.bf16 %v688_v0, %v686_v5  ;;  %v673_v13 = vsel %vm153_vm0, %v135_v2, 4286644096  ;;  %v696_v14 = vsel %vm153_vm0, %v88_v4, 4286644096  ;;  %v120_v16 = vld [vmem:[%s1385_s0 + $0x1bc] sm:$0xf] }
  0x63   :  { %728 = vst.msk [vmem:[%s1386_s1 + $0x34] sm:$0xf] %vm153_vm0, %v644_v8  ;;  %v677_v18 = vsel %vm153_vm0, %v151_v9, 4286644096  ;;  %v700_v19 = vsel %vm153_vm0, %v104_v11, 4286644096 }
  0x64   :  { %v671_v15 = vmax.bf16 %v669_v6, %v667_v10  ;;  %v694_v17 = vmax.bf16 %v692_v7, %v690_v12  ;;  %v136_v21 = vld [vmem:[%s1385_s0 + $0x1fc] sm:$0xf]  ;;  %v704_v23 = vsel %vm153_vm0, %v120_v16, 4286644096 }
  0x65   :  { %v152_v25 = vld [vmem:[%s1385_s0 + $0x23c] sm:$0xf]  ;;  %v708_v27 = vsel %vm153_vm0, %v136_v21, 4286644096 }
  0x66   :  { %v675_v20 = vmax.bf16 %v673_v13, %v671_v15  ;;  %v698_v22 = vmax.bf16 %v696_v14, %v694_v17  ;;  %v712_v29 = vsel %vm153_vm0, %v152_v25, 4286644096 }
  0x68   :  { %v679_v24 = vmax.bf16 %v677_v18, %v675_v20  ;;  %v702_v26 = vmax.bf16 %v700_v19, %v698_v22 }
  0x6a   :  { %729 = vst.msk [vmem:[%s1386_s1 + $0x38] sm:$0xf] %vm153_vm0, %v679_v24  ;;  %v706_v28 = vmax.bf16 %v704_v23, %v702_v26 }
  0x6c   :  { %v710_v30 = vmax.bf16 %v708_v27, %v706_v28 }
  0x6e   :  { %v714_v31 = vmax.bf16 %v712_v29, %v710_v30 }
  0x70   :  { %730 = vst.msk [vmem:[%s1386_s1 + $0x3c] sm:$0xf] %vm153_vm0, %v714_v31 }

// kernel: _lambda_.30
= control target key start
LH: loop header
LB: loop body
LE: loop exit
PB: predicated region body
PF: predicated region fallthrough
CT: control target
= control target key end

     0   :  { %vm19_vm0 = vcmask 523264   ;;  %s1888_s1 = inlined_call_operand.vmem [shape: bf16[576,64], index: 1, kind: input, shape index: {}]   ;;  %s1889_s0 = inlined_call_operand.vmem [shape: bf16[128,576], index: 0, kind: input, shape index: {}]   ;;  %s1890_s2 = inlined_call_operand.vmem [shape: f32[128,64], index: 2, kind: output, shape index: {0}]   ;;  %s1891_s3 = inlined_call_operand.vmem [shape: f32[8,64], index: 3, kind: output, shape index: {1}]   ;;  %s1892_s4 = inlined_call_operand.vmem [shape: f32[8,64], index: 4, kind: output, shape index: {2}]  }
   0x1   :  { %v1332_v0 = vld [vmem:[%s1888_s1 + $0x40] sm:$0xff]   ;;  %v1336_v4 = vld [vmem:[%s1888_s1 + $0x48] sm:$0xff]   ;;  %v1340_v8 = vld [vmem:[%s1888_s1 + $0x50] sm:$0xff]  }
   0x2   :  { %v1333_v1 = vld [vmem:[%s1888_s1 + $0xc0] sm:$0xff]   ;;  %1159 = vmatprep.subr.bf16.mxu0 %v1332_v0  ;;  %v1337_v5 = vld [vmem:[%s1888_s1 + $0xc8] sm:$0xff]   ;;  %v1341_v9 = vld [vmem:[%s1888_s1 + $0xd0] sm:$0xff]  }
   0x3   :  { %v1334_v2 = vld [vmem:[%s1888_s1] sm:$0xff]   ;;  %1223 = vmatprep.subr.bf16.mxu1 %v1333_v1  ;;  %v1338_v6 = vld [vmem:[%s1888_s1 + $0x8] sm:$0xff]   ;;  %v1342_v10 = vld [vmem:[%s1888_s1 + $0x10] sm:$0xff]  }
   0x4   :  { %v1335_v3 = vld [vmem:[%s1888_s1 + $0x80] sm:$0xff]   ;;  %1160 = vmatpush3.bf16.msra.mxu0 %v1334_v2  ;;  %v1339_v7 = vld [vmem:[%s1888_s1 + $0x88] sm:$0xff]   ;;  %v1343_v11 = vld [vmem:[%s1888_s1 + $0x90] sm:$0xff]  }
   0x5   :  { %1224 = vmatpush3.bf16.msra.mxu1 %v1335_v3  ;;  %1161 = vmatprep.subr.bf16.mxu0 %v1336_v4  ;;  %v1344_v12 = vld [vmem:[%s1888_s1 + $0x58] sm:$0xff]   ;;  %v1348_v16 = vld [vmem:[%s1888_s1 + $0x60] sm:$0xff]   ;;  %v1352_v20 = vld [vmem:[%s1888_s1 + $0x68] sm:$0xff]  }
   0x6   :  { %1225 = vmatprep.subr.bf16.mxu1 %v1337_v5  ;;  %v1345_v13 = vld [vmem:[%s1888_s1 + $0xd8] sm:$0xff]   ;;  %v1349_v17 = vld [vmem:[%s1888_s1 + $0xe0] sm:$0xff]   ;;  %v1353_v21 = vld [vmem:[%s1888_s1 + $0xe8] sm:$0xff]  }
   0x7   :  { %v1346_v14 = vld [vmem:[%s1888_s1 + $0x18] sm:$0xff]   ;;  %v1350_v18 = vld [vmem:[%s1888_s1 + $0x20] sm:$0xff]   ;;  %v1354_v22 = vld [vmem:[%s1888_s1 + $0x28] sm:$0xff]  }
   0x8   :  { %1162 = vmatpush3.bf16.msra.mxu0 %v1338_v6  ;;  %v1347_v15 = vld [vmem:[%s1888_s1 + $0x98] sm:$0xff]   ;;  %v1351_v19 = vld [vmem:[%s1888_s1 + $0xa0] sm:$0xff]   ;;  %v1355_v23 = vld [vmem:[%s1888_s1 + $0xa8] sm:$0xff]  }
   0x9   :  { %1226 = vmatpush3.bf16.msra.mxu1 %v1339_v7  ;;  %1163 = vmatprep.subr.bf16.mxu0 %v1340_v8  ;;  %v1356_v24 = vld [vmem:[%s1888_s1 + $0x70] sm:$0xff]   ;;  %v1360_v28 = vld [vmem:[%s1888_s1 + $0x78] sm:$0xff]   ;;  %v1369_v35 = vld [vmem:[%s1889_s0 + $0xc] ss:$20 sps:$4 sm:$0xff]  }
   0xa   :  { %1227 = vmatprep.subr.bf16.mxu1 %v1341_v9  ;;  %v1357_v25 = vld [vmem:[%s1888_s1 + $0xf0] sm:$0xff]   ;;  %v1361_v29 = vld [vmem:[%s1888_s1 + $0xf8] sm:$0xff]   ;;  %v1370_v36 = vld [vmem:[%s1888_s1 + $0x100] sm:$0xff]   ;;  %742 = vmatprep.mubr.bf16.mxu1 %v1369_v35 }
   0xb   :  { %v1358_v26 = vld [vmem:[%s1888_s1 + $0x30] sm:$0xff]   ;;  %v1362_v30 = vld [vmem:[%s1888_s1 + $0x38] sm:$0xff]   ;;  %v1371_v37 = vld [vmem:[%s1889_s0 + $0x2c] ss:$20 sps:$4 sm:$0xff]  }
   0xc   :  { %1164 = vmatpush3.bf16.msra.mxu0 %v1342_v10  ;;  %v1359_v27 = vld [vmem:[%s1888_s1 + $0xb0] sm:$0xff]   ;;  %v1363_v31 = vld [vmem:[%s1888_s1 + $0xb8] sm:$0xff]   ;;  %v1383_v42 = vld [vmem:[%s1888_s1 + $0x108] sm:$0xff]  }
   0xd   :  { %1228 = vmatpush3.bf16.msra.mxu1 %v1343_v11  ;;  %1165 = vmatprep.subr.bf16.mxu0 %v1344_v12  ;;  %v1364_v32 = vld [vmem:[%s1889_s0] ss:$20 sps:$4 sm:$0xff]   ;;  %v1366_v33 = vld [vmem:[%s1889_s0 + $0x4] ss:$20 sps:$4 sm:$0xff]   ;;  %v1367_v34 = vld [vmem:[%s1889_s0 + $0x8] ss:$20 sps:$4 sm:$0xff]  }
   0xe   :  { %1229 = vmatprep.subr.bf16.mxu1 %v1345_v13  ;;  %645 = vmatprep.mubr.bf16.mxu0 %v1366_v33  ;;  %v1373_v38 = vld [vmem:[%s1889_s0 + $0x34] ss:$20 sps:$4 sm:$0xff]   ;;  %v1376_v40 = vld [vmem:[%s1889_s0 + $0x30] ss:$20 sps:$4 sm:$0xff]   ;;  %v1382_v45 = vld [vmem:[%s1889_s0 + $0x58] ss:$20 sps:$4 sm:$0xff]  }
   0xf   :  { %v1375_v39 = vld [vmem:[%s1889_s0 + $0x28] ss:$20 sps:$4 sm:$0xff]   ;;  %v1381_v44 = vld [vmem:[%s1889_s0 + $0x50] ss:$20 sps:$4 sm:$0xff]   ;;  %v1388_v50 = vld [vmem:[%s1889_s0 + $0x78] ss:$20 sps:$4 sm:$0xff]  }
  0x10   :  { %1166 = vmatpush3.bf16.msra.mxu0 %v1346_v14  ;;  %v1377_v41 = vld [vmem:[%s1889_s0 + $0x54] ss:$20 sps:$4 sm:$0xff]   ;;  %v1379_v43 = vld [vmem:[%s1889_s0 + $0x5c] ss:$20 sps:$4 sm:$0xff]   ;;  %v1386_v48 = vld [vmem:[%s1889_s0 + $0x84] ss:$20 sps:$4 sm:$0xff]  }
  0x11   :  { %1230 = vmatpush3.bf16.msra.mxu1 %v1347_v15  ;;  %1167 = vmatprep.subr.bf16.mxu0 %v1348_v16  ;;  %v1396_v46 = vld [vmem:[%s1888_s1 + $0x110] sm:$0xff]   ;;  %v1409_v49 = vld [vmem:[%s1888_s1 + $0x118] sm:$0xff]   ;;  %v1392_v53 = vld [vmem:[%s1889_s0 + $0xac] ss:$20 sps:$4 sm:$0xff]   ;;  %v1424_v12 = vmov 0.0  }
  0x12   :  { %1231 = vmatprep.subr.bf16.mxu1 %v1349_v17  ;;  %v1384_v47 = vld [vmem:[%s1889_s0 + $0x7c] ss:$20 sps:$4 sm:$0xff]   ;;  %v1389_v51 = vld [vmem:[%s1889_s0 + $0x80] ss:$20 sps:$4 sm:$0xff]   ;;  %v1390_v52 = vld [vmem:[%s1889_s0 + $0xa4] ss:$20 sps:$4 sm:$0xff]  }
  0x13   :  { %v1394_v54 = vld [vmem:[%s1889_s0 + $0xa0] ss:$20 sps:$4 sm:$0xff]   ;;  %v1395_v55 = vld [vmem:[%s1889_s0 + $0xa8] ss:$20 sps:$4 sm:$0xff]   ;;  %v1402_v59 = vld [vmem:[%s1889_s0 + $0xd0] ss:$20 sps:$4 sm:$0xff]  }
  0x14   :  { %1168 = vmatpush3.bf16.msra.mxu0 %v1350_v18  ;;  %v1397_v56 = vld [vmem:[%s1889_s0 + $0xcc] ss:$20 sps:$4 sm:$0xff]   ;;  %v1399_v57 = vld [vmem:[%s1889_s0 + $0xd4] ss:$20 sps:$4 sm:$0xff]   ;;  %v1405_v61 = vld [vmem:[%s1889_s0 + $0xfc] ss:$20 sps:$4 sm:$0xff]  }
  0x15   :  { %1232 = vmatpush3.bf16.msra.mxu1 %v1351_v19  ;;  %1169 = vmatprep.subr.bf16.mxu0 %v1352_v20  ;;  %v1401_v58 = vld [vmem:[%s1889_s0 + $0xc8] ss:$20 sps:$4 sm:$0xff]   ;;  %v1407_v62 = vld [vmem:[%s1889_s0 + $0xf0] ss:$20 sps:$4 sm:$0xff]   ;;  %v1408_v63 = vld [vmem:[%s1889_s0 + $0xf8] ss:$20 sps:$4 sm:$0xff]  }
  0x16   :  { %1233 = vmatprep.subr.bf16.mxu1 %v1353_v21  ;;  %v1403_v60 = vld [vmem:[%s1889_s0 + $0xf4] ss:$20 sps:$4 sm:$0xff]   ;;  %v1410_v0 = vld [vmem:[%s1889_s0 + $0x11c] ss:$20 sps:$4 sm:$0xff]   ;;  %v1412_v1 = vld [vmem:[%s1889_s0 + $0x124] ss:$20 sps:$4 sm:$0xff]  }
  0x17   :  { %v1414_v2 = vld [vmem:[%s1889_s0 + $0x118] ss:$20 sps:$4 sm:$0xff]   ;;  %v1415_v3 = vld [vmem:[%s1889_s0 + $0x120] ss:$20 sps:$4 sm:$0xff]   ;;  %v1416_v4 = vld [vmem:[%s1889_s0 + $0x10] ss:$20 sps:$4 sm:$0xff]  }
  0x18   :  { %1170 = vmatpush3.bf16.msra.mxu0 %v1354_v22  ;;  %v1417_v5 = vld [vmem:[%s1889_s0 + $0xb0] ss:$20 sps:$4 sm:$0xff]   ;;  %v1418_v6 = vld [vmem:[%s1889_s0 + $0x38] ss:$20 sps:$4 sm:$0xff]   ;;  %v1420_v8 = vld [vmem:[%s1889_s0 + $0x60] ss:$20 sps:$4 sm:$0xff]  }
  0x19   :  { %1234 = vmatpush3.bf16.msra.mxu1 %v1355_v23  ;;  %1171 = vmatprep.subr.bf16.mxu0 %v1356_v24  ;;  %v1419_v7 = vld [vmem:[%s1889_s0 + $0xd8] ss:$20 sps:$4 sm:$0xff]   ;;  %v1421_v9 = vld [vmem:[%s1889_s0 + $0x100] ss:$20 sps:$4 sm:$0xff]   ;;  %v1422_v10 = vld [vmem:[%s1889_s0 + $0x88] ss:$20 sps:$4 sm:$0xff]  }
  0x1a   :  { %1235 = vmatprep.subr.bf16.mxu1 %v1357_v25  ;;  %v1423_v11 = vld [vmem:[%s1889_s0 + $0x128] ss:$20 sps:$4 sm:$0xff]   ;;  %22 = vst.msk [vmem:[#allocation2 + $0x10] sm:$0xff] %vm19_vm0, %v1424_v12  ;;  %20 = vst.msk [vmem:[#allocation2] sm:$0xff] %vm19_vm0, %v1424_v12 }
  0x1b   :  { %21 = vst.msk [vmem:[#allocation2 + $0x8] sm:$0xff] %vm19_vm0, %v1424_v12  ;;  %23 = vst.msk [vmem:[#allocation2 + $0x18] sm:$0xff] %vm19_vm0, %v1424_v12 }
  0x1c   :  { %1172 = vmatpush3.bf16.msra.mxu0 %v1358_v26  ;;  %24 = vst.msk [vmem:[#allocation2 + $0x20] sm:$0xff] %vm19_vm0, %v1424_v12  ;;  %25 = vst.msk [vmem:[#allocation2 + $0x28] sm:$0xff] %vm19_vm0, %v1424_v12 }
  0x1d   :  { %1236 = vmatpush3.bf16.msra.mxu1 %v1359_v27  ;;  %1173 = vmatprep.subr.bf16.mxu0 %v1360_v28  ;;  %26 = vst.msk [vmem:[#allocation2 + $0x30] sm:$0xff] %vm19_vm0, %v1424_v12  ;;  %27 = vst.msk [vmem:[#allocation2 + $0x38] sm:$0xff] %vm19_vm0, %v1424_v12 }
  0x1e   :  { %1237 = vmatprep.subr.bf16.mxu1 %v1361_v29  ;;  %28 = vst.msk [vmem:[#allocation2 + $0x40] sm:$0xff] %vm19_vm0, %v1424_v12  ;;  %29 = vst.msk [vmem:[#allocation2 + $0x48] sm:$0xff] %vm19_vm0, %v1424_v12 }
  0x1f   :  { %30 = vst.msk [vmem:[#allocation2 + $0x50] sm:$0xff] %vm19_vm0, %v1424_v12  ;;  %31 = vst.msk [vmem:[#allocation2 + $0x58] sm:$0xff] %vm19_vm0, %v1424_v12 }
  0x20   :  { %1174 = vmatpush3.bf16.msra.mxu0 %v1362_v30  ;;  %32 = vst.msk [vmem:[#allocation2 + $0x60] sm:$0xff] %vm19_vm0, %v1424_v12  ;;  %33 = vst.msk [vmem:[#allocation2 + $0x68] sm:$0xff] %vm19_vm0, %v1424_v12 }
  0x21   :  { %1238 = vmatpush3.bf16.msra.mxu1 %v1363_v31  ;;  %1299 = vmatprep.subr.bf16.mxu0 %v1370_v36  ;;  %34 = vst.msk [vmem:[#allocation2 + $0x70] sm:$0xff] %vm19_vm0, %v1424_v12  ;;  %35 = vst.msk [vmem:[#allocation2 + $0x78] sm:$0xff] %vm19_vm0, %v1424_v12 }
  0x22   :  { %1323 = vmatprep.subr.bf16.mxu1 %v1370_v36 }
  0x23   :  { %646 = vmatmul.mubr.bf16.vlgmr.msra.gmra.mrb[0].mxu0 %v1364_v32 }
  0x24   :  { %743 = vmatmul.mubr.bf16.vlgmr.msra.gmra.mrb[0].mxu1 %v1367_v34  ;;  %1300 = vmatpush3.bf16.msra.mxu0 %v1370_v36 }
  0x25   :  { %653 = vmatprep.mubr.bf16.mxu0 %v1371_v37  ;;  %750 = vmatprep.mubr.bf16.mxu1 %v1373_v38 }
  0x26   :  { %1327 = vmatpush3.bf16.msra.mxu1 %v1370_v36  ;;  %1301 = vmatprep.subr.bf16.mxu0 %v1383_v42 }
  0x27   :  { %1324 = vmatprep.subr.bf16.mxu1 %v1383_v42 }
  0x28   :  { %1302 = vmatpush3.bf16.msra.mxu0 %v1383_v42 }
  0x29   :  { %1303 = vmatprep.subr.bf16.mxu0 %v1396_v46 }
  0x2a   :  { %1328 = vmatpush3.bf16.msra.mxu1 %v1383_v42 }
  0x2b   :  { %654 = vmatmul.mubr.bf16.gmra.mrb[4].mxu0 %v1375_v39  ;;  %1325 = vmatprep.subr.bf16.mxu1 %v1396_v46 }
  0x2c   :  { %751 = vmatmul.mubr.bf16.gmra.mrb[4].mxu1 %v1376_v40  ;;  %661 = vmatprep.mubr.bf16.mxu0 %v1377_v41 }
  0x2d   :  { %758 = vmatprep.mubr.bf16.mxu1 %v1379_v43  ;;  %1304 = vmatpush3.bf16.msra.mxu0 %v1396_v46 }
  0x2e   :  { %1329 = vmatpush3.bf16.msra.mxu1 %v1396_v46  ;;  %1305 = vmatprep.subr.bf16.mxu0 %v1409_v49 }
  0x2f   :  { %1326 = vmatprep.subr.bf16.mxu1 %v1409_v49 }
  0x31   :  { %1306 = vmatpush3.bf16.msra.mxu0 %v1409_v49 }
  0x32   :  { %1330 = vmatpush3.bf16.msra.mxu1 %v1409_v49 }
  0x33   :  { %662 = vmatmul.mubr.bf16.gmra.mrb[8].mxu0 %v1381_v44 }
  0x34   :  { %759 = vmatmul.mubr.bf16.gmra.mrb[8].mxu1 %v1382_v45  ;;  %669 = vmatprep.mubr.bf16.mxu0 %v1384_v47 }
  0x35   :  { %766 = vmatprep.mubr.bf16.mxu1 %v1386_v48 }
  0x3b   :  { %670 = vmatmul.mubr.bf16.gmra.mrb[12].mxu0 %v1388_v50 }
  0x3c   :  { %767 = vmatmul.mubr.bf16.gmra.mrb[12].mxu1 %v1389_v51  ;;  %677 = vmatprep.mubr.bf16.mxu0 %v1390_v52 }
  0x3d   :  { %774 = vmatprep.mubr.bf16.mxu1 %v1392_v53 }
  0x43   :  { %678 = vmatmul.mubr.bf16.gmra.mrb[16].mxu0 %v1394_v54 }
  0x44   :  { %775 = vmatmul.mubr.bf16.gmra.mrb[16].mxu1 %v1395_v55  ;;  %685 = vmatprep.mubr.bf16.mxu0 %v1397_v56 }
  0x45   :  { %782 = vmatprep.mubr.bf16.mxu1 %v1399_v57 }
  0x4b   :  { %686 = vmatmul.mubr.bf16.gmra.mrb[20].mxu0 %v1401_v58 }
  0x4c   :  { %783 = vmatmul.mubr.bf16.gmra.mrb[20].mxu1 %v1402_v59  ;;  %693 = vmatprep.mubr.bf16.mxu0 %v1403_v60 }
  0x4d   :  { %790 = vmatprep.mubr.bf16.mxu1 %v1405_v61 }
  0x53   :  { %694 = vmatmul.mubr.bf16.gmra.mrb[24].mxu0 %v1407_v62 }
  0x54   :  { %791 = vmatmul.mubr.bf16.gmra.mrb[24].mxu1 %v1408_v63  ;;  %701 = vmatprep.mubr.bf16.mxu0 %v1410_v0 }
  0x55   :  { %798 = vmatprep.mubr.bf16.mxu1 %v1412_v1 }
  0x5b   :  { %702 = vmatmul.mubr.bf16.gmra.mrb[28].mxu0 %v1414_v2 }
  0x5c   :  { %799 = vmatmul.mubr.bf16.gmra.mrb[28].mxu1 %v1415_v3  ;;  %1307 = vmatprep.mubr.msk.bf16.mxu0 %vm19_vm0, %v1416_v4 }
  0x5d   :  { %1315 = vmatprep.mubr.msk.bf16.mxu1 %vm19_vm0, %v1417_v5 }
  0x63   :  { %1308 = vmatmul.mubr.msk.bf16.vlgmr.msra.gmra.mrb[32].mxu0 %vm19_vm0, %v1418_v6 }
  0x64   :  { %1316 = vmatmul.mubr.msk.bf16.vlgmr.msra.gmra.mrb[32].mxu1 %vm19_vm0, %v1419_v7  ;;  %1311 = vmatprep.mubr.msk.bf16.mxu0 %vm19_vm0, %v1420_v8 }
  0x65   :  { %1319 = vmatprep.mubr.msk.bf16.mxu1 %vm19_vm0, %v1421_v9 }
  0x6b   :  { %1312 = vmatmul.mubr.msk.bf16.gmra.mrb[36].mxu0 %vm19_vm0, %v1422_v10 }
  0x6c   :  { %1320 = vmatmul.mubr.msk.bf16.gmra.mrb[36].mxu1 %vm19_vm0, %v1423_v11 }
  0xf6   :  { %v1175_v13 = vpop.f32.mrb[0].mxu0 }
  0xf7   :  { %v1239_v14 = vpop.f32.mrb[0].mxu1  ;;  %v1176_v15 = vpop.f32.mrb[1].mxu0 }
  0xf8   :  { %v1177_v16 = vadd.f32 %v1176_v15, %v1175_v13  ;;  %v1240_v17 = vpop.f32.mrb[1].mxu1  ;;  %v1178_v18 = vpop.f32.mrb[2].mxu0 }
  0xf9   :  { %v1241_v19 = vadd.f32 %v1240_v17, %v1239_v14  ;;  %v1242_v20 = vpop.f32.mrb[2].mxu1  ;;  %v1179_v21 = vpop.f32.mrb[3].mxu0 }
  0xfa   :  { %v1180_v22 = vadd.f32 %v1179_v21, %v1178_v18  ;;  %v1243_v23 = vpop.f32.mrb[3].mxu1 }
  0xfb   :  { %v1244_v24 = vadd.f32 %v1243_v23, %v1242_v20  ;;  %v1702_v25 = vadd.f32 %v1241_v19, %v1177_v16 }
  0xfd   :  { %v1704_v26 = vadd.f32 %v1244_v24, %v1180_v22 }
  0xfe   :  { %v1181_v27 = vpop.f32.mrb[4].mxu0 }
  0xff   :  { %v1245_v28 = vpop.f32.mrb[4].mxu1  ;;  %v1182_v29 = vpop.f32.mrb[5].mxu0 }
 0x100   :  { %v1183_v30 = vadd.f32 %v1182_v29, %v1181_v27  ;;  %v1246_v31 = vpop.f32.mrb[5].mxu1  ;;  %v1184_v32 = vpop.f32.mrb[6].mxu0 }
 0x101   :  { %v1247_v33 = vadd.f32 %v1246_v31, %v1245_v28  ;;  %v1248_v34 = vpop.f32.mrb[6].mxu1  ;;  %v1185_v35 = vpop.f32.mrb[7].mxu0 }
 0x102   :  { %v1186_v36 = vadd.f32 %v1185_v35, %v1184_v32  ;;  %v1249_v37 = vpop.f32.mrb[7].mxu1 }
 0x103   :  { %v1250_v38 = vadd.f32 %v1249_v37, %v1248_v34  ;;  %v1706_v39 = vadd.f32 %v1247_v33, %v1183_v30 }
 0x105   :  { %v1708_v40 = vadd.f32 %v1250_v38, %v1186_v36 }
 0x106   :  { %v1187_v41 = vpop.f32.mrb[8].mxu0 }
 0x107   :  { %v1251_v42 = vpop.f32.mrb[8].mxu1  ;;  %v1188_v43 = vpop.f32.mrb[9].mxu0 }
 0x108   :  { %v1189_v44 = vadd.f32 %v1188_v43, %v1187_v41  ;;  %v1252_v45 = vpop.f32.mrb[9].mxu1  ;;  %v1190_v46 = vpop.f32.mrb[10].mxu0 }
 0x109   :  { %v1253_v47 = vadd.f32 %v1252_v45, %v1251_v42  ;;  %v1254_v48 = vpop.f32.mrb[10].mxu1  ;;  %v1191_v49 = vpop.f32.mrb[11].mxu0 }
 0x10a   :  { %v1192_v50 = vadd.f32 %v1191_v49, %v1190_v46  ;;  %v1255_v51 = vpop.f32.mrb[11].mxu1 }
 0x10b   :  { %v1256_v52 = vadd.f32 %v1255_v51, %v1254_v48  ;;  %v1710_v53 = vadd.f32 %v1253_v47, %v1189_v44 }
 0x10d   :  { %v1712_v54 = vadd.f32 %v1256_v52, %v1192_v50 }
 0x10e   :  { %v1193_v55 = vpop.f32.mrb[12].mxu0 }
 0x10f   :  { %v1257_v56 = vpop.f32.mrb[12].mxu1  ;;  %v1194_v57 = vpop.f32.mrb[13].mxu0 }
 0x110   :  { %v1195_v58 = vadd.f32 %v1194_v57, %v1193_v55  ;;  %v1258_v59 = vpop.f32.mrb[13].mxu1  ;;  %v1196_v60 = vpop.f32.mrb[14].mxu0 }
 0x111   :  { %v1259_v61 = vadd.f32 %v1258_v59, %v1257_v56  ;;  %v1260_v62 = vpop.f32.mrb[14].mxu1  ;;  %v1197_v63 = vpop.f32.mrb[15].mxu0 }
 0x112   :  { %v1198_v0 = vadd.f32 %v1197_v63, %v1196_v60  ;;  %v1261_v1 = vpop.f32.mrb[15].mxu1 }
 0x113   :  { %v1262_v2 = vadd.f32 %v1261_v1, %v1260_v62  ;;  %v1714_v3 = vadd.f32 %v1259_v61, %v1195_v58 }
 0x115   :  { %v1716_v4 = vadd.f32 %v1262_v2, %v1198_v0 }
 0x116   :  { %v1199_v5 = vpop.f32.mrb[16].mxu0 }
 0x117   :  { %v1263_v6 = vpop.f32.mrb[16].mxu1  ;;  %v1200_v7 = vpop.f32.mrb[17].mxu0 }
 0x118   :  { %v1201_v8 = vadd.f32 %v1200_v7, %v1199_v5  ;;  %v1264_v9 = vpop.f32.mrb[17].mxu1  ;;  %v1202_v10 = vpop.f32.mrb[18].mxu0  ;;  %v38_v5 = vld [vmem:[#allocation2 + $0x10] sm:$0xff] }
 0x119   :  { %v1265_v11 = vadd.f32 %v1264_v9, %v1263_v6  ;;  %v1266_v12 = vpop.f32.mrb[18].mxu1  ;;  %v1203_v13 = vpop.f32.mrb[19].mxu0 }
 0x11a   :  { %v1204_v14 = vadd.f32 %v1203_v13, %v1202_v10  ;;  %v1267_v15 = vpop.f32.mrb[19].mxu1  ;;  %v36_v10 = vld [vmem:[#allocation2] sm:$0xff] }
 0x11b   :  { %v1268_v16 = vadd.f32 %v1267_v15, %v1266_v12  ;;  %v777_v17 = vadd.f32 %v1265_v11, %v1201_v8  ;;  %v46_v8 = vld [vmem:[#allocation2 + $0x50] sm:$0xff] }
 0x11d   :  { %v1718_v18 = vadd.f32 %v1268_v16, %v1204_v14  ;;  %v44_v14 = vld [vmem:[#allocation2 + $0x40] sm:$0xff]  ;;  %v39_v16 = vld [vmem:[#allocation2 + $0x18] sm:$0xff] }
 0x11e   :  { %v1205_v19 = vpop.f32.mrb[20].mxu0 }
 0x11f   :  { %v1269_v20 = vpop.f32.mrb[20].mxu1  ;;  %v1206_v21 = vpop.f32.mrb[21].mxu0 }
 0x120   :  { %v1207_v22 = vadd.f32 %v1206_v21, %v1205_v19  ;;  %v1270_v23 = vpop.f32.mrb[21].mxu1  ;;  %v1208_v24 = vpop.f32.mrb[22].mxu0 }
 0x121   :  { %v1271_v27 = vadd.f32 %v1270_v23, %v1269_v20  ;;  %v1272_v28 = vpop.f32.mrb[22].mxu1  ;;  %v1209_v29 = vpop.f32.mrb[23].mxu0  ;;  %v47_v23 = vld [vmem:[#allocation2 + $0x58] sm:$0xff] }
 0x122   :  { %v1210_v30 = vadd.f32 %v1209_v29, %v1208_v24  ;;  %v1273_v31 = vpop.f32.mrb[23].mxu1 }
 0x123   :  { %v1274_v32 = vadd.f32 %v1273_v31, %v1272_v28  ;;  %v785_v33 = vadd.f32 %v1271_v27, %v1207_v22  ;;  %v37_v27 = vld [vmem:[#allocation2 + $0x8] sm:$0xff] }
 0x125   :  { %v788_v34 = vadd.f32 %v1274_v32, %v1210_v30  ;;  %v45_v32 = vld [vmem:[#allocation2 + $0x48] sm:$0xff] }
 0x126   :  { %v1211_v35 = vpop.f32.mrb[24].mxu0 }
 0x127   :  { %v1275_v36 = vpop.f32.mrb[24].mxu1  ;;  %v1212_v37 = vpop.f32.mrb[25].mxu0 }
 0x128   :  { %v1213_v38 = vadd.f32 %v1212_v37, %v1211_v35  ;;  %v1276_v41 = vpop.f32.mrb[25].mxu1  ;;  %v1214_v42 = vpop.f32.mrb[26].mxu0 }
 0x129   :  { %v1277_v43 = vadd.f32 %v1276_v41, %v1275_v36  ;;  %v1278_v44 = vpop.f32.mrb[26].mxu1  ;;  %v1215_v45 = vpop.f32.mrb[27].mxu0 }
 0x12a   :  { %v1216_v46 = vadd.f32 %v1215_v45, %v1214_v42  ;;  %v1279_v47 = vpop.f32.mrb[27].mxu1  ;;  %v40_v42 = vld [vmem:[#allocation2 + $0x20] sm:$0xff] }
 0x12b   :  { %v1280_v48 = vadd.f32 %v1279_v47, %v1278_v44  ;;  %v1720_v49 = vadd.f32 %v1277_v43, %v1213_v38  ;;  %v50_v38 = vld [vmem:[#allocation2 + $0x70] sm:$0xff] }
 0x12d   :  { %v1722_v50 = vadd.f32 %v1280_v48, %v1216_v46  ;;  %v48_v46 = vld [vmem:[#allocation2 + $0x60] sm:$0xff]  ;;  %v43_v48 = vld [vmem:[#allocation2 + $0x38] sm:$0xff] }
 0x12e   :  { %v1217_v51 = vpop.f32.mrb[28].mxu0 }
 0x12f   :  { %v1281_v52 = vpop.f32.mrb[28].mxu1  ;;  %v1218_v55 = vpop.f32.mrb[29].mxu0 }
 0x130   :  { %v1219_v56 = vadd.f32 %v1218_v55, %v1217_v51  ;;  %v1282_v57 = vpop.f32.mrb[29].mxu1  ;;  %v1220_v58 = vpop.f32.mrb[30].mxu0 }
 0x131   :  { %v1283_v59 = vadd.f32 %v1282_v57, %v1281_v52  ;;  %v1284_v60 = vpop.f32.mrb[30].mxu1  ;;  %v1221_v61 = vpop.f32.mrb[31].mxu0 }
 0x132   :  { %v1222_v62 = vadd.f32 %v1221_v61, %v1220_v58  ;;  %v1285_v63 = vpop.f32.mrb[31].mxu1 }
 0x133   :  { %v1286_v0 = vadd.f32 %v1285_v63, %v1284_v60  ;;  %v801_v1 = vadd.f32 %v1283_v59, %v1219_v56 }
 0x135   :  { %v1724_v2 = vadd.f32 %v1286_v0, %v1222_v62 }
 0x136   :  { %v1309_v6 = vpop.f32.mrb[32].mxu0 }
 0x137   :  { %v850_v7 = vadd.f32 %v1309_v6, %v1706_v39  ;;  %v1317_v9 = vpop.f32.mrb[32].mxu1  ;;  %v841_v11 = vpop.f32.mrb[33].mxu0 }
 0x138   :  { %v882_v12 = vadd.f32 %v1317_v9, %v785_v33  ;;  %v842_v13 = vadd.f32 %v841_v11, %v1702_v25  ;;  %v873_v15 = vpop.f32.mrb[33].mxu1  ;;  %v1310_v19 = vpop.f32.mrb[34].mxu0  ;;  %v41_v9 = vld [vmem:[#allocation2 + $0x28] sm:$0xff] }
 0x139   :  { %v906_v20 = vadd.f32 %v850_v7, %v38_v5  ;;  %v874_v21 = vadd.f32 %v873_v15, %v777_v17  ;;  %v853_v22 = vadd.f32 %v1310_v19, %v1708_v40  ;;  %v1318_v24 = vpop.f32.mrb[34].mxu1  ;;  %v844_v28 = vpop.f32.mrb[35].mxu0 }
 0x13a   :  { %v914_v39 = vadd.f32 %v882_v12, %v46_v8  ;;  %v904_v29 = vadd.f32 %v842_v13, %v36_v10  ;;  %v885_v30 = vadd.f32 %v1318_v24, %v788_v34  ;;  %v845_v31 = vadd.f32 %v844_v28, %v1704_v26  ;;  %v876_v33 = vpop.f32.mrb[35].mxu1  ;;  %v42_v26 = vld [vmem:[#allocation2 + $0x30] sm:$0xff]  ;;  %v51_v8 = vld [vmem:[#allocation2 + $0x78] sm:$0xff] }
 0x13b   :  { %922 = vst.msk [vmem:[#allocation2 + $0x10] sm:$0xff] %vm19_vm0, %v906_v20  ;;  %v912_v25 = vadd.f32 %v874_v21, %v44_v14  ;;  %v907_v35 = vadd.f32 %v853_v22, %v39_v16  ;;  %v877_v36 = vadd.f32 %v876_v33, %v1718_v18 }
 0x13c   :  { %930 = vst.msk [vmem:[#allocation2 + $0x50] sm:$0xff] %vm19_vm0, %v914_v39  ;;  %920 = vst.msk [vmem:[#allocation2] sm:$0xff] %vm19_vm0, %v904_v29  ;;  %v915_v40 = vadd.f32 %v885_v30, %v47_v23  ;;  %v905_v17 = vadd.f32 %v845_v31, %v37_v27 }
 0x13d   :  { %928 = vst.msk [vmem:[#allocation2 + $0x40] sm:$0xff] %vm19_vm0, %v912_v25  ;;  %923 = vst.msk [vmem:[#allocation2 + $0x18] sm:$0xff] %vm19_vm0, %v907_v35  ;;  %v913_v34 = vadd.f32 %v877_v36, %v45_v32  ;;  %v49_v35 = vld [vmem:[#allocation2 + $0x68] sm:$0xff] }
 0x13e   :  { %931 = vst.msk [vmem:[#allocation2 + $0x58] sm:$0xff] %vm19_vm0, %v915_v40  ;;  %921 = vst.msk [vmem:[#allocation2 + $0x8] sm:$0xff] %vm19_vm0, %v905_v17  ;;  %v1313_v37 = vpop.f32.mrb[36].mxu0 }
 0x13f   :  { %929 = vst.msk [vmem:[#allocation2 + $0x48] sm:$0xff] %vm19_vm0, %v913_v34  ;;  %v866_v18 = vadd.f32 %v1313_v37, %v1714_v3  ;;  %v1321_v41 = vpop.f32.mrb[36].mxu1  ;;  %v857_v43 = vpop.f32.mrb[37].mxu0 }
 0x140   :  { %v898_v44 = vadd.f32 %v1321_v41, %v801_v1  ;;  %v858_v45 = vadd.f32 %v857_v43, %v1710_v53  ;;  %v889_v47 = vpop.f32.mrb[37].mxu1  ;;  %v1314_v51 = vpop.f32.mrb[38].mxu0 }
 0x141   :  { %v910_v52 = vadd.f32 %v866_v18, %v42_v26  ;;  %v890_v55 = vadd.f32 %v889_v47, %v1720_v49  ;;  %v869_v56 = vadd.f32 %v1314_v51, %v1716_v4  ;;  %v1322_v57 = vpop.f32.mrb[38].mxu1  ;;  %v860_v58 = vpop.f32.mrb[39].mxu0 }
 0x142   :  { %v941_v59 = vld [vmem:[#allocation2 + $0x10] sm:$0xff]  ;;  %v918_v3 = vadd.f32 %v898_v44, %v50_v38  ;;  %v908_v60 = vadd.f32 %v858_v45, %v40_v42  ;;  %v901_v61 = vadd.f32 %v1322_v57, %v1724_v2  ;;  %v861_v62 = vadd.f32 %v860_v58, %v1712_v54  ;;  %v892_v63 = vpop.f32.mrb[39].mxu1 }
 0x143   :  { %957 = vst.msk [vmem:[%s1890_s2 + $0x10] sm:$0xff] %vm19_vm0, %v941_v59  ;;  %v1749_v53 = vld [vmem:[#allocation2 + $0x50] sm:$0xff]  ;;  %v939_v49 = vld [vmem:[#allocation2] sm:$0xff]  ;;  %926 = vst.msk [vmem:[#allocation2 + $0x30] sm:$0xff] %vm19_vm0, %v910_v52  ;;  %v916_v4 = vadd.f32 %v890_v55, %v48_v46  ;;  %v911_v0 = vadd.f32 %v869_v56, %v43_v48  ;;  %v1010_v10 = vmul.f32 %v941_v59, %v941_v59  ;;  %v974_v14 = vsel %vm19_vm0, %v941_v59, 0.0 }
 0x144   :  { %965 = vst.msk [vmem:[%s1890_s2 + $0x50] sm:$0xff] %vm19_vm0, %v1749_v53  ;;  %955 = vst.msk [vmem:[%s1890_s2] sm:$0xff] %vm19_vm0, %v939_v49  ;;  %v1008_v54 = vmul.f32 %v939_v49, %v939_v49  ;;  %v1761_v1 = vld [vmem:[#allocation2 + $0x40] sm:$0xff]  ;;  %v942_v2 = vld [vmem:[#allocation2 + $0x18] sm:$0xff]  ;;  %v971_v11 = vsel %vm19_vm0, %v939_v49, 0.0  ;;  %v919_v21 = vadd.f32 %v901_v61, %v51_v8  ;;  %v909_v22 = vadd.f32 %v861_v62, %v41_v9 }
 0x145   :  { %934 = vst.msk [vmem:[#allocation2 + $0x70] sm:$0xff] %vm19_vm0, %v918_v3  ;;  %924 = vst.msk [vmem:[#allocation2 + $0x20] sm:$0xff] %vm19_vm0, %v908_v60  ;;  %v1774_v5 = vld [vmem:[#allocation2 + $0x58] sm:$0xff]  ;;  %v940_v6 = vld [vmem:[#allocation2 + $0x8] sm:$0xff]  ;;  %v1011_v19 = vmul.f32 %v942_v2, %v942_v2  ;;  %v893_v28 = vadd.f32 %v892_v63, %v1722_v50  ;;  %v1027_v39 = vsel %vm19_vm0, %v1010_v10, 0.0  ;;  %v976_v29 = vsel %vm19_vm0, %v942_v2, 0.0 }
 0x146   :  { %963 = vst.msk [vmem:[%s1890_s2 + $0x40] sm:$0xff] %vm19_vm0, %v1761_v1  ;;  %958 = vst.msk [vmem:[%s1890_s2 + $0x18] sm:$0xff] %vm19_vm0, %v942_v2  ;;  %v1787_v7 = vld [vmem:[#allocation2 + $0x48] sm:$0xff]  ;;  %v972_v12 = vsel %vm19_vm0, %v940_v6, 0.0  ;;  %v1009_v13 = vmul.f32 %v940_v6, %v940_v6  ;;  %v1024_v15 = vsel %vm19_vm0, %v1008_v54, 0.0  ;;  %v1016_v56 = vmul.f32 %v1761_v1, %v1761_v1 }
 0x147   :  { %932 = vst.msk [vmem:[#allocation2 + $0x60] sm:$0xff] %vm19_vm0, %v916_v4  ;;  %927 = vst.msk [vmem:[#allocation2 + $0x38] sm:$0xff] %vm19_vm0, %v911_v0  ;;  %v973_v16 = vadd.f32 %v972_v12, %v971_v11  ;;  %v1029_v36 = vsel %vm19_vm0, %v1011_v19, 0.0  ;;  %v917_v37 = vadd.f32 %v893_v28, %v49_v35  ;;  %v986_v61 = vsel %vm19_vm0, %v1761_v1, 0.0 }
 0x148   :  { %966 = vst.msk [vmem:[%s1890_s2 + $0x58] sm:$0xff] %vm19_vm0, %v1774_v5  ;;  %956 = vst.msk [vmem:[%s1890_s2 + $0x8] sm:$0xff] %vm19_vm0, %v940_v6  ;;  %v1025_v20 = vsel %vm19_vm0, %v1009_v13, 0.0  ;;  %v1017_v62 = vmul.f32 %v1787_v7, %v1787_v7  ;;  %v1018_v0 = vmul.f32 %v1749_v53, %v1749_v53  ;;  %v1039_v54 = vsel %vm19_vm0, %v1016_v56, 0.0 }
 0x149   :  { %964 = vst.msk [vmem:[%s1890_s2 + $0x48] sm:$0xff] %vm19_vm0, %v1787_v7  ;;  %v975_v23 = vadd.f32 %v974_v14, %v973_v16  ;;  %v1026_v24 = vadd.f32 %v1025_v20, %v1024_v15  ;;  %935 = vst.msk [vmem:[#allocation2 + $0x78] sm:$0xff] %vm19_vm0, %v919_v21  ;;  %v988_v1 = vsel %vm19_vm0, %v1787_v7, 0.0  ;;  %v990_v8 = vsel %vm19_vm0, %v1749_v53, 0.0 }
 0x14a   :  { %v945_v27 = vld [vmem:[#allocation2 + $0x30] sm:$0xff]  ;;  %925 = vst.msk [vmem:[#allocation2 + $0x28] sm:$0xff] %vm19_vm0, %v909_v22  ;;  %933 = vst.msk [vmem:[#allocation2 + $0x68] sm:$0xff] %vm19_vm0, %v917_v37  ;;  %v1019_v9 = vmul.f32 %v1774_v5, %v1774_v5  ;;  %v1041_v10 = vsel %vm19_vm0, %v1017_v62, 0.0  ;;  %v1043_v13 = vsel %vm19_vm0, %v1018_v0, 0.0  ;;  %v992_v14 = vsel %vm19_vm0, %v1774_v5, 0.0 }
 0x14b   :  { %961 = vst.msk [vmem:[%s1890_s2 + $0x30] sm:$0xff] %vm19_vm0, %v945_v27  ;;  %v1028_v32 = vadd.f32 %v1027_v39, %v1026_v24  ;;  %v977_v50 = vadd.f32 %v976_v29, %v975_v23  ;;  %v1014_v43 = vmul.f32 %v945_v27, %v945_v27  ;;  %v982_v47 = vsel %vm19_vm0, %v945_v27, 0.0 }
 0x14c   :  { %v1806_v30 = vld [vmem:[#allocation2 + $0x70] sm:$0xff]  ;;  %v943_v31 = vld [vmem:[#allocation2 + $0x20] sm:$0xff]  ;;  %v1045_v19 = vsel %vm19_vm0, %v1019_v9, 0.0 }
 0x14d   :  { %969 = vst.msk [vmem:[%s1890_s2 + $0x70] sm:$0xff] %vm19_vm0, %v1806_v30  ;;  %959 = vst.msk [vmem:[%s1890_s2 + $0x20] sm:$0xff] %vm19_vm0, %v943_v31  ;;  %v978_v40 = vsel %vm19_vm0, %v943_v31, 0.0  ;;  %v1012_v17 = vmul.f32 %v943_v31, %v943_v31  ;;  %v1030_v34 = vadd.f32 %v1029_v36, %v1028_v32  ;;  %v1035_v57 = vsel %vm19_vm0, %v1014_v43, 0.0 }
 0x14e   :  { %v951_v33 = vld [vmem:[#allocation2 + $0x60] sm:$0xff]  ;;  %v946_v25 = vld [vmem:[#allocation2 + $0x38] sm:$0xff]  ;;  %v979_v18 = vadd.f32 %v978_v40, %v977_v50  ;;  %v1022_v23 = vmul.f32 %v1806_v30, %v1806_v30  ;;  %v998_v5 = vsel %vm19_vm0, %v1806_v30, 0.0 }
 0x14f   :  { %967 = vst.msk [vmem:[%s1890_s2 + $0x60] sm:$0xff] %vm19_vm0, %v951_v33  ;;  %962 = vst.msk [vmem:[%s1890_s2 + $0x38] sm:$0xff] %vm19_vm0, %v946_v25  ;;  %v1031_v26 = vsel %vm19_vm0, %v1012_v17, 0.0  ;;  %v1015_v48 = vmul.f32 %v946_v25, %v946_v25  ;;  %v984_v58 = vsel %vm19_vm0, %v946_v25, 0.0  ;;  %v1020_v15 = vmul.f32 %v951_v33, %v951_v33 }
 0x150   :  { %v1032_v38 = vadd.f32 %v1031_v26, %v1030_v34  ;;  %v954_v41 = vld [vmem:[#allocation2 + $0x78] sm:$0xff]  ;;  %v994_v20 = vsel %vm19_vm0, %v951_v33, 0.0  ;;  %v1051_v33 = vsel %vm19_vm0, %v1022_v23, 0.0 }
 0x151   :  { %v944_v42 = vld [vmem:[#allocation2 + $0x28] sm:$0xff]  ;;  %970 = vst.msk [vmem:[%s1890_s2 + $0x78] sm:$0xff] %vm19_vm0, %v954_v41  ;;  %v1037_v63 = vsel %vm19_vm0, %v1015_v48, 0.0  ;;  %v1047_v24 = vsel %vm19_vm0, %v1020_v15, 0.0  ;;  %v1023_v29 = vmul.f32 %v954_v41, %v954_v41  ;;  %v1000_v25 = vsel %vm19_vm0, %v954_v41, 0.0 }
 0x152   :  { %960 = vst.msk [vmem:[%s1890_s2 + $0x28] sm:$0xff] %vm19_vm0, %v944_v42  ;;  %v980_v44 = vsel %vm19_vm0, %v944_v42, 0.0  ;;  %v1013_v45 = vmul.f32 %v944_v42, %v944_v42  ;;  %v952_v60 = vld [vmem:[#allocation2 + $0x68] sm:$0xff] }
 0x153   :  { %v981_v46 = vadd.f32 %v980_v44, %v979_v18  ;;  %968 = vst.msk [vmem:[%s1890_s2 + $0x68] sm:$0xff] %vm19_vm0, %v952_v60  ;;  %v1021_v53 = vmul.f32 %v952_v60, %v952_v60  ;;  %v996_v27 = vsel %vm19_vm0, %v952_v60, 0.0  ;;  %v1053_v40 = vsel %vm19_vm0, %v1023_v29, 0.0 }
 0x154   :  { %v1033_v51 = vsel %vm19_vm0, %v1013_v45, 0.0 }
 0x155   :  { %v983_v52 = vadd.f32 %v982_v47, %v981_v46  ;;  %v1034_v55 = vadd.f32 %v1033_v51, %v1032_v38  ;;  %v1049_v31 = vsel %vm19_vm0, %v1021_v53, 0.0 }
 0x157   :  { %v985_v59 = vadd.f32 %v984_v58, %v983_v52  ;;  %v1036_v3 = vadd.f32 %v1035_v57, %v1034_v55 }
 0x159   :  { %v987_v49 = vadd.f32 %v986_v61, %v985_v59  ;;  %v1038_v4 = vadd.f32 %v1037_v63, %v1036_v3 }
 0x15b   :  { %v1040_v2 = vadd.f32 %v1039_v54, %v1038_v4  ;;  %v989_v6 = vadd.f32 %v988_v1, %v987_v49 }
 0x15d   :  { %v991_v11 = vadd.f32 %v990_v8, %v989_v6  ;;  %v1042_v12 = vadd.f32 %v1041_v10, %v1040_v2 }
 0x15f   :  { %v993_v16 = vadd.f32 %v992_v14, %v991_v11  ;;  %v1044_v7 = vadd.f32 %v1043_v13, %v1042_v12 }
 0x161   :  { %v995_v21 = vadd.f32 %v994_v20, %v993_v16  ;;  %v1046_v22 = vadd.f32 %v1045_v19, %v1044_v7 }
 0x163   :  { %v997_v28 = vadd.f32 %v996_v27, %v995_v21  ;;  %v1048_v39 = vadd.f32 %v1047_v24, %v1046_v22 }
 0x165   :  { %v999_v32 = vadd.f32 %v998_v5, %v997_v28  ;;  %v1050_v50 = vadd.f32 %v1049_v31, %v1048_v39 }
 0x167   :  { %v1001_v35 = vadd.f32 %v1000_v25, %v999_v32  ;;  %v1052_v36 = vadd.f32 %v1051_v33, %v1050_v50 }
 0x169   :  { %v1002_v17 = vrot.slane %v1001_v35, 4  ;;  %v1054_v34 = vadd.f32 %v1053_v40, %v1052_v36 }
 0x16b   :  { %v1003_v26 = vadd.f32 %v1002_v17, %v1001_v35  ;;  %v1055_v37 = vrot.slane %v1054_v34, 4 }
 0x16d   :  { %v1004_v18 = vrot.slane %v1003_v26, 2  ;;  %v1056_v38 = vadd.f32 %v1055_v37, %v1054_v34 }
 0x16f   :  { %v1005_v30 = vadd.f32 %v1004_v18, %v1003_v26  ;;  %v1057_v42 = vrot.slane %v1056_v38, 2 }
 0x171   :  { %v1006_v43 = vrot.slane %v1005_v30, 1  ;;  %v1058_v44 = vadd.f32 %v1057_v42, %v1056_v38 }
 0x173   :  { %v1007_v45 = vadd.f32 %v1006_v43, %v1005_v30  ;;  %v1059_v46 = vrot.slane %v1058_v44, 1 }
 0x175   :  { %v1060_v47 = vadd.f32 %v1059_v46, %v1058_v44  ;;  %1061 = vst.msk [vmem:[%s1891_s3] sm:$0xff] %vm19_vm0, %v1007_v45 }
 0x177   :  { %1062 = vst.msk [vmem:[%s1892_s4] sm:$0xff] %vm19_vm0, %v1060_v47 }

// kernel: _lambda_.31
= control target key start
LH: loop header
LB: loop body
LE: loop exit
PB: predicated region body
PF: predicated region fallthrough
CT: control target
= control target key end

     0   :  { %vm21_vm0 = vcmask 523264   ;;  %v66_v22 = vlaneseq  ;;  %vm189_vm1 = vcmask 519168   ;;  %s416_s1 = inlined_call_operand.vmem [shape: f32[8,64], index: 1, kind: input, shape index: {}]   ;;  %s417_s2 = inlined_call_operand.vmem [shape: f32[8,64], index: 2, kind: input, shape index: {}]   ;;  %s418_s3 = inlined_call_operand.vmem [shape: f32[1,64], index: 3, kind: input, shape index: {}]   ;;  %s419_s0 = inlined_call_operand.vmem [shape: f32[128,64], index: 0, kind: input, shape index: {}]   ;;  %s420_s4 = inlined_call_operand.vmem [shape: f32[1,64], index: 4, kind: input, shape index: {}]   ;;  %s421_s5 = inlined_call_operand.vmem [shape: bf16[128,64], index: 5, kind: output, shape index: {}]  }
   0x1   :  { %v20_v0 = vld [vmem:[%s416_s1] sm:$0xff]  ;;  %v50_v30 = vld [vmem:[%s419_s0 + $0x8] sm:$0xff]  ;;  %v51_v31 = vld [vmem:[%s419_s0 + $0x10] sm:$0xff] }
   0x2   :  { %v30_v1 = vld [vmem:[%s417_s2] sm:$0xff]  ;;  %v22_v2 = vsel %vm21_vm0, %v20_v0, 0.0  ;;  %v67_v23 = vshrl.u32 %v66_v22, 7  ;;  %v52_v32 = vld [vmem:[%s419_s0 + $0x18] sm:$0xff]  ;;  %v54_v36 = vld [vmem:[%s419_s0 + $0x28] sm:$0xff] }
   0x3   :  { %v31_v3 = vsel %vm21_vm0, %v30_v1, 0.0  ;;  %v23_v4 = vrot.slane %v22_v2, 4  ;;  %v42_v24 = vld [vmem:[%s418_s3] sm:$0x1]  ;;  %v55_v37 = vld [vmem:[%s419_s0 + $0x30] sm:$0xff]  ;;  %v56_v38 = vld [vmem:[%s419_s0 + $0x38] sm:$0xff] }
   0x4   :  { %v32_v5 = vrot.slane %v31_v3, 4  ;;  %v68_v25 = vsub.s32 0, %v67_v23  ;;  %v46_v28 = vld [vmem:[%s420_s4] sm:$0x1]  ;;  %v58_v40 = vld [vmem:[%s419_s0 + $0x48] sm:$0xff]  ;;  %v59_v41 = vld [vmem:[%s419_s0 + $0x50] sm:$0xff] }
   0x5   :  { %v24_v6 = vadd.f32 %v23_v4, %v22_v2  ;;  %v49_v29 = vld [vmem:[%s419_s0] sm:$0xff]  ;;  %v60_v46 = vld [vmem:[%s419_s0 + $0x58] sm:$0xff]  ;;  %v62_v48 = vld [vmem:[%s419_s0 + $0x68] sm:$0xff] }
   0x6   :  { %v33_v7 = vadd.f32 %v32_v5, %v31_v3  ;;  %v53_v33 = vld [vmem:[%s419_s0 + $0x20] sm:$0xff] }
   0x7   :  { %v25_v8 = vrot.slane %v24_v6, 2  ;;  %v57_v39 = vld [vmem:[%s419_s0 + $0x40] sm:$0xff] }
   0x8   :  { %v34_v9 = vrot.slane %v33_v7, 2  ;;  %v61_v47 = vld [vmem:[%s419_s0 + $0x60] sm:$0xff] }
   0x9   :  { %v26_v10 = vadd.f32 %v25_v8, %v24_v6 }
   0xa   :  { %v35_v11 = vadd.f32 %v34_v9, %v33_v7 }
   0xb   :  { %v27_v12 = vrot.slane %v26_v10, 1 }
   0xc   :  { %v36_v13 = vrot.slane %v35_v11, 1 }
   0xd   :  { %v28_v14 = vadd.f32 %v27_v12, %v26_v10 }
   0xe   :  { %v37_v15 = vadd.f32 %v36_v13, %v35_v11 }
   0xf   :  { %v29_v16 = vmul.f32 0.0009765625, %v28_v14 }
  0x10   :  { %v38_v17 = vmul.f32 0.0009765625, %v37_v15 }
  0x11   :  { %v39_v18 = vmul.f32 %v29_v16, %v29_v16 }
  0x13   :  { %v40_v19 = vsub.f32 %v38_v17, %v39_v18  ;;  %v63_v17 = vld [vmem:[%s419_s0 + $0x70] sm:$0xff]  ;;  %v64_v18 = vld [vmem:[%s419_s0 + $0x78] sm:$0xff] }
  0x15   :  { %v41_v20 = vmax.f32 %v40_v19, 0.0 }
  0x17   :  { %v43_v21 = vadd.f32 1e-05, %v41_v20 }
  0x19   :  { %242 = vrsqrt.f32 %v43_v21 }
  0x23   :  { %v243_v26 = vpop.eup %242 }
  0x24   :  { %v45_v27 = vmul.f32 %v243_v26, %v42_v24 }
  0x26   :  { %v47_v34 = vmul.f32 %v45_v27, %v29_v16  ;;  %v301_v35 = vrot.slane %v45_v27, %v68_v25 }
  0x28   :  { %v48_v42 = vsub.f32 %v46_v28, %v47_v34  ;;  %v71_v43 = vmul.f32 %v301_v35, %v49_v29  ;;  %v72_v44 = vmul.f32 %v301_v35, %v50_v30  ;;  %v73_v45 = vmul.f32 %v301_v35, %v51_v31 }
  0x29   :  { %v74_v49 = vmul.f32 %v301_v35, %v52_v32  ;;  %v75_v50 = vmul.f32 %v301_v35, %v53_v33  ;;  %v76_v51 = vmul.f32 %v301_v35, %v54_v36  ;;  %v77_v52 = vmul.f32 %v301_v35, %v55_v37 }
  0x2a   :  { %v91_v53 = vrot.slane %v48_v42, %v68_v25  ;;  %v78_v54 = vmul.f32 %v301_v35, %v56_v38  ;;  %v79_v55 = vmul.f32 %v301_v35, %v57_v39  ;;  %v80_v56 = vmul.f32 %v301_v35, %v58_v40 }
  0x2b   :  { %v81_v57 = vmul.f32 %v301_v35, %v59_v41  ;;  %v82_v58 = vmul.f32 %v301_v35, %v60_v46  ;;  %v83_v59 = vmul.f32 %v301_v35, %v61_v47  ;;  %v84_v60 = vmul.f32 %v301_v35, %v62_v48 }
  0x2c   :  { %v93_v61 = vadd.f32 %v91_v53, %v71_v43  ;;  %v94_v62 = vadd.f32 %v91_v53, %v72_v44  ;;  %v95_v63 = vadd.f32 %v91_v53, %v73_v45  ;;  %v96_v0 = vadd.f32 %v91_v53, %v74_v49 }
  0x2d   :  { %v97_v1 = vadd.f32 %v91_v53, %v75_v50  ;;  %v98_v2 = vadd.f32 %v91_v53, %v76_v51  ;;  %v99_v3 = vadd.f32 %v91_v53, %v77_v52  ;;  %v100_v4 = vadd.f32 %v91_v53, %v78_v54 }
  0x2e   :  { %v109_v5 = vmax.f32 %v93_v61, 0.0  ;;  %v110_v6 = vmax.f32 %v94_v62, 0.0  ;;  %v111_v7 = vmax.f32 %v95_v63, 0.0  ;;  %v112_v8 = vmax.f32 %v96_v0, 0.0 }
  0x2f   :  { %v113_v9 = vmax.f32 %v97_v1, 0.0  ;;  %v114_v10 = vmax.f32 %v98_v2, 0.0  ;;  %v115_v11 = vmax.f32 %v99_v3, 0.0  ;;  %v116_v12 = vmax.f32 %v100_v4, 0.0 }
  0x30   :  { %v226_v13 = vpack.c.bf16 %v109_v5, %v109_v5  ;;  %v227_v14 = vpack.c.bf16 %v110_v6, %v110_v6  ;;  %v228_v15 = vpack.c.bf16 %v111_v7, %v111_v7  ;;  %v229_v16 = vpack.c.bf16 %v112_v8, %v112_v8 }
  0x31   :  { %v230_v19 = vpack.c.bf16 %v113_v9, %v113_v9  ;;  %v231_v20 = vpack.c.bf16 %v114_v10, %v114_v10  ;;  %v232_v21 = vpack.c.bf16 %v115_v11, %v115_v11  ;;  %v233_v22 = vpack.c.bf16 %v116_v12, %v116_v12 }
  0x32   :  { %190 = vst.msk [vmem:[%s421_s5] sm:$0xf] %vm189_vm1, %v226_v13  ;;  %191 = vst.msk [vmem:[%s421_s5 + $0x4] sm:$0xf] %vm189_vm1, %v227_v14  ;;  %v101_v23 = vadd.f32 %v91_v53, %v79_v55  ;;  %v102_v24 = vadd.f32 %v91_v53, %v80_v56  ;;  %v103_v25 = vadd.f32 %v91_v53, %v81_v57 }
  0x33   :  { %192 = vst.msk [vmem:[%s421_s5 + $0x8] sm:$0xf] %vm189_vm1, %v228_v15  ;;  %193 = vst.msk [vmem:[%s421_s5 + $0xc] sm:$0xf] %vm189_vm1, %v229_v16  ;;  %v104_v26 = vadd.f32 %v91_v53, %v82_v58  ;;  %v105_v27 = vadd.f32 %v91_v53, %v83_v59  ;;  %v106_v28 = vadd.f32 %v91_v53, %v84_v60 }
  0x34   :  { %194 = vst.msk [vmem:[%s421_s5 + $0x10] sm:$0xf] %vm189_vm1, %v230_v19  ;;  %195 = vst.msk [vmem:[%s421_s5 + $0x14] sm:$0xf] %vm189_vm1, %v231_v20  ;;  %v85_v29 = vmul.f32 %v301_v35, %v63_v17  ;;  %v86_v30 = vmul.f32 %v301_v35, %v64_v18  ;;  %v117_v31 = vmax.f32 %v101_v23, 0.0  ;;  %v118_v32 = vmax.f32 %v102_v24, 0.0 }
  0x35   :  { %196 = vst.msk [vmem:[%s421_s5 + $0x18] sm:$0xf] %vm189_vm1, %v232_v21  ;;  %197 = vst.msk [vmem:[%s421_s5 + $0x1c] sm:$0xf] %vm189_vm1, %v233_v22  ;;  %v119_v33 = vmax.f32 %v103_v25, 0.0  ;;  %v120_v34 = vmax.f32 %v104_v26, 0.0 }
  0x36   :  { %v121_v36 = vmax.f32 %v105_v27, 0.0  ;;  %v122_v37 = vmax.f32 %v106_v28, 0.0  ;;  %v107_v38 = vadd.f32 %v91_v53, %v85_v29  ;;  %v108_v39 = vadd.f32 %v91_v53, %v86_v30 }
  0x37   :  { %v234_v40 = vpack.c.bf16 %v117_v31, %v117_v31  ;;  %v235_v41 = vpack.c.bf16 %v118_v32, %v118_v32  ;;  %v236_v42 = vpack.c.bf16 %v119_v33, %v119_v33  ;;  %v237_v43 = vpack.c.bf16 %v120_v34, %v120_v34 }
  0x38   :  { %v238_v44 = vpack.c.bf16 %v121_v36, %v121_v36  ;;  %v239_v45 = vpack.c.bf16 %v122_v37, %v122_v37  ;;  %v123_v46 = vmax.f32 %v107_v38, 0.0  ;;  %v124_v47 = vmax.f32 %v108_v39, 0.0 }
  0x39   :  { %198 = vst.msk [vmem:[%s421_s5 + $0x20] sm:$0xf] %vm189_vm1, %v234_v40  ;;  %199 = vst.msk [vmem:[%s421_s5 + $0x24] sm:$0xf] %vm189_vm1, %v235_v41 }
  0x3a   :  { %200 = vst.msk [vmem:[%s421_s5 + $0x28] sm:$0xf] %vm189_vm1, %v236_v42  ;;  %201 = vst.msk [vmem:[%s421_s5 + $0x2c] sm:$0xf] %vm189_vm1, %v237_v43  ;;  %v240_v35 = vpack.c.bf16 %v123_v46, %v123_v46  ;;  %v241_v48 = vpack.c.bf16 %v124_v47, %v124_v47 }
  0x3b   :  { %202 = vst.msk [vmem:[%s421_s5 + $0x30] sm:$0xf] %vm189_vm1, %v238_v44  ;;  %203 = vst.msk [vmem:[%s421_s5 + $0x34] sm:$0xf] %vm189_vm1, %v239_v45 }
  0x3c   :  { %204 = vst.msk [vmem:[%s421_s5 + $0x38] sm:$0xf] %vm189_vm1, %v240_v35  ;;  %205 = vst.msk [vmem:[%s421_s5 + $0x3c] sm:$0xf] %vm189_vm1, %v241_v48 }

// kernel: _lambda_.33
= control target key start
LH: loop header
LB: loop body
LE: loop exit
PB: predicated region body
PF: predicated region fallthrough
CT: control target
= control target key end

     0   :  { %vm24_vm0 = vcmask 523264   ;;  %v69_v22 = vlaneseq  ;;  %vm240_vm1 = vcmask 519168   ;;  %s601_s1 = inlined_call_operand.vmem [shape: f32[8,64], index: 1, kind: input, shape index: {}]   ;;  %s602_s2 = inlined_call_operand.vmem [shape: f32[8,64], index: 2, kind: input, shape index: {}]   ;;  %s603_s5 = inlined_call_operand.vmem [shape: bf16[128,64], index: 5, kind: input, shape index: {}]   ;;  %s604_s3 = inlined_call_operand.vmem [shape: f32[1,64], index: 3, kind: input, shape index: {}]   ;;  %s605_s0 = inlined_call_operand.vmem [shape: f32[128,64], index: 0, kind: input, shape index: {}]   ;;  %s606_s4 = inlined_call_operand.vmem [shape: f32[1,64], index: 4, kind: input, shape index: {}]   ;;  %s607_s6 = inlined_call_operand.vmem [shape: bf16[128,64], index: 6, kind: output, shape index: {}]  }
   0x1   :  { %v23_v0 = vld [vmem:[%s601_s1] sm:$0xff]  ;;  %v383_v25 = vld [vmem:[%s603_s5 + $0x8] sm:$0xff]   ;;  %v391_v27 = vld [vmem:[%s603_s5 + $0x10] sm:$0xff]  }
   0x2   :  { %v33_v1 = vld [vmem:[%s602_s2] sm:$0xff]  ;;  %v25_v2 = vsel %vm24_vm0, %v23_v0, 0.0  ;;  %v70_v23 = vshrl.u32 %v69_v22, 7  ;;  %v396_v29 = vld [vmem:[%s603_s5 + $0x18] sm:$0xff]   ;;  %v299_v36 = vunpack.c.l.bf16 %v383_v25  ;;  %v415_v37 = vld [vmem:[%s603_s5 + $0x28] sm:$0xff]   ;;  %v300_v40 = vunpack.c.h.bf16 %v383_v25 }
   0x3   :  { %v34_v3 = vsel %vm24_vm0, %v33_v1, 0.0  ;;  %v26_v4 = vrot.slane %v25_v2, 4  ;;  %v378_v24 = vld [vmem:[%s603_s5] sm:$0xff]   ;;  %v53_v39 = vld [vmem:[%s605_s0 + $0x8] sm:$0xff]  ;;  %v303_v41 = vunpack.c.l.bf16 %v391_v27  ;;  %v304_v42 = vunpack.c.h.bf16 %v391_v27  ;;  %v426_v43 = vld [vmem:[%s603_s5 + $0x30] sm:$0xff]  }
   0x4   :  { %v35_v5 = vrot.slane %v34_v3, 4  ;;  %v45_v26 = vld [vmem:[%s604_s3] sm:$0x1]  ;;  %v71_v28 = vsub.s32 0, %v70_v23  ;;  %v295_v34 = vunpack.c.l.bf16 %v378_v24  ;;  %v296_v35 = vunpack.c.h.bf16 %v378_v24  ;;  %v431_v44 = vld [vmem:[%s603_s5 + $0x38] sm:$0xff]   ;;  %v54_v45 = vld [vmem:[%s605_s0 + $0x10] sm:$0xff] }
   0x5   :  { %v27_v6 = vadd.f32 %v26_v4, %v25_v2  ;;  %v401_v30 = vld [vmem:[%s603_s5 + $0x20] sm:$0xff]   ;;  %v55_v46 = vld [vmem:[%s605_s0 + $0x18] sm:$0xff]  ;;  %v307_v48 = vunpack.c.l.bf16 %v396_v29  ;;  %v308_v49 = vunpack.c.h.bf16 %v396_v29  ;;  %v57_v54 = vld [vmem:[%s605_s0 + $0x28] sm:$0xff]  ;;  %v315_v57 = vunpack.c.l.bf16 %v415_v37 }
   0x6   :  { %v36_v7 = vadd.f32 %v35_v5, %v34_v3  ;;  %v49_v32 = vld [vmem:[%s606_s4] sm:$0x1]  ;;  %v311_v50 = vunpack.c.l.bf16 %v401_v30  ;;  %v312_v51 = vunpack.c.h.bf16 %v401_v30  ;;  %v58_v55 = vld [vmem:[%s605_s0 + $0x30] sm:$0xff]  ;;  %v59_v56 = vld [vmem:[%s605_s0 + $0x38] sm:$0xff]  ;;  %v316_v58 = vunpack.c.h.bf16 %v415_v37 }
   0x7   :  { %v28_v8 = vrot.slane %v27_v6, 2  ;;  %v52_v33 = vld [vmem:[%s605_s0] sm:$0xff]  ;;  %v61_v60 = vld [vmem:[%s605_s0 + $0x48] sm:$0xff]  ;;  %v62_v61 = vld [vmem:[%s605_s0 + $0x50] sm:$0xff]  ;;  %v319_v62 = vunpack.c.l.bf16 %v426_v43  ;;  %v320_v63 = vunpack.c.h.bf16 %v426_v43  ;;  %v323_v0 = vunpack.c.l.bf16 %v431_v44 }
   0x8   :  { %v37_v9 = vrot.slane %v36_v7, 2  ;;  %v56_v47 = vld [vmem:[%s605_s0 + $0x20] sm:$0xff]  ;;  %v324_v1 = vunpack.c.h.bf16 %v431_v44 }
   0x9   :  { %v29_v10 = vadd.f32 %v28_v8, %v27_v6  ;;  %v60_v59 = vld [vmem:[%s605_s0 + $0x40] sm:$0xff]  ;;  %v63_v6 = vld [vmem:[%s605_s0 + $0x58] sm:$0xff]  ;;  %v65_v8 = vld [vmem:[%s605_s0 + $0x68] sm:$0xff] }
   0xa   :  { %v38_v11 = vadd.f32 %v37_v9, %v36_v7  ;;  %v64_v7 = vld [vmem:[%s605_s0 + $0x60] sm:$0xff] }
   0xb   :  { %v30_v12 = vrot.slane %v29_v10, 1 }
   0xc   :  { %v39_v13 = vrot.slane %v38_v11, 1 }
   0xd   :  { %v31_v14 = vadd.f32 %v30_v12, %v29_v10 }
   0xe   :  { %v40_v15 = vadd.f32 %v39_v13, %v38_v11 }
   0xf   :  { %v32_v16 = vmul.f32 0.0009765625, %v31_v14 }
  0x10   :  { %v41_v17 = vmul.f32 0.0009765625, %v40_v15 }
  0x11   :  { %v42_v18 = vmul.f32 %v32_v16, %v32_v16 }
  0x13   :  { %v43_v19 = vsub.f32 %v41_v17, %v42_v18 }
  0x15   :  { %v44_v20 = vmax.f32 %v43_v19, 0.0 }
  0x17   :  { %v46_v21 = vadd.f32 1e-05, %v44_v20 }
  0x19   :  { %332 = vrsqrt.f32 %v46_v21 }
  0x23   :  { %v333_v31 = vpop.eup %332 }
  0x24   :  { %v48_v38 = vmul.f32 %v333_v31, %v45_v26 }
  0x26   :  { %v50_v52 = vmul.f32 %v48_v38, %v32_v16  ;;  %v446_v53 = vrot.slane %v48_v38, %v71_v28 }
  0x28   :  { %v51_v2 = vsub.f32 %v49_v32, %v50_v52  ;;  %v74_v3 = vmul.f32 %v446_v53, %v52_v33  ;;  %v75_v4 = vmul.f32 %v446_v53, %v53_v39  ;;  %v76_v5 = vmul.f32 %v446_v53, %v54_v45 }
  0x29   :  { %v77_v9 = vmul.f32 %v446_v53, %v55_v46  ;;  %v78_v10 = vmul.f32 %v446_v53, %v56_v47  ;;  %v79_v11 = vmul.f32 %v446_v53, %v57_v54  ;;  %v80_v12 = vmul.f32 %v446_v53, %v58_v55 }
  0x2a   :  { %v488_v13 = vrot.slane %v51_v2, %v71_v28  ;;  %v81_v14 = vmul.f32 %v446_v53, %v59_v56  ;;  %v82_v15 = vmul.f32 %v446_v53, %v60_v59  ;;  %v83_v16 = vmul.f32 %v446_v53, %v61_v60 }
  0x2b   :  { %v84_v17 = vmul.f32 %v446_v53, %v62_v61  ;;  %v85_v18 = vmul.f32 %v446_v53, %v63_v6  ;;  %v86_v19 = vmul.f32 %v446_v53, %v64_v7  ;;  %v87_v20 = vmul.f32 %v446_v53, %v65_v8 }
  0x2c   :  { %v96_v21 = vadd.f32 %v488_v13, %v74_v3  ;;  %v97_v22 = vadd.f32 %v488_v13, %v75_v4  ;;  %v98_v23 = vadd.f32 %v488_v13, %v76_v5  ;;  %v99_v24 = vadd.f32 %v488_v13, %v77_v9 }
  0x2d   :  { %v100_v25 = vadd.f32 %v488_v13, %v78_v10  ;;  %v101_v26 = vadd.f32 %v488_v13, %v79_v11  ;;  %v102_v27 = vadd.f32 %v488_v13, %v80_v12  ;;  %v103_v28 = vadd.f32 %v488_v13, %v81_v14 }
  0x2e   :  { %v144_v29 = vadd.f32 %v295_v34, %v96_v21  ;;  %v145_v31 = vadd.f32 %v296_v35, %v97_v22  ;;  %v146_v32 = vadd.f32 %v299_v36, %v98_v23  ;;  %v147_v33 = vadd.f32 %v300_v40, %v99_v24  ;;  %v66_v34 = vld [vmem:[%s605_s0 + $0x70] sm:$0xff]  ;;  %v67_v35 = vld [vmem:[%s605_s0 + $0x78] sm:$0xff] }
  0x2f   :  { %v148_v38 = vadd.f32 %v303_v41, %v100_v25  ;;  %v149_v39 = vadd.f32 %v304_v42, %v101_v26  ;;  %v150_v45 = vadd.f32 %v307_v48, %v102_v27  ;;  %v151_v46 = vadd.f32 %v308_v49, %v103_v28 }
  0x30   :  { %v160_v47 = vmax.f32 %v144_v29, 0.0  ;;  %v161_v52 = vmax.f32 %v145_v31, 0.0  ;;  %v162_v54 = vmax.f32 %v146_v32, 0.0  ;;  %v163_v55 = vmax.f32 %v147_v33, 0.0 }
  0x31   :  { %v164_v56 = vmax.f32 %v148_v38, 0.0  ;;  %v165_v59 = vmax.f32 %v149_v39, 0.0  ;;  %v166_v60 = vmax.f32 %v150_v45, 0.0  ;;  %v167_v61 = vmax.f32 %v151_v46, 0.0 }
  0x32   :  { %v277_v2 = vpack.c.bf16 %v160_v47, %v160_v47  ;;  %v278_v3 = vpack.c.bf16 %v161_v52, %v161_v52  ;;  %v279_v4 = vpack.c.bf16 %v162_v54, %v162_v54  ;;  %v280_v5 = vpack.c.bf16 %v163_v55, %v163_v55 }
  0x33   :  { %v281_v36 = vpack.c.bf16 %v164_v56, %v164_v56  ;;  %v282_v40 = vpack.c.bf16 %v165_v59, %v165_v59  ;;  %v283_v41 = vpack.c.bf16 %v166_v60, %v166_v60  ;;  %v284_v42 = vpack.c.bf16 %v167_v61, %v167_v61 }
  0x34   :  { %241 = vst.msk [vmem:[%s607_s6] sm:$0xf] %vm240_vm1, %v277_v2  ;;  %242 = vst.msk [vmem:[%s607_s6 + $0x4] sm:$0xf] %vm240_vm1, %v278_v3  ;;  %v104_v48 = vadd.f32 %v488_v13, %v82_v15  ;;  %v105_v49 = vadd.f32 %v488_v13, %v83_v16  ;;  %v106_v6 = vadd.f32 %v488_v13, %v84_v17 }
  0x35   :  { %243 = vst.msk [vmem:[%s607_s6 + $0x8] sm:$0xf] %vm240_vm1, %v279_v4  ;;  %244 = vst.msk [vmem:[%s607_s6 + $0xc] sm:$0xf] %vm240_vm1, %v280_v5  ;;  %v107_v7 = vadd.f32 %v488_v13, %v85_v18  ;;  %v108_v8 = vadd.f32 %v488_v13, %v86_v19  ;;  %v109_v9 = vadd.f32 %v488_v13, %v87_v20 }
  0x36   :  { %245 = vst.msk [vmem:[%s607_s6 + $0x10] sm:$0xf] %vm240_vm1, %v281_v36  ;;  %246 = vst.msk [vmem:[%s607_s6 + $0x14] sm:$0xf] %vm240_vm1, %v282_v40  ;;  %v88_v10 = vmul.f32 %v446_v53, %v66_v34  ;;  %v89_v11 = vmul.f32 %v446_v53, %v67_v35  ;;  %v152_v12 = vadd.f32 %v311_v50, %v104_v48 }
  0x37   :  { %247 = vst.msk [vmem:[%s607_s6 + $0x18] sm:$0xf] %vm240_vm1, %v283_v41  ;;  %248 = vst.msk [vmem:[%s607_s6 + $0x1c] sm:$0xf] %vm240_vm1, %v284_v42  ;;  %v153_v14 = vadd.f32 %v312_v51, %v105_v49  ;;  %v154_v15 = vadd.f32 %v315_v57, %v106_v6  ;;  %v155_v16 = vadd.f32 %v316_v58, %v107_v7 }
  0x38   :  { %v156_v17 = vadd.f32 %v319_v62, %v108_v8  ;;  %v157_v18 = vadd.f32 %v320_v63, %v109_v9  ;;  %v110_v53 = vadd.f32 %v488_v13, %v88_v10  ;;  %v111_v19 = vadd.f32 %v488_v13, %v89_v11 }
  0x39   :  { %v168_v50 = vmax.f32 %v152_v12, 0.0  ;;  %v169_v20 = vmax.f32 %v153_v14, 0.0  ;;  %v170_v30 = vmax.f32 %v154_v15, 0.0  ;;  %v171_v51 = vmax.f32 %v155_v16, 0.0 }
  0x3a   :  { %v172_v21 = vmax.f32 %v156_v17, 0.0  ;;  %v173_v22 = vmax.f32 %v157_v18, 0.0  ;;  %v158_v37 = vadd.f32 %v323_v0, %v110_v53  ;;  %v159_v57 = vadd.f32 %v324_v1, %v111_v19 }
  0x3b   :  { %v285_v58 = vpack.c.bf16 %v168_v50, %v168_v50  ;;  %v286_v62 = vpack.c.bf16 %v169_v20, %v169_v20  ;;  %v287_v43 = vpack.c.bf16 %v170_v30, %v170_v30  ;;  %v288_v63 = vpack.c.bf16 %v171_v51, %v171_v51 }
  0x3c   :  { %v289_v23 = vpack.c.bf16 %v172_v21, %v172_v21  ;;  %v290_v24 = vpack.c.bf16 %v173_v22, %v173_v22  ;;  %v174_v25 = vmax.f32 %v158_v37, 0.0  ;;  %v175_v13 = vmax.f32 %v159_v57, 0.0 }
  0x3d   :  { %249 = vst.msk [vmem:[%s607_s6 + $0x20] sm:$0xf] %vm240_vm1, %v285_v58  ;;  %250 = vst.msk [vmem:[%s607_s6 + $0x24] sm:$0xf] %vm240_vm1, %v286_v62 }
  0x3e   :  { %251 = vst.msk [vmem:[%s607_s6 + $0x28] sm:$0xf] %vm240_vm1, %v287_v43  ;;  %252 = vst.msk [vmem:[%s607_s6 + $0x2c] sm:$0xf] %vm240_vm1, %v288_v63  ;;  %v291_v44 = vpack.c.bf16 %v174_v25, %v174_v25  ;;  %v292_v0 = vpack.c.bf16 %v175_v13, %v175_v13 }
  0x3f   :  { %253 = vst.msk [vmem:[%s607_s6 + $0x30] sm:$0xf] %vm240_vm1, %v289_v23  ;;  %254 = vst.msk [vmem:[%s607_s6 + $0x34] sm:$0xf] %vm240_vm1, %v290_v24 }
  0x40   :  { %255 = vst.msk [vmem:[%s607_s6 + $0x38] sm:$0xf] %vm240_vm1, %v291_v44  ;;  %256 = vst.msk [vmem:[%s607_s6 + $0x3c] sm:$0xf] %vm240_vm1, %v292_v0 }

// kernel: _lambda_.34
= control target key start
LH: loop header
LB: loop body
LE: loop exit
PB: predicated region body
PF: predicated region fallthrough
CT: control target
= control target key end

     0   :  { %vm377_vm0 = vcmask 523264   ;;  %s939_s1 = inlined_call_operand.vmem [shape: bf16[576,128], index: 1, kind: input, shape index: {}]   ;;  %s940_s0 = inlined_call_operand.vmem [shape: bf16[32,576], index: 0, kind: input, shape index: {}]   ;;  %s941_s2 = inlined_call_operand.vmem [shape: f32[32,128], index: 2, kind: output, shape index: {0}]   ;;  %s942_s3 = inlined_call_operand.vmem [shape: f32[8,128], index: 3, kind: output, shape index: {1}]   ;;  %s943_s4 = inlined_call_operand.vmem [shape: f32[8,128], index: 4, kind: output, shape index: {2}]  }
   0x1   :  { %v708_v0 = vld [vmem:[%s939_s1 + $0x40] sm:$0xff]   ;;  %v712_v4 = vld [vmem:[%s939_s1 + $0x48] sm:$0xff]   ;;  %v716_v8 = vld [vmem:[%s939_s1 + $0x50] sm:$0xff]  }
   0x2   :  { %v709_v1 = vld [vmem:[%s939_s1 + $0xc0] sm:$0xff]   ;;  %634 = vmatprep.subr.bf16.mxu0 %v708_v0  ;;  %v713_v5 = vld [vmem:[%s939_s1 + $0xc8] sm:$0xff]   ;;  %v717_v9 = vld [vmem:[%s939_s1 + $0xd0] sm:$0xff]  }
   0x3   :  { %v710_v2 = vld [vmem:[%s939_s1] sm:$0xff]   ;;  %662 = vmatprep.subr.bf16.mxu1 %v709_v1  ;;  %v714_v6 = vld [vmem:[%s939_s1 + $0x8] sm:$0xff]   ;;  %v718_v10 = vld [vmem:[%s939_s1 + $0x10] sm:$0xff]  }
   0x4   :  { %v711_v3 = vld [vmem:[%s939_s1 + $0x80] sm:$0xff]   ;;  %635 = vmatpush3.bf16.msra.mxu0 %v710_v2  ;;  %v715_v7 = vld [vmem:[%s939_s1 + $0x88] sm:$0xff]   ;;  %v719_v11 = vld [vmem:[%s939_s1 + $0x90] sm:$0xff]  }
   0x5   :  { %663 = vmatpush3.bf16.msra.mxu1 %v711_v3  ;;  %636 = vmatprep.subr.bf16.mxu0 %v712_v4  ;;  %v720_v12 = vld [vmem:[%s939_s1 + $0x58] sm:$0xff]   ;;  %v724_v16 = vld [vmem:[%s939_s1 + $0x60] sm:$0xff]   ;;  %v728_v20 = vld [vmem:[%s939_s1 + $0x68] sm:$0xff]  }
   0x6   :  { %664 = vmatprep.subr.bf16.mxu1 %v713_v5  ;;  %v721_v13 = vld [vmem:[%s939_s1 + $0xd8] sm:$0xff]   ;;  %v725_v17 = vld [vmem:[%s939_s1 + $0xe0] sm:$0xff]   ;;  %v729_v21 = vld [vmem:[%s939_s1 + $0xe8] sm:$0xff]  }
   0x7   :  { %v722_v14 = vld [vmem:[%s939_s1 + $0x18] sm:$0xff]   ;;  %v726_v18 = vld [vmem:[%s939_s1 + $0x20] sm:$0xff]   ;;  %v730_v22 = vld [vmem:[%s939_s1 + $0x28] sm:$0xff]  }
   0x8   :  { %637 = vmatpush3.bf16.msra.mxu0 %v714_v6  ;;  %v723_v15 = vld [vmem:[%s939_s1 + $0x98] sm:$0xff]   ;;  %v727_v19 = vld [vmem:[%s939_s1 + $0xa0] sm:$0xff]   ;;  %v731_v23 = vld [vmem:[%s939_s1 + $0xa8] sm:$0xff]  }
   0x9   :  { %665 = vmatpush3.bf16.msra.mxu1 %v715_v7  ;;  %638 = vmatprep.subr.bf16.mxu0 %v716_v8  ;;  %v732_v24 = vld [vmem:[%s939_s1 + $0x70] sm:$0xff]   ;;  %v736_v28 = vld [vmem:[%s939_s1 + $0x78] sm:$0xff]   ;;  %v745_v35 = vld [vmem:[%s940_s0 + $0xc] ss:$20 sps:$4 sm:$0xff]  }
   0xa   :  { %666 = vmatprep.subr.bf16.mxu1 %v717_v9  ;;  %v733_v25 = vld [vmem:[%s939_s1 + $0xf0] sm:$0xff]   ;;  %v737_v29 = vld [vmem:[%s939_s1 + $0xf8] sm:$0xff]   ;;  %v746_v36 = vld [vmem:[%s939_s1 + $0x100] sm:$0xff]   ;;  %465 = vmatprep.mubr.bf16.mxu1 %v745_v35 }
   0xb   :  { %v734_v26 = vld [vmem:[%s939_s1 + $0x30] sm:$0xff]   ;;  %v738_v30 = vld [vmem:[%s939_s1 + $0x38] sm:$0xff]   ;;  %v747_v37 = vld [vmem:[%s939_s1 + $0x108] sm:$0xff]  }
   0xc   :  { %639 = vmatpush3.bf16.msra.mxu0 %v718_v10  ;;  %v735_v27 = vld [vmem:[%s939_s1 + $0xb0] sm:$0xff]   ;;  %v739_v31 = vld [vmem:[%s939_s1 + $0xb8] sm:$0xff]   ;;  %v748_v38 = vld [vmem:[%s940_s0 + $0x2c] ss:$20 sps:$4 sm:$0xff]  }
   0xd   :  { %667 = vmatpush3.bf16.msra.mxu1 %v719_v11  ;;  %640 = vmatprep.subr.bf16.mxu0 %v720_v12  ;;  %v740_v32 = vld [vmem:[%s940_s0] ss:$20 sps:$4 sm:$0xff]   ;;  %v742_v33 = vld [vmem:[%s940_s0 + $0x4] ss:$20 sps:$4 sm:$0xff]   ;;  %v743_v34 = vld [vmem:[%s940_s0 + $0x8] ss:$20 sps:$4 sm:$0xff]  }
   0xe   :  { %668 = vmatprep.subr.bf16.mxu1 %v721_v13  ;;  %416 = vmatprep.mubr.bf16.mxu0 %v742_v33  ;;  %v750_v39 = vld [vmem:[%s940_s0 + $0x34] ss:$20 sps:$4 sm:$0xff]   ;;  %v753_v42 = vld [vmem:[%s940_s0 + $0x30] ss:$20 sps:$4 sm:$0xff]   ;;  %v755_v44 = vld [vmem:[%s939_s1 + $0x118] sm:$0xff]  }
   0xf   :  { %v752_v40 = vld [vmem:[%s940_s0 + $0x28] ss:$20 sps:$4 sm:$0xff]   ;;  %v754_v41 = vld [vmem:[%s939_s1 + $0x110] sm:$0xff]   ;;  %v757_v45 = vld [vmem:[%s940_s0 + $0x38] ss:$20 sps:$4 sm:$0xff]  }
  0x10   :  { %641 = vmatpush3.bf16.msra.mxu0 %v722_v14  ;;  %v756_v43 = vld [vmem:[%s940_s0 + $0x10] ss:$20 sps:$4 sm:$0xff]  }
  0x11   :  { %669 = vmatpush3.bf16.msra.mxu1 %v723_v15  ;;  %642 = vmatprep.subr.bf16.mxu0 %v724_v16 }
  0x12   :  { %670 = vmatprep.subr.bf16.mxu1 %v725_v17 }
  0x14   :  { %643 = vmatpush3.bf16.msra.mxu0 %v726_v18 }
  0x15   :  { %671 = vmatpush3.bf16.msra.mxu1 %v727_v19  ;;  %644 = vmatprep.subr.bf16.mxu0 %v728_v20 }
  0x16   :  { %672 = vmatprep.subr.bf16.mxu1 %v729_v21 }
  0x18   :  { %645 = vmatpush3.bf16.msra.mxu0 %v730_v22 }
  0x19   :  { %673 = vmatpush3.bf16.msra.mxu1 %v731_v23  ;;  %646 = vmatprep.subr.bf16.mxu0 %v732_v24 }
  0x1a   :  { %674 = vmatprep.subr.bf16.mxu1 %v733_v25 }
  0x1c   :  { %647 = vmatpush3.bf16.msra.mxu0 %v734_v26 }
  0x1d   :  { %675 = vmatpush3.bf16.msra.mxu1 %v735_v27  ;;  %648 = vmatprep.subr.bf16.mxu0 %v736_v28 }
  0x1e   :  { %676 = vmatprep.subr.bf16.mxu1 %v737_v29 }
  0x20   :  { %649 = vmatpush3.bf16.msra.mxu0 %v738_v30 }
  0x21   :  { %677 = vmatpush3.bf16.msra.mxu1 %v739_v31  ;;  %696 = vmatprep.subr.bf16.mxu0 %v746_v36 }
  0x23   :  { %417 = vmatmul.mubr.bf16.vlgmr.msra.gmra.mrb[0].mxu0 %v740_v32 }
  0x24   :  { %466 = vmatmul.mubr.bf16.vlgmr.msra.gmra.mrb[0].mxu1 %v743_v34  ;;  %697 = vmatpush3.bf16.msra.mxu0 %v746_v36 }
  0x25   :  { %698 = vmatprep.subr.bf16.mxu0 %v747_v37  ;;  %424 = vmatprep.mubr.bf16.mxu0 %v748_v38 }
  0x26   :  { %473 = vmatprep.mubr.bf16.mxu1 %v750_v39 }
  0x28   :  { %699 = vmatpush3.bf16.msra.mxu0 %v747_v37 }
  0x29   :  { %700 = vmatprep.subr.bf16.mxu0 %v754_v41 }
  0x2b   :  { %425 = vmatmul.mubr.bf16.gmra.mrb[4].mxu0 %v752_v40 }
  0x2c   :  { %474 = vmatmul.mubr.bf16.gmra.mrb[4].mxu1 %v753_v42  ;;  %704 = vmatprep.mubr.msk.bf16.mxu0 %vm377_vm0, %v756_v43 }
  0x2d   :  { %701 = vmatpush3.bf16.msra.mxu0 %v754_v41 }
  0x2e   :  { %702 = vmatprep.subr.bf16.mxu0 %v755_v44 }
  0x31   :  { %703 = vmatpush3.bf16.msra.mxu0 %v755_v44 }
  0x34   :  { %705 = vmatmul.mubr.msk.bf16.vlgmr.msra.gmra.mrb[8].mxu0 %vm377_vm0, %v757_v45 }
  0xf6   :  { %v650_v46 = vpop.f32.mrb[0].mxu0 }
  0xf7   :  { %v678_v47 = vpop.f32.mrb[0].mxu1  ;;  %v651_v48 = vpop.f32.mrb[1].mxu0 }
  0xf8   :  { %v652_v49 = vadd.f32 %v651_v48, %v650_v46  ;;  %v679_v50 = vpop.f32.mrb[1].mxu1  ;;  %v653_v51 = vpop.f32.mrb[2].mxu0 }
  0xf9   :  { %v680_v52 = vadd.f32 %v679_v50, %v678_v47  ;;  %v681_v53 = vpop.f32.mrb[2].mxu1  ;;  %v654_v54 = vpop.f32.mrb[3].mxu0 }
  0xfa   :  { %v655_v55 = vadd.f32 %v654_v54, %v653_v51  ;;  %v682_v56 = vpop.f32.mrb[3].mxu1 }
  0xfb   :  { %v683_v57 = vadd.f32 %v682_v56, %v681_v53  ;;  %v468_v58 = vadd.f32 %v680_v52, %v652_v49 }
  0xfd   :  { %v471_v59 = vadd.f32 %v683_v57, %v655_v55 }
  0xfe   :  { %v656_v60 = vpop.f32.mrb[4].mxu0 }
  0xff   :  { %v684_v61 = vpop.f32.mrb[4].mxu1  ;;  %v657_v62 = vpop.f32.mrb[5].mxu0 }
 0x100   :  { %v658_v63 = vadd.f32 %v657_v62, %v656_v60  ;;  %v685_v0 = vpop.f32.mrb[5].mxu1  ;;  %v659_v1 = vpop.f32.mrb[6].mxu0 }
 0x101   :  { %v686_v2 = vadd.f32 %v685_v0, %v684_v61  ;;  %v687_v3 = vpop.f32.mrb[6].mxu1  ;;  %v660_v4 = vpop.f32.mrb[7].mxu0 }
 0x102   :  { %v661_v5 = vadd.f32 %v660_v4, %v659_v1  ;;  %v688_v6 = vpop.f32.mrb[7].mxu1 }
 0x103   :  { %v689_v7 = vadd.f32 %v688_v6, %v687_v3  ;;  %v476_v8 = vadd.f32 %v686_v2, %v658_v63 }
 0x105   :  { %v479_v9 = vadd.f32 %v689_v7, %v661_v5 }
 0x107   :  { %v706_v10 = vpop.f32.mrb[8].mxu0 }
 0x108   :  { %v525_v11 = vadd.f32 %v706_v10, %v476_v8  ;;  %v516_v12 = vpop.f32.mrb[9].mxu0 }
 0x109   :  { %v517_v13 = vadd.f32 %v516_v12, %v468_v58  ;;  %v707_v14 = vpop.f32.mrb[10].mxu0 }
 0x10a   :  { %548 = vst [vmem:[%s941_s2 + $0x10] sm:$0xff] %v525_v11  ;;  %v528_v15 = vadd.f32 %v707_v14, %v479_v9  ;;  %v519_v16 = vpop.f32.mrb[11].mxu0  ;;  %v561_v21 = vmul.f32 %v525_v11, %v525_v11 }
 0x10b   :  { %546 = vst [vmem:[%s941_s2] sm:$0xff] %v517_v13  ;;  %v520_v17 = vadd.f32 %v519_v16, %v471_v59  ;;  %v559_v18 = vmul.f32 %v517_v13, %v517_v13 }
 0x10c   :  { %549 = vst [vmem:[%s941_s2 + $0x18] sm:$0xff] %v528_v15  ;;  %v562_v24 = vmul.f32 %v528_v15, %v528_v15 }
 0x10d   :  { %547 = vst [vmem:[%s941_s2 + $0x8] sm:$0xff] %v520_v17  ;;  %v550_v19 = vadd.f32 %v520_v17, %v517_v13  ;;  %v560_v20 = vmul.f32 %v520_v17, %v520_v17 }
 0x10f   :  { %v551_v22 = vadd.f32 %v550_v19, %v525_v11  ;;  %v563_v23 = vadd.f32 %v560_v20, %v559_v18 }
 0x111   :  { %v552_v25 = vadd.f32 %v551_v22, %v528_v15  ;;  %v564_v26 = vadd.f32 %v563_v23, %v561_v21 }
 0x113   :  { %v553_v27 = vrot.slane %v552_v25, 4  ;;  %v565_v28 = vadd.f32 %v564_v26, %v562_v24 }
 0x115   :  { %v554_v29 = vadd.f32 %v553_v27, %v552_v25  ;;  %v566_v30 = vrot.slane %v565_v28, 4 }
 0x117   :  { %v555_v31 = vrot.slane %v554_v29, 2  ;;  %v567_v32 = vadd.f32 %v566_v30, %v565_v28 }
 0x119   :  { %v556_v33 = vadd.f32 %v555_v31, %v554_v29  ;;  %v568_v34 = vrot.slane %v567_v32, 2 }
 0x11b   :  { %v557_v35 = vrot.slane %v556_v33, 1  ;;  %v569_v36 = vadd.f32 %v568_v34, %v567_v32 }
 0x11d   :  { %v558_v37 = vadd.f32 %v557_v35, %v556_v33  ;;  %v570_v38 = vrot.slane %v569_v36, 1 }
 0x11f   :  { %v571_v39 = vadd.f32 %v570_v38, %v569_v36  ;;  %572 = vst [vmem:[%s942_s3] sm:$0xff] %v558_v37 }
 0x121   :  { %573 = vst [vmem:[%s943_s4] sm:$0xff] %v571_v39 }

// kernel: _lambda_.35
= control target key start
LH: loop header
LB: loop body
LE: loop exit
PB: predicated region body
PF: predicated region fallthrough
CT: control target
= control target key end

     0   :  { %v51_v20 = vlaneseq  ;;  %s179_s1 = inlined_call_operand.vmem [shape: f32[8,128], index: 1, kind: input, shape index: {}]   ;;  %s180_s2 = inlined_call_operand.vmem [shape: f32[8,128], index: 2, kind: input, shape index: {}]   ;;  %s181_s3 = inlined_call_operand.vmem [shape: f32[1,128], index: 3, kind: input, shape index: {}]   ;;  %s182_s4 = inlined_call_operand.vmem [shape: f32[1,128], index: 4, kind: input, shape index: {}]   ;;  %s183_s0 = inlined_call_operand.vmem [shape: f32[32,128], index: 0, kind: input, shape index: {}]   ;;  %s184_s5 = inlined_call_operand.vmem [shape: bf16[32,128], index: 5, kind: output, shape index: {}]  }
   0x1   :  { %v20_v0 = vld [vmem:[%s179_s1] sm:$0xff]  ;;  %v47_v28 = vld [vmem:[%s183_s0 + $0x8] sm:$0xff]  ;;  %v48_v29 = vld [vmem:[%s183_s0 + $0x10] sm:$0xff] }
   0x2   :  { %v28_v1 = vld [vmem:[%s180_s2] sm:$0xff]  ;;  %v21_v2 = vrot.slane %v20_v0, 4  ;;  %v52_v21 = vshrl.u32 %v51_v20, 7  ;;  %v49_v32 = vld [vmem:[%s183_s0 + $0x18] sm:$0xff] }
   0x3   :  { %v29_v3 = vrot.slane %v28_v1, 4  ;;  %v39_v22 = vld [vmem:[%s181_s3] sm:$0x1] }
   0x4   :  { %v22_v4 = vadd.f32 %v21_v2, %v20_v0  ;;  %v53_v23 = vsub.s32 0, %v52_v21  ;;  %v43_v26 = vld [vmem:[%s182_s4] sm:$0x1] }
   0x5   :  { %v30_v5 = vadd.f32 %v29_v3, %v28_v1  ;;  %v46_v27 = vld [vmem:[%s183_s0] sm:$0xff] }
   0x6   :  { %v23_v6 = vrot.slane %v22_v4, 2 }
   0x7   :  { %v31_v7 = vrot.slane %v30_v5, 2 }
   0x8   :  { %v24_v8 = vadd.f32 %v23_v6, %v22_v4 }
   0x9   :  { %v32_v9 = vadd.f32 %v31_v7, %v30_v5 }
   0xa   :  { %v25_v10 = vrot.slane %v24_v8, 1 }
   0xb   :  { %v33_v11 = vrot.slane %v32_v9, 1 }
   0xc   :  { %v26_v12 = vadd.f32 %v25_v10, %v24_v8 }
   0xd   :  { %v34_v13 = vadd.f32 %v33_v11, %v32_v9 }
   0xe   :  { %v27_v14 = vmul.f32 0.00390625, %v26_v12 }
   0xf   :  { %v35_v15 = vmul.f32 0.00390625, %v34_v13 }
  0x10   :  { %v36_v16 = vmul.f32 %v27_v14, %v27_v14 }
  0x12   :  { %v37_v17 = vsub.f32 %v35_v15, %v36_v16 }
  0x14   :  { %v38_v18 = vmax.f32 %v37_v17, 0.0 }
  0x16   :  { %v40_v19 = vadd.f32 1e-05, %v38_v18 }
  0x18   :  { %117 = vrsqrt.f32 %v40_v19 }
  0x22   :  { %v118_v24 = vpop.eup %117 }
  0x23   :  { %v42_v25 = vmul.f32 %v118_v24, %v39_v22 }
  0x25   :  { %v44_v30 = vmul.f32 %v42_v25, %v27_v14  ;;  %v54_v31 = vrot.slane %v42_v25, %v53_v23 }
  0x27   :  { %v45_v33 = vsub.f32 %v43_v26, %v44_v30  ;;  %v56_v34 = vmul.f32 %v54_v31, %v46_v27  ;;  %v57_v35 = vmul.f32 %v54_v31, %v47_v28  ;;  %v58_v36 = vmul.f32 %v54_v31, %v48_v29 }
  0x28   :  { %v59_v37 = vmul.f32 %v54_v31, %v49_v32 }
  0x29   :  { %v64_v38 = vrot.slane %v45_v33, %v53_v23 }
  0x2b   :  { %v66_v39 = vadd.f32 %v64_v38, %v56_v34  ;;  %v67_v40 = vadd.f32 %v64_v38, %v57_v35  ;;  %v68_v41 = vadd.f32 %v64_v38, %v58_v36  ;;  %v69_v42 = vadd.f32 %v64_v38, %v59_v37 }
  0x2d   :  { %v70_v43 = vmax.f32 %v66_v39, 0.0  ;;  %v71_v44 = vmax.f32 %v67_v40, 0.0  ;;  %v72_v45 = vmax.f32 %v68_v41, 0.0  ;;  %v73_v46 = vmax.f32 %v69_v42, 0.0 }
  0x2f   :  { %v109_v47 = vpack.c.bf16 %v71_v44, %v70_v43  ;;  %v114_v48 = vpack.c.bf16 %v73_v46, %v72_v45 }
  0x31   :  { %110 = vst [vmem:[%s184_s5] sm:$0xff] %v109_v47   ;;  %116 = vst [vmem:[%s184_s5 + $0x8] sm:$0xff] %v114_v48  }

// kernel: _lambda_.37
= control target key start
LH: loop header
LB: loop body
LE: loop exit
PB: predicated region body
PF: predicated region fallthrough
CT: control target
= control target key end

     0   :  { %v51_v20 = vlaneseq  ;;  %s175_s1 = inlined_call_operand.vmem [shape: f32[8,128], index: 1, kind: input, shape index: {}]   ;;  %s176_s2 = inlined_call_operand.vmem [shape: f32[8,128], index: 2, kind: input, shape index: {}]   ;;  %s177_s3 = inlined_call_operand.vmem [shape: f32[1,128], index: 3, kind: input, shape index: {}]   ;;  %s178_s4 = inlined_call_operand.vmem [shape: f32[1,128], index: 4, kind: input, shape index: {}]   ;;  %s179_s0 = inlined_call_operand.vmem [shape: f32[32,128], index: 0, kind: input, shape index: {}]   ;;  %s180_s5 = inlined_call_operand.vmem [shape: bf16[32,128], index: 5, kind: output, shape index: {}]  }
   0x1   :  { %v20_v0 = vld [vmem:[%s175_s1] sm:$0xff]  ;;  %v47_v28 = vld [vmem:[%s179_s0 + $0x8] sm:$0xff]  ;;  %v48_v29 = vld [vmem:[%s179_s0 + $0x10] sm:$0xff] }
   0x2   :  { %v28_v1 = vld [vmem:[%s176_s2] sm:$0xff]  ;;  %v21_v2 = vrot.slane %v20_v0, 4  ;;  %v52_v21 = vshrl.u32 %v51_v20, 7  ;;  %v49_v32 = vld [vmem:[%s179_s0 + $0x18] sm:$0xff] }
   0x3   :  { %v29_v3 = vrot.slane %v28_v1, 4  ;;  %v39_v22 = vld [vmem:[%s177_s3] sm:$0x1] }
   0x4   :  { %v22_v4 = vadd.f32 %v21_v2, %v20_v0  ;;  %v53_v23 = vsub.s32 0, %v52_v21  ;;  %v43_v26 = vld [vmem:[%s178_s4] sm:$0x1] }
   0x5   :  { %v30_v5 = vadd.f32 %v29_v3, %v28_v1  ;;  %v46_v27 = vld [vmem:[%s179_s0] sm:$0xff] }
   0x6   :  { %v23_v6 = vrot.slane %v22_v4, 2 }
   0x7   :  { %v31_v7 = vrot.slane %v30_v5, 2 }
   0x8   :  { %v24_v8 = vadd.f32 %v23_v6, %v22_v4 }
   0x9   :  { %v32_v9 = vadd.f32 %v31_v7, %v30_v5 }
   0xa   :  { %v25_v10 = vrot.slane %v24_v8, 1 }
   0xb   :  { %v33_v11 = vrot.slane %v32_v9, 1 }
   0xc   :  { %v26_v12 = vadd.f32 %v25_v10, %v24_v8 }
   0xd   :  { %v34_v13 = vadd.f32 %v33_v11, %v32_v9 }
   0xe   :  { %v27_v14 = vmul.f32 0.00390625, %v26_v12 }
   0xf   :  { %v35_v15 = vmul.f32 0.00390625, %v34_v13 }
  0x10   :  { %v36_v16 = vmul.f32 %v27_v14, %v27_v14 }
  0x12   :  { %v37_v17 = vsub.f32 %v35_v15, %v36_v16 }
  0x14   :  { %v38_v18 = vmax.f32 %v37_v17, 0.0 }
  0x16   :  { %v40_v19 = vadd.f32 1e-05, %v38_v18 }
  0x18   :  { %113 = vrsqrt.f32 %v40_v19 }
  0x22   :  { %v114_v24 = vpop.eup %113 }
  0x23   :  { %v42_v25 = vmul.f32 %v114_v24, %v39_v22 }
  0x25   :  { %v44_v30 = vmul.f32 %v42_v25, %v27_v14  ;;  %v54_v31 = vrot.slane %v42_v25, %v53_v23 }
  0x27   :  { %v45_v33 = vsub.f32 %v43_v26, %v44_v30  ;;  %v56_v34 = vmul.f32 %v54_v31, %v46_v27  ;;  %v57_v35 = vmul.f32 %v54_v31, %v47_v28  ;;  %v58_v36 = vmul.f32 %v54_v31, %v48_v29 }
  0x28   :  { %v59_v37 = vmul.f32 %v54_v31, %v49_v32 }
  0x29   :  { %v64_v38 = vrot.slane %v45_v33, %v53_v23 }
  0x2b   :  { %v66_v39 = vadd.f32 %v64_v38, %v56_v34  ;;  %v67_v40 = vadd.f32 %v64_v38, %v57_v35  ;;  %v68_v41 = vadd.f32 %v64_v38, %v58_v36  ;;  %v69_v42 = vadd.f32 %v64_v38, %v59_v37 }
  0x2d   :  { %v105_v43 = vpack.c.bf16 %v67_v40, %v66_v39  ;;  %v110_v44 = vpack.c.bf16 %v69_v42, %v68_v41 }
  0x2f   :  { %106 = vst [vmem:[%s180_s5] sm:$0xff] %v105_v43   ;;  %112 = vst [vmem:[%s180_s5 + $0x8] sm:$0xff] %v110_v44  }

// kernel: _lambda_.38
= control target key start
LH: loop header
LB: loop body
LE: loop exit
PB: predicated region body
PF: predicated region fallthrough
CT: control target
= control target key end

     0   :  { %s1086_s15 = smov 0   ;;  %s1088_s16 = smov 0   ;;  %s1205_s0 = inlined_call_operand.vmem [shape: bf16[32,1152], index: 0, kind: input, shape index: {}]   ;;  %s1206_s1 = inlined_call_operand.vmem [shape: bf16[1152,128], index: 1, kind: input, shape index: {}]   ;;  %s1207_s2 = inlined_call_operand.vmem [shape: f32[32,128], index: 2, kind: output, shape index: {0}]   ;;  %s1208_s3 = inlined_call_operand.vmem [shape: f32[8,128], index: 3, kind: output, shape index: {1}]   ;;  %s1209_s4 = inlined_call_operand.vmem [shape: f32[8,128], index: 4, kind: output, shape index: {2}]  }
   0x1   :  { %s1090_s17 = smov 0   ;;  %s1092_s18 = smov 0  }
   0x2   :  { %s1094_s19 = smov 0  }
   0x3 LB: > { %s24_s20 = sadd.s32 1, %s1054_s18  ;;  %p43_p1 = scmp.ne.s32.totalorder %s1046_s16, %s1042_s15  ;;  %s1058_s19 = sphi %s1094_s19, %s15_s19   ;;  %s1054_s18 = sphi %s1092_s18, %s1213_s18   ;;  %s1050_s17 = sphi %s1090_s17, %s1212_s17   ;;  %s1046_s16 = sphi %s1088_s16, %s1211_s16   ;;  %s1042_s15 = sphi %s1086_s15, %s1210_s15  }
   0x4   : > { %p25_p0 = scmp.ge.s32.totalorder %s24_s20, 3  ;;  %p44_p2 = scmp.eq.s32.totalorder %s1058_s19, 0 }
   0x5   : > { %s36_s22 = sadd.s32 1, %s1046_s16  ;;  %p836_p5 = scmp.ge.s32.totalorder %s1058_s19, 3 }
   0x6   : > { %s1215_s20 = smov (%p25_p0, %s24_s20), 0  ;;  %p45_p3 = por %p44_p2, %p43_p1 }
   0x7   : > { %s32_s21 = ssub.s32 %s1054_s18, %s1215_s20  ;;  %173 = sbr.rel (%p836_p5) target bundleno = 23 (0x17), region = 16 }
   0x8   : > { %p34_p4 = scmp.eq.s32.totalorder %s32_s21, 0 }
   0xa   : > { %s1121_s23 = scalar_select %p34_p4, %s1046_s16, %s36_s22  }
   0xe   : > { %176 = sbr.rel (!%p45_p3) target bundleno = 23 (0x17), region = 20  ;;  %s178_s24 = sand.u32 (%p45_p3), 1, %s1046_s16  }
   0xf   : > { %s886_s25 = smul.u32 (%p45_p3), 12, %s1054_s18 }
  0x10   : > { %s945_s26 = smul.u32 (%p45_p3), 48, %s178_s24 }
  0x11   : > { %s186_s29 = scalar_lea.vmem (%p45_p3), %s1205_s0, %s886_s25 }
  0x12   : > { %v201_v0 = vld [vmem:[%s186_s29] sm:$0xff] (%p45_p3)  ;;  %v205_v2 = vld [vmem:[%s186_s29 + $0x48] sm:$0xff] (%p45_p3)  ;;  %s180_s30 = scalar_lea.vmem (%p45_p3), [#allocation3], %s945_s26  ;;  %v842_v6 = vld [vmem:[%s186_s29 + $0x50] sm:$0xf] (%p45_p3) }
  0x13   : > { %v203_v1 = vld [vmem:[%s186_s29 + $0x24] sm:$0xff] (%p45_p3)  ;;  %202 = vst [vmem:[%s180_s30] sm:$0xff] (%p45_p3), %v201_v0  ;;  %206 = vst [vmem:[%s180_s30 + $0x18] sm:$0xff] (%p45_p3), %v205_v2  ;;  %v207_v3 = vld [vmem:[%s186_s29 + $0x6c] sm:$0xff] (%p45_p3) }
  0x14   : > { %204 = vst [vmem:[%s180_s30 + $0xc] sm:$0xff] (%p45_p3), %v203_v1  ;;  %v838_v4 = vld [vmem:[%s186_s29 + $0x8] sm:$0xf] (%p45_p3)  ;;  %v840_v5 = vld [vmem:[%s186_s29 + $0x2c] sm:$0xf] (%p45_p3)  ;;  %208 = vst [vmem:[%s180_s30 + $0x24] sm:$0xff] (%p45_p3), %v207_v3 }
  0x15   : > { %839 = vst [vmem:[%s180_s30 + $0x8] sm:$0xf] %v838_v4  ;;  %841 = vst [vmem:[%s180_s30 + $0x14] sm:$0xf] %v840_v5  ;;  %v844_v7 = vld [vmem:[%s186_s29 + $0x74] sm:$0xf] }
  0x16   : > { %843 = vst [vmem:[%s180_s30 + $0x20] sm:$0xf] %v842_v6  ;;  %845 = vst [vmem:[%s180_s30 + $0x2c] sm:$0xf] %v844_v7 }
  0x17 PF: > { %p846_p6 = scmp.ge.s32.totalorder %s1058_s19, 1  ;;  %p237_p7 = scmp.lt.s32.totalorder %s1058_s19, 4 }
  0x19   : > { %p238_p8 = pnand %p846_p6, %p237_p7 }
  0x1a   : > { %s244_s5 = sand.u32 (!%p238_p8), 1, %s1042_s15   ;;  %s284_s6 = smul.u32 (!%p238_p8), 48, %s1050_s17 }
  0x1b   : > { %241 = sbr.rel (%p238_p8) target bundleno = 328 (0x148), region = 50  ;;  %p848_p10 = scmp.ne.s32.totalorder (!%p238_p8), %s1050_s17, 0 }
  0x1c   : > { %s946_s7 = smul.u32 (!%p238_p8), 48, %s244_s5  ;;  %p285_p9 = scmp.lt.s32.totalorder (!%p238_p8), %s284_s6, 143 }
  0x1e   : > { %s1138_s12 = scalar_lea.vmem (!%p238_p8), [#allocation3], %s946_s7 }
  0x22   : > { %s1217_s6 = smov (!%p285_p9, %s284_s6), 143  ;;  %308 = sbr.rel (%p848_p10) target bundleno = 41 (0x29), region = 58 }
  0x23   : > { %s847_s8 = sshll.u32 %s1217_s6, 2  ;;  %v1060_v8 = vmov (!%p848_p10), 0.0  }
  0x24   : > { %s1136_s11 = scalar_lea.vmem %s1206_s1, %s847_s8  ;;  %309 = vst [vmem:[#allocation2] sm:$0xff] (!%p848_p10), %v1060_v8  ;;  %310 = vst [vmem:[#allocation2 + $0x8] sm:$0xff] (!%p848_p10), %v1060_v8 }
  0x25   : > { %311 = vst [vmem:[#allocation2 + $0x10] sm:$0xff] (!%p848_p10), %v1060_v8  ;;  %312 = vst [vmem:[#allocation2 + $0x18] sm:$0xff] (!%p848_p10), %v1060_v8 }
  0x29 PF: > { %v988_v9 = vld [vmem:[%s1136_s11 + $0x40] sm:$0xff]   ;;  %v991_v12 = vld [vmem:[%s1136_s11 + $0x48] sm:$0xff]   ;;  %v994_v15 = vld [vmem:[%s1136_s11 + $0x50] sm:$0xff]   ;;  %p879_p11 = scmp.ne.s32.totalorder %s1050_s17, 2 }
  0x2a   : > { %v989_v10 = vld [vmem:[%s1136_s11] sm:$0xff]   ;;  %887 = vmatprep.subr.bf16.mxu0 %v988_v9  ;;  %v992_v13 = vld [vmem:[%s1136_s11 + $0x8] sm:$0xff]   ;;  %v995_v16 = vld [vmem:[%s1136_s11 + $0x10] sm:$0xff]  }
  0x2b   : > { %v990_v11 = vld [vmem:[%s1136_s11 + $0x80] sm:$0xff]   ;;  %888 = vmatpush3.bf16.msra.mxu0 %v989_v10  ;;  %v993_v14 = vld [vmem:[%s1136_s11 + $0x88] sm:$0xff]   ;;  %v996_v17 = vld [vmem:[%s1136_s11 + $0x90] sm:$0xff]  }
  0x2c   : > { %925 = vmatprep.subr.bf16.mxu1 %v990_v11  ;;  %889 = vmatprep.subr.bf16.mxu0 %v991_v12  ;;  %v997_v18 = vld [vmem:[%s1136_s11 + $0x58] sm:$0xff]   ;;  %v1000_v21 = vld [vmem:[%s1136_s11 + $0x60] sm:$0xff]   ;;  %v1003_v24 = vld [vmem:[%s1136_s11 + $0x68] sm:$0xff]  }
  0x2d   : > { %926 = vmatpush3.bf16.msra.mxu1 %v990_v11  ;;  %v998_v19 = vld [vmem:[%s1136_s11 + $0x18] sm:$0xff]   ;;  %v1002_v22 = vld [vmem:[%s1136_s11 + $0xa0] sm:$0xff]   ;;  %v1005_v25 = vld [vmem:[%s1136_s11 + $0xa8] sm:$0xff]  }
  0x2e   : > { %927 = vmatprep.subr.bf16.mxu1 %v993_v14  ;;  %v999_v20 = vld [vmem:[%s1136_s11 + $0x98] sm:$0xff]   ;;  %v1001_v23 = vld [vmem:[%s1136_s11 + $0x20] sm:$0xff]   ;;  %v1004_v26 = vld [vmem:[%s1136_s11 + $0x28] sm:$0xff]  }
  0x2f   : > { %890 = vmatpush3.bf16.msra.mxu0 %v992_v13  ;;  %v1006_v27 = vld [vmem:[%s1136_s11 + $0x70] sm:$0xff]   ;;  %v1009_v30 = vld [vmem:[%s1136_s11 + $0x78] sm:$0xff]   ;;  %v313_v45 = vld [vmem:[#allocation2] sm:$0xff] }
  0x30   : > { %891 = vmatprep.subr.bf16.mxu0 %v994_v15  ;;  %v1007_v28 = vld [vmem:[%s1136_s11 + $0x30] sm:$0xff]   ;;  %v1011_v31 = vld [vmem:[%s1136_s11 + $0xb8] sm:$0xff]   ;;  %v314_v50 = vld [vmem:[#allocation2 + $0x8] sm:$0xff] }
  0x31   : > { %928 = vmatpush3.bf16.msra.mxu1 %v993_v14  ;;  %v1008_v29 = vld [vmem:[%s1136_s11 + $0xb0] sm:$0xff]   ;;  %v1010_v34 = vld [vmem:[%s1136_s11 + $0x38] sm:$0xff]  }
  0x32   : > { %929 = vmatprep.subr.bf16.mxu1 %v996_v17  ;;  %v1014_v32 = vld [vmem:[%s1138_s12 + $0x4] ss:$12 sps:$4 sm:$0xff]   ;;  %v1015_v33 = vld [vmem:[%s1138_s12 + $0x8] ss:$12 sps:$4 sm:$0xff]   ;;  %v1012_v35 = vld [vmem:[%s1138_s12] ss:$12 sps:$4 sm:$0xff]  }
  0x33   : > { %892 = vmatpush3.bf16.msra.mxu0 %v995_v16  ;;  %581 = vmatprep.mubr.bf16.mxu0 %v1014_v32  ;;  %v1017_v36 = vld [vmem:[%s1138_s12 + $0x1c] ss:$12 sps:$4 sm:$0xff]   ;;  %v1016_v37 = vld [vmem:[%s1138_s12 + $0x20] ss:$12 sps:$4 sm:$0xff]   ;;  %v1019_v38 = vld [vmem:[%s1138_s12 + $0x18] ss:$12 sps:$4 sm:$0xff]  }
  0x34   : > { %893 = vmatprep.subr.bf16.mxu0 %v997_v18  ;;  %941 = vmatprep.mubr.bf16.mxu1 %v1015_v33  ;;  %v315_v59 = vld [vmem:[#allocation2 + $0x10] sm:$0xff]  ;;  %v316_v63 = vld [vmem:[#allocation2 + $0x18] sm:$0xff] }
  0x35   : > { %930 = vmatpush3.bf16.msra.mxu1 %v996_v17 }
  0x36   : > { %931 = vmatprep.subr.bf16.mxu1 %v999_v20 }
  0x37   : > { %894 = vmatpush3.bf16.msra.mxu0 %v998_v19 }
  0x38   : > { %895 = vmatprep.subr.bf16.mxu0 %v1000_v21 }
  0x39   : > { %932 = vmatpush3.bf16.msra.mxu1 %v999_v20 }
  0x3a   : > { %933 = vmatprep.subr.bf16.mxu1 %v1002_v22 }
  0x3b   : > { %896 = vmatpush3.bf16.msra.mxu0 %v1001_v23 }
  0x3c   : > { %897 = vmatprep.subr.bf16.mxu0 %v1003_v24 }
  0x3d   : > { %934 = vmatpush3.bf16.msra.mxu1 %v1002_v22 }
  0x3e   : > { %935 = vmatprep.subr.bf16.mxu1 %v1005_v25 }
  0x3f   : > { %898 = vmatpush3.bf16.msra.mxu0 %v1004_v26 }
  0x40   : > { %899 = vmatprep.subr.bf16.mxu0 %v1006_v27 }
  0x41   : > { %936 = vmatpush3.bf16.msra.mxu1 %v1005_v25 }
  0x42   : > { %937 = vmatprep.subr.bf16.mxu1 %v1008_v29 }
  0x43   : > { %900 = vmatpush3.bf16.msra.mxu0 %v1007_v28 }
  0x44   : > { %901 = vmatprep.subr.bf16.mxu0 %v1009_v30 }
  0x45   : > { %938 = vmatpush3.bf16.msra.mxu1 %v1008_v29 }
  0x46   : > { %939 = vmatprep.subr.bf16.mxu1 %v1011_v31 }
  0x47   : > { %902 = vmatpush3.bf16.msra.mxu0 %v1010_v34 }
  0x49   : > { %940 = vmatpush3.bf16.msra.mxu1 %v1011_v31 }
  0x4a   : > { %582 = vmatmul.mubr.bf16.vlgmr.msra.gmra.mrb[0].mxu0 %v1012_v35 }
  0x4b   : > { %589 = vmatprep.mubr.bf16.mxu0 %v1017_v36 }
  0x4c   : > { %942 = vmatmul.mubr.bf16.vlgmr.msra.gmra.mrb[0].mxu1 %v1016_v37 }
  0x52   : > { %590 = vmatmul.mubr.bf16.gmra.mrb[4].mxu0 %v1019_v38 }
 0x11d   : > { %v903_v39 = vpop.f32.mrb[0].mxu0 }
 0x11e   : > { %v904_v40 = vpop.f32.mrb[1].mxu0 }
 0x11f   : > { %v905_v41 = vadd.f32 %v904_v40, %v903_v39  ;;  %v906_v42 = vpop.f32.mrb[2].mxu0  ;;  %v943_v43 = vpop.f32.mrb[0].mxu1 }
 0x120   : > { %v907_v44 = vpop.f32.mrb[3].mxu0  ;;  %v632_v46 = vpop.f32.mrb[1].mxu1 }
 0x121   : > { %v908_v47 = vadd.f32 %v907_v44, %v906_v42  ;;  %v633_v48 = vadd.f32 %v905_v41, %v632_v46  ;;  %v944_v49 = vpop.f32.mrb[2].mxu1 }
 0x122   : > { %v635_v51 = vpop.f32.mrb[3].mxu1 }
 0x123   : > { %v647_v52 = vadd.f32 %v633_v48, %v313_v45  ;;  %v636_v53 = vadd.f32 %v908_v47, %v635_v51 }
 0x125   : > { %651 = vst [vmem:[#allocation2] sm:$0xff] %v647_v52  ;;  %v648_v54 = vadd.f32 %v636_v53, %v314_v50  ;;  %v909_v55 = vpop.f32.mrb[4].mxu0 }
 0x126   : > { %v910_v56 = vpop.f32.mrb[5].mxu0 }
 0x127   : > { %652 = vst [vmem:[#allocation2 + $0x8] sm:$0xff] %v648_v54  ;;  %v911_v57 = vadd.f32 %v910_v56, %v909_v55  ;;  %v912_v58 = vpop.f32.mrb[6].mxu0 }
 0x128   : > { %v913_v60 = vpop.f32.mrb[7].mxu0 }
 0x129   : > { %v641_v61 = vadd.f32 %v943_v43, %v911_v57  ;;  %v914_v62 = vadd.f32 %v913_v60, %v912_v58  ;;  %658 = sbr.rel (%p879_p11) target bundleno = 328 (0x148), region = 62 }
 0x12b   : > { %v649_v0 = vadd.f32 %v641_v61, %v315_v59  ;;  %v644_v1 = vadd.f32 %v944_v49, %v914_v62 }
 0x12c   : > { %v659_v3 = vld [vmem:[#allocation2] sm:$0xff] (!%p879_p11) }
 0x12d   : > { %653 = vst [vmem:[#allocation2 + $0x10] sm:$0xff] %v649_v0  ;;  %v650_v2 = vadd.f32 %v644_v1, %v316_v63  ;;  %663 = vst [vmem:[%s1207_s2] sm:$0xff] (!%p879_p11), %v659_v3  ;;  %v676_v6 = vmul.f32 (!%p879_p11), %v659_v3, %v659_v3 }
 0x12e   : > { %v660_v4 = vld [vmem:[#allocation2 + $0x8] sm:$0xff] (!%p879_p11) }
 0x12f   : > { %654 = vst [vmem:[#allocation2 + $0x18] sm:$0xff] %v650_v2  ;;  %664 = vst [vmem:[%s1207_s2 + $0x8] sm:$0xff] (!%p879_p11), %v660_v4  ;;  %v667_v7 = vadd.f32 (!%p879_p11), %v660_v4, %v659_v3  ;;  %v677_v8 = vmul.f32 (!%p879_p11), %v660_v4, %v660_v4 }
 0x131   : > { %v680_v11 = vadd.f32 %v677_v8, %v676_v6 }
 0x134   : > { %v661_v5 = vld [vmem:[#allocation2 + $0x10] sm:$0xff] }
 0x135   : > { %665 = vst [vmem:[%s1207_s2 + $0x10] sm:$0xff] %v661_v5  ;;  %v678_v9 = vmul.f32 %v661_v5, %v661_v5  ;;  %v668_v12 = vadd.f32 %v667_v7, %v661_v5 }
 0x136   : > { %v662_v10 = vld [vmem:[#allocation2 + $0x18] sm:$0xff] }
 0x137   : > { %666 = vst [vmem:[%s1207_s2 + $0x18] sm:$0xff] %v662_v10  ;;  %v679_v13 = vmul.f32 %v662_v10, %v662_v10  ;;  %v681_v14 = vadd.f32 %v680_v11, %v678_v9  ;;  %v669_v15 = vadd.f32 %v668_v12, %v662_v10 }
 0x139   : > { %v670_v16 = vrot.slane %v669_v15, 4  ;;  %v682_v17 = vadd.f32 %v681_v14, %v679_v13 }
 0x13b   : > { %v671_v18 = vadd.f32 %v670_v16, %v669_v15  ;;  %v683_v19 = vrot.slane %v682_v17, 4 }
 0x13d   : > { %v672_v20 = vrot.slane %v671_v18, 2  ;;  %v684_v21 = vadd.f32 %v683_v19, %v682_v17 }
 0x13f   : > { %v673_v22 = vadd.f32 %v672_v20, %v671_v18  ;;  %v685_v23 = vrot.slane %v684_v21, 2 }
 0x141   : > { %v674_v24 = vrot.slane %v673_v22, 1  ;;  %v686_v25 = vadd.f32 %v685_v23, %v684_v21 }
 0x143   : > { %v675_v26 = vadd.f32 %v674_v24, %v673_v22  ;;  %v687_v27 = vrot.slane %v686_v25, 1 }
 0x145   : > { %689 = vst [vmem:[%s1208_s3] sm:$0xff] %v675_v26  ;;  %v688_v28 = vadd.f32 %v687_v27, %v686_v25 }
 0x147   : > { %690 = vst [vmem:[%s1209_s4] sm:$0xff] %v688_v28 }
 0x148 PF: > { %s15_s19 = sadd.s32 1, %s1058_s19   ;;  %s1210_s15 = smov %s1046_s16 }
 0x149   : > { %p12_p12 = scmp.ge.s32.totalorder %s15_s19, 5   ;;  %s1211_s16 = smov %s1121_s23 }
 0x14a   : > { %s1212_s17 = smov %s1054_s18  ;;  %s1213_s18 = smov %s1215_s20 }
 0x14b   :  { %14 = sbr.rel (!%p12_p12) target bundleno = 3 (0x3), region = 130 }

// kernel: _lambda_.36
= control target key start
LH: loop header
LB: loop body
LE: loop exit
PB: predicated region body
PF: predicated region fallthrough
CT: control target
= control target key end

     0   :  { %vm73_vm0 = vcmask 523264   ;;  %s277_s1 = inlined_call_operand.vmem [shape: bf16[64,128], index: 1, kind: input, shape index: {}]   ;;  %s278_s0 = inlined_call_operand.vmem [shape: bf16[32,64], index: 0, kind: input, shape index: {}]   ;;  %s279_s2 = inlined_call_operand.vmem [shape: f32[32,128], index: 2, kind: output, shape index: {0}]   ;;  %s280_s3 = inlined_call_operand.vmem [shape: f32[8,128], index: 3, kind: output, shape index: {1}]   ;;  %s281_s4 = inlined_call_operand.vmem [shape: f32[8,128], index: 4, kind: output, shape index: {2}]  }
   0x1   :  { %v210_v0 = vld [vmem:[%s277_s1] sm:$0xff]   ;;  %v211_v1 = vld [vmem:[%s277_s1 + $0x8] sm:$0xff]   ;;  %v212_v2 = vld [vmem:[%s277_s1 + $0x10] sm:$0xff]  }
   0x2   :  { %198 = vmatprep.subr.bf16.mxu0 %v210_v0  ;;  %v214_v3 = vld [vmem:[%s278_s0] sm:$0xff]   ;;  %v213_v4 = vld [vmem:[%s277_s1 + $0x18] sm:$0xff]   ;;  %v215_v5 = vld [vmem:[%s278_s0 + $0x8] sm:$0xff]  }
   0x3   :  { %199 = vmatpush3.bf16.msra.mxu0 %v210_v0  ;;  %206 = vmatprep.mubr.msk.bf16.mxu0 %vm73_vm0, %v214_v3 }
   0x4   :  { %200 = vmatprep.subr.bf16.mxu0 %v211_v1 }
   0x7   :  { %201 = vmatpush3.bf16.msra.mxu0 %v211_v1 }
   0x8   :  { %202 = vmatprep.subr.bf16.mxu0 %v212_v2 }
   0xb   :  { %203 = vmatpush3.bf16.msra.mxu0 %v212_v2 }
   0xc   :  { %204 = vmatprep.subr.bf16.mxu0 %v213_v4 }
   0xf   :  { %205 = vmatpush3.bf16.msra.mxu0 %v213_v4 }
  0x12   :  { %207 = vmatmul.mubr.msk.bf16.vlgmr.msra.gmra.mrb[0].mxu0 %vm73_vm0, %v215_v5 }
  0xe5   :  { %v208_v6 = vpop.f32.mrb[0].mxu0 }
  0xe6   :  { %146 = vst [vmem:[%s279_s2 + $0x10] sm:$0xff] %v208_v6  ;;  %v114_v7 = vpop.f32.mrb[1].mxu0  ;;  %v159_v13 = vmul.f32 %v208_v6, %v208_v6 }
  0xe7   :  { %144 = vst [vmem:[%s279_s2] sm:$0xff] %v114_v7  ;;  %v209_v8 = vpop.f32.mrb[2].mxu0  ;;  %v157_v10 = vmul.f32 %v114_v7, %v114_v7 }
  0xe8   :  { %147 = vst [vmem:[%s279_s2 + $0x18] sm:$0xff] %v209_v8  ;;  %v117_v9 = vpop.f32.mrb[3].mxu0  ;;  %v160_v16 = vmul.f32 %v209_v8, %v209_v8 }
  0xe9   :  { %145 = vst [vmem:[%s279_s2 + $0x8] sm:$0xff] %v117_v9  ;;  %v148_v11 = vadd.f32 %v117_v9, %v114_v7  ;;  %v158_v12 = vmul.f32 %v117_v9, %v117_v9 }
  0xeb   :  { %v149_v14 = vadd.f32 %v208_v6, %v148_v11  ;;  %v161_v15 = vadd.f32 %v158_v12, %v157_v10 }
  0xed   :  { %v150_v17 = vadd.f32 %v209_v8, %v149_v14  ;;  %v162_v18 = vadd.f32 %v161_v15, %v159_v13 }
  0xef   :  { %v151_v19 = vrot.slane %v150_v17, 4  ;;  %v163_v20 = vadd.f32 %v162_v18, %v160_v16 }
  0xf1   :  { %v152_v21 = vadd.f32 %v151_v19, %v150_v17  ;;  %v164_v22 = vrot.slane %v163_v20, 4 }
  0xf3   :  { %v153_v23 = vrot.slane %v152_v21, 2  ;;  %v165_v24 = vadd.f32 %v164_v22, %v163_v20 }
  0xf5   :  { %v154_v25 = vadd.f32 %v153_v23, %v152_v21  ;;  %v166_v26 = vrot.slane %v165_v24, 2 }
  0xf7   :  { %v155_v27 = vrot.slane %v154_v25, 1  ;;  %v167_v28 = vadd.f32 %v166_v26, %v165_v24 }
  0xf9   :  { %v156_v29 = vadd.f32 %v155_v27, %v154_v25  ;;  %v168_v30 = vrot.slane %v167_v28, 1 }
  0xfb   :  { %v169_v31 = vadd.f32 %v168_v30, %v167_v28  ;;  %170 = vst [vmem:[%s280_s3] sm:$0xff] %v156_v29 }
  0xfd   :  { %171 = vst [vmem:[%s281_s4] sm:$0xff] %v169_v31 }

// kernel: _lambda_.39
= control target key start
LH: loop header
LB: loop body
LE: loop exit
PB: predicated region body
PF: predicated region fallthrough
CT: control target
= control target key end

     0   :  { %v54_v20 = vlaneseq  ;;  %s214_s1 = inlined_call_operand.vmem [shape: f32[8,128], index: 1, kind: input, shape index: {}]   ;;  %s215_s2 = inlined_call_operand.vmem [shape: f32[8,128], index: 2, kind: input, shape index: {}]   ;;  %s216_s3 = inlined_call_operand.vmem [shape: f32[1,128], index: 3, kind: input, shape index: {}]   ;;  %s217_s4 = inlined_call_operand.vmem [shape: f32[1,128], index: 4, kind: input, shape index: {}]   ;;  %s218_s0 = inlined_call_operand.vmem [shape: f32[32,128], index: 0, kind: input, shape index: {}]   ;;  %s219_s5 = inlined_call_operand.vmem [shape: bf16[32,128], index: 5, kind: input, shape index: {}]   ;;  %s220_s6 = inlined_call_operand.vmem [shape: bf16[32,128], index: 6, kind: output, shape index: {}]  }
   0x1   :  { %v23_v0 = vld [vmem:[%s214_s1] sm:$0xff]  ;;  %v50_v28 = vld [vmem:[%s218_s0 + $0x8] sm:$0xff]  ;;  %v51_v29 = vld [vmem:[%s218_s0 + $0x10] sm:$0xff] }
   0x2   :  { %v31_v1 = vld [vmem:[%s215_s2] sm:$0xff]  ;;  %v24_v2 = vrot.slane %v23_v0, 4  ;;  %v55_v21 = vshrl.u32 %v54_v20, 7  ;;  %v52_v33 = vld [vmem:[%s218_s0 + $0x18] sm:$0xff]  ;;  %v139_v34 = vld [vmem:[%s219_s5 + $0x8] sm:$0xff]  }
   0x3   :  { %v32_v3 = vrot.slane %v31_v1, 4  ;;  %v42_v22 = vld [vmem:[%s216_s3] sm:$0x1]  ;;  %v127_v43 = vunpack.c.l.bf16 %v139_v34  ;;  %v128_v44 = vunpack.c.h.bf16 %v139_v34 }
   0x4   :  { %v25_v4 = vadd.f32 %v24_v2, %v23_v0  ;;  %v56_v23 = vsub.s32 0, %v55_v21  ;;  %v46_v26 = vld [vmem:[%s217_s4] sm:$0x1] }
   0x5   :  { %v33_v5 = vadd.f32 %v32_v3, %v31_v1  ;;  %v49_v27 = vld [vmem:[%s218_s0] sm:$0xff] }
   0x6   :  { %v26_v6 = vrot.slane %v25_v4, 2  ;;  %v122_v32 = vld [vmem:[%s219_s5] sm:$0xff]  }
   0x7   :  { %v34_v7 = vrot.slane %v33_v5, 2  ;;  %v123_v39 = vunpack.c.l.bf16 %v122_v32  ;;  %v124_v42 = vunpack.c.h.bf16 %v122_v32 }
   0x8   :  { %v27_v8 = vadd.f32 %v26_v6, %v25_v4 }
   0x9   :  { %v35_v9 = vadd.f32 %v34_v7, %v33_v5 }
   0xa   :  { %v28_v10 = vrot.slane %v27_v8, 1 }
   0xb   :  { %v36_v11 = vrot.slane %v35_v9, 1 }
   0xc   :  { %v29_v12 = vadd.f32 %v28_v10, %v27_v8 }
   0xd   :  { %v37_v13 = vadd.f32 %v36_v11, %v35_v9 }
   0xe   :  { %v30_v14 = vmul.f32 0.00390625, %v29_v12 }
   0xf   :  { %v38_v15 = vmul.f32 0.00390625, %v37_v13 }
  0x10   :  { %v39_v16 = vmul.f32 %v30_v14, %v30_v14 }
  0x12   :  { %v40_v17 = vsub.f32 %v38_v15, %v39_v16 }
  0x14   :  { %v41_v18 = vmax.f32 %v40_v17, 0.0 }
  0x16   :  { %v43_v19 = vadd.f32 1e-05, %v41_v18 }
  0x18   :  { %141 = vrsqrt.f32 %v43_v19 }
  0x22   :  { %v142_v24 = vpop.eup %141 }
  0x23   :  { %v45_v25 = vmul.f32 %v142_v24, %v42_v22 }
  0x25   :  { %v47_v30 = vmul.f32 %v45_v25, %v30_v14  ;;  %v57_v31 = vrot.slane %v45_v25, %v56_v23 }
  0x27   :  { %v48_v35 = vsub.f32 %v46_v26, %v47_v30  ;;  %v59_v36 = vmul.f32 %v57_v31, %v49_v27  ;;  %v60_v37 = vmul.f32 %v57_v31, %v50_v28  ;;  %v61_v38 = vmul.f32 %v57_v31, %v51_v29 }
  0x28   :  { %v62_v40 = vmul.f32 %v57_v31, %v52_v33 }
  0x29   :  { %v67_v41 = vrot.slane %v48_v35, %v56_v23 }
  0x2b   :  { %v69_v45 = vadd.f32 %v67_v41, %v59_v36  ;;  %v70_v46 = vadd.f32 %v67_v41, %v60_v37  ;;  %v71_v47 = vadd.f32 %v67_v41, %v61_v38  ;;  %v72_v48 = vadd.f32 %v67_v41, %v62_v40 }
  0x2d   :  { %v81_v49 = vadd.f32 %v123_v39, %v69_v45  ;;  %v82_v50 = vadd.f32 %v124_v42, %v70_v46  ;;  %v83_v51 = vadd.f32 %v127_v43, %v71_v47  ;;  %v84_v52 = vadd.f32 %v128_v44, %v72_v48 }
  0x2f   :  { %v85_v53 = vmax.f32 %v81_v49, 0.0  ;;  %v86_v54 = vmax.f32 %v82_v50, 0.0  ;;  %v87_v55 = vmax.f32 %v83_v51, 0.0  ;;  %v88_v56 = vmax.f32 %v84_v52, 0.0 }
  0x31   :  { %v132_v57 = vpack.c.bf16 %v86_v54, %v85_v53  ;;  %v137_v58 = vpack.c.bf16 %v88_v56, %v87_v55 }
  0x33   :  { %133 = vst [vmem:[%s220_s6] sm:$0xff] %v132_v57   ;;  %140 = vst [vmem:[%s220_s6 + $0x8] sm:$0xff] %v137_v58  }

// kernel: _lambda_.41
= control target key start
LH: loop header
LB: loop body
LE: loop exit
PB: predicated region body
PF: predicated region fallthrough
CT: control target
= control target key end

     0   :  { %v154_v40 = vmov 1966171168   ;;  %v69_v42 = vlaneseq  ;;  %s212_s1 = inlined_call_operand.vmem [shape: f32[8,256], index: 1, kind: input, shape index: {}]   ;;  %s213_s2 = inlined_call_operand.vmem [shape: f32[8,256], index: 2, kind: input, shape index: {}]   ;;  %s214_s3 = inlined_call_operand.vmem [shape: f32[1,256], index: 3, kind: input, shape index: {}]   ;;  %s215_s0 = inlined_call_operand.vmem [shape: f32[8,256], index: 0, kind: input, shape index: {}]   ;;  %s216_s4 = inlined_call_operand.vmem [shape: f32[1,256], index: 4, kind: input, shape index: {}]   ;;  %s217_s5 = inlined_call_operand.vmem [shape: bf16[8,256], index: 5, kind: output, shape index: {}]  }
   0x1   :  { %v20_v0 = vld [vmem:[%s212_s1] sm:$0xff]  ;;  %v21_v1 = vld [vmem:[%s212_s1 + $0x8] sm:$0xff]  ;;  %v67_v41 = vunpack.c.l.s4 %v154_v40 }
   0x2   :  { %v36_v2 = vld [vmem:[%s213_s2] sm:$0xff]  ;;  %v22_v3 = vrot.slane %v20_v0, 4  ;;  %v28_v4 = vrot.slane %v21_v1, 4  ;;  %v37_v5 = vld [vmem:[%s213_s2 + $0x8] sm:$0xff]  ;;  %v70_v44 = vshrl.u32 %v69_v42, 7 }
   0x3   :  { %v38_v6 = vrot.slane %v36_v2, 4  ;;  %v44_v7 = vrot.slane %v37_v5, 4  ;;  %v68_v43 = vunpack.c.0.s8 %v67_v41  ;;  %v58_v50 = vld [vmem:[%s214_s3] sm:$0x3]  ;;  %v116_v63 = vld [vmem:[%s215_s0 + $0x8] sm:$0xff] }
   0x4   :  { %v23_v8 = vadd.f32 %v22_v3, %v20_v0  ;;  %v29_v9 = vadd.f32 %v28_v4, %v21_v1  ;;  %v86_v52 = vsub.s32 0, %v70_v44  ;;  %v90_v53 = vsub.s32 1, %v70_v44  ;;  %v82_v61 = vld [vmem:[%s216_s4] sm:$0x3] }
   0x5   :  { %v39_v10 = vadd.f32 %v38_v6, %v36_v2  ;;  %v45_v11 = vadd.f32 %v44_v7, %v37_v5  ;;  %v71_v46 = vsub.s32 %v68_v43, %v70_v44  ;;  %v115_v62 = vld [vmem:[%s215_s0] sm:$0xff] }
   0x6   :  { %v24_v12 = vrot.slane %v23_v8, 2  ;;  %v30_v13 = vrot.slane %v29_v9, 2 }
   0x7   :  { %v40_v14 = vrot.slane %v39_v10, 2  ;;  %v46_v15 = vrot.slane %v45_v11, 2 }
   0x8   :  { %v25_v16 = vadd.f32 %v24_v12, %v23_v8  ;;  %v31_v17 = vadd.f32 %v30_v13, %v29_v9 }
   0x9   :  { %v41_v18 = vadd.f32 %v40_v14, %v39_v10  ;;  %v47_v19 = vadd.f32 %v46_v15, %v45_v11 }
   0xa   :  { %v26_v20 = vrot.slane %v25_v16, 1  ;;  %v32_v21 = vrot.slane %v31_v17, 1 }
   0xb   :  { %v42_v22 = vrot.slane %v41_v18, 1  ;;  %v48_v23 = vrot.slane %v47_v19, 1 }
   0xc   :  { %v27_v24 = vadd.f32 %v26_v20, %v25_v16  ;;  %v33_v25 = vadd.f32 %v32_v21, %v31_v17 }
   0xd   :  { %v43_v26 = vadd.f32 %v42_v22, %v41_v18  ;;  %v49_v27 = vadd.f32 %v48_v23, %v47_v19 }
   0xe   :  { %v34_v28 = vmul.f32 0.015625, %v27_v24  ;;  %v35_v29 = vmul.f32 0.015625, %v33_v25 }
   0xf   :  { %v50_v30 = vmul.f32 0.015625, %v43_v26  ;;  %v51_v31 = vmul.f32 0.015625, %v49_v27 }
  0x10   :  { %v52_v32 = vmul.f32 %v34_v28, %v34_v28  ;;  %v53_v33 = vmul.f32 %v35_v29, %v35_v29 }
  0x12   :  { %v54_v34 = vsub.f32 %v50_v30, %v52_v32  ;;  %v55_v35 = vsub.f32 %v51_v31, %v53_v33 }
  0x14   :  { %v56_v36 = vmax.f32 %v54_v34, 0.0  ;;  %v57_v37 = vmax.f32 %v55_v35, 0.0 }
  0x16   :  { %v59_v38 = vadd.f32 1e-05, %v56_v36  ;;  %v60_v39 = vadd.f32 1e-05, %v57_v37 }
  0x18   :  { %150 = vrsqrt.f32 %v59_v38 }
  0x19   :  { %152 = vrsqrt.f32 %v60_v39 }
  0x22   :  { %v151_v45 = vpop.eup %150 }
  0x23   :  { %v153_v47 = vpop.eup %152 }
  0x24   :  { %v65_v48 = vcombine.low %v151_v45, %v153_v47 }
  0x26   :  { %v72_v49 = vrot.slane %v65_v48, %v71_v46 }
  0x28   :  { %v79_v51 = vrot.slane %v72_v49, %v71_v46 }
  0x2a   :  { %v81_v54 = vmul.f32 %v79_v51, %v58_v50 }
  0x2c   :  { %v87_v55 = vrot.slane %v81_v54, %v86_v52  ;;  %v91_v56 = vrot.slane %v81_v54, %v90_v53 }
  0x2e   :  { %v94_v57 = vmul.f32 %v87_v55, %v34_v28  ;;  %v95_v58 = vmul.f32 %v91_v56, %v35_v29  ;;  %v117_v2 = vmul.f32 %v115_v62, %v87_v55  ;;  %v118_v3 = vmul.f32 %v116_v63, %v91_v56 }
  0x30   :  { %v98_v59 = vcombine.low %v94_v57, %v95_v58 }
  0x32   :  { %v105_v60 = vrot.slane %v98_v59, %v71_v46 }
  0x34   :  { %v112_v0 = vrot.slane %v105_v60, %v71_v46 }
  0x36   :  { %v114_v1 = vsub.f32 %v82_v61, %v112_v0 }
  0x38   :  { %v123_v4 = vrot.slane %v114_v1, %v86_v52  ;;  %v127_v5 = vrot.slane %v114_v1, %v90_v53 }
  0x3a   :  { %v130_v6 = vadd.f32 %v123_v4, %v117_v2  ;;  %v131_v7 = vadd.f32 %v127_v5, %v118_v3 }
  0x3c   :  { %v132_v8 = vmax.f32 %v130_v6, 0.0  ;;  %v133_v9 = vmax.f32 %v131_v7, 0.0 }
  0x3e   :  { %v148_v10 = vpack.c.bf16 %v133_v9, %v132_v8 }
  0x40   :  { %142 = vst [vmem:[%s217_s5] sm:$0xff] %v148_v10 }

// kernel: _lambda_.40
= control target key start
LH: loop header
LB: loop body
LE: loop exit
PB: predicated region body
PF: predicated region fallthrough
CT: control target
= control target key end

     0   :  { %s1067_s15 = smov 0   ;;  %s1069_s16 = smov 0   ;;  %s1178_s0 = inlined_call_operand.vmem [shape: bf16[8,1152], index: 0, kind: input, shape index: {}]   ;;  %s1179_s1 = inlined_call_operand.vmem [shape: bf16[1152,256], index: 1, kind: input, shape index: {}]   ;;  %s1180_s2 = inlined_call_operand.vmem [shape: f32[8,256], index: 2, kind: output, shape index: {0}]   ;;  %s1181_s3 = inlined_call_operand.vmem [shape: f32[8,256], index: 3, kind: output, shape index: {1}]   ;;  %s1182_s4 = inlined_call_operand.vmem [shape: f32[8,256], index: 4, kind: output, shape index: {2}]  }
   0x1   :  { %s1071_s17 = smov 0  }
   0x2 LB: > { %s24_s18 = sadd.s32 1, %s1034_s16  ;;  %p852_p0 = scmp.ge.s32.totalorder %s1038_s17, 1  ;;  %s1038_s17 = sphi %s1071_s17, %s15_s17   ;;  %s1034_s16 = sphi %s1069_s16, %s1184_s16   ;;  %s1030_s15 = sphi %s1067_s15, %s1183_s15  }
   0x3   : > { %p25_p1 = scmp.ge.s32.totalorder %s24_s18, 3  ;;  %p198_p2 = scmp.lt.s32.totalorder %s1038_s17, 4 }
   0x5   : > { %s1186_s18 = smov (%p25_p1, %s24_s18), 0  ;;  %p199_p3 = pnand %p852_p0, %p198_p2 }
   0x6   : > { %s244_s19 = smul.u32 (!%p199_p3), 3, %s1030_s15  ;;  %p856_p6 = scmp.ne.s32.totalorder (!%p199_p3), %s1030_s15, 0 }
   0x7   : > { %202 = sbr.rel (%p199_p3) target bundleno = 329 (0x149), region = 28 }
   0x8   : > { %s254_s20 = smul.u32 (!%p199_p3), 48, %s1030_s15  ;;  %p247_p4 = scmp.lt.s32.totalorder (!%p199_p3), %s244_s19, 8 }
   0xa   : > { %p255_p5 = scmp.lt.s32.totalorder (!%p199_p3), %s254_s20, 143 }
   0xe   : > { %s1188_s19 = smov (!%p247_p4, %s244_s19), 8  ;;  %s1190_s20 = smov (!%p255_p5, %s254_s20), 143 }
   0xf   : > { %s853_s21 = sshll.u32 %s1188_s19, 2  ;;  %s914_s25 = sshll.u32 %s1190_s20, 3  ;;  %v1040_v0 = vmov (!%p856_p6), 0.0  }
  0x10   : > { %s1092_s24 = scalar_lea.vmem %s1178_s0, %s853_s21  ;;  %s1097_s28 = scalar_lea.vmem %s1179_s1, %s914_s25  ;;  %281 = vst [vmem:[#allocation2] sm:$0xff] (!%p856_p6), %v1040_v0  ;;  %282 = vst [vmem:[#allocation2 + $0x8] sm:$0xff] (!%p856_p6), %v1040_v0 }
  0x11   : > { %280 = sbr.rel (%p856_p6) target bundleno = 24 (0x18), region = 32 }
  0x18 PF: > { %v941_v1 = vld [vmem:[%s1097_s28 + $0x4] ss:$8 sps:$4 sm:$0xff]   ;;  %v943_v2 = vld [vmem:[%s1097_s28] ss:$8 sps:$4 sm:$0xff]   ;;  %v1041_v3 = vmov 0   ;;  %p908_p7 = scmp.ne.s32.totalorder %s1030_s15, 2 }
  0x19   : > { %659 = vmatprep.mubr.bf16.mxu1 %v1041_v3  ;;  %586 = vmatprep.subr.bf16.mxu0 %v941_v1  ;;  %v944_v4 = vld [vmem:[%s1097_s28 + $0x14] ss:$8 sps:$4 sm:$0xff]   ;;  %v946_v5 = vld [vmem:[%s1097_s28 + $0x10] ss:$8 sps:$4 sm:$0xff]   ;;  %v947_v6 = vld [vmem:[%s1097_s28 + $0x24] ss:$8 sps:$4 sm:$0xff]  }
  0x1a   : > { %587 = vmatpush1.bf16.msra.mxu0 %v943_v2  ;;  %v949_v7 = vld [vmem:[%s1097_s28 + $0x20] ss:$8 sps:$4 sm:$0xff]   ;;  %v950_v8 = vld [vmem:[%s1097_s28 + $0x34] ss:$8 sps:$4 sm:$0xff]   ;;  %v952_v9 = vld [vmem:[%s1097_s28 + $0x30] ss:$8 sps:$4 sm:$0xff]  }
  0x1b   : > { %588 = vmatprep.subr.bf16.mxu0 %v944_v4  ;;  %v965_v10 = vld [vmem:[%s1097_s28 + $0x104] ss:$8 sps:$4 sm:$0xff]   ;;  %v967_v11 = vld [vmem:[%s1097_s28 + $0x100] ss:$8 sps:$4 sm:$0xff]   ;;  %v971_v13 = vld [vmem:[%s1097_s28 + $0x114] ss:$8 sps:$4 sm:$0xff]  }
  0x1c   : > { %v953_v12 = vld [vmem:[%s1097_s28 + $0x44] ss:$8 sps:$4 sm:$0xff]   ;;  %627 = vmatprep.subr.bf16.mxu1 %v965_v10  ;;  %v973_v14 = vld [vmem:[%s1097_s28 + $0x110] ss:$8 sps:$4 sm:$0xff]   ;;  %v955_v15 = vld [vmem:[%s1097_s28 + $0x40] ss:$8 sps:$4 sm:$0xff]  }
  0x1d   : > { %628 = vmatpush1.bf16.msra.mxu1 %v967_v11  ;;  %v956_v16 = vld [vmem:[%s1097_s28 + $0x54] ss:$8 sps:$4 sm:$0xff]   ;;  %v977_v17 = vld [vmem:[%s1097_s28 + $0x124] ss:$8 sps:$4 sm:$0xff]   ;;  %v979_v18 = vld [vmem:[%s1097_s28 + $0x120] ss:$8 sps:$4 sm:$0xff]  }
  0x1e   : > { %589 = vmatpush1.bf16.msra.mxu0 %v946_v5  ;;  %629 = vmatprep.subr.bf16.mxu1 %v971_v13  ;;  %v958_v19 = vld [vmem:[%s1097_s28 + $0x50] ss:$8 sps:$4 sm:$0xff]   ;;  %v983_v20 = vld [vmem:[%s1097_s28 + $0x134] ss:$8 sps:$4 sm:$0xff]   ;;  %v959_v21 = vld [vmem:[%s1097_s28 + $0x64] ss:$8 sps:$4 sm:$0xff]  }
  0x1f   : > { %590 = vmatprep.subr.bf16.mxu0 %v947_v6  ;;  %v985_v22 = vld [vmem:[%s1097_s28 + $0x130] ss:$8 sps:$4 sm:$0xff]   ;;  %v961_v23 = vld [vmem:[%s1097_s28 + $0x60] ss:$8 sps:$4 sm:$0xff]   ;;  %v989_v24 = vld [vmem:[%s1097_s28 + $0x144] ss:$8 sps:$4 sm:$0xff]  }
  0x20   : > { %v962_v25 = vld [vmem:[%s1097_s28 + $0x74] ss:$8 sps:$4 sm:$0xff]   ;;  %v991_v26 = vld [vmem:[%s1097_s28 + $0x140] ss:$8 sps:$4 sm:$0xff]   ;;  %v964_v27 = vld [vmem:[%s1097_s28 + $0x70] ss:$8 sps:$4 sm:$0xff]  }
  0x21   : > { %630 = vmatpush1.bf16.msra.mxu1 %v973_v14  ;;  %v995_v28 = vld [vmem:[%s1097_s28 + $0x154] ss:$8 sps:$4 sm:$0xff]   ;;  %v968_v29 = vld [vmem:[%s1097_s28 + $0x84] ss:$8 sps:$4 sm:$0xff]   ;;  %v997_v30 = vld [vmem:[%s1097_s28 + $0x150] ss:$8 sps:$4 sm:$0xff]  }
  0x22   : > { %591 = vmatpush1.bf16.msra.mxu0 %v949_v7  ;;  %631 = vmatprep.subr.bf16.mxu1 %v977_v17  ;;  %v970_v31 = vld [vmem:[%s1097_s28 + $0x80] ss:$8 sps:$4 sm:$0xff]   ;;  %v1001_v32 = vld [vmem:[%s1097_s28 + $0x164] ss:$8 sps:$4 sm:$0xff]   ;;  %v974_v33 = vld [vmem:[%s1097_s28 + $0x94] ss:$8 sps:$4 sm:$0xff]  }
  0x23   : > { %592 = vmatprep.subr.bf16.mxu0 %v950_v8  ;;  %v285_v34 = vld [vmem:[%s1092_s24] sm:$0xff]  ;;  %v976_v37 = vld [vmem:[%s1097_s28 + $0x90] ss:$8 sps:$4 sm:$0xff]   ;;  %v1007_v38 = vld [vmem:[%s1097_s28 + $0x174] ss:$8 sps:$4 sm:$0xff]  }
  0x24   : > { %v858_v35 = vcombine.high %v285_v34, %v285_v34  ;;  %v1003_v36 = vld [vmem:[%s1097_s28 + $0x160] ss:$8 sps:$4 sm:$0xff]   ;;  %v980_v39 = vld [vmem:[%s1097_s28 + $0xa4] ss:$8 sps:$4 sm:$0xff]   ;;  %v1009_v40 = vld [vmem:[%s1097_s28 + $0x170] ss:$8 sps:$4 sm:$0xff]   ;;  %v857_v53 = vcombine.low %v285_v34, %v285_v34 }
  0x25   : > { %632 = vmatpush1.bf16.msra.mxu1 %v979_v18  ;;  %v982_v41 = vld [vmem:[%s1097_s28 + $0xa0] ss:$8 sps:$4 sm:$0xff]   ;;  %v986_v42 = vld [vmem:[%s1097_s28 + $0xb4] ss:$8 sps:$4 sm:$0xff]   ;;  %v988_v44 = vld [vmem:[%s1097_s28 + $0xb0] ss:$8 sps:$4 sm:$0xff]  }
  0x26   : > { %593 = vmatpush1.bf16.msra.mxu0 %v952_v9  ;;  %633 = vmatprep.subr.bf16.mxu1 %v983_v20  ;;  %v1013_v43 = vld [vmem:[%s1092_s24 + $0x8] ss:$0 sps:$4 sm:$0xff]   ;;  %v992_v45 = vld [vmem:[%s1097_s28 + $0xc4] ss:$8 sps:$4 sm:$0xff]   ;;  %v998_v47 = vld [vmem:[%s1097_s28 + $0xd4] ss:$8 sps:$4 sm:$0xff]  }
  0x27   : > { %594 = vmatprep.subr.bf16.mxu0 %v953_v12  ;;  %618 = vmatprep.mubr.bf16.mxu0 %v858_v35  ;;  %v994_v46 = vld [vmem:[%s1097_s28 + $0xc0] ss:$8 sps:$4 sm:$0xff]   ;;  %v1000_v48 = vld [vmem:[%s1097_s28 + $0xd0] ss:$8 sps:$4 sm:$0xff]   ;;  %v1004_v49 = vld [vmem:[%s1097_s28 + $0xe4] ss:$8 sps:$4 sm:$0xff]  }
  0x28   : > { %v1006_v50 = vld [vmem:[%s1097_s28 + $0xe0] ss:$8 sps:$4 sm:$0xff]   ;;  %v1010_v51 = vld [vmem:[%s1097_s28 + $0xf4] ss:$8 sps:$4 sm:$0xff]   ;;  %v1012_v52 = vld [vmem:[%s1097_s28 + $0xf0] ss:$8 sps:$4 sm:$0xff]  }
  0x29   : > { %634 = vmatpush1.bf16.msra.mxu1 %v985_v22  ;;  %v283_v58 = vld [vmem:[#allocation2] sm:$0xff]  ;;  %v284_v61 = vld [vmem:[#allocation2 + $0x8] sm:$0xff] }
  0x2a   : > { %595 = vmatpush1.bf16.msra.mxu0 %v955_v15  ;;  %635 = vmatprep.subr.bf16.mxu1 %v989_v24 }
  0x2b   : > { %596 = vmatprep.subr.bf16.mxu0 %v956_v16 }
  0x2d   : > { %636 = vmatpush1.bf16.msra.mxu1 %v991_v26 }
  0x2e   : > { %597 = vmatpush1.bf16.msra.mxu0 %v958_v19  ;;  %637 = vmatprep.subr.bf16.mxu1 %v995_v28 }
  0x2f   : > { %598 = vmatprep.subr.bf16.mxu0 %v959_v21 }
  0x31   : > { %638 = vmatpush1.bf16.msra.mxu1 %v997_v30 }
  0x32   : > { %599 = vmatpush1.bf16.msra.mxu0 %v961_v23  ;;  %639 = vmatprep.subr.bf16.mxu1 %v1001_v32 }
  0x33   : > { %600 = vmatprep.subr.bf16.mxu0 %v962_v25 }
  0x35   : > { %640 = vmatpush1.bf16.msra.mxu1 %v1003_v36 }
  0x36   : > { %601 = vmatpush1.bf16.msra.mxu0 %v964_v27  ;;  %641 = vmatprep.subr.bf16.mxu1 %v1007_v38 }
  0x37   : > { %602 = vmatprep.subr.bf16.mxu0 %v968_v29 }
  0x39   : > { %642 = vmatpush1.bf16.msra.mxu1 %v1009_v40 }
  0x3a   : > { %603 = vmatpush1.bf16.msra.mxu0 %v970_v31 }
  0x3b   : > { %604 = vmatprep.subr.bf16.mxu0 %v974_v33 }
  0x3c   : > { %660 = vmatmul.mubr.bf16.vlgmr.msra.gmra.mrb[0].mxu1 %v1013_v43 }
  0x3e   : > { %605 = vmatpush1.bf16.msra.mxu0 %v976_v37 }
  0x3f   : > { %606 = vmatprep.subr.bf16.mxu0 %v980_v39 }
  0x42   : > { %607 = vmatpush1.bf16.msra.mxu0 %v982_v41 }
  0x43   : > { %608 = vmatprep.subr.bf16.mxu0 %v986_v42 }
  0x46   : > { %609 = vmatpush1.bf16.msra.mxu0 %v988_v44 }
  0x47   : > { %610 = vmatprep.subr.bf16.mxu0 %v992_v45 }
  0x4a   : > { %611 = vmatpush1.bf16.msra.mxu0 %v994_v46 }
  0x4b   : > { %612 = vmatprep.subr.bf16.mxu0 %v998_v47 }
  0x4e   : > { %613 = vmatpush1.bf16.msra.mxu0 %v1000_v48 }
  0x4f   : > { %614 = vmatprep.subr.bf16.mxu0 %v1004_v49 }
  0x52   : > { %615 = vmatpush1.bf16.msra.mxu0 %v1006_v50 }
  0x53   : > { %616 = vmatprep.subr.bf16.mxu0 %v1010_v51 }
  0x56   : > { %617 = vmatpush1.bf16.msra.mxu0 %v1012_v52 }
  0x59   : > { %619 = vmatmul.mubr.bf16.vlgmr.msra.gmra.mrb[0].mxu0 %v857_v53 }
 0x10f   : > { %v661_v54 = vpop.f32.mrb[0].mxu1 }
 0x110   : > { %v663_v55 = vpop.f32.mrb[1].mxu1 }
 0x111   : > { %v665_v56 = vpop.f32.mrb[2].mxu1 }
 0x112   : > { %v666_v57 = vpop.f32.mrb[3].mxu1 }
 0x12c   : > { %v620_v59 = vpop.f32.mrb[0].mxu0  ;;  %675 = sbr.rel (%p908_p7) target bundleno = 329 (0x149), region = 36 }
 0x12d   : > { %v662_v60 = vadd.f32 %v661_v54, %v620_v59  ;;  %v622_v62 = vpop.f32.mrb[1].mxu0 }
 0x12e   : > { %v664_v63 = vadd.f32 %v663_v55, %v622_v62  ;;  %v624_v0 = vpop.f32.mrb[2].mxu0 }
 0x12f   : > { %v668_v1 = vadd.f32 %v662_v60, %v283_v58  ;;  %v625_v2 = vpop.f32.mrb[3].mxu0 }
 0x130   : > { %v669_v3 = vadd.f32 %v664_v63, %v284_v61 }
 0x131   : > { %670 = vst [vmem:[#allocation2] sm:$0xff] %v668_v1 }
 0x132   : > { %671 = vst [vmem:[#allocation2 + $0x8] sm:$0xff] %v669_v3 }
 0x138   : > { %v676_v4 = vld [vmem:[#allocation2] sm:$0xff] }
 0x139   : > { %v677_v5 = vld [vmem:[#allocation2 + $0x8] sm:$0xff]  ;;  %678 = vst [vmem:[%s1180_s2] sm:$0xff] %v676_v4  ;;  %v680_v6 = vrot.slane %v676_v4, 4  ;;  %v692_v8 = vmul.f32 %v676_v4, %v676_v4 }
 0x13a   : > { %679 = vst [vmem:[%s1180_s2 + $0x8] sm:$0xff] %v677_v5  ;;  %v686_v7 = vrot.slane %v677_v5, 4  ;;  %v693_v9 = vmul.f32 %v677_v5, %v677_v5 }
 0x13b   : > { %v681_v10 = vadd.f32 %v680_v6, %v676_v4  ;;  %v694_v12 = vrot.slane %v692_v8, 4 }
 0x13c   : > { %v687_v11 = vadd.f32 %v686_v7, %v677_v5  ;;  %v700_v13 = vrot.slane %v693_v9, 4 }
 0x13d   : > { %v682_v14 = vrot.slane %v681_v10, 2  ;;  %v695_v16 = vadd.f32 %v694_v12, %v692_v8 }
 0x13e   : > { %v688_v15 = vrot.slane %v687_v11, 2  ;;  %v701_v17 = vadd.f32 %v700_v13, %v693_v9 }
 0x13f   : > { %v683_v18 = vadd.f32 %v682_v14, %v681_v10  ;;  %v696_v20 = vrot.slane %v695_v16, 2 }
 0x140   : > { %v689_v19 = vadd.f32 %v688_v15, %v687_v11  ;;  %v702_v21 = vrot.slane %v701_v17, 2 }
 0x141   : > { %v684_v22 = vrot.slane %v683_v18, 1  ;;  %v697_v24 = vadd.f32 %v696_v20, %v695_v16 }
 0x142   : > { %v690_v23 = vrot.slane %v689_v19, 1  ;;  %v703_v25 = vadd.f32 %v702_v21, %v701_v17 }
 0x143   : > { %v685_v26 = vadd.f32 %v684_v22, %v683_v18  ;;  %v698_v28 = vrot.slane %v697_v24, 1 }
 0x144   : > { %v691_v27 = vadd.f32 %v690_v23, %v689_v19  ;;  %v704_v29 = vrot.slane %v703_v25, 1 }
 0x145   : > { %706 = vst [vmem:[%s1181_s3] sm:$0xff] %v685_v26  ;;  %v699_v30 = vadd.f32 %v698_v28, %v697_v24 }
 0x146   : > { %707 = vst [vmem:[%s1181_s3 + $0x8] sm:$0xff] %v691_v27  ;;  %v705_v31 = vadd.f32 %v704_v29, %v703_v25 }
 0x147   : > { %708 = vst [vmem:[%s1182_s4] sm:$0xff] %v699_v30 }
 0x148   : > { %709 = vst [vmem:[%s1182_s4 + $0x8] sm:$0xff] %v705_v31 }
 0x149 PF: > { %s15_s17 = sadd.s32 1, %s1038_s17   ;;  %s1183_s15 = smov %s1034_s16 }
 0x14a   : > { %p12_p8 = scmp.ge.s32.totalorder %s15_s17, 5   ;;  %s1184_s16 = smov %s1186_s18 }
 0x14c   :  { %14 = sbr.rel (!%p12_p8) target bundleno = 2 (0x2), region = 93 }

// kernel: _lambda_.44
= control target key start
LH: loop header
LB: loop body
LE: loop exit
PB: predicated region body
PF: predicated region fallthrough
CT: control target
= control target key end

     0   :  { %s1067_s15 = smov 0   ;;  %s1069_s16 = smov 0   ;;  %s1178_s0 = inlined_call_operand.vmem [shape: bf16[8,2304], index: 0, kind: input, shape index: {}]   ;;  %s1179_s1 = inlined_call_operand.vmem [shape: bf16[2304,256], index: 1, kind: input, shape index: {}]   ;;  %s1180_s2 = inlined_call_operand.vmem [shape: f32[8,256], index: 2, kind: output, shape index: {0}]   ;;  %s1181_s3 = inlined_call_operand.vmem [shape: f32[8,256], index: 3, kind: output, shape index: {1}]   ;;  %s1182_s4 = inlined_call_operand.vmem [shape: f32[8,256], index: 4, kind: output, shape index: {2}]  }
   0x1   :  { %s1071_s17 = smov 0  }
   0x2 LB: > { %s24_s18 = sadd.s32 1, %s1034_s16  ;;  %p852_p0 = scmp.ge.s32.totalorder %s1038_s17, 1  ;;  %s1038_s17 = sphi %s1071_s17, %s15_s17   ;;  %s1034_s16 = sphi %s1069_s16, %s1184_s16   ;;  %s1030_s15 = sphi %s1067_s15, %s1183_s15  }
   0x3   : > { %p25_p1 = scmp.ge.s32.totalorder %s24_s18, 6  ;;  %p198_p2 = scmp.lt.s32.totalorder %s1038_s17, 7 }
   0x5   : > { %s1186_s18 = smov (%p25_p1, %s24_s18), 0  ;;  %p199_p3 = pnand %p852_p0, %p198_p2 }
   0x6   : > { %s244_s19 = smul.u32 (!%p199_p3), 3, %s1030_s15  ;;  %p856_p6 = scmp.ne.s32.totalorder (!%p199_p3), %s1030_s15, 0 }
   0x7   : > { %202 = sbr.rel (%p199_p3) target bundleno = 329 (0x149), region = 28 }
   0x8   : > { %s254_s20 = smul.u32 (!%p199_p3), 48, %s1030_s15  ;;  %p247_p4 = scmp.lt.s32.totalorder (!%p199_p3), %s244_s19, 17 }
   0xa   : > { %p255_p5 = scmp.lt.s32.totalorder (!%p199_p3), %s254_s20, 287 }
   0xe   : > { %s1188_s19 = smov (!%p247_p4, %s244_s19), 17  ;;  %s1190_s20 = smov (!%p255_p5, %s254_s20), 287 }
   0xf   : > { %s853_s21 = sshll.u32 %s1188_s19, 2  ;;  %s914_s25 = sshll.u32 %s1190_s20, 3  ;;  %v1040_v0 = vmov (!%p856_p6), 0.0  }
  0x10   : > { %s1092_s24 = scalar_lea.vmem %s1178_s0, %s853_s21  ;;  %s1097_s28 = scalar_lea.vmem %s1179_s1, %s914_s25  ;;  %281 = vst [vmem:[#allocation2] sm:$0xff] (!%p856_p6), %v1040_v0  ;;  %282 = vst [vmem:[#allocation2 + $0x8] sm:$0xff] (!%p856_p6), %v1040_v0 }
  0x11   : > { %280 = sbr.rel (%p856_p6) target bundleno = 24 (0x18), region = 32 }
  0x18 PF: > { %v941_v1 = vld [vmem:[%s1097_s28 + $0x4] ss:$8 sps:$4 sm:$0xff]   ;;  %v943_v2 = vld [vmem:[%s1097_s28] ss:$8 sps:$4 sm:$0xff]   ;;  %v1041_v3 = vmov 0   ;;  %p908_p7 = scmp.ne.s32.totalorder %s1030_s15, 5 }
  0x19   : > { %659 = vmatprep.mubr.bf16.mxu1 %v1041_v3  ;;  %586 = vmatprep.subr.bf16.mxu0 %v941_v1  ;;  %v944_v4 = vld [vmem:[%s1097_s28 + $0x14] ss:$8 sps:$4 sm:$0xff]   ;;  %v946_v5 = vld [vmem:[%s1097_s28 + $0x10] ss:$8 sps:$4 sm:$0xff]   ;;  %v947_v6 = vld [vmem:[%s1097_s28 + $0x24] ss:$8 sps:$4 sm:$0xff]  }
  0x1a   : > { %587 = vmatpush1.bf16.msra.mxu0 %v943_v2  ;;  %v949_v7 = vld [vmem:[%s1097_s28 + $0x20] ss:$8 sps:$4 sm:$0xff]   ;;  %v950_v8 = vld [vmem:[%s1097_s28 + $0x34] ss:$8 sps:$4 sm:$0xff]   ;;  %v952_v9 = vld [vmem:[%s1097_s28 + $0x30] ss:$8 sps:$4 sm:$0xff]  }
  0x1b   : > { %588 = vmatprep.subr.bf16.mxu0 %v944_v4  ;;  %v965_v10 = vld [vmem:[%s1097_s28 + $0x104] ss:$8 sps:$4 sm:$0xff]   ;;  %v967_v11 = vld [vmem:[%s1097_s28 + $0x100] ss:$8 sps:$4 sm:$0xff]   ;;  %v971_v13 = vld [vmem:[%s1097_s28 + $0x114] ss:$8 sps:$4 sm:$0xff]  }
  0x1c   : > { %v953_v12 = vld [vmem:[%s1097_s28 + $0x44] ss:$8 sps:$4 sm:$0xff]   ;;  %627 = vmatprep.subr.bf16.mxu1 %v965_v10  ;;  %v973_v14 = vld [vmem:[%s1097_s28 + $0x110] ss:$8 sps:$4 sm:$0xff]   ;;  %v955_v15 = vld [vmem:[%s1097_s28 + $0x40] ss:$8 sps:$4 sm:$0xff]  }
  0x1d   : > { %628 = vmatpush1.bf16.msra.mxu1 %v967_v11  ;;  %v956_v16 = vld [vmem:[%s1097_s28 + $0x54] ss:$8 sps:$4 sm:$0xff]   ;;  %v977_v17 = vld [vmem:[%s1097_s28 + $0x124] ss:$8 sps:$4 sm:$0xff]   ;;  %v979_v18 = vld [vmem:[%s1097_s28 + $0x120] ss:$8 sps:$4 sm:$0xff]  }
  0x1e   : > { %589 = vmatpush1.bf16.msra.mxu0 %v946_v5  ;;  %629 = vmatprep.subr.bf16.mxu1 %v971_v13  ;;  %v958_v19 = vld [vmem:[%s1097_s28 + $0x50] ss:$8 sps:$4 sm:$0xff]   ;;  %v983_v20 = vld [vmem:[%s1097_s28 + $0x134] ss:$8 sps:$4 sm:$0xff]   ;;  %v959_v21 = vld [vmem:[%s1097_s28 + $0x64] ss:$8 sps:$4 sm:$0xff]  }
  0x1f   : > { %590 = vmatprep.subr.bf16.mxu0 %v947_v6  ;;  %v985_v22 = vld [vmem:[%s1097_s28 + $0x130] ss:$8 sps:$4 sm:$0xff]   ;;  %v961_v23 = vld [vmem:[%s1097_s28 + $0x60] ss:$8 sps:$4 sm:$0xff]   ;;  %v989_v24 = vld [vmem:[%s1097_s28 + $0x144] ss:$8 sps:$4 sm:$0xff]  }
  0x20   : > { %v962_v25 = vld [vmem:[%s1097_s28 + $0x74] ss:$8 sps:$4 sm:$0xff]   ;;  %v991_v26 = vld [vmem:[%s1097_s28 + $0x140] ss:$8 sps:$4 sm:$0xff]   ;;  %v964_v27 = vld [vmem:[%s1097_s28 + $0x70] ss:$8 sps:$4 sm:$0xff]  }
  0x21   : > { %630 = vmatpush1.bf16.msra.mxu1 %v973_v14  ;;  %v995_v28 = vld [vmem:[%s1097_s28 + $0x154] ss:$8 sps:$4 sm:$0xff]   ;;  %v968_v29 = vld [vmem:[%s1097_s28 + $0x84] ss:$8 sps:$4 sm:$0xff]   ;;  %v997_v30 = vld [vmem:[%s1097_s28 + $0x150] ss:$8 sps:$4 sm:$0xff]  }
  0x22   : > { %591 = vmatpush1.bf16.msra.mxu0 %v949_v7  ;;  %631 = vmatprep.subr.bf16.mxu1 %v977_v17  ;;  %v970_v31 = vld [vmem:[%s1097_s28 + $0x80] ss:$8 sps:$4 sm:$0xff]   ;;  %v1001_v32 = vld [vmem:[%s1097_s28 + $0x164] ss:$8 sps:$4 sm:$0xff]   ;;  %v974_v33 = vld [vmem:[%s1097_s28 + $0x94] ss:$8 sps:$4 sm:$0xff]  }
  0x23   : > { %592 = vmatprep.subr.bf16.mxu0 %v950_v8  ;;  %v285_v34 = vld [vmem:[%s1092_s24] sm:$0xff]  ;;  %v976_v37 = vld [vmem:[%s1097_s28 + $0x90] ss:$8 sps:$4 sm:$0xff]   ;;  %v1007_v38 = vld [vmem:[%s1097_s28 + $0x174] ss:$8 sps:$4 sm:$0xff]  }
  0x24   : > { %v858_v35 = vcombine.high %v285_v34, %v285_v34  ;;  %v1003_v36 = vld [vmem:[%s1097_s28 + $0x160] ss:$8 sps:$4 sm:$0xff]   ;;  %v980_v39 = vld [vmem:[%s1097_s28 + $0xa4] ss:$8 sps:$4 sm:$0xff]   ;;  %v1009_v40 = vld [vmem:[%s1097_s28 + $0x170] ss:$8 sps:$4 sm:$0xff]   ;;  %v857_v53 = vcombine.low %v285_v34, %v285_v34 }
  0x25   : > { %632 = vmatpush1.bf16.msra.mxu1 %v979_v18  ;;  %v982_v41 = vld [vmem:[%s1097_s28 + $0xa0] ss:$8 sps:$4 sm:$0xff]   ;;  %v986_v42 = vld [vmem:[%s1097_s28 + $0xb4] ss:$8 sps:$4 sm:$0xff]   ;;  %v988_v44 = vld [vmem:[%s1097_s28 + $0xb0] ss:$8 sps:$4 sm:$0xff]  }
  0x26   : > { %593 = vmatpush1.bf16.msra.mxu0 %v952_v9  ;;  %633 = vmatprep.subr.bf16.mxu1 %v983_v20  ;;  %v1013_v43 = vld [vmem:[%s1092_s24 + $0x8] ss:$0 sps:$4 sm:$0xff]   ;;  %v992_v45 = vld [vmem:[%s1097_s28 + $0xc4] ss:$8 sps:$4 sm:$0xff]   ;;  %v998_v47 = vld [vmem:[%s1097_s28 + $0xd4] ss:$8 sps:$4 sm:$0xff]  }
  0x27   : > { %594 = vmatprep.subr.bf16.mxu0 %v953_v12  ;;  %618 = vmatprep.mubr.bf16.mxu0 %v858_v35  ;;  %v994_v46 = vld [vmem:[%s1097_s28 + $0xc0] ss:$8 sps:$4 sm:$0xff]   ;;  %v1000_v48 = vld [vmem:[%s1097_s28 + $0xd0] ss:$8 sps:$4 sm:$0xff]   ;;  %v1004_v49 = vld [vmem:[%s1097_s28 + $0xe4] ss:$8 sps:$4 sm:$0xff]  }
  0x28   : > { %v1006_v50 = vld [vmem:[%s1097_s28 + $0xe0] ss:$8 sps:$4 sm:$0xff]   ;;  %v1010_v51 = vld [vmem:[%s1097_s28 + $0xf4] ss:$8 sps:$4 sm:$0xff]   ;;  %v1012_v52 = vld [vmem:[%s1097_s28 + $0xf0] ss:$8 sps:$4 sm:$0xff]  }
  0x29   : > { %634 = vmatpush1.bf16.msra.mxu1 %v985_v22  ;;  %v283_v58 = vld [vmem:[#allocation2] sm:$0xff]  ;;  %v284_v61 = vld [vmem:[#allocation2 + $0x8] sm:$0xff] }
  0x2a   : > { %595 = vmatpush1.bf16.msra.mxu0 %v955_v15  ;;  %635 = vmatprep.subr.bf16.mxu1 %v989_v24 }
  0x2b   : > { %596 = vmatprep.subr.bf16.mxu0 %v956_v16 }
  0x2d   : > { %636 = vmatpush1.bf16.msra.mxu1 %v991_v26 }
  0x2e   : > { %597 = vmatpush1.bf16.msra.mxu0 %v958_v19  ;;  %637 = vmatprep.subr.bf16.mxu1 %v995_v28 }
  0x2f   : > { %598 = vmatprep.subr.bf16.mxu0 %v959_v21 }
  0x31   : > { %638 = vmatpush1.bf16.msra.mxu1 %v997_v30 }
  0x32   : > { %599 = vmatpush1.bf16.msra.mxu0 %v961_v23  ;;  %639 = vmatprep.subr.bf16.mxu1 %v1001_v32 }
  0x33   : > { %600 = vmatprep.subr.bf16.mxu0 %v962_v25 }
  0x35   : > { %640 = vmatpush1.bf16.msra.mxu1 %v1003_v36 }
  0x36   : > { %601 = vmatpush1.bf16.msra.mxu0 %v964_v27  ;;  %641 = vmatprep.subr.bf16.mxu1 %v1007_v38 }
  0x37   : > { %602 = vmatprep.subr.bf16.mxu0 %v968_v29 }
  0x39   : > { %642 = vmatpush1.bf16.msra.mxu1 %v1009_v40 }
  0x3a   : > { %603 = vmatpush1.bf16.msra.mxu0 %v970_v31 }
  0x3b   : > { %604 = vmatprep.subr.bf16.mxu0 %v974_v33 }
  0x3c   : > { %660 = vmatmul.mubr.bf16.vlgmr.msra.gmra.mrb[0].mxu1 %v1013_v43 }
  0x3e   : > { %605 = vmatpush1.bf16.msra.mxu0 %v976_v37 }
  0x3f   : > { %606 = vmatprep.subr.bf16.mxu0 %v980_v39 }
  0x42   : > { %607 = vmatpush1.bf16.msra.mxu0 %v982_v41 }
  0x43   : > { %608 = vmatprep.subr.bf16.mxu0 %v986_v42 }
  0x46   : > { %609 = vmatpush1.bf16.msra.mxu0 %v988_v44 }
  0x47   : > { %610 = vmatprep.subr.bf16.mxu0 %v992_v45 }
  0x4a   : > { %611 = vmatpush1.bf16.msra.mxu0 %v994_v46 }
  0x4b   : > { %612 = vmatprep.subr.bf16.mxu0 %v998_v47 }
  0x4e   : > { %613 = vmatpush1.bf16.msra.mxu0 %v1000_v48 }
  0x4f   : > { %614 = vmatprep.subr.bf16.mxu0 %v1004_v49 }
  0x52   : > { %615 = vmatpush1.bf16.msra.mxu0 %v1006_v50 }
  0x53   : > { %616 = vmatprep.subr.bf16.mxu0 %v1010_v51 }
  0x56   : > { %617 = vmatpush1.bf16.msra.mxu0 %v1012_v52 }
  0x59   : > { %619 = vmatmul.mubr.bf16.vlgmr.msra.gmra.mrb[0].mxu0 %v857_v53 }
 0x10f   : > { %v661_v54 = vpop.f32.mrb[0].mxu1 }
 0x110   : > { %v663_v55 = vpop.f32.mrb[1].mxu1 }
 0x111   : > { %v665_v56 = vpop.f32.mrb[2].mxu1 }
 0x112   : > { %v666_v57 = vpop.f32.mrb[3].mxu1 }
 0x12c   : > { %v620_v59 = vpop.f32.mrb[0].mxu0  ;;  %675 = sbr.rel (%p908_p7) target bundleno = 329 (0x149), region = 36 }
 0x12d   : > { %v662_v60 = vadd.f32 %v661_v54, %v620_v59  ;;  %v622_v62 = vpop.f32.mrb[1].mxu0 }
 0x12e   : > { %v664_v63 = vadd.f32 %v663_v55, %v622_v62  ;;  %v624_v0 = vpop.f32.mrb[2].mxu0 }
 0x12f   : > { %v668_v1 = vadd.f32 %v662_v60, %v283_v58  ;;  %v625_v2 = vpop.f32.mrb[3].mxu0 }
 0x130   : > { %v669_v3 = vadd.f32 %v664_v63, %v284_v61 }
 0x131   : > { %670 = vst [vmem:[#allocation2] sm:$0xff] %v668_v1 }
 0x132   : > { %671 = vst [vmem:[#allocation2 + $0x8] sm:$0xff] %v669_v3 }
 0x138   : > { %v676_v4 = vld [vmem:[#allocation2] sm:$0xff] }
 0x139   : > { %v677_v5 = vld [vmem:[#allocation2 + $0x8] sm:$0xff]  ;;  %678 = vst [vmem:[%s1180_s2] sm:$0xff] %v676_v4  ;;  %v680_v6 = vrot.slane %v676_v4, 4  ;;  %v692_v8 = vmul.f32 %v676_v4, %v676_v4 }
 0x13a   : > { %679 = vst [vmem:[%s1180_s2 + $0x8] sm:$0xff] %v677_v5  ;;  %v686_v7 = vrot.slane %v677_v5, 4  ;;  %v693_v9 = vmul.f32 %v677_v5, %v677_v5 }
 0x13b   : > { %v681_v10 = vadd.f32 %v680_v6, %v676_v4  ;;  %v694_v12 = vrot.slane %v692_v8, 4 }
 0x13c   : > { %v687_v11 = vadd.f32 %v686_v7, %v677_v5  ;;  %v700_v13 = vrot.slane %v693_v9, 4 }
 0x13d   : > { %v682_v14 = vrot.slane %v681_v10, 2  ;;  %v695_v16 = vadd.f32 %v694_v12, %v692_v8 }
 0x13e   : > { %v688_v15 = vrot.slane %v687_v11, 2  ;;  %v701_v17 = vadd.f32 %v700_v13, %v693_v9 }
 0x13f   : > { %v683_v18 = vadd.f32 %v682_v14, %v681_v10  ;;  %v696_v20 = vrot.slane %v695_v16, 2 }
 0x140   : > { %v689_v19 = vadd.f32 %v688_v15, %v687_v11  ;;  %v702_v21 = vrot.slane %v701_v17, 2 }
 0x141   : > { %v684_v22 = vrot.slane %v683_v18, 1  ;;  %v697_v24 = vadd.f32 %v696_v20, %v695_v16 }
 0x142   : > { %v690_v23 = vrot.slane %v689_v19, 1  ;;  %v703_v25 = vadd.f32 %v702_v21, %v701_v17 }
 0x143   : > { %v685_v26 = vadd.f32 %v684_v22, %v683_v18  ;;  %v698_v28 = vrot.slane %v697_v24, 1 }
 0x144   : > { %v691_v27 = vadd.f32 %v690_v23, %v689_v19  ;;  %v704_v29 = vrot.slane %v703_v25, 1 }
 0x145   : > { %706 = vst [vmem:[%s1181_s3] sm:$0xff] %v685_v26  ;;  %v699_v30 = vadd.f32 %v698_v28, %v697_v24 }
 0x146   : > { %707 = vst [vmem:[%s1181_s3 + $0x8] sm:$0xff] %v691_v27  ;;  %v705_v31 = vadd.f32 %v704_v29, %v703_v25 }
 0x147   : > { %708 = vst [vmem:[%s1182_s4] sm:$0xff] %v699_v30 }
 0x148   : > { %709 = vst [vmem:[%s1182_s4 + $0x8] sm:$0xff] %v705_v31 }
 0x149 PF: > { %s15_s17 = sadd.s32 1, %s1038_s17   ;;  %s1183_s15 = smov %s1034_s16 }
 0x14a   : > { %p12_p8 = scmp.ge.s32.totalorder %s15_s17, 8   ;;  %s1184_s16 = smov %s1186_s18 }
 0x14c   :  { %14 = sbr.rel (!%p12_p8) target bundleno = 2 (0x2), region = 93 }

// kernel: _lambda_.42
= control target key start
LH: loop header
LB: loop body
LE: loop exit
PB: predicated region body
PF: predicated region fallthrough
CT: control target
= control target key end

     0   :  { %v255_v1 = vmov 0   ;;  %s350_s1 = inlined_call_operand.vmem [shape: bf16[128,256], index: 1, kind: input, shape index: {}]   ;;  %s351_s0 = inlined_call_operand.vmem [shape: bf16[8,128], index: 0, kind: input, shape index: {}]   ;;  %s352_s2 = inlined_call_operand.vmem [shape: f32[8,256], index: 2, kind: output, shape index: {0}]   ;;  %s353_s3 = inlined_call_operand.vmem [shape: f32[8,256], index: 3, kind: output, shape index: {1}]   ;;  %s354_s4 = inlined_call_operand.vmem [shape: f32[8,256], index: 4, kind: output, shape index: {2}]  }
   0x1   :  { %v231_v0 = vld [vmem:[%s350_s1 + $0x4] ss:$8 sps:$4 sm:$0xff]   ;;  %152 = vmatprep.mubr.bf16.mxu0 %v255_v1  ;;  %v233_v2 = vld [vmem:[%s350_s1] ss:$8 sps:$4 sm:$0xff]   ;;  %v234_v3 = vld [vmem:[%s350_s1 + $0x14] ss:$8 sps:$4 sm:$0xff]  }
   0x2   :  { %120 = vmatprep.subr.bf16.mxu0 %v231_v0  ;;  %v236_v4 = vld [vmem:[%s350_s1 + $0x10] ss:$8 sps:$4 sm:$0xff]   ;;  %v237_v5 = vld [vmem:[%s350_s1 + $0x24] ss:$8 sps:$4 sm:$0xff]   ;;  %v239_v6 = vld [vmem:[%s350_s1 + $0x20] ss:$8 sps:$4 sm:$0xff]  }
   0x3   :  { %121 = vmatpush1.bf16.msra.mxu0 %v233_v2  ;;  %v240_v7 = vld [vmem:[%s350_s1 + $0x34] ss:$8 sps:$4 sm:$0xff]   ;;  %v242_v8 = vld [vmem:[%s350_s1 + $0x30] ss:$8 sps:$4 sm:$0xff]   ;;  %v243_v9 = vld [vmem:[%s350_s1 + $0x44] ss:$8 sps:$4 sm:$0xff]  }
   0x4   :  { %122 = vmatprep.subr.bf16.mxu0 %v234_v3  ;;  %v245_v10 = vld [vmem:[%s350_s1 + $0x40] ss:$8 sps:$4 sm:$0xff]   ;;  %v246_v11 = vld [vmem:[%s350_s1 + $0x54] ss:$8 sps:$4 sm:$0xff]   ;;  %v248_v12 = vld [vmem:[%s350_s1 + $0x50] ss:$8 sps:$4 sm:$0xff]  }
   0x5   :  { %v249_v13 = vld [vmem:[%s350_s1 + $0x64] ss:$8 sps:$4 sm:$0xff]   ;;  %v251_v14 = vld [vmem:[%s350_s1 + $0x60] ss:$8 sps:$4 sm:$0xff]   ;;  %v252_v15 = vld [vmem:[%s350_s1 + $0x74] ss:$8 sps:$4 sm:$0xff]  }
   0x6   :  { %v254_v16 = vld [vmem:[%s350_s1 + $0x70] ss:$8 sps:$4 sm:$0xff]   ;;  %v23_v17 = vld [vmem:[%s351_s0] sm:$0xf] }
   0x7   :  { %123 = vmatpush1.bf16.msra.mxu0 %v236_v4 }
   0x8   :  { %124 = vmatprep.subr.bf16.mxu0 %v237_v5 }
   0xb   :  { %125 = vmatpush1.bf16.msra.mxu0 %v239_v6 }
   0xc   :  { %126 = vmatprep.subr.bf16.mxu0 %v240_v7 }
   0xf   :  { %127 = vmatpush1.bf16.msra.mxu0 %v242_v8 }
  0x10   :  { %128 = vmatprep.subr.bf16.mxu0 %v243_v9 }
  0x13   :  { %129 = vmatpush1.bf16.msra.mxu0 %v245_v10 }
  0x14   :  { %130 = vmatprep.subr.bf16.mxu0 %v246_v11 }
  0x17   :  { %131 = vmatpush1.bf16.msra.mxu0 %v248_v12 }
  0x18   :  { %132 = vmatprep.subr.bf16.mxu0 %v249_v13 }
  0x1b   :  { %133 = vmatpush1.bf16.msra.mxu0 %v251_v14 }
  0x1c   :  { %134 = vmatprep.subr.bf16.mxu0 %v252_v15 }
  0x1f   :  { %135 = vmatpush1.bf16.msra.mxu0 %v254_v16 }
  0x22   :  { %153 = vmatmul.mubr.bf16.vlgmr.msra.gmra.mrb[0].mxu0 %v23_v17 }
  0xf5   :  { %v154_v18 = vpop.f32.mrb[0].mxu0 }
  0xf6   :  { %170 = vst [vmem:[%s352_s2] sm:$0xff] %v154_v18  ;;  %v172_v19 = vrot.slane %v154_v18, 4  ;;  %v184_v20 = vmul.f32 %v154_v18, %v154_v18  ;;  %v156_v21 = vpop.f32.mrb[1].mxu0 }
  0xf7   :  { %171 = vst [vmem:[%s352_s2 + $0x8] sm:$0xff] %v156_v21  ;;  %v178_v22 = vrot.slane %v156_v21, 4  ;;  %v185_v23 = vmul.f32 %v156_v21, %v156_v21  ;;  %v158_v24 = vpop.f32.mrb[2].mxu0 }
  0xf8   :  { %v173_v25 = vadd.f32 %v172_v19, %v154_v18  ;;  %v186_v26 = vrot.slane %v184_v20, 4  ;;  %v159_v27 = vpop.f32.mrb[3].mxu0 }
  0xf9   :  { %v179_v28 = vadd.f32 %v178_v22, %v156_v21  ;;  %v192_v29 = vrot.slane %v185_v23, 4 }
  0xfa   :  { %v174_v30 = vrot.slane %v173_v25, 2  ;;  %v187_v31 = vadd.f32 %v186_v26, %v184_v20 }
  0xfb   :  { %v180_v32 = vrot.slane %v179_v28, 2  ;;  %v193_v33 = vadd.f32 %v192_v29, %v185_v23 }
  0xfc   :  { %v175_v34 = vadd.f32 %v174_v30, %v173_v25  ;;  %v188_v35 = vrot.slane %v187_v31, 2 }
  0xfd   :  { %v181_v36 = vadd.f32 %v180_v32, %v179_v28  ;;  %v194_v37 = vrot.slane %v193_v33, 2 }
  0xfe   :  { %v176_v38 = vrot.slane %v175_v34, 1  ;;  %v189_v39 = vadd.f32 %v188_v35, %v187_v31 }
  0xff   :  { %v182_v40 = vrot.slane %v181_v36, 1  ;;  %v195_v41 = vadd.f32 %v194_v37, %v193_v33 }
 0x100   :  { %v177_v42 = vadd.f32 %v176_v38, %v175_v34  ;;  %v190_v43 = vrot.slane %v189_v39, 1 }
 0x101   :  { %v183_v44 = vadd.f32 %v182_v40, %v181_v36  ;;  %v196_v45 = vrot.slane %v195_v41, 1 }
 0x102   :  { %v191_v46 = vadd.f32 %v190_v43, %v189_v39  ;;  %198 = vst [vmem:[%s353_s3] sm:$0xff] %v177_v42 }
 0x103   :  { %v197_v47 = vadd.f32 %v196_v45, %v195_v41  ;;  %199 = vst [vmem:[%s353_s3 + $0x8] sm:$0xff] %v183_v44 }
 0x104   :  { %200 = vst [vmem:[%s354_s4] sm:$0xff] %v191_v46 }
 0x105   :  { %201 = vst [vmem:[%s354_s4 + $0x8] sm:$0xff] %v197_v47 }

// kernel: _lambda_.43
= control target key start
LH: loop header
LB: loop body
LE: loop exit
PB: predicated region body
PF: predicated region fallthrough
CT: control target
= control target key end

     0   :  { %v152_v40 = vmov 1966171168   ;;  %v69_v42 = vlaneseq  ;;  %s210_s1 = inlined_call_operand.vmem [shape: f32[8,256], index: 1, kind: input, shape index: {}]   ;;  %s211_s2 = inlined_call_operand.vmem [shape: f32[8,256], index: 2, kind: input, shape index: {}]   ;;  %s212_s3 = inlined_call_operand.vmem [shape: f32[1,256], index: 3, kind: input, shape index: {}]   ;;  %s213_s0 = inlined_call_operand.vmem [shape: f32[8,256], index: 0, kind: input, shape index: {}]   ;;  %s214_s4 = inlined_call_operand.vmem [shape: f32[1,256], index: 4, kind: input, shape index: {}]   ;;  %s215_s5 = inlined_call_operand.vmem [shape: bf16[8,256], index: 5, kind: output, shape index: {}]  }
   0x1   :  { %v20_v0 = vld [vmem:[%s210_s1] sm:$0xff]  ;;  %v21_v1 = vld [vmem:[%s210_s1 + $0x8] sm:$0xff]  ;;  %v67_v41 = vunpack.c.l.s4 %v152_v40 }
   0x2   :  { %v36_v2 = vld [vmem:[%s211_s2] sm:$0xff]  ;;  %v22_v3 = vrot.slane %v20_v0, 4  ;;  %v28_v4 = vrot.slane %v21_v1, 4  ;;  %v37_v5 = vld [vmem:[%s211_s2 + $0x8] sm:$0xff]  ;;  %v70_v44 = vshrl.u32 %v69_v42, 7 }
   0x3   :  { %v38_v6 = vrot.slane %v36_v2, 4  ;;  %v44_v7 = vrot.slane %v37_v5, 4  ;;  %v68_v43 = vunpack.c.0.s8 %v67_v41  ;;  %v58_v50 = vld [vmem:[%s212_s3] sm:$0x3]  ;;  %v116_v63 = vld [vmem:[%s213_s0 + $0x8] sm:$0xff] }
   0x4   :  { %v23_v8 = vadd.f32 %v22_v3, %v20_v0  ;;  %v29_v9 = vadd.f32 %v28_v4, %v21_v1  ;;  %v86_v52 = vsub.s32 0, %v70_v44  ;;  %v90_v53 = vsub.s32 1, %v70_v44  ;;  %v82_v61 = vld [vmem:[%s214_s4] sm:$0x3] }
   0x5   :  { %v39_v10 = vadd.f32 %v38_v6, %v36_v2  ;;  %v45_v11 = vadd.f32 %v44_v7, %v37_v5  ;;  %v71_v46 = vsub.s32 %v68_v43, %v70_v44  ;;  %v115_v62 = vld [vmem:[%s213_s0] sm:$0xff] }
   0x6   :  { %v24_v12 = vrot.slane %v23_v8, 2  ;;  %v30_v13 = vrot.slane %v29_v9, 2 }
   0x7   :  { %v40_v14 = vrot.slane %v39_v10, 2  ;;  %v46_v15 = vrot.slane %v45_v11, 2 }
   0x8   :  { %v25_v16 = vadd.f32 %v24_v12, %v23_v8  ;;  %v31_v17 = vadd.f32 %v30_v13, %v29_v9 }
   0x9   :  { %v41_v18 = vadd.f32 %v40_v14, %v39_v10  ;;  %v47_v19 = vadd.f32 %v46_v15, %v45_v11 }
   0xa   :  { %v26_v20 = vrot.slane %v25_v16, 1  ;;  %v32_v21 = vrot.slane %v31_v17, 1 }
   0xb   :  { %v42_v22 = vrot.slane %v41_v18, 1  ;;  %v48_v23 = vrot.slane %v47_v19, 1 }
   0xc   :  { %v27_v24 = vadd.f32 %v26_v20, %v25_v16  ;;  %v33_v25 = vadd.f32 %v32_v21, %v31_v17 }
   0xd   :  { %v43_v26 = vadd.f32 %v42_v22, %v41_v18  ;;  %v49_v27 = vadd.f32 %v48_v23, %v47_v19 }
   0xe   :  { %v34_v28 = vmul.f32 0.015625, %v27_v24  ;;  %v35_v29 = vmul.f32 0.015625, %v33_v25 }
   0xf   :  { %v50_v30 = vmul.f32 0.015625, %v43_v26  ;;  %v51_v31 = vmul.f32 0.015625, %v49_v27 }
  0x10   :  { %v52_v32 = vmul.f32 %v34_v28, %v34_v28  ;;  %v53_v33 = vmul.f32 %v35_v29, %v35_v29 }
  0x12   :  { %v54_v34 = vsub.f32 %v50_v30, %v52_v32  ;;  %v55_v35 = vsub.f32 %v51_v31, %v53_v33 }
  0x14   :  { %v56_v36 = vmax.f32 %v54_v34, 0.0  ;;  %v57_v37 = vmax.f32 %v55_v35, 0.0 }
  0x16   :  { %v59_v38 = vadd.f32 1e-05, %v56_v36  ;;  %v60_v39 = vadd.f32 1e-05, %v57_v37 }
  0x18   :  { %148 = vrsqrt.f32 %v59_v38 }
  0x19   :  { %150 = vrsqrt.f32 %v60_v39 }
  0x22   :  { %v149_v45 = vpop.eup %148 }
  0x23   :  { %v151_v47 = vpop.eup %150 }
  0x24   :  { %v65_v48 = vcombine.low %v149_v45, %v151_v47 }
  0x26   :  { %v72_v49 = vrot.slane %v65_v48, %v71_v46 }
  0x28   :  { %v79_v51 = vrot.slane %v72_v49, %v71_v46 }
  0x2a   :  { %v81_v54 = vmul.f32 %v79_v51, %v58_v50 }
  0x2c   :  { %v87_v55 = vrot.slane %v81_v54, %v86_v52  ;;  %v91_v56 = vrot.slane %v81_v54, %v90_v53 }
  0x2e   :  { %v94_v57 = vmul.f32 %v87_v55, %v34_v28  ;;  %v95_v58 = vmul.f32 %v91_v56, %v35_v29  ;;  %v117_v2 = vmul.f32 %v115_v62, %v87_v55  ;;  %v118_v3 = vmul.f32 %v116_v63, %v91_v56 }
  0x30   :  { %v98_v59 = vcombine.low %v94_v57, %v95_v58 }
  0x32   :  { %v105_v60 = vrot.slane %v98_v59, %v71_v46 }
  0x34   :  { %v112_v0 = vrot.slane %v105_v60, %v71_v46 }
  0x36   :  { %v114_v1 = vsub.f32 %v82_v61, %v112_v0 }
  0x38   :  { %v123_v4 = vrot.slane %v114_v1, %v86_v52  ;;  %v127_v5 = vrot.slane %v114_v1, %v90_v53 }
  0x3a   :  { %v130_v6 = vadd.f32 %v123_v4, %v117_v2  ;;  %v131_v7 = vadd.f32 %v127_v5, %v118_v3 }
  0x3c   :  { %v146_v8 = vpack.c.bf16 %v131_v7, %v130_v6 }
  0x3e   :  { %140 = vst [vmem:[%s215_s5] sm:$0xff] %v146_v8 }

// kernel: _lambda_.45
= control target key start
LH: loop header
LB: loop body
LE: loop exit
PB: predicated region body
PF: predicated region fallthrough
CT: control target
= control target key end

     0   :  { %v162_v40 = vmov 1966171168   ;;  %v72_v42 = vlaneseq  ;;  %s228_s1 = inlined_call_operand.vmem [shape: f32[8,256], index: 1, kind: input, shape index: {}]   ;;  %s229_s2 = inlined_call_operand.vmem [shape: f32[8,256], index: 2, kind: input, shape index: {}]   ;;  %s230_s3 = inlined_call_operand.vmem [shape: f32[1,256], index: 3, kind: input, shape index: {}]   ;;  %s231_s0 = inlined_call_operand.vmem [shape: f32[8,256], index: 0, kind: input, shape index: {}]   ;;  %s232_s4 = inlined_call_operand.vmem [shape: f32[1,256], index: 4, kind: input, shape index: {}]   ;;  %s233_s5 = inlined_call_operand.vmem [shape: bf16[8,256], index: 5, kind: input, shape index: {}]   ;;  %s234_s6 = inlined_call_operand.vmem [shape: bf16[8,256], index: 6, kind: output, shape index: {}]  }
   0x1   :  { %v23_v0 = vld [vmem:[%s228_s1] sm:$0xff]  ;;  %v24_v1 = vld [vmem:[%s228_s1 + $0x8] sm:$0xff]  ;;  %v70_v41 = vunpack.c.l.s4 %v162_v40 }
   0x2   :  { %v39_v2 = vld [vmem:[%s229_s2] sm:$0xff]  ;;  %v25_v3 = vrot.slane %v23_v0, 4  ;;  %v31_v4 = vrot.slane %v24_v1, 4  ;;  %v40_v5 = vld [vmem:[%s229_s2 + $0x8] sm:$0xff]  ;;  %v73_v44 = vshrl.u32 %v72_v42, 7 }
   0x3   :  { %v41_v6 = vrot.slane %v39_v2, 4  ;;  %v47_v7 = vrot.slane %v40_v5, 4  ;;  %v71_v43 = vunpack.c.0.s8 %v70_v41  ;;  %v61_v50 = vld [vmem:[%s230_s3] sm:$0x3]  ;;  %v119_v63 = vld [vmem:[%s231_s0 + $0x8] sm:$0xff] }
   0x4   :  { %v26_v8 = vadd.f32 %v25_v3, %v23_v0  ;;  %v32_v9 = vadd.f32 %v31_v4, %v24_v1  ;;  %v89_v52 = vsub.s32 0, %v73_v44  ;;  %v93_v53 = vsub.s32 1, %v73_v44  ;;  %v85_v61 = vld [vmem:[%s232_s4] sm:$0x3] }
   0x5   :  { %v42_v10 = vadd.f32 %v41_v6, %v39_v2  ;;  %v48_v11 = vadd.f32 %v47_v7, %v40_v5  ;;  %v74_v46 = vsub.s32 %v71_v43, %v73_v44  ;;  %v118_v62 = vld [vmem:[%s231_s0] sm:$0xff] }
   0x6   :  { %v27_v12 = vrot.slane %v26_v8, 2  ;;  %v33_v13 = vrot.slane %v32_v9, 2  ;;  %v135_v1 = vld [vmem:[%s233_s5] sm:$0xff] }
   0x7   :  { %v43_v14 = vrot.slane %v42_v10, 2  ;;  %v49_v15 = vrot.slane %v48_v11, 2  ;;  %v136_v7 = vunpack.c.l.bf16 %v135_v1 }
   0x8   :  { %v28_v16 = vadd.f32 %v27_v12, %v26_v8  ;;  %v34_v17 = vadd.f32 %v33_v13, %v32_v9  ;;  %v137_v8 = vunpack.c.h.bf16 %v135_v1 }
   0x9   :  { %v44_v18 = vadd.f32 %v43_v14, %v42_v10  ;;  %v50_v19 = vadd.f32 %v49_v15, %v48_v11 }
   0xa   :  { %v29_v20 = vrot.slane %v28_v16, 1  ;;  %v35_v21 = vrot.slane %v34_v17, 1 }
   0xb   :  { %v45_v22 = vrot.slane %v44_v18, 1  ;;  %v51_v23 = vrot.slane %v50_v19, 1 }
   0xc   :  { %v30_v24 = vadd.f32 %v29_v20, %v28_v16  ;;  %v36_v25 = vadd.f32 %v35_v21, %v34_v17 }
   0xd   :  { %v46_v26 = vadd.f32 %v45_v22, %v44_v18  ;;  %v52_v27 = vadd.f32 %v51_v23, %v50_v19 }
   0xe   :  { %v37_v28 = vmul.f32 0.015625, %v30_v24  ;;  %v38_v29 = vmul.f32 0.015625, %v36_v25 }
   0xf   :  { %v53_v30 = vmul.f32 0.015625, %v46_v26  ;;  %v54_v31 = vmul.f32 0.015625, %v52_v27 }
  0x10   :  { %v55_v32 = vmul.f32 %v37_v28, %v37_v28  ;;  %v56_v33 = vmul.f32 %v38_v29, %v38_v29 }
  0x12   :  { %v57_v34 = vsub.f32 %v53_v30, %v55_v32  ;;  %v58_v35 = vsub.f32 %v54_v31, %v56_v33 }
  0x14   :  { %v59_v36 = vmax.f32 %v57_v34, 0.0  ;;  %v60_v37 = vmax.f32 %v58_v35, 0.0 }
  0x16   :  { %v62_v38 = vadd.f32 1e-05, %v59_v36  ;;  %v63_v39 = vadd.f32 1e-05, %v60_v37 }
  0x18   :  { %158 = vrsqrt.f32 %v62_v38 }
  0x19   :  { %160 = vrsqrt.f32 %v63_v39 }
  0x22   :  { %v159_v45 = vpop.eup %158 }
  0x23   :  { %v161_v47 = vpop.eup %160 }
  0x24   :  { %v68_v48 = vcombine.low %v159_v45, %v161_v47 }
  0x26   :  { %v75_v49 = vrot.slane %v68_v48, %v74_v46 }
  0x28   :  { %v82_v51 = vrot.slane %v75_v49, %v74_v46 }
  0x2a   :  { %v84_v54 = vmul.f32 %v82_v51, %v61_v50 }
  0x2c   :  { %v90_v55 = vrot.slane %v84_v54, %v89_v52  ;;  %v94_v56 = vrot.slane %v84_v54, %v93_v53 }
  0x2e   :  { %v97_v57 = vmul.f32 %v90_v55, %v37_v28  ;;  %v98_v58 = vmul.f32 %v94_v56, %v38_v29  ;;  %v120_v3 = vmul.f32 %v118_v62, %v90_v55  ;;  %v121_v4 = vmul.f32 %v119_v63, %v94_v56 }
  0x30   :  { %v101_v59 = vcombine.low %v97_v57, %v98_v58 }
  0x32   :  { %v108_v60 = vrot.slane %v101_v59, %v74_v46 }
  0x34   :  { %v115_v0 = vrot.slane %v108_v60, %v74_v46 }
  0x36   :  { %v117_v2 = vsub.f32 %v85_v61, %v115_v0 }
  0x38   :  { %v126_v5 = vrot.slane %v117_v2, %v89_v52  ;;  %v130_v6 = vrot.slane %v117_v2, %v93_v53 }
  0x3a   :  { %v133_v9 = vadd.f32 %v126_v5, %v120_v3  ;;  %v134_v10 = vadd.f32 %v130_v6, %v121_v4 }
  0x3c   :  { %v138_v11 = vadd.f32 %v136_v7, %v133_v9  ;;  %v139_v12 = vadd.f32 %v137_v8, %v134_v10 }
  0x3e   :  { %v140_v13 = vmax.f32 %v138_v11, 0.0  ;;  %v141_v14 = vmax.f32 %v139_v12, 0.0 }
  0x40   :  { %v156_v15 = vpack.c.bf16 %v141_v14, %v140_v13 }
  0x42   :  { %150 = vst [vmem:[%s234_s6] sm:$0xff] %v156_v15 }

// kernel: _lambda_.47
= control target key start
LH: loop header
LB: loop body
LE: loop exit
PB: predicated region body
PF: predicated region fallthrough
CT: control target
= control target key end

     0   :  { %s342_s1 = inlined_call_operand.vmem [shape: f32[8,512], index: 1, kind: input, shape index: {}]   ;;  %s343_s2 = inlined_call_operand.vmem [shape: f32[8,512], index: 2, kind: input, shape index: {}]   ;;  %s344_s3 = inlined_call_operand.vmem [shape: f32[1,512], index: 3, kind: input, shape index: {}]   ;;  %s345_s0 = inlined_call_operand.vmem [shape: f32[8,512], index: 0, kind: input, shape index: {}]   ;;  %s346_s4 = inlined_call_operand.vmem [shape: f32[1,512], index: 4, kind: input, shape index: {}]   ;;  %s347_s5 = inlined_call_operand.vmem [shape: bf16[8,512], index: 5, kind: output, shape index: {}]  }
   0x1   :  { %v20_v0 = vld [vmem:[%s342_s1] sm:$0xff]  ;;  %v21_v1 = vld [vmem:[%s342_s1 + $0x8] sm:$0xff]  ;;  %v22_v2 = vld [vmem:[%s342_s1 + $0x10] sm:$0xff] }
   0x2   :  { %v23_v3 = vld [vmem:[%s342_s1 + $0x18] sm:$0xff]  ;;  %v24_v4 = vrot.slane %v20_v0, 4  ;;  %v30_v5 = vrot.slane %v21_v1, 4  ;;  %v36_v6 = vrot.slane %v22_v2, 4  ;;  %v52_v7 = vld [vmem:[%s343_s2] sm:$0xff]  ;;  %v53_v8 = vld [vmem:[%s343_s2 + $0x8] sm:$0xff] }
   0x3   :  { %v42_v9 = vrot.slane %v23_v3, 4  ;;  %v54_v10 = vld [vmem:[%s343_s2 + $0x10] sm:$0xff]  ;;  %v55_v11 = vld [vmem:[%s343_s2 + $0x18] sm:$0xff]  ;;  %v56_v12 = vrot.slane %v52_v7, 4  ;;  %v62_v13 = vrot.slane %v53_v8, 4 }
   0x4   :  { %v25_v14 = vadd.f32 %v24_v4, %v20_v0  ;;  %v31_v15 = vadd.f32 %v30_v5, %v21_v1  ;;  %v37_v16 = vadd.f32 %v36_v6, %v22_v2  ;;  %v68_v17 = vrot.slane %v54_v10, 4 }
   0x5   :  { %v43_v18 = vadd.f32 %v42_v9, %v23_v3  ;;  %v57_v19 = vadd.f32 %v56_v12, %v52_v7  ;;  %v63_v20 = vadd.f32 %v62_v13, %v53_v8  ;;  %v74_v21 = vrot.slane %v55_v11, 4 }
   0x6   :  { %v26_v22 = vrot.slane %v25_v14, 2  ;;  %v32_v23 = vrot.slane %v31_v15, 2  ;;  %v38_v24 = vrot.slane %v37_v16, 2  ;;  %v69_v25 = vadd.f32 %v68_v17, %v54_v10 }
   0x7   :  { %v44_v26 = vrot.slane %v43_v18, 2  ;;  %v58_v27 = vrot.slane %v57_v19, 2  ;;  %v64_v28 = vrot.slane %v63_v20, 2  ;;  %v75_v29 = vadd.f32 %v74_v21, %v55_v11 }
   0x8   :  { %v27_v30 = vadd.f32 %v26_v22, %v25_v14  ;;  %v33_v31 = vadd.f32 %v32_v23, %v31_v15  ;;  %v39_v32 = vadd.f32 %v38_v24, %v37_v16  ;;  %v70_v33 = vrot.slane %v69_v25, 2 }
   0x9   :  { %v45_v34 = vadd.f32 %v44_v26, %v43_v18  ;;  %v59_v35 = vadd.f32 %v58_v27, %v57_v19  ;;  %v65_v36 = vadd.f32 %v64_v28, %v63_v20  ;;  %v76_v37 = vrot.slane %v75_v29, 2 }
   0xa   :  { %v28_v38 = vrot.slane %v27_v30, 1  ;;  %v34_v39 = vrot.slane %v33_v31, 1  ;;  %v40_v40 = vrot.slane %v39_v32, 1  ;;  %v71_v41 = vadd.f32 %v70_v33, %v69_v25 }
   0xb   :  { %v46_v42 = vrot.slane %v45_v34, 1  ;;  %v60_v43 = vrot.slane %v59_v35, 1  ;;  %v66_v44 = vrot.slane %v65_v36, 1  ;;  %v77_v45 = vadd.f32 %v76_v37, %v75_v29 }
   0xc   :  { %v29_v46 = vadd.f32 %v28_v38, %v27_v30  ;;  %v35_v47 = vadd.f32 %v34_v39, %v33_v31  ;;  %v41_v48 = vadd.f32 %v40_v40, %v39_v32  ;;  %v72_v49 = vrot.slane %v71_v41, 1  ;;  %v96_v31 = vld [vmem:[%s344_s3] sm:$0xf] }
   0xd   :  { %v47_v50 = vadd.f32 %v46_v42, %v45_v34  ;;  %v61_v51 = vadd.f32 %v60_v43, %v59_v35  ;;  %v67_v52 = vadd.f32 %v66_v44, %v65_v36  ;;  %v78_v53 = vrot.slane %v77_v45, 1 }
   0xe   :  { %v48_v54 = vmul.f32 0.015625, %v29_v46  ;;  %v49_v55 = vmul.f32 0.015625, %v35_v47  ;;  %v50_v56 = vmul.f32 0.015625, %v41_v48  ;;  %v73_v57 = vadd.f32 %v72_v49, %v71_v41 }
   0xf   :  { %v51_v58 = vmul.f32 0.015625, %v47_v50  ;;  %v79_v59 = vadd.f32 %v78_v53, %v77_v45  ;;  %v80_v60 = vmul.f32 0.015625, %v61_v51  ;;  %v81_v61 = vmul.f32 0.015625, %v67_v52  ;;  %v135_v50 = vld [vmem:[%s346_s4] sm:$0xf]  ;;  %v192_v53 = vld [vmem:[%s345_s0 + $0x8] sm:$0xff] }
  0x10   :  { %v82_v62 = vmul.f32 0.015625, %v73_v57  ;;  %v84_v63 = vmul.f32 %v48_v54, %v48_v54  ;;  %v85_v0 = vmul.f32 %v49_v55, %v49_v55  ;;  %v86_v1 = vmul.f32 %v50_v56, %v50_v56  ;;  %v191_v52 = vld [vmem:[%s345_s0] sm:$0xff] }
  0x11   :  { %v83_v2 = vmul.f32 0.015625, %v79_v59  ;;  %v87_v3 = vmul.f32 %v51_v58, %v51_v58  ;;  %v263_v16 = vmov 1966171168   ;;  %v114_v18 = vlaneseq }
  0x12   :  { %v88_v4 = vsub.f32 %v80_v60, %v84_v63  ;;  %v89_v5 = vsub.f32 %v81_v61, %v85_v0  ;;  %v90_v6 = vsub.f32 %v82_v62, %v86_v1  ;;  %v112_v17 = vunpack.c.l.s4 %v263_v16 }
  0x13   :  { %v91_v7 = vsub.f32 %v83_v2, %v87_v3  ;;  %v115_v20 = vshrl.u32 %v114_v18, 7 }
  0x14   :  { %v92_v8 = vmax.f32 %v88_v4, 0.0  ;;  %v93_v9 = vmax.f32 %v89_v5, 0.0  ;;  %v94_v10 = vmax.f32 %v90_v6, 0.0  ;;  %v113_v19 = vunpack.c.0.s8 %v112_v17 }
  0x15   :  { %v95_v11 = vmax.f32 %v91_v7, 0.0  ;;  %v139_v32 = vsub.s32 0, %v115_v20  ;;  %v143_v34 = vsub.s32 1, %v115_v20  ;;  %v147_v35 = vsub.s32 2, %v115_v20 }
  0x16   :  { %v97_v12 = vadd.f32 1e-05, %v92_v8  ;;  %v98_v13 = vadd.f32 1e-05, %v93_v9  ;;  %v99_v14 = vadd.f32 1e-05, %v94_v10  ;;  %v116_v22 = vsub.s32 %v113_v19, %v115_v20 }
  0x17   :  { %v100_v15 = vadd.f32 1e-05, %v95_v11  ;;  %v151_v36 = vsub.s32 3, %v115_v20 }
  0x18   :  { %255 = vrsqrt.f32 %v97_v12 }
  0x19   :  { %257 = vrsqrt.f32 %v98_v13 }
  0x1a   :  { %259 = vrsqrt.f32 %v99_v14 }
  0x1b   :  { %261 = vrsqrt.f32 %v100_v15 }
  0x22   :  { %v256_v21 = vpop.eup %255 }
  0x23   :  { %v258_v23 = vpop.eup %257 }
  0x24   :  { %v260_v24 = vpop.eup %259  ;;  %v109_v25 = vcombine.low %v256_v21, %v258_v23 }
  0x25   :  { %v262_v26 = vpop.eup %261 }
  0x26   :  { %v110_v27 = vcombine.low %v260_v24, %v262_v26  ;;  %v117_v28 = vrot.slane %v109_v25, %v116_v22 }
  0x28   :  { %v124_v29 = vrot.slane %v110_v27, %v116_v22 }
  0x2a   :  { %v125_v30 = vcombine.low %v117_v28, %v124_v29 }
  0x2c   :  { %v132_v33 = vrot.slane %v125_v30, %v116_v22 }
  0x2e   :  { %v134_v37 = vmul.f32 %v132_v33, %v96_v31 }
  0x30   :  { %v140_v38 = vrot.slane %v134_v37, %v139_v32  ;;  %v144_v39 = vrot.slane %v134_v37, %v143_v34  ;;  %v148_v40 = vrot.slane %v134_v37, %v147_v35  ;;  %v152_v41 = vrot.slane %v134_v37, %v151_v36 }
  0x32   :  { %v157_v42 = vmul.f32 %v140_v38, %v48_v54  ;;  %v158_v43 = vmul.f32 %v144_v39, %v49_v55  ;;  %v159_v44 = vmul.f32 %v148_v40, %v50_v56  ;;  %v160_v45 = vmul.f32 %v152_v41, %v51_v58  ;;  %v193_v54 = vld [vmem:[%s345_s0 + $0x10] sm:$0xff]  ;;  %v194_v55 = vld [vmem:[%s345_s0 + $0x18] sm:$0xff] }
  0x33   :  { %v195_v57 = vmul.f32 %v191_v52, %v140_v38  ;;  %v196_v59 = vmul.f32 %v192_v53, %v144_v39  ;;  %v197_v60 = vmul.f32 %v193_v54, %v148_v40  ;;  %v198_v61 = vmul.f32 %v194_v55, %v152_v41 }
  0x34   :  { %v165_v46 = vcombine.low %v157_v42, %v158_v43  ;;  %v166_v47 = vcombine.low %v159_v44, %v160_v45 }
  0x36   :  { %v173_v48 = vrot.slane %v165_v46, %v116_v22  ;;  %v180_v49 = vrot.slane %v166_v47, %v116_v22 }
  0x38   :  { %v181_v51 = vcombine.low %v173_v48, %v180_v49 }
  0x3a   :  { %v188_v56 = vrot.slane %v181_v51, %v116_v22 }
  0x3c   :  { %v190_v58 = vsub.f32 %v135_v50, %v188_v56 }
  0x3e   :  { %v203_v62 = vrot.slane %v190_v58, %v139_v32  ;;  %v207_v63 = vrot.slane %v190_v58, %v143_v34  ;;  %v211_v0 = vrot.slane %v190_v58, %v147_v35  ;;  %v215_v1 = vrot.slane %v190_v58, %v151_v36 }
  0x40   :  { %v220_v2 = vadd.f32 %v203_v62, %v195_v57  ;;  %v221_v3 = vadd.f32 %v207_v63, %v196_v59  ;;  %v222_v4 = vadd.f32 %v211_v0, %v197_v60  ;;  %v223_v5 = vadd.f32 %v215_v1, %v198_v61 }
  0x42   :  { %v224_v6 = vmax.f32 %v220_v2, 0.0  ;;  %v225_v7 = vmax.f32 %v221_v3, 0.0  ;;  %v226_v8 = vmax.f32 %v222_v4, 0.0  ;;  %v227_v9 = vmax.f32 %v223_v5, 0.0 }
  0x44   :  { %v252_v10 = vpack.c.bf16 %v225_v7, %v224_v6  ;;  %v253_v11 = vpack.c.bf16 %v227_v9, %v226_v8 }
  0x46   :  { %244 = vst [vmem:[%s347_s5] sm:$0xff] %v252_v10  ;;  %245 = vst [vmem:[%s347_s5 + $0x8] sm:$0xff] %v253_v11 }

// kernel: _lambda_.46
= control target key start
LH: loop header
LB: loop body
LE: loop exit
PB: predicated region body
PF: predicated region fallthrough
CT: control target
= control target key end

     0   :  { %s1599_s15 = smov 0   ;;  %s1601_s16 = smov 0   ;;  %s1786_s0 = inlined_call_operand.vmem [shape: bf16[8,2304], index: 0, kind: input, shape index: {}]   ;;  %s1787_s1 = inlined_call_operand.vmem [shape: bf16[2304,512], index: 1, kind: input, shape index: {}]   ;;  %s1788_s2 = inlined_call_operand.vmem [shape: f32[8,512], index: 2, kind: output, shape index: {0}]   ;;  %s1789_s3 = inlined_call_operand.vmem [shape: f32[8,512], index: 3, kind: output, shape index: {1}]   ;;  %s1790_s4 = inlined_call_operand.vmem [shape: f32[8,512], index: 4, kind: output, shape index: {2}]  }
   0x1   :  { %s1603_s17 = smov 0  }
   0x2 LB: > { %s24_s18 = sadd.s32 1, %s1566_s16  ;;  %p1264_p0 = scmp.ge.s32.totalorder %s1570_s17, 1  ;;  %s1570_s17 = sphi %s1603_s17, %s15_s17   ;;  %s1566_s16 = sphi %s1601_s16, %s1792_s16   ;;  %s1562_s15 = sphi %s1599_s15, %s1791_s15  }
   0x3   : > { %p25_p1 = scmp.ge.s32.totalorder %s24_s18, 6  ;;  %p198_p2 = scmp.lt.s32.totalorder %s1570_s17, 7 }
   0x5   : > { %s1794_s18 = smov (%p25_p1, %s24_s18), 0  ;;  %p199_p3 = pnand %p1264_p0, %p198_p2 }
   0x6   : > { %s244_s19 = smul.u32 (!%p199_p3), 3, %s1562_s15  ;;  %p1268_p6 = scmp.ne.s32.totalorder (!%p199_p3), %s1562_s15, 0 }
   0x7   : > { %202 = sbr.rel (%p199_p3) target bundleno = 362 (0x16a), region = 28 }
   0x8   : > { %s254_s20 = smul.u32 (!%p199_p3), 48, %s1562_s15  ;;  %p247_p4 = scmp.lt.s32.totalorder (!%p199_p3), %s244_s19, 17 }
   0xa   : > { %p255_p5 = scmp.lt.s32.totalorder (!%p199_p3), %s254_s20, 287 }
   0xe   : > { %s1796_s19 = smov (!%p247_p4, %s244_s19), 17  ;;  %s1798_s20 = smov (!%p255_p5, %s254_s20), 287 }
   0xf   : > { %s1265_s21 = sshll.u32 %s1796_s19, 2  ;;  %s1374_s25 = sshll.u32 %s1798_s20, 4  ;;  %v1572_v0 = vmov (!%p1268_p6), 0.0  }
  0x10   : > { %s1624_s24 = scalar_lea.vmem %s1786_s0, %s1265_s21  ;;  %s1629_s28 = scalar_lea.vmem %s1787_s1, %s1374_s25  ;;  %281 = vst [vmem:[#allocation2] sm:$0xff] (!%p1268_p6), %v1572_v0  ;;  %282 = vst [vmem:[#allocation2 + $0x8] sm:$0xff] (!%p1268_p6), %v1572_v0 }
  0x11   : > { %280 = sbr.rel (%p1268_p6) target bundleno = 24 (0x18), region = 32  ;;  %283 = vst [vmem:[#allocation2 + $0x10] sm:$0xff] (!%p1268_p6), %v1572_v0  ;;  %284 = vst [vmem:[#allocation2 + $0x18] sm:$0xff] (!%p1268_p6), %v1572_v0 }
  0x18 PF: > { %v1401_v1 = vld [vmem:[%s1629_s28 + $0x4] ss:$16 sps:$4 sm:$0xff]   ;;  %v1573_v3 = vmov 0   ;;  %v1405_v4 = vld [vmem:[%s1629_s28] ss:$16 sps:$4 sm:$0xff]   ;;  %p1368_p7 = scmp.ne.s32.totalorder %s1562_s15, 5 }
  0x19   : > { %v1403_v2 = vld [vmem:[%s1629_s28 + $0x204] ss:$16 sps:$4 sm:$0xff]   ;;  %951 = vmatprep.mubr.bf16.mxu1 %v1573_v3  ;;  %878 = vmatprep.subr.bf16.mxu0 %v1401_v1  ;;  %v1406_v5 = vld [vmem:[%s1629_s28 + $0x200] ss:$16 sps:$4 sm:$0xff]   ;;  %v1454_v35 = vld [vmem:[%s1629_s28 + $0xc] ss:$16 sps:$4 sm:$0xff]  }
  0x1a   : > { %919 = vmatprep.subr.bf16.mxu1 %v1403_v2  ;;  %v1407_v6 = vld [vmem:[%s1629_s28 + $0x24] ss:$16 sps:$4 sm:$0xff]   ;;  %879 = vmatpush1.bf16.msra.mxu0 %v1405_v4  ;;  %v1411_v8 = vld [vmem:[%s1629_s28 + $0x20] ss:$16 sps:$4 sm:$0xff]   ;;  %v1668_v36 = vld [vmem:[%s1624_s24 + $0x8] ss:$0 sps:$4 sm:$0xff]  }
  0x1b   : > { %920 = vmatpush1.bf16.msra.mxu1 %v1406_v5  ;;  %v1409_v7 = vld [vmem:[%s1629_s28 + $0x224] ss:$16 sps:$4 sm:$0xff]   ;;  %880 = vmatprep.subr.bf16.mxu0 %v1407_v6  ;;  %v1412_v9 = vld [vmem:[%s1629_s28 + $0x220] ss:$16 sps:$4 sm:$0xff]   ;;  %v1452_v37 = vld [vmem:[%s1629_s28 + $0x8] ss:$16 sps:$4 sm:$0xff]  }
  0x1c   : > { %921 = vmatprep.subr.bf16.mxu1 %v1409_v7  ;;  %v1413_v10 = vld [vmem:[%s1629_s28 + $0x44] ss:$16 sps:$4 sm:$0xff]   ;;  %v1417_v12 = vld [vmem:[%s1629_s28 + $0x40] ss:$16 sps:$4 sm:$0xff]   ;;  %v1460_v40 = vld [vmem:[%s1629_s28 + $0x2c] ss:$16 sps:$4 sm:$0xff]  }
  0x1d   : > { %v1415_v11 = vld [vmem:[%s1629_s28 + $0x244] ss:$16 sps:$4 sm:$0xff]   ;;  %v1418_v13 = vld [vmem:[%s1629_s28 + $0x240] ss:$16 sps:$4 sm:$0xff]   ;;  %v1458_v41 = vld [vmem:[%s1629_s28 + $0x28] ss:$16 sps:$4 sm:$0xff]  }
  0x1e   : > { %881 = vmatpush1.bf16.msra.mxu0 %v1411_v8  ;;  %v1419_v14 = vld [vmem:[%s1629_s28 + $0x64] ss:$16 sps:$4 sm:$0xff]   ;;  %v1423_v16 = vld [vmem:[%s1629_s28 + $0x60] ss:$16 sps:$4 sm:$0xff]   ;;  %v1466_v44 = vld [vmem:[%s1629_s28 + $0x4c] ss:$16 sps:$4 sm:$0xff]  }
  0x1f   : > { %922 = vmatpush1.bf16.msra.mxu1 %v1412_v9  ;;  %882 = vmatprep.subr.bf16.mxu0 %v1413_v10  ;;  %v1421_v15 = vld [vmem:[%s1629_s28 + $0x264] ss:$16 sps:$4 sm:$0xff]   ;;  %v1424_v17 = vld [vmem:[%s1629_s28 + $0x260] ss:$16 sps:$4 sm:$0xff]   ;;  %v1464_v45 = vld [vmem:[%s1629_s28 + $0x48] ss:$16 sps:$4 sm:$0xff]  }
  0x20   : > { %923 = vmatprep.subr.bf16.mxu1 %v1415_v11  ;;  %v1425_v18 = vld [vmem:[%s1629_s28 + $0x84] ss:$16 sps:$4 sm:$0xff]   ;;  %v1429_v20 = vld [vmem:[%s1629_s28 + $0x80] ss:$16 sps:$4 sm:$0xff]   ;;  %v1472_v48 = vld [vmem:[%s1629_s28 + $0x6c] ss:$16 sps:$4 sm:$0xff]  }
  0x21   : > { %v1427_v19 = vld [vmem:[%s1629_s28 + $0x284] ss:$16 sps:$4 sm:$0xff]   ;;  %v1430_v21 = vld [vmem:[%s1629_s28 + $0x280] ss:$16 sps:$4 sm:$0xff]   ;;  %v1470_v49 = vld [vmem:[%s1629_s28 + $0x68] ss:$16 sps:$4 sm:$0xff]  }
  0x22   : > { %883 = vmatpush1.bf16.msra.mxu0 %v1417_v12  ;;  %v1431_v22 = vld [vmem:[%s1629_s28 + $0xa4] ss:$16 sps:$4 sm:$0xff]   ;;  %v1435_v24 = vld [vmem:[%s1629_s28 + $0xa0] ss:$16 sps:$4 sm:$0xff]   ;;  %v1478_v54 = vld [vmem:[%s1629_s28 + $0x8c] ss:$16 sps:$4 sm:$0xff]  }
  0x23   : > { %924 = vmatpush1.bf16.msra.mxu1 %v1418_v13  ;;  %884 = vmatprep.subr.bf16.mxu0 %v1419_v14  ;;  %v1433_v23 = vld [vmem:[%s1629_s28 + $0x2a4] ss:$16 sps:$4 sm:$0xff]   ;;  %v1436_v25 = vld [vmem:[%s1629_s28 + $0x2a0] ss:$16 sps:$4 sm:$0xff]   ;;  %v1476_v55 = vld [vmem:[%s1629_s28 + $0x88] ss:$16 sps:$4 sm:$0xff]  }
  0x24   : > { %925 = vmatprep.subr.bf16.mxu1 %v1421_v15  ;;  %v1437_v26 = vld [vmem:[%s1629_s28 + $0xc4] ss:$16 sps:$4 sm:$0xff]   ;;  %v1441_v28 = vld [vmem:[%s1629_s28 + $0xc0] ss:$16 sps:$4 sm:$0xff]   ;;  %v1484_v58 = vld [vmem:[%s1629_s28 + $0xac] ss:$16 sps:$4 sm:$0xff]  }
  0x25   : > { %v1439_v27 = vld [vmem:[%s1629_s28 + $0x2c4] ss:$16 sps:$4 sm:$0xff]   ;;  %v1442_v29 = vld [vmem:[%s1629_s28 + $0x2c0] ss:$16 sps:$4 sm:$0xff]   ;;  %v1482_v59 = vld [vmem:[%s1629_s28 + $0xa8] ss:$16 sps:$4 sm:$0xff]  }
  0x26   : > { %885 = vmatpush1.bf16.msra.mxu0 %v1423_v16  ;;  %v1443_v30 = vld [vmem:[%s1629_s28 + $0xe4] ss:$16 sps:$4 sm:$0xff]   ;;  %v1447_v32 = vld [vmem:[%s1629_s28 + $0xe0] ss:$16 sps:$4 sm:$0xff]   ;;  %v1490_v62 = vld [vmem:[%s1629_s28 + $0xcc] ss:$16 sps:$4 sm:$0xff]  }
  0x27   : > { %926 = vmatpush1.bf16.msra.mxu1 %v1424_v17  ;;  %886 = vmatprep.subr.bf16.mxu0 %v1425_v18  ;;  %v1445_v31 = vld [vmem:[%s1629_s28 + $0x2e4] ss:$16 sps:$4 sm:$0xff]   ;;  %v1448_v33 = vld [vmem:[%s1629_s28 + $0x2e0] ss:$16 sps:$4 sm:$0xff]   ;;  %v1488_v63 = vld [vmem:[%s1629_s28 + $0xc8] ss:$16 sps:$4 sm:$0xff]  }
  0x28   : > { %927 = vmatprep.subr.bf16.mxu1 %v1427_v19  ;;  %v1449_v34 = vld [vmem:[%s1629_s28 + $0x104] ss:$16 sps:$4 sm:$0xff]   ;;  %v1455_v38 = vld [vmem:[%s1629_s28 + $0x100] ss:$16 sps:$4 sm:$0xff]   ;;  %v1496_v2 = vld [vmem:[%s1629_s28 + $0xec] ss:$16 sps:$4 sm:$0xff]  }
  0x29   : > { %v1456_v39 = vld [vmem:[%s1629_s28 + $0x124] ss:$16 sps:$4 sm:$0xff]   ;;  %v1461_v42 = vld [vmem:[%s1629_s28 + $0x120] ss:$16 sps:$4 sm:$0xff]   ;;  %v1494_v4 = vld [vmem:[%s1629_s28 + $0xe8] ss:$16 sps:$4 sm:$0xff]  }
  0x2a   : > { %887 = vmatpush1.bf16.msra.mxu0 %v1429_v20  ;;  %v1462_v43 = vld [vmem:[%s1629_s28 + $0x144] ss:$16 sps:$4 sm:$0xff]   ;;  %v1467_v46 = vld [vmem:[%s1629_s28 + $0x140] ss:$16 sps:$4 sm:$0xff]   ;;  %v1502_v6 = vld [vmem:[%s1629_s28 + $0x10c] ss:$16 sps:$4 sm:$0xff]  }
  0x2b   : > { %928 = vmatpush1.bf16.msra.mxu1 %v1430_v21  ;;  %888 = vmatprep.subr.bf16.mxu0 %v1431_v22  ;;  %v1468_v47 = vld [vmem:[%s1629_s28 + $0x164] ss:$16 sps:$4 sm:$0xff]   ;;  %v1473_v51 = vld [vmem:[%s1629_s28 + $0x160] ss:$16 sps:$4 sm:$0xff]   ;;  %v1505_v7 = vld [vmem:[%s1629_s28 + $0x20c] ss:$16 sps:$4 sm:$0xff]  }
  0x2c   : > { %929 = vmatprep.subr.bf16.mxu1 %v1433_v23  ;;  %v289_v50 = vld [vmem:[%s1624_s24] sm:$0xff]  ;;  %v1500_v9 = vld [vmem:[%s1629_s28 + $0x108] ss:$16 sps:$4 sm:$0xff]   ;;  %v1508_v11 = vld [vmem:[%s1629_s28 + $0x12c] ss:$16 sps:$4 sm:$0xff]  }
  0x2d   : > { %v1474_v52 = vld [vmem:[%s1629_s28 + $0x184] ss:$16 sps:$4 sm:$0xff]   ;;  %v1270_v53 = vcombine.high %v289_v50, %v289_v50  ;;  %v1479_v56 = vld [vmem:[%s1629_s28 + $0x180] ss:$16 sps:$4 sm:$0xff]   ;;  %v1704_v8 = vcombine.low %v289_v50, %v289_v50  ;;  %v1503_v10 = vld [vmem:[%s1629_s28 + $0x208] ss:$16 sps:$4 sm:$0xff]  }
  0x2e   : > { %889 = vmatpush1.bf16.msra.mxu0 %v1435_v24  ;;  %v1480_v57 = vld [vmem:[%s1629_s28 + $0x1a4] ss:$16 sps:$4 sm:$0xff]   ;;  %v1485_v60 = vld [vmem:[%s1629_s28 + $0x1a0] ss:$16 sps:$4 sm:$0xff]   ;;  %v1511_v12 = vld [vmem:[%s1629_s28 + $0x22c] ss:$16 sps:$4 sm:$0xff]  }
  0x2f   : > { %930 = vmatpush1.bf16.msra.mxu1 %v1436_v25  ;;  %890 = vmatprep.subr.bf16.mxu0 %v1437_v26  ;;  %v1486_v61 = vld [vmem:[%s1629_s28 + $0x1c4] ss:$16 sps:$4 sm:$0xff]   ;;  %v1491_v0 = vld [vmem:[%s1629_s28 + $0x1c0] ss:$16 sps:$4 sm:$0xff]   ;;  %v1506_v13 = vld [vmem:[%s1629_s28 + $0x128] ss:$16 sps:$4 sm:$0xff]  }
  0x30   : > { %931 = vmatprep.subr.bf16.mxu1 %v1439_v27  ;;  %910 = vmatprep.mubr.bf16.mxu0 %v1270_v53  ;;  %v1492_v1 = vld [vmem:[%s1629_s28 + $0x1e4] ss:$16 sps:$4 sm:$0xff]   ;;  %v1497_v5 = vld [vmem:[%s1629_s28 + $0x1e0] ss:$16 sps:$4 sm:$0xff]   ;;  %v1509_v14 = vld [vmem:[%s1629_s28 + $0x228] ss:$16 sps:$4 sm:$0xff]  }
  0x31   : > { %v1514_v15 = vld [vmem:[%s1629_s28 + $0x14c] ss:$16 sps:$4 sm:$0xff]   ;;  %v1512_v17 = vld [vmem:[%s1629_s28 + $0x148] ss:$16 sps:$4 sm:$0xff]  }
  0x32   : > { %891 = vmatpush1.bf16.msra.mxu0 %v1441_v28  ;;  %v1517_v16 = vld [vmem:[%s1629_s28 + $0x24c] ss:$16 sps:$4 sm:$0xff]   ;;  %v1515_v18 = vld [vmem:[%s1629_s28 + $0x248] ss:$16 sps:$4 sm:$0xff]  }
  0x33   : > { %932 = vmatpush1.bf16.msra.mxu1 %v1442_v29  ;;  %892 = vmatprep.subr.bf16.mxu0 %v1443_v30  ;;  %v1520_v19 = vld [vmem:[%s1629_s28 + $0x16c] ss:$16 sps:$4 sm:$0xff]   ;;  %v1518_v21 = vld [vmem:[%s1629_s28 + $0x168] ss:$16 sps:$4 sm:$0xff]  }
  0x34   : > { %933 = vmatprep.subr.bf16.mxu1 %v1445_v31  ;;  %v1523_v20 = vld [vmem:[%s1629_s28 + $0x26c] ss:$16 sps:$4 sm:$0xff]   ;;  %v1521_v22 = vld [vmem:[%s1629_s28 + $0x268] ss:$16 sps:$4 sm:$0xff]  }
  0x35   : > { %v1529_v23 = vld [vmem:[%s1629_s28 + $0x28c] ss:$16 sps:$4 sm:$0xff]   ;;  %v1524_v24 = vld [vmem:[%s1629_s28 + $0x188] ss:$16 sps:$4 sm:$0xff]  }
  0x36   : > { %893 = vmatpush1.bf16.msra.mxu0 %v1447_v32  ;;  %v1527_v25 = vld [vmem:[%s1629_s28 + $0x288] ss:$16 sps:$4 sm:$0xff]   ;;  %v1532_v26 = vld [vmem:[%s1629_s28 + $0x1ac] ss:$16 sps:$4 sm:$0xff]  }
  0x37   : > { %934 = vmatpush1.bf16.msra.mxu1 %v1448_v33  ;;  %894 = vmatprep.subr.bf16.mxu0 %v1449_v34  ;;  %v1535_v27 = vld [vmem:[%s1629_s28 + $0x2ac] ss:$16 sps:$4 sm:$0xff]   ;;  %v1530_v28 = vld [vmem:[%s1629_s28 + $0x1a8] ss:$16 sps:$4 sm:$0xff]  }
  0x38   : > { %960 = vmatprep.subr.bf16.mxu1 %v1454_v35  ;;  %v1533_v29 = vld [vmem:[%s1629_s28 + $0x2a8] ss:$16 sps:$4 sm:$0xff]   ;;  %v1538_v30 = vld [vmem:[%s1629_s28 + $0x1cc] ss:$16 sps:$4 sm:$0xff]  }
  0x39   : > { %v1541_v31 = vld [vmem:[%s1629_s28 + $0x2cc] ss:$16 sps:$4 sm:$0xff]   ;;  %v1536_v32 = vld [vmem:[%s1629_s28 + $0x1c8] ss:$16 sps:$4 sm:$0xff]  }
  0x3a   : > { %952 = vmatmul.mubr.bf16.vlgmr.msra.gmra.mrb[0].mxu1 %v1668_v36  ;;  %895 = vmatpush1.bf16.msra.mxu0 %v1455_v38  ;;  %v1539_v33 = vld [vmem:[%s1629_s28 + $0x2c8] ss:$16 sps:$4 sm:$0xff]   ;;  %v1544_v34 = vld [vmem:[%s1629_s28 + $0x1ec] ss:$16 sps:$4 sm:$0xff]  }
  0x3b   : > { %961 = vmatpush1.bf16.msra.mxu1 %v1452_v37  ;;  %896 = vmatprep.subr.bf16.mxu0 %v1456_v39  ;;  %v1547_v35 = vld [vmem:[%s1629_s28 + $0x2ec] ss:$16 sps:$4 sm:$0xff]   ;;  %v1542_v37 = vld [vmem:[%s1629_s28 + $0x1e8] ss:$16 sps:$4 sm:$0xff]  }
  0x3c   : > { %962 = vmatprep.subr.bf16.mxu1 %v1460_v40  ;;  %992 = vmatprep.mubr.bf16.mxu1 %v1270_v53  ;;  %v1545_v38 = vld [vmem:[%s1629_s28 + $0x2e8] ss:$16 sps:$4 sm:$0xff]  }
  0x3e   : > { %897 = vmatpush1.bf16.msra.mxu0 %v1461_v42 }
  0x3f   : > { %963 = vmatpush1.bf16.msra.mxu1 %v1458_v41  ;;  %898 = vmatprep.subr.bf16.mxu0 %v1462_v43  ;;  %v285_v43 = vld [vmem:[#allocation2] sm:$0xff] }
  0x40   : > { %964 = vmatprep.subr.bf16.mxu1 %v1466_v44 }
  0x42   : > { %899 = vmatpush1.bf16.msra.mxu0 %v1467_v46  ;;  %v286_v46 = vld [vmem:[#allocation2 + $0x8] sm:$0xff] }
  0x43   : > { %965 = vmatpush1.bf16.msra.mxu1 %v1464_v45  ;;  %900 = vmatprep.subr.bf16.mxu0 %v1468_v47 }
  0x44   : > { %966 = vmatprep.subr.bf16.mxu1 %v1472_v48 }
  0x46   : > { %901 = vmatpush1.bf16.msra.mxu0 %v1473_v51 }
  0x47   : > { %967 = vmatpush1.bf16.msra.mxu1 %v1470_v49  ;;  %902 = vmatprep.subr.bf16.mxu0 %v1474_v52 }
  0x48   : > { %968 = vmatprep.subr.bf16.mxu1 %v1478_v54  ;;  %v287_v54 = vld [vmem:[#allocation2 + $0x10] sm:$0xff] }
  0x4a   : > { %903 = vmatpush1.bf16.msra.mxu0 %v1479_v56 }
  0x4b   : > { %969 = vmatpush1.bf16.msra.mxu1 %v1476_v55  ;;  %904 = vmatprep.subr.bf16.mxu0 %v1480_v57  ;;  %v288_v57 = vld [vmem:[#allocation2 + $0x18] sm:$0xff] }
  0x4c   : > { %970 = vmatprep.subr.bf16.mxu1 %v1484_v58 }
  0x4e   : > { %905 = vmatpush1.bf16.msra.mxu0 %v1485_v60 }
  0x4f   : > { %971 = vmatpush1.bf16.msra.mxu1 %v1482_v59  ;;  %906 = vmatprep.subr.bf16.mxu0 %v1486_v61 }
  0x50   : > { %972 = vmatprep.subr.bf16.mxu1 %v1490_v62 }
  0x52   : > { %907 = vmatpush1.bf16.msra.mxu0 %v1491_v0 }
  0x53   : > { %973 = vmatpush1.bf16.msra.mxu1 %v1488_v63  ;;  %908 = vmatprep.subr.bf16.mxu0 %v1492_v1 }
  0x54   : > { %974 = vmatprep.subr.bf16.mxu1 %v1496_v2 }
  0x56   : > { %909 = vmatpush1.bf16.msra.mxu0 %v1497_v5 }
  0x57   : > { %975 = vmatpush1.bf16.msra.mxu1 %v1494_v4  ;;  %1001 = vmatprep.subr.bf16.mxu0 %v1505_v7 }
  0x58   : > { %976 = vmatprep.subr.bf16.mxu1 %v1502_v6 }
  0x59   : > { %911 = vmatmul.mubr.bf16.vlgmr.msra.gmra.mrb[0].mxu0 %v1704_v8 }
  0x5a   : > { %1002 = vmatpush1.bf16.msra.mxu0 %v1503_v10  ;;  %1033 = vmatprep.mubr.bf16.mxu0 %v1573_v3  ;;  %v1526_v3 = vld [vmem:[%s1629_s28 + $0x18c] ss:$16 sps:$4 sm:$0xff]  }
  0x5b   : > { %977 = vmatpush1.bf16.msra.mxu1 %v1500_v9  ;;  %1003 = vmatprep.subr.bf16.mxu0 %v1511_v12 }
  0x5c   : > { %978 = vmatprep.subr.bf16.mxu1 %v1508_v11 }
  0x5e   : > { %1004 = vmatpush1.bf16.msra.mxu0 %v1509_v14 }
  0x5f   : > { %979 = vmatpush1.bf16.msra.mxu1 %v1506_v13  ;;  %1005 = vmatprep.subr.bf16.mxu0 %v1517_v16 }
  0x60   : > { %980 = vmatprep.subr.bf16.mxu1 %v1514_v15 }
  0x62   : > { %1006 = vmatpush1.bf16.msra.mxu0 %v1515_v18 }
  0x63   : > { %981 = vmatpush1.bf16.msra.mxu1 %v1512_v17  ;;  %1007 = vmatprep.subr.bf16.mxu0 %v1523_v20 }
  0x64   : > { %982 = vmatprep.subr.bf16.mxu1 %v1520_v19 }
  0x66   : > { %1008 = vmatpush1.bf16.msra.mxu0 %v1521_v22 }
  0x67   : > { %983 = vmatpush1.bf16.msra.mxu1 %v1518_v21  ;;  %1009 = vmatprep.subr.bf16.mxu0 %v1529_v23 }
  0x68   : > { %984 = vmatprep.subr.bf16.mxu1 %v1526_v3 }
  0x6a   : > { %1010 = vmatpush1.bf16.msra.mxu0 %v1527_v25 }
  0x6b   : > { %985 = vmatpush1.bf16.msra.mxu1 %v1524_v24  ;;  %1011 = vmatprep.subr.bf16.mxu0 %v1535_v27 }
  0x6c   : > { %986 = vmatprep.subr.bf16.mxu1 %v1532_v26 }
  0x6e   : > { %1012 = vmatpush1.bf16.msra.mxu0 %v1533_v29 }
  0x6f   : > { %987 = vmatpush1.bf16.msra.mxu1 %v1530_v28  ;;  %1013 = vmatprep.subr.bf16.mxu0 %v1541_v31 }
  0x70   : > { %988 = vmatprep.subr.bf16.mxu1 %v1538_v30 }
  0x72   : > { %1014 = vmatpush1.bf16.msra.mxu0 %v1539_v33 }
  0x73   : > { %989 = vmatpush1.bf16.msra.mxu1 %v1536_v32  ;;  %1015 = vmatprep.subr.bf16.mxu0 %v1547_v35 }
  0x74   : > { %990 = vmatprep.subr.bf16.mxu1 %v1544_v34 }
  0x76   : > { %1016 = vmatpush1.bf16.msra.mxu0 %v1545_v38 }
  0x77   : > { %991 = vmatpush1.bf16.msra.mxu1 %v1542_v37 }
  0x79   : > { %1034 = vmatmul.mubr.bf16.vlgmr.msra.gmra.mrb[4].mxu0 %v1668_v36 }
  0x7a   : > { %993 = vmatmul.mubr.bf16.vlgmr.msra.gmra.mrb[4].mxu1 %v1704_v8 }
 0x10d   : > { %v953_v39 = vpop.f32.mrb[0].mxu1 }
 0x10e   : > { %v955_v40 = vpop.f32.mrb[1].mxu1 }
 0x10f   : > { %v957_v41 = vpop.f32.mrb[2].mxu1 }
 0x110   : > { %v958_v42 = vpop.f32.mrb[3].mxu1 }
 0x12c   : > { %v912_v44 = vpop.f32.mrb[0].mxu0 }
 0x12d   : > { %v954_v45 = vadd.f32 %v953_v39, %v912_v44  ;;  %v914_v47 = vpop.f32.mrb[1].mxu0 }
 0x12e   : > { %v956_v48 = vadd.f32 %v955_v40, %v914_v47  ;;  %v916_v49 = vpop.f32.mrb[2].mxu0 }
 0x12f   : > { %v1042_v50 = vadd.f32 %v954_v45, %v285_v43  ;;  %v917_v51 = vpop.f32.mrb[3].mxu0 }
 0x130   : > { %v1043_v52 = vadd.f32 %v956_v48, %v286_v46 }
 0x131   : > { %1046 = vst [vmem:[#allocation2] sm:$0xff] %v1042_v50 }
 0x132   : > { %1047 = vst [vmem:[#allocation2 + $0x8] sm:$0xff] %v1043_v52 }
 0x138   : > { %v1054_v2 = vld [vmem:[#allocation2] sm:$0xff] (!%p1368_p7) }
 0x139   : > { %v1055_v4 = vld [vmem:[#allocation2 + $0x8] sm:$0xff] (!%p1368_p7)  ;;  %1058 = vst [vmem:[%s1788_s2] sm:$0xff] (!%p1368_p7), %v1054_v2  ;;  %v1062_v7 = vrot.slane (!%p1368_p7), %v1054_v2, 4  ;;  %v1086_v10 = vmul.f32 (!%p1368_p7), %v1054_v2, %v1054_v2 }
 0x13a   : > { %1059 = vst [vmem:[%s1788_s2 + $0x8] sm:$0xff] (!%p1368_p7), %v1055_v4  ;;  %v1068_v8 = vrot.slane (!%p1368_p7), %v1055_v4, 4  ;;  %v1087_v12 = vmul.f32 (!%p1368_p7), %v1055_v4, %v1055_v4 }
 0x13b   : > { %v1063_v15 = vadd.f32 (!%p1368_p7), %v1062_v7, %v1054_v2  ;;  %v1090_v18 = vrot.slane (!%p1368_p7), %v1086_v10, 4 }
 0x13c   : > { %v1069_v16 = vadd.f32 (!%p1368_p7), %v1068_v8, %v1055_v4  ;;  %v1096_v20 = vrot.slane (!%p1368_p7), %v1087_v12, 4 }
 0x13d   : > { %v1064_v3 = vrot.slane (!%p1368_p7), %v1063_v15, 2  ;;  %v1091_v25 = vadd.f32 (!%p1368_p7), %v1090_v18, %v1086_v10 }
 0x13e   : > { %v1070_v23 = vrot.slane (!%p1368_p7), %v1069_v16, 2  ;;  %v1097_v27 = vadd.f32 (!%p1368_p7), %v1096_v20, %v1087_v12 }
 0x13f   : > { %v1065_v30 = vadd.f32 (!%p1368_p7), %v1064_v3, %v1063_v15  ;;  %v1092_v33 = vrot.slane (!%p1368_p7), %v1091_v25, 2 }
 0x140   : > { %v1071_v31 = vadd.f32 (!%p1368_p7), %v1070_v23, %v1069_v16  ;;  %v1098_v35 = vrot.slane (!%p1368_p7), %v1097_v27, 2 }
 0x141   : > { %v1066_v39 = vrot.slane (!%p1368_p7), %v1065_v30, 1  ;;  %v1093_v42 = vadd.f32 (!%p1368_p7), %v1092_v33, %v1091_v25 }
 0x142   : > { %v1072_v40 = vrot.slane (!%p1368_p7), %v1071_v31, 1  ;;  %v1099_v44 = vadd.f32 (!%p1368_p7), %v1098_v35, %v1097_v27 }
 0x143   : > { %v1067_v47 = vadd.f32 (!%p1368_p7), %v1066_v39, %v1065_v30  ;;  %v1094_v50 = vrot.slane (!%p1368_p7), %v1093_v42, 1 }
 0x144   : > { %v1073_v48 = vadd.f32 (!%p1368_p7), %v1072_v40, %v1071_v31  ;;  %v1100_v52 = vrot.slane (!%p1368_p7), %v1099_v44, 1 }
 0x145   : > { %1114 = vst [vmem:[%s1789_s3] sm:$0xff] (!%p1368_p7), %v1067_v47 }
 0x146   : > { %1115 = vst [vmem:[%s1789_s3 + $0x8] sm:$0xff] (!%p1368_p7), %v1073_v48 }
 0x14c   : > { %v1035_v55 = vpop.f32.mrb[4].mxu0 }
 0x14d   : > { %v994_v53 = vpop.f32.mrb[4].mxu1  ;;  %v1037_v58 = vpop.f32.mrb[5].mxu0  ;;  %1053 = sbr.rel (%p1368_p7) target bundleno = 362 (0x16a), region = 36 }
 0x14e   : > { %v1036_v36 = vadd.f32 %v1035_v55, %v994_v53  ;;  %v996_v56 = vpop.f32.mrb[5].mxu1  ;;  %v1039_v61 = vpop.f32.mrb[6].mxu0  ;;  %v1095_v55 = vadd.f32 (!%p1368_p7), %v1094_v50, %v1093_v42 }
 0x14f   : > { %v1038_v59 = vadd.f32 %v1037_v58, %v996_v56  ;;  %v998_v60 = vpop.f32.mrb[6].mxu1  ;;  %v1040_v0 = vpop.f32.mrb[7].mxu0 }
 0x150   : > { %v1044_v62 = vadd.f32 %v1036_v36, %v287_v54  ;;  %v999_v63 = vpop.f32.mrb[7].mxu1  ;;  %v1101_v36 = vadd.f32 (!%p1368_p7), %v1100_v52, %v1099_v44  ;;  %1118 = vst [vmem:[%s1790_s4] sm:$0xff] (!%p1368_p7), %v1095_v55 }
 0x151   : > { %v1045_v1 = vadd.f32 %v1038_v59, %v288_v57 }
 0x152   : > { %1048 = vst [vmem:[#allocation2 + $0x10] sm:$0xff] %v1044_v62  ;;  %1119 = vst [vmem:[%s1790_s4 + $0x8] sm:$0xff] (!%p1368_p7), %v1101_v36 }
 0x153   : > { %1049 = vst [vmem:[#allocation2 + $0x18] sm:$0xff] %v1045_v1 }
 0x159   : > { %v1056_v5 = vld [vmem:[#allocation2 + $0x10] sm:$0xff] }
 0x15a   : > { %1060 = vst [vmem:[%s1788_s2 + $0x10] sm:$0xff] %v1056_v5  ;;  %v1057_v6 = vld [vmem:[#allocation2 + $0x18] sm:$0xff]  ;;  %v1074_v9 = vrot.slane %v1056_v5, 4  ;;  %v1088_v13 = vmul.f32 %v1056_v5, %v1056_v5 }
 0x15b   : > { %1061 = vst [vmem:[%s1788_s2 + $0x18] sm:$0xff] %v1057_v6  ;;  %v1080_v11 = vrot.slane %v1057_v6, 4  ;;  %v1089_v14 = vmul.f32 %v1057_v6, %v1057_v6 }
 0x15c   : > { %v1075_v17 = vadd.f32 %v1074_v9, %v1056_v5  ;;  %v1102_v21 = vrot.slane %v1088_v13, 4 }
 0x15d   : > { %v1081_v19 = vadd.f32 %v1080_v11, %v1057_v6  ;;  %v1108_v22 = vrot.slane %v1089_v14, 4 }
 0x15e   : > { %v1076_v24 = vrot.slane %v1075_v17, 2  ;;  %v1103_v28 = vadd.f32 %v1102_v21, %v1088_v13 }
 0x15f   : > { %v1082_v26 = vrot.slane %v1081_v19, 2  ;;  %v1109_v29 = vadd.f32 %v1108_v22, %v1089_v14 }
 0x160   : > { %v1077_v32 = vadd.f32 %v1076_v24, %v1075_v17  ;;  %v1104_v37 = vrot.slane %v1103_v28, 2 }
 0x161   : > { %v1083_v34 = vadd.f32 %v1082_v26, %v1081_v19  ;;  %v1110_v38 = vrot.slane %v1109_v29, 2 }
 0x162   : > { %v1078_v41 = vrot.slane %v1077_v32, 1  ;;  %v1105_v45 = vadd.f32 %v1104_v37, %v1103_v28 }
 0x163   : > { %v1084_v43 = vrot.slane %v1083_v34, 1  ;;  %v1111_v46 = vadd.f32 %v1110_v38, %v1109_v29 }
 0x164   : > { %v1079_v49 = vadd.f32 %v1078_v41, %v1077_v32  ;;  %v1106_v53 = vrot.slane %v1105_v45, 1 }
 0x165   : > { %v1085_v51 = vadd.f32 %v1084_v43, %v1083_v34  ;;  %v1112_v54 = vrot.slane %v1111_v46, 1 }
 0x166   : > { %1116 = vst [vmem:[%s1789_s3 + $0x10] sm:$0xff] %v1079_v49  ;;  %v1107_v56 = vadd.f32 %v1106_v53, %v1105_v45 }
 0x167   : > { %1117 = vst [vmem:[%s1789_s3 + $0x18] sm:$0xff] %v1085_v51  ;;  %v1113_v57 = vadd.f32 %v1112_v54, %v1111_v46 }
 0x168   : > { %1120 = vst [vmem:[%s1790_s4 + $0x10] sm:$0xff] %v1107_v56 }
 0x169   : > { %1121 = vst [vmem:[%s1790_s4 + $0x18] sm:$0xff] %v1113_v57 }
 0x16a PF: > { %s15_s17 = sadd.s32 1, %s1570_s17   ;;  %s1791_s15 = smov %s1566_s16 }
 0x16b   : > { %p12_p8 = scmp.ge.s32.totalorder %s15_s17, 8   ;;  %s1792_s16 = smov %s1794_s18 }
 0x16d   :  { %14 = sbr.rel (!%p12_p8) target bundleno = 2 (0x2), region = 93 }

// kernel: _lambda_.50
= control target key start
LH: loop header
LB: loop body
LE: loop exit
PB: predicated region body
PF: predicated region fallthrough
CT: control target
= control target key end

     0   :  { %s1875_s15 = smov 0   ;;  %s1877_s16 = smov 0   ;;  %s2096_s0 = inlined_call_operand.vmem [shape: bf16[8,4608], index: 0, kind: input, shape index: {}]   ;;  %s2097_s1 = inlined_call_operand.vmem [shape: bf16[4608,512], index: 1, kind: input, shape index: {}]   ;;  %s2098_s2 = inlined_call_operand.vmem [shape: f32[8,512], index: 2, kind: output, shape index: {0}]   ;;  %s2099_s3 = inlined_call_operand.vmem [shape: f32[8,512], index: 3, kind: output, shape index: {1}]   ;;  %s2100_s4 = inlined_call_operand.vmem [shape: f32[8,512], index: 4, kind: output, shape index: {2}]  }
   0x1   :  { %s1879_s17 = smov 0  }
   0x2 LB: > { %s24_s18 = sadd.s32 1, %s1843_s16  ;;  %p1458_p0 = scmp.ge.s32.totalorder %s1847_s17, 1  ;;  %s1847_s17 = sphi %s1879_s17, %s15_s17   ;;  %s1843_s16 = sphi %s1877_s16, %s2102_s16   ;;  %s1839_s15 = sphi %s1875_s15, %s2101_s15  }
   0x3   : > { %p25_p1 = scmp.ge.s32.totalorder %s24_s18, 9  ;;  %p198_p2 = scmp.lt.s32.totalorder %s1847_s17, 10 }
   0x5   : > { %s2104_s18 = smov (%p25_p1, %s24_s18), 0  ;;  %p199_p3 = pnand %p1458_p0, %p198_p2 }
   0x6   : > { %s1459_s19 = sshll.u32 (!%p199_p3), %s1839_s15, 2  ;;  %s1461_s20 = sshll.u32 (!%p199_p3), %s1839_s15, 6 }
   0x7   : > { %202 = sbr.rel (%p199_p3) target bundleno = 394 (0x18a), region = 28  ;;  %p247_p4 = scmp.lt.s32.totalorder (!%p199_p3), %s1459_s19, 35 }
   0x8   : > { %p255_p5 = scmp.lt.s32.totalorder (!%p199_p3), %s1461_s20, 575  ;;  %p1464_p6 = scmp.ne.s32.totalorder (!%p199_p3), %s1839_s15, 0 }
   0xe   : > { %s2106_s19 = smov (!%p247_p4, %s1459_s19), 35  ;;  %s2108_s20 = smov (!%p255_p5, %s1461_s20), 575 }
   0xf   : > { %s1460_s21 = sshll.u32 %s2106_s19, 2  ;;  %s1603_s25 = sshll.u32 %s2108_s20, 4  ;;  %v1849_v0 = vmov (!%p1464_p6), 0.0  }
  0x10   : > { %s1900_s24 = scalar_lea.vmem %s2096_s0, %s1460_s21  ;;  %s1905_s28 = scalar_lea.vmem %s2097_s1, %s1603_s25  ;;  %280 = vst [vmem:[#allocation2] sm:$0xff] (!%p1464_p6), %v1849_v0  ;;  %281 = vst [vmem:[#allocation2 + $0x8] sm:$0xff] (!%p1464_p6), %v1849_v0 }
  0x11   : > { %279 = sbr.rel (%p1464_p6) target bundleno = 24 (0x18), region = 32  ;;  %282 = vst [vmem:[#allocation2 + $0x10] sm:$0xff] (!%p1464_p6), %v1849_v0  ;;  %283 = vst [vmem:[#allocation2 + $0x18] sm:$0xff] (!%p1464_p6), %v1849_v0 }
  0x18 PF: > { %v1629_v1 = vld [vmem:[%s1905_s28 + $0x4] ss:$16 sps:$4 sm:$0xff]   ;;  %v1633_v3 = vld [vmem:[%s1905_s28] ss:$16 sps:$4 sm:$0xff]   ;;  %v289_v49 = vld [vmem:[%s1900_s24 + $0x8] sm:$0xff]  ;;  %p1597_p7 = scmp.ne.s32.totalorder %s1839_s15, 8 }
  0x19   : > { %v1631_v2 = vld [vmem:[%s1905_s28 + $0x204] ss:$16 sps:$4 sm:$0xff]   ;;  %1072 = vmatprep.subr.bf16.mxu0 %v1629_v1  ;;  %v1634_v4 = vld [vmem:[%s1905_s28 + $0x200] ss:$16 sps:$4 sm:$0xff]   ;;  %v1468_v52 = vcombine.high %v289_v49, %v289_v49 }
  0x1a   : > { %1113 = vmatprep.subr.bf16.mxu1 %v1631_v2  ;;  %v1635_v5 = vld [vmem:[%s1905_s28 + $0x24] ss:$16 sps:$4 sm:$0xff]   ;;  %1073 = vmatpush1.bf16.msra.mxu0 %v1633_v3  ;;  %v1639_v7 = vld [vmem:[%s1905_s28 + $0x20] ss:$16 sps:$4 sm:$0xff]  }
  0x1b   : > { %1114 = vmatpush1.bf16.msra.mxu1 %v1634_v4  ;;  %v1637_v6 = vld [vmem:[%s1905_s28 + $0x224] ss:$16 sps:$4 sm:$0xff]   ;;  %1074 = vmatprep.subr.bf16.mxu0 %v1635_v5  ;;  %v1640_v8 = vld [vmem:[%s1905_s28 + $0x220] ss:$16 sps:$4 sm:$0xff]   ;;  %v1731_v5 = vld [vmem:[%s1905_s28 + $0xc] ss:$16 sps:$4 sm:$0xff]  }
  0x1c   : > { %1115 = vmatprep.subr.bf16.mxu1 %v1637_v6  ;;  %v1641_v9 = vld [vmem:[%s1905_s28 + $0x44] ss:$16 sps:$4 sm:$0xff]   ;;  %v1645_v11 = vld [vmem:[%s1905_s28 + $0x40] ss:$16 sps:$4 sm:$0xff]   ;;  %1145 = vmatprep.mubr.bf16.mxu1 %v1468_v52  ;;  %v1734_v6 = vld [vmem:[%s1905_s28 + $0x20c] ss:$16 sps:$4 sm:$0xff]  }
  0x1d   : > { %v1643_v10 = vld [vmem:[%s1905_s28 + $0x244] ss:$16 sps:$4 sm:$0xff]   ;;  %v1646_v12 = vld [vmem:[%s1905_s28 + $0x240] ss:$16 sps:$4 sm:$0xff]  }
  0x1e   : > { %1075 = vmatpush1.bf16.msra.mxu0 %v1639_v7  ;;  %v1647_v13 = vld [vmem:[%s1905_s28 + $0x64] ss:$16 sps:$4 sm:$0xff]   ;;  %v1651_v15 = vld [vmem:[%s1905_s28 + $0x60] ss:$16 sps:$4 sm:$0xff]  }
  0x1f   : > { %1116 = vmatpush1.bf16.msra.mxu1 %v1640_v8  ;;  %1076 = vmatprep.subr.bf16.mxu0 %v1641_v9  ;;  %v1649_v14 = vld [vmem:[%s1905_s28 + $0x264] ss:$16 sps:$4 sm:$0xff]   ;;  %v1652_v16 = vld [vmem:[%s1905_s28 + $0x260] ss:$16 sps:$4 sm:$0xff]   ;;  %v1981_v8 = vcombine.low %v289_v49, %v289_v49  ;;  %v1729_v9 = vld [vmem:[%s1905_s28 + $0x8] ss:$16 sps:$4 sm:$0xff]  }
  0x20   : > { %1117 = vmatprep.subr.bf16.mxu1 %v1643_v10  ;;  %v1653_v17 = vld [vmem:[%s1905_s28 + $0x84] ss:$16 sps:$4 sm:$0xff]   ;;  %v1657_v19 = vld [vmem:[%s1905_s28 + $0x80] ss:$16 sps:$4 sm:$0xff]   ;;  %v1732_v10 = vld [vmem:[%s1905_s28 + $0x208] ss:$16 sps:$4 sm:$0xff]  }
  0x21   : > { %v1655_v18 = vld [vmem:[%s1905_s28 + $0x284] ss:$16 sps:$4 sm:$0xff]   ;;  %v1658_v20 = vld [vmem:[%s1905_s28 + $0x280] ss:$16 sps:$4 sm:$0xff]   ;;  %v1789_v49 = vld [vmem:[%s1905_s28 + $0x148] ss:$16 sps:$4 sm:$0xff]  }
  0x22   : > { %1077 = vmatpush1.bf16.msra.mxu0 %v1645_v11  ;;  %v1659_v21 = vld [vmem:[%s1905_s28 + $0xa4] ss:$16 sps:$4 sm:$0xff]   ;;  %v1663_v23 = vld [vmem:[%s1905_s28 + $0xa0] ss:$16 sps:$4 sm:$0xff]   ;;  %v1737_v11 = vld [vmem:[%s1905_s28 + $0x2c] ss:$16 sps:$4 sm:$0xff]  }
  0x23   : > { %1118 = vmatpush1.bf16.msra.mxu1 %v1646_v12  ;;  %1078 = vmatprep.subr.bf16.mxu0 %v1647_v13  ;;  %v1661_v22 = vld [vmem:[%s1905_s28 + $0x2a4] ss:$16 sps:$4 sm:$0xff]   ;;  %v1664_v24 = vld [vmem:[%s1905_s28 + $0x2a0] ss:$16 sps:$4 sm:$0xff]   ;;  %v1740_v12 = vld [vmem:[%s1905_s28 + $0x22c] ss:$16 sps:$4 sm:$0xff]  }
  0x24   : > { %1119 = vmatprep.subr.bf16.mxu1 %v1649_v14  ;;  %v1665_v25 = vld [vmem:[%s1905_s28 + $0xc4] ss:$16 sps:$4 sm:$0xff]   ;;  %v1669_v27 = vld [vmem:[%s1905_s28 + $0xc0] ss:$16 sps:$4 sm:$0xff]   ;;  %v1735_v13 = vld [vmem:[%s1905_s28 + $0x28] ss:$16 sps:$4 sm:$0xff]  }
  0x25   : > { %v1667_v26 = vld [vmem:[%s1905_s28 + $0x2c4] ss:$16 sps:$4 sm:$0xff]   ;;  %v1670_v28 = vld [vmem:[%s1905_s28 + $0x2c0] ss:$16 sps:$4 sm:$0xff]   ;;  %v1738_v14 = vld [vmem:[%s1905_s28 + $0x228] ss:$16 sps:$4 sm:$0xff]  }
  0x26   : > { %1079 = vmatpush1.bf16.msra.mxu0 %v1651_v15  ;;  %v1671_v29 = vld [vmem:[%s1905_s28 + $0xe4] ss:$16 sps:$4 sm:$0xff]   ;;  %v1675_v31 = vld [vmem:[%s1905_s28 + $0xe0] ss:$16 sps:$4 sm:$0xff]   ;;  %v1743_v15 = vld [vmem:[%s1905_s28 + $0x4c] ss:$16 sps:$4 sm:$0xff]  }
  0x27   : > { %1120 = vmatpush1.bf16.msra.mxu1 %v1652_v16  ;;  %1080 = vmatprep.subr.bf16.mxu0 %v1653_v17  ;;  %v1673_v30 = vld [vmem:[%s1905_s28 + $0x2e4] ss:$16 sps:$4 sm:$0xff]   ;;  %v1676_v32 = vld [vmem:[%s1905_s28 + $0x2e0] ss:$16 sps:$4 sm:$0xff]   ;;  %v1746_v16 = vld [vmem:[%s1905_s28 + $0x24c] ss:$16 sps:$4 sm:$0xff]  }
  0x28   : > { %1121 = vmatprep.subr.bf16.mxu1 %v1655_v18  ;;  %v1677_v33 = vld [vmem:[%s1905_s28 + $0x104] ss:$16 sps:$4 sm:$0xff]   ;;  %v1681_v35 = vld [vmem:[%s1905_s28 + $0x100] ss:$16 sps:$4 sm:$0xff]   ;;  %v1741_v17 = vld [vmem:[%s1905_s28 + $0x48] ss:$16 sps:$4 sm:$0xff]  }
  0x29   : > { %v1679_v34 = vld [vmem:[%s1905_s28 + $0x304] ss:$16 sps:$4 sm:$0xff]   ;;  %v1682_v36 = vld [vmem:[%s1905_s28 + $0x300] ss:$16 sps:$4 sm:$0xff]   ;;  %v1744_v18 = vld [vmem:[%s1905_s28 + $0x248] ss:$16 sps:$4 sm:$0xff]  }
  0x2a   : > { %1081 = vmatpush1.bf16.msra.mxu0 %v1657_v19  ;;  %v1683_v37 = vld [vmem:[%s1905_s28 + $0x124] ss:$16 sps:$4 sm:$0xff]   ;;  %v1687_v39 = vld [vmem:[%s1905_s28 + $0x120] ss:$16 sps:$4 sm:$0xff]   ;;  %v1749_v19 = vld [vmem:[%s1905_s28 + $0x6c] ss:$16 sps:$4 sm:$0xff]  }
  0x2b   : > { %1122 = vmatpush1.bf16.msra.mxu1 %v1658_v20  ;;  %1082 = vmatprep.subr.bf16.mxu0 %v1659_v21  ;;  %v1685_v38 = vld [vmem:[%s1905_s28 + $0x324] ss:$16 sps:$4 sm:$0xff]   ;;  %v1688_v40 = vld [vmem:[%s1905_s28 + $0x320] ss:$16 sps:$4 sm:$0xff]   ;;  %v1752_v20 = vld [vmem:[%s1905_s28 + $0x26c] ss:$16 sps:$4 sm:$0xff]  }
  0x2c   : > { %1123 = vmatprep.subr.bf16.mxu1 %v1661_v22  ;;  %v1689_v41 = vld [vmem:[%s1905_s28 + $0x144] ss:$16 sps:$4 sm:$0xff]   ;;  %v1693_v43 = vld [vmem:[%s1905_s28 + $0x140] ss:$16 sps:$4 sm:$0xff]   ;;  %v1747_v21 = vld [vmem:[%s1905_s28 + $0x68] ss:$16 sps:$4 sm:$0xff]  }
  0x2d   : > { %v1691_v42 = vld [vmem:[%s1905_s28 + $0x344] ss:$16 sps:$4 sm:$0xff]   ;;  %v1694_v44 = vld [vmem:[%s1905_s28 + $0x340] ss:$16 sps:$4 sm:$0xff]   ;;  %v1750_v22 = vld [vmem:[%s1905_s28 + $0x268] ss:$16 sps:$4 sm:$0xff]  }
  0x2e   : > { %1083 = vmatpush1.bf16.msra.mxu0 %v1663_v23  ;;  %v1695_v45 = vld [vmem:[%s1905_s28 + $0x164] ss:$16 sps:$4 sm:$0xff]   ;;  %v1699_v50 = vld [vmem:[%s1905_s28 + $0x160] ss:$16 sps:$4 sm:$0xff]   ;;  %v1755_v23 = vld [vmem:[%s1905_s28 + $0x8c] ss:$16 sps:$4 sm:$0xff]  }
  0x2f   : > { %1124 = vmatpush1.bf16.msra.mxu1 %v1664_v24  ;;  %1084 = vmatprep.subr.bf16.mxu0 %v1665_v25  ;;  %v1697_v46 = vld [vmem:[%s1905_s28 + $0x364] ss:$16 sps:$4 sm:$0xff]   ;;  %v1700_v51 = vld [vmem:[%s1905_s28 + $0x360] ss:$16 sps:$4 sm:$0xff]   ;;  %v1758_v24 = vld [vmem:[%s1905_s28 + $0x28c] ss:$16 sps:$4 sm:$0xff]  }
  0x30   : > { %1125 = vmatprep.subr.bf16.mxu1 %v1667_v26  ;;  %v288_v47 = vld [vmem:[%s1900_s24] sm:$0xff]  ;;  %v1753_v25 = vld [vmem:[%s1905_s28 + $0x88] ss:$16 sps:$4 sm:$0xff]  }
  0x31   : > { %v1955_v48 = vcombine.high %v288_v47, %v288_v47  ;;  %v1701_v53 = vld [vmem:[%s1905_s28 + $0x184] ss:$16 sps:$4 sm:$0xff]   ;;  %v1705_v55 = vld [vmem:[%s1905_s28 + $0x180] ss:$16 sps:$4 sm:$0xff]   ;;  %v1979_v7 = vcombine.low %v288_v47, %v288_v47  ;;  %v1756_v26 = vld [vmem:[%s1905_s28 + $0x288] ss:$16 sps:$4 sm:$0xff]  }
  0x32   : > { %1085 = vmatpush1.bf16.msra.mxu0 %v1669_v27  ;;  %v1703_v54 = vld [vmem:[%s1905_s28 + $0x384] ss:$16 sps:$4 sm:$0xff]   ;;  %v1706_v56 = vld [vmem:[%s1905_s28 + $0x380] ss:$16 sps:$4 sm:$0xff]   ;;  %v1761_v27 = vld [vmem:[%s1905_s28 + $0xac] ss:$16 sps:$4 sm:$0xff]  }
  0x33   : > { %1126 = vmatpush1.bf16.msra.mxu1 %v1670_v28  ;;  %1086 = vmatprep.subr.bf16.mxu0 %v1671_v29  ;;  %v1707_v57 = vld [vmem:[%s1905_s28 + $0x1a4] ss:$16 sps:$4 sm:$0xff]   ;;  %v1711_v59 = vld [vmem:[%s1905_s28 + $0x1a0] ss:$16 sps:$4 sm:$0xff]   ;;  %v1764_v28 = vld [vmem:[%s1905_s28 + $0x2ac] ss:$16 sps:$4 sm:$0xff]  }
  0x34   : > { %1127 = vmatprep.subr.bf16.mxu1 %v1673_v30  ;;  %1104 = vmatprep.mubr.bf16.mxu0 %v1955_v48  ;;  %v1709_v58 = vld [vmem:[%s1905_s28 + $0x3a4] ss:$16 sps:$4 sm:$0xff]   ;;  %v1712_v60 = vld [vmem:[%s1905_s28 + $0x3a0] ss:$16 sps:$4 sm:$0xff]   ;;  %v1759_v29 = vld [vmem:[%s1905_s28 + $0xa8] ss:$16 sps:$4 sm:$0xff]  }
  0x35   : > { %v1713_v61 = vld [vmem:[%s1905_s28 + $0x1c4] ss:$16 sps:$4 sm:$0xff]   ;;  %v1717_v63 = vld [vmem:[%s1905_s28 + $0x1c0] ss:$16 sps:$4 sm:$0xff]   ;;  %v1762_v30 = vld [vmem:[%s1905_s28 + $0x2a8] ss:$16 sps:$4 sm:$0xff]  }
  0x36   : > { %1087 = vmatpush1.bf16.msra.mxu0 %v1675_v31  ;;  %v1715_v62 = vld [vmem:[%s1905_s28 + $0x3c4] ss:$16 sps:$4 sm:$0xff]   ;;  %v1718_v0 = vld [vmem:[%s1905_s28 + $0x3c0] ss:$16 sps:$4 sm:$0xff]   ;;  %v1767_v31 = vld [vmem:[%s1905_s28 + $0xcc] ss:$16 sps:$4 sm:$0xff]  }
  0x37   : > { %1128 = vmatpush1.bf16.msra.mxu1 %v1676_v32  ;;  %1088 = vmatprep.subr.bf16.mxu0 %v1677_v33  ;;  %v1719_v1 = vld [vmem:[%s1905_s28 + $0x1e4] ss:$16 sps:$4 sm:$0xff]   ;;  %v1723_v3 = vld [vmem:[%s1905_s28 + $0x1e0] ss:$16 sps:$4 sm:$0xff]   ;;  %v1770_v32 = vld [vmem:[%s1905_s28 + $0x2cc] ss:$16 sps:$4 sm:$0xff]  }
  0x38   : > { %1129 = vmatprep.subr.bf16.mxu1 %v1679_v34  ;;  %v1721_v2 = vld [vmem:[%s1905_s28 + $0x3e4] ss:$16 sps:$4 sm:$0xff]   ;;  %v1724_v4 = vld [vmem:[%s1905_s28 + $0x3e0] ss:$16 sps:$4 sm:$0xff]   ;;  %v1765_v33 = vld [vmem:[%s1905_s28 + $0xc8] ss:$16 sps:$4 sm:$0xff]  }
  0x39   : > { %v1768_v34 = vld [vmem:[%s1905_s28 + $0x2c8] ss:$16 sps:$4 sm:$0xff]   ;;  %v1791_v47 = vld [vmem:[%s1905_s28 + $0x14c] ss:$16 sps:$4 sm:$0xff]  }
  0x3a   : > { %1089 = vmatpush1.bf16.msra.mxu0 %v1681_v35  ;;  %v1773_v35 = vld [vmem:[%s1905_s28 + $0xec] ss:$16 sps:$4 sm:$0xff]  }
  0x3b   : > { %1130 = vmatpush1.bf16.msra.mxu1 %v1682_v36  ;;  %1090 = vmatprep.subr.bf16.mxu0 %v1683_v37  ;;  %v1776_v36 = vld [vmem:[%s1905_s28 + $0x2ec] ss:$16 sps:$4 sm:$0xff]   ;;  %v1771_v37 = vld [vmem:[%s1905_s28 + $0xe8] ss:$16 sps:$4 sm:$0xff]  }
  0x3c   : > { %1131 = vmatprep.subr.bf16.mxu1 %v1685_v38  ;;  %v1774_v38 = vld [vmem:[%s1905_s28 + $0x2e8] ss:$16 sps:$4 sm:$0xff]  }
  0x3e   : > { %1091 = vmatpush1.bf16.msra.mxu0 %v1687_v39  ;;  %v1779_v39 = vld [vmem:[%s1905_s28 + $0x10c] ss:$16 sps:$4 sm:$0xff]  }
  0x3f   : > { %1132 = vmatpush1.bf16.msra.mxu1 %v1688_v40  ;;  %1092 = vmatprep.subr.bf16.mxu0 %v1689_v41  ;;  %v1782_v40 = vld [vmem:[%s1905_s28 + $0x30c] ss:$16 sps:$4 sm:$0xff]   ;;  %v1777_v41 = vld [vmem:[%s1905_s28 + $0x108] ss:$16 sps:$4 sm:$0xff]  }
  0x40   : > { %1133 = vmatprep.subr.bf16.mxu1 %v1691_v42  ;;  %v1780_v42 = vld [vmem:[%s1905_s28 + $0x308] ss:$16 sps:$4 sm:$0xff]  }
  0x42   : > { %1093 = vmatpush1.bf16.msra.mxu0 %v1693_v43  ;;  %v1785_v43 = vld [vmem:[%s1905_s28 + $0x12c] ss:$16 sps:$4 sm:$0xff]  }
  0x43   : > { %1134 = vmatpush1.bf16.msra.mxu1 %v1694_v44  ;;  %1094 = vmatprep.subr.bf16.mxu0 %v1695_v45  ;;  %v1788_v44 = vld [vmem:[%s1905_s28 + $0x32c] ss:$16 sps:$4 sm:$0xff]   ;;  %v1783_v45 = vld [vmem:[%s1905_s28 + $0x128] ss:$16 sps:$4 sm:$0xff]  }
  0x44   : > { %1135 = vmatprep.subr.bf16.mxu1 %v1697_v46  ;;  %v1786_v46 = vld [vmem:[%s1905_s28 + $0x328] ss:$16 sps:$4 sm:$0xff]  }
  0x46   : > { %1095 = vmatpush1.bf16.msra.mxu0 %v1699_v50  ;;  %v1792_v50 = vld [vmem:[%s1905_s28 + $0x348] ss:$16 sps:$4 sm:$0xff]  }
  0x47   : > { %1136 = vmatpush1.bf16.msra.mxu1 %v1700_v51  ;;  %1096 = vmatprep.subr.bf16.mxu0 %v1701_v53  ;;  %v1797_v51 = vld [vmem:[%s1905_s28 + $0x16c] ss:$16 sps:$4 sm:$0xff]   ;;  %v1795_v53 = vld [vmem:[%s1905_s28 + $0x168] ss:$16 sps:$4 sm:$0xff]  }
  0x48   : > { %1137 = vmatprep.subr.bf16.mxu1 %v1703_v54  ;;  %v1798_v54 = vld [vmem:[%s1905_s28 + $0x368] ss:$16 sps:$4 sm:$0xff]  }
  0x4a   : > { %1097 = vmatpush1.bf16.msra.mxu0 %v1705_v55  ;;  %v1803_v55 = vld [vmem:[%s1905_s28 + $0x18c] ss:$16 sps:$4 sm:$0xff]  }
  0x4b   : > { %1138 = vmatpush1.bf16.msra.mxu1 %v1706_v56  ;;  %1098 = vmatprep.subr.bf16.mxu0 %v1707_v57  ;;  %v1806_v56 = vld [vmem:[%s1905_s28 + $0x38c] ss:$16 sps:$4 sm:$0xff]   ;;  %v1801_v57 = vld [vmem:[%s1905_s28 + $0x188] ss:$16 sps:$4 sm:$0xff]  }
  0x4c   : > { %1139 = vmatprep.subr.bf16.mxu1 %v1709_v58  ;;  %v1804_v58 = vld [vmem:[%s1905_s28 + $0x388] ss:$16 sps:$4 sm:$0xff]  }
  0x4e   : > { %1099 = vmatpush1.bf16.msra.mxu0 %v1711_v59  ;;  %v1809_v59 = vld [vmem:[%s1905_s28 + $0x1ac] ss:$16 sps:$4 sm:$0xff]  }
  0x4f   : > { %1140 = vmatpush1.bf16.msra.mxu1 %v1712_v60  ;;  %1100 = vmatprep.subr.bf16.mxu0 %v1713_v61  ;;  %v1812_v60 = vld [vmem:[%s1905_s28 + $0x3ac] ss:$16 sps:$4 sm:$0xff]   ;;  %v1807_v61 = vld [vmem:[%s1905_s28 + $0x1a8] ss:$16 sps:$4 sm:$0xff]  }
  0x50   : > { %1141 = vmatprep.subr.bf16.mxu1 %v1715_v62  ;;  %v1810_v62 = vld [vmem:[%s1905_s28 + $0x3a8] ss:$16 sps:$4 sm:$0xff]  }
  0x52   : > { %1101 = vmatpush1.bf16.msra.mxu0 %v1717_v63  ;;  %v1815_v63 = vld [vmem:[%s1905_s28 + $0x1cc] ss:$16 sps:$4 sm:$0xff]  }
  0x53   : > { %1142 = vmatpush1.bf16.msra.mxu1 %v1718_v0  ;;  %1102 = vmatprep.subr.bf16.mxu0 %v1719_v1  ;;  %v1818_v0 = vld [vmem:[%s1905_s28 + $0x3cc] ss:$16 sps:$4 sm:$0xff]   ;;  %v1813_v1 = vld [vmem:[%s1905_s28 + $0x1c8] ss:$16 sps:$4 sm:$0xff]  }
  0x54   : > { %1143 = vmatprep.subr.bf16.mxu1 %v1721_v2  ;;  %v1816_v2 = vld [vmem:[%s1905_s28 + $0x3c8] ss:$16 sps:$4 sm:$0xff]  }
  0x56   : > { %1103 = vmatpush1.bf16.msra.mxu0 %v1723_v3  ;;  %v1821_v3 = vld [vmem:[%s1905_s28 + $0x1ec] ss:$16 sps:$4 sm:$0xff]  }
  0x57   : > { %1144 = vmatpush1.bf16.msra.mxu1 %v1724_v4  ;;  %1154 = vmatprep.subr.bf16.mxu0 %v1731_v5  ;;  %v1824_v4 = vld [vmem:[%s1905_s28 + $0x3ec] ss:$16 sps:$4 sm:$0xff]   ;;  %v1819_v5 = vld [vmem:[%s1905_s28 + $0x1e8] ss:$16 sps:$4 sm:$0xff]  }
  0x58   : > { %1195 = vmatprep.subr.bf16.mxu1 %v1734_v6  ;;  %v1822_v6 = vld [vmem:[%s1905_s28 + $0x3e8] ss:$16 sps:$4 sm:$0xff]  }
  0x59   : > { %1105 = vmatmul.mubr.bf16.vlgmr.msra.gmra.mrb[0].mxu0 %v1979_v7 }
  0x5a   : > { %1146 = vmatmul.mubr.bf16.vlgmr.msra.gmra.mrb[0].mxu1 %v1981_v8  ;;  %1155 = vmatpush1.bf16.msra.mxu0 %v1729_v9 }
  0x5b   : > { %1196 = vmatpush1.bf16.msra.mxu1 %v1732_v10  ;;  %1156 = vmatprep.subr.bf16.mxu0 %v1737_v11  ;;  %v284_v10 = vld [vmem:[#allocation2] sm:$0xff] }
  0x5c   : > { %1197 = vmatprep.subr.bf16.mxu1 %v1740_v12  ;;  %1186 = vmatprep.mubr.bf16.mxu0 %v1955_v48  ;;  %v1794_v48 = vld [vmem:[%s1905_s28 + $0x34c] ss:$16 sps:$4 sm:$0xff]  }
  0x5d   : > { %1227 = vmatprep.mubr.bf16.mxu1 %v1468_v52  ;;  %v1800_v52 = vld [vmem:[%s1905_s28 + $0x36c] ss:$16 sps:$4 sm:$0xff]  }
  0x5e   : > { %1157 = vmatpush1.bf16.msra.mxu0 %v1735_v13 }
  0x5f   : > { %1198 = vmatpush1.bf16.msra.mxu1 %v1738_v14  ;;  %1158 = vmatprep.subr.bf16.mxu0 %v1743_v15  ;;  %v285_v14 = vld [vmem:[#allocation2 + $0x8] sm:$0xff] }
  0x60   : > { %1199 = vmatprep.subr.bf16.mxu1 %v1746_v16 }
  0x62   : > { %1159 = vmatpush1.bf16.msra.mxu0 %v1741_v17 }
  0x63   : > { %1200 = vmatpush1.bf16.msra.mxu1 %v1744_v18  ;;  %1160 = vmatprep.subr.bf16.mxu0 %v1749_v19 }
  0x64   : > { %1201 = vmatprep.subr.bf16.mxu1 %v1752_v20 }
  0x66   : > { %1161 = vmatpush1.bf16.msra.mxu0 %v1747_v21 }
  0x67   : > { %1202 = vmatpush1.bf16.msra.mxu1 %v1750_v22  ;;  %1162 = vmatprep.subr.bf16.mxu0 %v1755_v23 }
  0x68   : > { %1203 = vmatprep.subr.bf16.mxu1 %v1758_v24 }
  0x6a   : > { %1163 = vmatpush1.bf16.msra.mxu0 %v1753_v25 }
  0x6b   : > { %1204 = vmatpush1.bf16.msra.mxu1 %v1756_v26  ;;  %1164 = vmatprep.subr.bf16.mxu0 %v1761_v27  ;;  %v287_v26 = vld [vmem:[#allocation2 + $0x18] sm:$0xff] }
  0x6c   : > { %1205 = vmatprep.subr.bf16.mxu1 %v1764_v28 }
  0x6e   : > { %1165 = vmatpush1.bf16.msra.mxu0 %v1759_v29 }
  0x6f   : > { %1206 = vmatpush1.bf16.msra.mxu1 %v1762_v30  ;;  %1166 = vmatprep.subr.bf16.mxu0 %v1767_v31 }
  0x70   : > { %1207 = vmatprep.subr.bf16.mxu1 %v1770_v32 }
  0x72   : > { %1167 = vmatpush1.bf16.msra.mxu0 %v1765_v33 }
  0x73   : > { %1208 = vmatpush1.bf16.msra.mxu1 %v1768_v34  ;;  %1168 = vmatprep.subr.bf16.mxu0 %v1773_v35 }
  0x74   : > { %1209 = vmatprep.subr.bf16.mxu1 %v1776_v36 }
  0x76   : > { %1169 = vmatpush1.bf16.msra.mxu0 %v1771_v37 }
  0x77   : > { %1210 = vmatpush1.bf16.msra.mxu1 %v1774_v38  ;;  %1170 = vmatprep.subr.bf16.mxu0 %v1779_v39 }
  0x78   : > { %1211 = vmatprep.subr.bf16.mxu1 %v1782_v40 }
  0x7a   : > { %1171 = vmatpush1.bf16.msra.mxu0 %v1777_v41 }
  0x7b   : > { %1212 = vmatpush1.bf16.msra.mxu1 %v1780_v42  ;;  %1172 = vmatprep.subr.bf16.mxu0 %v1785_v43 }
  0x7c   : > { %1213 = vmatprep.subr.bf16.mxu1 %v1788_v44 }
  0x7e   : > { %1173 = vmatpush1.bf16.msra.mxu0 %v1783_v45 }
  0x7f   : > { %1214 = vmatpush1.bf16.msra.mxu1 %v1786_v46  ;;  %1174 = vmatprep.subr.bf16.mxu0 %v1791_v47 }
  0x80   : > { %1215 = vmatprep.subr.bf16.mxu1 %v1794_v48 }
  0x82   : > { %1175 = vmatpush1.bf16.msra.mxu0 %v1789_v49 }
  0x83   : > { %1216 = vmatpush1.bf16.msra.mxu1 %v1792_v50  ;;  %1176 = vmatprep.subr.bf16.mxu0 %v1797_v51 }
  0x84   : > { %1217 = vmatprep.subr.bf16.mxu1 %v1800_v52 }
  0x86   : > { %1177 = vmatpush1.bf16.msra.mxu0 %v1795_v53 }
  0x87   : > { %1218 = vmatpush1.bf16.msra.mxu1 %v1798_v54  ;;  %1178 = vmatprep.subr.bf16.mxu0 %v1803_v55 }
  0x88   : > { %1219 = vmatprep.subr.bf16.mxu1 %v1806_v56 }
  0x8a   : > { %1179 = vmatpush1.bf16.msra.mxu0 %v1801_v57 }
  0x8b   : > { %1220 = vmatpush1.bf16.msra.mxu1 %v1804_v58  ;;  %1180 = vmatprep.subr.bf16.mxu0 %v1809_v59 }
  0x8c   : > { %1221 = vmatprep.subr.bf16.mxu1 %v1812_v60 }
  0x8e   : > { %1181 = vmatpush1.bf16.msra.mxu0 %v1807_v61 }
  0x8f   : > { %1222 = vmatpush1.bf16.msra.mxu1 %v1810_v62  ;;  %1182 = vmatprep.subr.bf16.mxu0 %v1815_v63 }
  0x90   : > { %1223 = vmatprep.subr.bf16.mxu1 %v1818_v0 }
  0x92   : > { %1183 = vmatpush1.bf16.msra.mxu0 %v1813_v1 }
  0x93   : > { %1224 = vmatpush1.bf16.msra.mxu1 %v1816_v2  ;;  %1184 = vmatprep.subr.bf16.mxu0 %v1821_v3 }
  0x94   : > { %1225 = vmatprep.subr.bf16.mxu1 %v1824_v4 }
  0x96   : > { %1185 = vmatpush1.bf16.msra.mxu0 %v1819_v5 }
  0x97   : > { %1226 = vmatpush1.bf16.msra.mxu1 %v1822_v6 }
  0x99   : > { %1187 = vmatmul.mubr.bf16.vlgmr.msra.gmra.mrb[4].mxu0 %v1979_v7  ;;  %v286_v7 = vld [vmem:[#allocation2 + $0x10] sm:$0xff] }
  0x9a   : > { %1228 = vmatmul.mubr.bf16.vlgmr.msra.gmra.mrb[4].mxu1 %v1981_v8 }
 0x12c   : > { %v1106_v9 = vpop.f32.mrb[0].mxu0 }
 0x12d   : > { %v1147_v11 = vpop.f32.mrb[0].mxu1  ;;  %v1108_v13 = vpop.f32.mrb[1].mxu0 }
 0x12e   : > { %v1148_v12 = vadd.f32 %v1147_v11, %v1106_v9  ;;  %v1149_v15 = vpop.f32.mrb[1].mxu1  ;;  %v1110_v17 = vpop.f32.mrb[2].mxu0 }
 0x12f   : > { %v1150_v16 = vadd.f32 %v1149_v15, %v1108_v13  ;;  %v1151_v18 = vpop.f32.mrb[2].mxu1  ;;  %v1111_v20 = vpop.f32.mrb[3].mxu0 }
 0x130   : > { %v1236_v19 = vadd.f32 %v1148_v12, %v284_v10  ;;  %v1152_v21 = vpop.f32.mrb[3].mxu1 }
 0x131   : > { %v1237_v22 = vadd.f32 %v1150_v16, %v285_v14 }
 0x132   : > { %1240 = vst [vmem:[#allocation2] sm:$0xff] %v1236_v19 }
 0x133   : > { %1241 = vst [vmem:[#allocation2 + $0x8] sm:$0xff] %v1237_v22 }
 0x139   : > { %v1248_v35 = vld [vmem:[#allocation2] sm:$0xff] (!%p1597_p7) }
 0x13a   : > { %v1249_v36 = vld [vmem:[#allocation2 + $0x8] sm:$0xff] (!%p1597_p7)  ;;  %1252 = vst [vmem:[%s2098_s2] sm:$0xff] (!%p1597_p7), %v1248_v35  ;;  %v1256_v39 = vrot.slane (!%p1597_p7), %v1248_v35, 4  ;;  %v1280_v42 = vmul.f32 (!%p1597_p7), %v1248_v35, %v1248_v35 }
 0x13b   : > { %1253 = vst [vmem:[%s2098_s2 + $0x8] sm:$0xff] (!%p1597_p7), %v1249_v36  ;;  %v1262_v40 = vrot.slane (!%p1597_p7), %v1249_v36, 4  ;;  %v1281_v44 = vmul.f32 (!%p1597_p7), %v1249_v36, %v1249_v36 }
 0x13c   : > { %v1257_v47 = vadd.f32 (!%p1597_p7), %v1256_v39, %v1248_v35  ;;  %v1284_v50 = vrot.slane (!%p1597_p7), %v1280_v42, 4 }
 0x13d   : > { %v1263_v48 = vadd.f32 (!%p1597_p7), %v1262_v40, %v1249_v36  ;;  %v1290_v52 = vrot.slane (!%p1597_p7), %v1281_v44, 4 }
 0x13e   : > { %v1258_v55 = vrot.slane (!%p1597_p7), %v1257_v47, 2  ;;  %v1285_v58 = vadd.f32 (!%p1597_p7), %v1284_v50, %v1280_v42 }
 0x13f   : > { %v1264_v56 = vrot.slane (!%p1597_p7), %v1263_v48, 2  ;;  %v1291_v60 = vadd.f32 (!%p1597_p7), %v1290_v52, %v1281_v44 }
 0x140   : > { %v1259_v63 = vadd.f32 (!%p1597_p7), %v1258_v55, %v1257_v47  ;;  %v1286_v2 = vrot.slane (!%p1597_p7), %v1285_v58, 2 }
 0x141   : > { %v1265_v0 = vadd.f32 (!%p1597_p7), %v1264_v56, %v1263_v48  ;;  %v1292_v4 = vrot.slane (!%p1597_p7), %v1291_v60, 2 }
 0x142   : > { %v1260_v9 = vrot.slane (!%p1597_p7), %v1259_v63, 1  ;;  %v1287_v12 = vadd.f32 (!%p1597_p7), %v1286_v2, %v1285_v58 }
 0x143   : > { %v1266_v10 = vrot.slane (!%p1597_p7), %v1265_v0, 1  ;;  %v1293_v14 = vadd.f32 (!%p1597_p7), %v1292_v4, %v1291_v60 }
 0x144   : > { %v1261_v17 = vadd.f32 (!%p1597_p7), %v1260_v9, %v1259_v63  ;;  %v1288_v20 = vrot.slane (!%p1597_p7), %v1287_v12, 1 }
 0x145   : > { %v1267_v18 = vadd.f32 (!%p1597_p7), %v1266_v10, %v1265_v0  ;;  %v1294_v22 = vrot.slane (!%p1597_p7), %v1293_v14, 1 }
 0x146   : > { %1308 = vst [vmem:[%s2099_s3] sm:$0xff] (!%p1597_p7), %v1261_v17 }
 0x147   : > { %1309 = vst [vmem:[%s2099_s3 + $0x8] sm:$0xff] (!%p1597_p7), %v1267_v18 }
 0x16c   : > { %v1188_v23 = vpop.f32.mrb[4].mxu0 }
 0x16d   : > { %v1229_v24 = vpop.f32.mrb[4].mxu1  ;;  %v1190_v25 = vpop.f32.mrb[5].mxu0  ;;  %1247 = sbr.rel (%p1597_p7) target bundleno = 394 (0x18a), region = 36 }
 0x16e   : > { %v1230_v8 = vadd.f32 %v1229_v24, %v1188_v23  ;;  %v1231_v27 = vpop.f32.mrb[5].mxu1  ;;  %v1192_v29 = vpop.f32.mrb[6].mxu0  ;;  %v1289_v24 = vadd.f32 (!%p1597_p7), %v1288_v20, %v1287_v12 }
 0x16f   : > { %v1232_v28 = vadd.f32 %v1231_v27, %v1190_v25  ;;  %v1233_v30 = vpop.f32.mrb[6].mxu1  ;;  %v1193_v32 = vpop.f32.mrb[7].mxu0 }
 0x170   : > { %v1238_v31 = vadd.f32 %v1230_v8, %v286_v7  ;;  %v1234_v33 = vpop.f32.mrb[7].mxu1  ;;  %v1295_v8 = vadd.f32 (!%p1597_p7), %v1294_v22, %v1293_v14  ;;  %1312 = vst [vmem:[%s2100_s4] sm:$0xff] (!%p1597_p7), %v1289_v24 }
 0x171   : > { %v1239_v34 = vadd.f32 %v1232_v28, %v287_v26 }
 0x172   : > { %1242 = vst [vmem:[#allocation2 + $0x10] sm:$0xff] %v1238_v31  ;;  %1313 = vst [vmem:[%s2100_s4 + $0x8] sm:$0xff] (!%p1597_p7), %v1295_v8 }
 0x173   : > { %1243 = vst [vmem:[#allocation2 + $0x18] sm:$0xff] %v1239_v34 }
 0x179   : > { %v1250_v37 = vld [vmem:[#allocation2 + $0x10] sm:$0xff] }
 0x17a   : > { %1254 = vst [vmem:[%s2098_s2 + $0x10] sm:$0xff] %v1250_v37  ;;  %v1251_v38 = vld [vmem:[#allocation2 + $0x18] sm:$0xff]  ;;  %v1268_v41 = vrot.slane %v1250_v37, 4  ;;  %v1282_v45 = vmul.f32 %v1250_v37, %v1250_v37 }
 0x17b   : > { %1255 = vst [vmem:[%s2098_s2 + $0x18] sm:$0xff] %v1251_v38  ;;  %v1274_v43 = vrot.slane %v1251_v38, 4  ;;  %v1283_v46 = vmul.f32 %v1251_v38, %v1251_v38 }
 0x17c   : > { %v1269_v49 = vadd.f32 %v1268_v41, %v1250_v37  ;;  %v1296_v53 = vrot.slane %v1282_v45, 4 }
 0x17d   : > { %v1275_v51 = vadd.f32 %v1274_v43, %v1251_v38  ;;  %v1302_v54 = vrot.slane %v1283_v46, 4 }
 0x17e   : > { %v1270_v57 = vrot.slane %v1269_v49, 2  ;;  %v1297_v61 = vadd.f32 %v1296_v53, %v1282_v45 }
 0x17f   : > { %v1276_v59 = vrot.slane %v1275_v51, 2  ;;  %v1303_v62 = vadd.f32 %v1302_v54, %v1283_v46 }
 0x180   : > { %v1271_v1 = vadd.f32 %v1270_v57, %v1269_v49  ;;  %v1298_v5 = vrot.slane %v1297_v61, 2 }
 0x181   : > { %v1277_v3 = vadd.f32 %v1276_v59, %v1275_v51  ;;  %v1304_v6 = vrot.slane %v1303_v62, 2 }
 0x182   : > { %v1272_v11 = vrot.slane %v1271_v1, 1  ;;  %v1299_v15 = vadd.f32 %v1298_v5, %v1297_v61 }
 0x183   : > { %v1278_v13 = vrot.slane %v1277_v3, 1  ;;  %v1305_v16 = vadd.f32 %v1304_v6, %v1303_v62 }
 0x184   : > { %v1273_v19 = vadd.f32 %v1272_v11, %v1271_v1  ;;  %v1300_v23 = vrot.slane %v1299_v15, 1 }
 0x185   : > { %v1279_v21 = vadd.f32 %v1278_v13, %v1277_v3  ;;  %v1306_v7 = vrot.slane %v1305_v16, 1 }
 0x186   : > { %1310 = vst [vmem:[%s2099_s3 + $0x10] sm:$0xff] %v1273_v19  ;;  %v1301_v25 = vadd.f32 %v1300_v23, %v1299_v15 }
 0x187   : > { %1311 = vst [vmem:[%s2099_s3 + $0x18] sm:$0xff] %v1279_v21  ;;  %v1307_v26 = vadd.f32 %v1306_v7, %v1305_v16 }
 0x188   : > { %1314 = vst [vmem:[%s2100_s4 + $0x10] sm:$0xff] %v1301_v25 }
 0x189   : > { %1315 = vst [vmem:[%s2100_s4 + $0x18] sm:$0xff] %v1307_v26 }
 0x18a PF: > { %s15_s17 = sadd.s32 1, %s1847_s17   ;;  %s2101_s15 = smov %s1843_s16 }
 0x18b   : > { %p12_p8 = scmp.ge.s32.totalorder %s15_s17, 11   ;;  %s2102_s16 = smov %s2104_s18 }
 0x18d   :  { %14 = sbr.rel (!%p12_p8) target bundleno = 2 (0x2), region = 93 }

// kernel: _lambda_.48
= control target key start
LH: loop header
LB: loop body
LE: loop exit
PB: predicated region body
PF: predicated region fallthrough
CT: control target
= control target key end

     0   :  { %s1011_s1 = inlined_call_operand.vmem [shape: bf16[256,512], index: 1, kind: input, shape index: {}]   ;;  %s1012_s0 = inlined_call_operand.vmem [shape: bf16[8,256], index: 0, kind: input, shape index: {}]   ;;  %s1013_s2 = inlined_call_operand.vmem [shape: f32[8,512], index: 2, kind: output, shape index: {0}]   ;;  %s1014_s3 = inlined_call_operand.vmem [shape: f32[8,512], index: 3, kind: output, shape index: {1}]   ;;  %s1015_s4 = inlined_call_operand.vmem [shape: f32[8,512], index: 4, kind: output, shape index: {2}]  }
   0x1   :  { %v657_v0 = vld [vmem:[%s1011_s1 + $0x4] ss:$16 sps:$4 sm:$0xff]   ;;  %v659_v1 = vld [vmem:[%s1011_s1 + $0xc] ss:$16 sps:$4 sm:$0xff]   ;;  %v661_v2 = vld [vmem:[%s1011_s1] ss:$16 sps:$4 sm:$0xff]  }
   0x2   :  { %418 = vmatprep.subr.bf16.mxu0 %v657_v0  ;;  %v662_v3 = vld [vmem:[%s1011_s1 + $0x8] ss:$16 sps:$4 sm:$0xff]   ;;  %459 = vmatprep.subr.bf16.mxu1 %v659_v1  ;;  %v663_v4 = vld [vmem:[%s1011_s1 + $0x24] ss:$16 sps:$4 sm:$0xff]   ;;  %v665_v5 = vld [vmem:[%s1011_s1 + $0x2c] ss:$16 sps:$4 sm:$0xff]  }
   0x3   :  { %419 = vmatpush1.bf16.msra.mxu0 %v661_v2  ;;  %460 = vmatpush1.bf16.msra.mxu1 %v662_v3  ;;  %v667_v6 = vld [vmem:[%s1011_s1 + $0x20] ss:$16 sps:$4 sm:$0xff]   ;;  %v668_v7 = vld [vmem:[%s1011_s1 + $0x28] ss:$16 sps:$4 sm:$0xff]   ;;  %v669_v8 = vld [vmem:[%s1011_s1 + $0x44] ss:$16 sps:$4 sm:$0xff]  }
   0x4   :  { %420 = vmatprep.subr.bf16.mxu0 %v663_v4  ;;  %461 = vmatprep.subr.bf16.mxu1 %v665_v5  ;;  %v671_v9 = vld [vmem:[%s1011_s1 + $0x4c] ss:$16 sps:$4 sm:$0xff]   ;;  %v673_v10 = vld [vmem:[%s1011_s1 + $0x40] ss:$16 sps:$4 sm:$0xff]   ;;  %v674_v11 = vld [vmem:[%s1011_s1 + $0x48] ss:$16 sps:$4 sm:$0xff]  }
   0x5   :  { %v675_v12 = vld [vmem:[%s1011_s1 + $0x64] ss:$16 sps:$4 sm:$0xff]   ;;  %v677_v13 = vld [vmem:[%s1011_s1 + $0x6c] ss:$16 sps:$4 sm:$0xff]   ;;  %v679_v14 = vld [vmem:[%s1011_s1 + $0x60] ss:$16 sps:$4 sm:$0xff]  }
   0x6   :  { %v680_v15 = vld [vmem:[%s1011_s1 + $0x68] ss:$16 sps:$4 sm:$0xff]   ;;  %v681_v16 = vld [vmem:[%s1011_s1 + $0x84] ss:$16 sps:$4 sm:$0xff]   ;;  %v683_v17 = vld [vmem:[%s1011_s1 + $0x8c] ss:$16 sps:$4 sm:$0xff]  }
   0x7   :  { %421 = vmatpush1.bf16.msra.mxu0 %v667_v6  ;;  %462 = vmatpush1.bf16.msra.mxu1 %v668_v7  ;;  %v685_v18 = vld [vmem:[%s1011_s1 + $0x80] ss:$16 sps:$4 sm:$0xff]   ;;  %v686_v19 = vld [vmem:[%s1011_s1 + $0x88] ss:$16 sps:$4 sm:$0xff]   ;;  %v687_v20 = vld [vmem:[%s1011_s1 + $0xa4] ss:$16 sps:$4 sm:$0xff]  }
   0x8   :  { %422 = vmatprep.subr.bf16.mxu0 %v669_v8  ;;  %463 = vmatprep.subr.bf16.mxu1 %v671_v9  ;;  %v689_v21 = vld [vmem:[%s1011_s1 + $0xac] ss:$16 sps:$4 sm:$0xff]   ;;  %v691_v22 = vld [vmem:[%s1011_s1 + $0xa0] ss:$16 sps:$4 sm:$0xff]   ;;  %v692_v23 = vld [vmem:[%s1011_s1 + $0xa8] ss:$16 sps:$4 sm:$0xff]  }
   0x9   :  { %v693_v24 = vld [vmem:[%s1011_s1 + $0xc4] ss:$16 sps:$4 sm:$0xff]   ;;  %v695_v25 = vld [vmem:[%s1011_s1 + $0xcc] ss:$16 sps:$4 sm:$0xff]   ;;  %v697_v26 = vld [vmem:[%s1011_s1 + $0xc0] ss:$16 sps:$4 sm:$0xff]  }
   0xa   :  { %v698_v27 = vld [vmem:[%s1011_s1 + $0xc8] ss:$16 sps:$4 sm:$0xff]   ;;  %v699_v28 = vld [vmem:[%s1011_s1 + $0xe4] ss:$16 sps:$4 sm:$0xff]   ;;  %v701_v29 = vld [vmem:[%s1011_s1 + $0xec] ss:$16 sps:$4 sm:$0xff]  }
   0xb   :  { %423 = vmatpush1.bf16.msra.mxu0 %v673_v10  ;;  %464 = vmatpush1.bf16.msra.mxu1 %v674_v11  ;;  %v703_v30 = vld [vmem:[%s1011_s1 + $0xe0] ss:$16 sps:$4 sm:$0xff]   ;;  %v704_v31 = vld [vmem:[%s1011_s1 + $0xe8] ss:$16 sps:$4 sm:$0xff]   ;;  %v705_v32 = vld [vmem:[%s1011_s1 + $0x104] ss:$16 sps:$4 sm:$0xff]  }
   0xc   :  { %424 = vmatprep.subr.bf16.mxu0 %v675_v12  ;;  %465 = vmatprep.subr.bf16.mxu1 %v677_v13  ;;  %v707_v33 = vld [vmem:[%s1011_s1 + $0x10c] ss:$16 sps:$4 sm:$0xff]   ;;  %v709_v34 = vld [vmem:[%s1011_s1 + $0x100] ss:$16 sps:$4 sm:$0xff]   ;;  %v710_v35 = vld [vmem:[%s1011_s1 + $0x108] ss:$16 sps:$4 sm:$0xff]  }
   0xd   :  { %v711_v36 = vld [vmem:[%s1011_s1 + $0x124] ss:$16 sps:$4 sm:$0xff]   ;;  %v713_v37 = vld [vmem:[%s1011_s1 + $0x12c] ss:$16 sps:$4 sm:$0xff]   ;;  %v715_v38 = vld [vmem:[%s1011_s1 + $0x120] ss:$16 sps:$4 sm:$0xff]  }
   0xe   :  { %v716_v39 = vld [vmem:[%s1011_s1 + $0x128] ss:$16 sps:$4 sm:$0xff]   ;;  %v717_v40 = vld [vmem:[%s1011_s1 + $0x144] ss:$16 sps:$4 sm:$0xff]   ;;  %v719_v41 = vld [vmem:[%s1011_s1 + $0x14c] ss:$16 sps:$4 sm:$0xff]  }
   0xf   :  { %425 = vmatpush1.bf16.msra.mxu0 %v679_v14  ;;  %466 = vmatpush1.bf16.msra.mxu1 %v680_v15  ;;  %v721_v42 = vld [vmem:[%s1011_s1 + $0x140] ss:$16 sps:$4 sm:$0xff]   ;;  %v722_v43 = vld [vmem:[%s1011_s1 + $0x148] ss:$16 sps:$4 sm:$0xff]   ;;  %v723_v44 = vld [vmem:[%s1011_s1 + $0x164] ss:$16 sps:$4 sm:$0xff]  }
  0x10   :  { %426 = vmatprep.subr.bf16.mxu0 %v681_v16  ;;  %467 = vmatprep.subr.bf16.mxu1 %v683_v17  ;;  %v725_v45 = vld [vmem:[%s1011_s1 + $0x16c] ss:$16 sps:$4 sm:$0xff]   ;;  %v26_v46 = vld [vmem:[%s1012_s0] sm:$0xff]  ;;  %v728_v49 = vld [vmem:[%s1011_s1 + $0x168] ss:$16 sps:$4 sm:$0xff]  }
  0x11   :  { %v592_v47 = vcombine.high %v26_v46, %v26_v46  ;;  %v727_v48 = vld [vmem:[%s1011_s1 + $0x160] ss:$16 sps:$4 sm:$0xff]   ;;  %v729_v50 = vld [vmem:[%s1011_s1 + $0x184] ss:$16 sps:$4 sm:$0xff]   ;;  %v731_v51 = vld [vmem:[%s1011_s1 + $0x18c] ss:$16 sps:$4 sm:$0xff]   ;;  %v591_v2 = vcombine.low %v26_v46, %v26_v46 }
  0x12   :  { %v733_v52 = vld [vmem:[%s1011_s1 + $0x180] ss:$16 sps:$4 sm:$0xff]   ;;  %v734_v53 = vld [vmem:[%s1011_s1 + $0x188] ss:$16 sps:$4 sm:$0xff]   ;;  %v735_v54 = vld [vmem:[%s1011_s1 + $0x1a4] ss:$16 sps:$4 sm:$0xff]  }
  0x13   :  { %427 = vmatpush1.bf16.msra.mxu0 %v685_v18  ;;  %468 = vmatpush1.bf16.msra.mxu1 %v686_v19  ;;  %v737_v55 = vld [vmem:[%s1011_s1 + $0x1ac] ss:$16 sps:$4 sm:$0xff]   ;;  %v739_v56 = vld [vmem:[%s1011_s1 + $0x1a0] ss:$16 sps:$4 sm:$0xff]   ;;  %v740_v57 = vld [vmem:[%s1011_s1 + $0x1a8] ss:$16 sps:$4 sm:$0xff]  }
  0x14   :  { %428 = vmatprep.subr.bf16.mxu0 %v687_v20  ;;  %469 = vmatprep.subr.bf16.mxu1 %v689_v21  ;;  %v741_v58 = vld [vmem:[%s1011_s1 + $0x1c4] ss:$16 sps:$4 sm:$0xff]   ;;  %v743_v59 = vld [vmem:[%s1011_s1 + $0x1cc] ss:$16 sps:$4 sm:$0xff]   ;;  %v745_v60 = vld [vmem:[%s1011_s1 + $0x1c0] ss:$16 sps:$4 sm:$0xff]  }
  0x15   :  { %450 = vmatprep.mubr.bf16.mxu0 %v592_v47  ;;  %491 = vmatprep.mubr.bf16.mxu1 %v592_v47  ;;  %v746_v61 = vld [vmem:[%s1011_s1 + $0x1c8] ss:$16 sps:$4 sm:$0xff]   ;;  %v747_v62 = vld [vmem:[%s1011_s1 + $0x1e4] ss:$16 sps:$4 sm:$0xff]   ;;  %v749_v63 = vld [vmem:[%s1011_s1 + $0x1ec] ss:$16 sps:$4 sm:$0xff]  }
  0x16   :  { %v751_v0 = vld [vmem:[%s1011_s1 + $0x1e0] ss:$16 sps:$4 sm:$0xff]   ;;  %v752_v1 = vld [vmem:[%s1011_s1 + $0x1e8] ss:$16 sps:$4 sm:$0xff]  }
  0x17   :  { %429 = vmatpush1.bf16.msra.mxu0 %v691_v22  ;;  %470 = vmatpush1.bf16.msra.mxu1 %v692_v23 }
  0x18   :  { %430 = vmatprep.subr.bf16.mxu0 %v693_v24  ;;  %471 = vmatprep.subr.bf16.mxu1 %v695_v25 }
  0x1b   :  { %431 = vmatpush1.bf16.msra.mxu0 %v697_v26  ;;  %472 = vmatpush1.bf16.msra.mxu1 %v698_v27 }
  0x1c   :  { %432 = vmatprep.subr.bf16.mxu0 %v699_v28  ;;  %473 = vmatprep.subr.bf16.mxu1 %v701_v29 }
  0x1f   :  { %433 = vmatpush1.bf16.msra.mxu0 %v703_v30  ;;  %474 = vmatpush1.bf16.msra.mxu1 %v704_v31 }
  0x20   :  { %434 = vmatprep.subr.bf16.mxu0 %v705_v32  ;;  %475 = vmatprep.subr.bf16.mxu1 %v707_v33 }
  0x23   :  { %435 = vmatpush1.bf16.msra.mxu0 %v709_v34  ;;  %476 = vmatpush1.bf16.msra.mxu1 %v710_v35 }
  0x24   :  { %436 = vmatprep.subr.bf16.mxu0 %v711_v36  ;;  %477 = vmatprep.subr.bf16.mxu1 %v713_v37 }
  0x27   :  { %437 = vmatpush1.bf16.msra.mxu0 %v715_v38  ;;  %478 = vmatpush1.bf16.msra.mxu1 %v716_v39 }
  0x28   :  { %438 = vmatprep.subr.bf16.mxu0 %v717_v40  ;;  %479 = vmatprep.subr.bf16.mxu1 %v719_v41 }
  0x2b   :  { %439 = vmatpush1.bf16.msra.mxu0 %v721_v42  ;;  %480 = vmatpush1.bf16.msra.mxu1 %v722_v43 }
  0x2c   :  { %440 = vmatprep.subr.bf16.mxu0 %v723_v44  ;;  %481 = vmatprep.subr.bf16.mxu1 %v725_v45 }
  0x2f   :  { %441 = vmatpush1.bf16.msra.mxu0 %v727_v48  ;;  %482 = vmatpush1.bf16.msra.mxu1 %v728_v49 }
  0x30   :  { %442 = vmatprep.subr.bf16.mxu0 %v729_v50  ;;  %483 = vmatprep.subr.bf16.mxu1 %v731_v51 }
  0x33   :  { %443 = vmatpush1.bf16.msra.mxu0 %v733_v52  ;;  %484 = vmatpush1.bf16.msra.mxu1 %v734_v53 }
  0x34   :  { %444 = vmatprep.subr.bf16.mxu0 %v735_v54  ;;  %485 = vmatprep.subr.bf16.mxu1 %v737_v55 }
  0x37   :  { %445 = vmatpush1.bf16.msra.mxu0 %v739_v56  ;;  %486 = vmatpush1.bf16.msra.mxu1 %v740_v57 }
  0x38   :  { %446 = vmatprep.subr.bf16.mxu0 %v741_v58  ;;  %487 = vmatprep.subr.bf16.mxu1 %v743_v59 }
  0x3b   :  { %447 = vmatpush1.bf16.msra.mxu0 %v745_v60  ;;  %488 = vmatpush1.bf16.msra.mxu1 %v746_v61 }
  0x3c   :  { %448 = vmatprep.subr.bf16.mxu0 %v747_v62  ;;  %489 = vmatprep.subr.bf16.mxu1 %v749_v63 }
  0x3f   :  { %449 = vmatpush1.bf16.msra.mxu0 %v751_v0  ;;  %490 = vmatpush1.bf16.msra.mxu1 %v752_v1 }
  0x42   :  { %451 = vmatmul.mubr.bf16.vlgmr.msra.gmra.mrb[0].mxu0 %v591_v2  ;;  %492 = vmatmul.mubr.bf16.vlgmr.msra.gmra.mrb[0].mxu1 %v591_v2 }
 0x115   :  { %v452_v3 = vpop.f32.mrb[0].mxu0  ;;  %v493_v4 = vpop.f32.mrb[0].mxu1 }
 0x116   :  { %515 = vst [vmem:[%s1013_s2] sm:$0xff] %v452_v3  ;;  %v519_v5 = vrot.slane %v452_v3, 4  ;;  %v543_v6 = vmul.f32 %v452_v3, %v452_v3  ;;  %517 = vst [vmem:[%s1013_s2 + $0x10] sm:$0xff] %v493_v4  ;;  %v531_v7 = vrot.slane %v493_v4, 4  ;;  %v545_v8 = vmul.f32 %v493_v4, %v493_v4  ;;  %v454_v9 = vpop.f32.mrb[1].mxu0  ;;  %v495_v10 = vpop.f32.mrb[1].mxu1 }
 0x117   :  { %516 = vst [vmem:[%s1013_s2 + $0x8] sm:$0xff] %v454_v9  ;;  %v525_v11 = vrot.slane %v454_v9, 4  ;;  %v544_v12 = vmul.f32 %v454_v9, %v454_v9  ;;  %518 = vst [vmem:[%s1013_s2 + $0x18] sm:$0xff] %v495_v10  ;;  %v537_v13 = vrot.slane %v495_v10, 4  ;;  %v546_v14 = vmul.f32 %v495_v10, %v495_v10  ;;  %v456_v15 = vpop.f32.mrb[2].mxu0  ;;  %v497_v16 = vpop.f32.mrb[2].mxu1 }
 0x118   :  { %v520_v17 = vadd.f32 %v519_v5, %v452_v3  ;;  %v547_v18 = vrot.slane %v543_v6, 4  ;;  %v532_v19 = vadd.f32 %v531_v7, %v493_v4  ;;  %v559_v20 = vrot.slane %v545_v8, 4  ;;  %v457_v21 = vpop.f32.mrb[3].mxu0  ;;  %v498_v22 = vpop.f32.mrb[3].mxu1 }
 0x119   :  { %v526_v23 = vadd.f32 %v525_v11, %v454_v9  ;;  %v553_v24 = vrot.slane %v544_v12, 4  ;;  %v538_v25 = vadd.f32 %v537_v13, %v495_v10  ;;  %v565_v26 = vrot.slane %v546_v14, 4 }
 0x11a   :  { %v521_v27 = vrot.slane %v520_v17, 2  ;;  %v548_v28 = vadd.f32 %v547_v18, %v543_v6  ;;  %v533_v29 = vrot.slane %v532_v19, 2  ;;  %v560_v30 = vadd.f32 %v559_v20, %v545_v8 }
 0x11b   :  { %v527_v31 = vrot.slane %v526_v23, 2  ;;  %v554_v32 = vadd.f32 %v553_v24, %v544_v12  ;;  %v539_v33 = vrot.slane %v538_v25, 2  ;;  %v566_v34 = vadd.f32 %v565_v26, %v546_v14 }
 0x11c   :  { %v522_v35 = vadd.f32 %v521_v27, %v520_v17  ;;  %v549_v36 = vrot.slane %v548_v28, 2  ;;  %v534_v37 = vadd.f32 %v533_v29, %v532_v19  ;;  %v561_v38 = vrot.slane %v560_v30, 2 }
 0x11d   :  { %v528_v39 = vadd.f32 %v527_v31, %v526_v23  ;;  %v555_v40 = vrot.slane %v554_v32, 2  ;;  %v540_v41 = vadd.f32 %v539_v33, %v538_v25  ;;  %v567_v42 = vrot.slane %v566_v34, 2 }
 0x11e   :  { %v523_v43 = vrot.slane %v522_v35, 1  ;;  %v550_v44 = vadd.f32 %v549_v36, %v548_v28  ;;  %v535_v45 = vrot.slane %v534_v37, 1  ;;  %v562_v46 = vadd.f32 %v561_v38, %v560_v30 }
 0x11f   :  { %v529_v47 = vrot.slane %v528_v39, 1  ;;  %v556_v48 = vadd.f32 %v555_v40, %v554_v32  ;;  %v541_v49 = vrot.slane %v540_v41, 1  ;;  %v568_v50 = vadd.f32 %v567_v42, %v566_v34 }
 0x120   :  { %v524_v51 = vadd.f32 %v523_v43, %v522_v35  ;;  %v551_v52 = vrot.slane %v550_v44, 1  ;;  %v536_v53 = vadd.f32 %v535_v45, %v534_v37  ;;  %v563_v54 = vrot.slane %v562_v46, 1 }
 0x121   :  { %v530_v55 = vadd.f32 %v529_v47, %v528_v39  ;;  %v557_v56 = vrot.slane %v556_v48, 1  ;;  %v542_v57 = vadd.f32 %v541_v49, %v540_v41  ;;  %v569_v58 = vrot.slane %v568_v50, 1 }
 0x122   :  { %v552_v59 = vadd.f32 %v551_v52, %v550_v44  ;;  %571 = vst [vmem:[%s1014_s3] sm:$0xff] %v524_v51  ;;  %v564_v60 = vadd.f32 %v563_v54, %v562_v46  ;;  %573 = vst [vmem:[%s1014_s3 + $0x10] sm:$0xff] %v536_v53 }
 0x123   :  { %v558_v61 = vadd.f32 %v557_v56, %v556_v48  ;;  %572 = vst [vmem:[%s1014_s3 + $0x8] sm:$0xff] %v530_v55  ;;  %v570_v62 = vadd.f32 %v569_v58, %v568_v50  ;;  %574 = vst [vmem:[%s1014_s3 + $0x18] sm:$0xff] %v542_v57 }
 0x124   :  { %575 = vst [vmem:[%s1015_s4] sm:$0xff] %v552_v59  ;;  %577 = vst [vmem:[%s1015_s4 + $0x10] sm:$0xff] %v564_v60 }
 0x125   :  { %576 = vst [vmem:[%s1015_s4 + $0x8] sm:$0xff] %v558_v61  ;;  %578 = vst [vmem:[%s1015_s4 + $0x18] sm:$0xff] %v570_v62 }

// kernel: _lambda_.49
= control target key start
LH: loop header
LB: loop body
LE: loop exit
PB: predicated region body
PF: predicated region fallthrough
CT: control target
= control target key end

     0   :  { %s338_s1 = inlined_call_operand.vmem [shape: f32[8,512], index: 1, kind: input, shape index: {}]   ;;  %s339_s2 = inlined_call_operand.vmem [shape: f32[8,512], index: 2, kind: input, shape index: {}]   ;;  %s340_s3 = inlined_call_operand.vmem [shape: f32[1,512], index: 3, kind: input, shape index: {}]   ;;  %s341_s0 = inlined_call_operand.vmem [shape: f32[8,512], index: 0, kind: input, shape index: {}]   ;;  %s342_s4 = inlined_call_operand.vmem [shape: f32[1,512], index: 4, kind: input, shape index: {}]   ;;  %s343_s5 = inlined_call_operand.vmem [shape: bf16[8,512], index: 5, kind: output, shape index: {}]  }
   0x1   :  { %v20_v0 = vld [vmem:[%s338_s1] sm:$0xff]  ;;  %v21_v1 = vld [vmem:[%s338_s1 + $0x8] sm:$0xff]  ;;  %v22_v2 = vld [vmem:[%s338_s1 + $0x10] sm:$0xff] }
   0x2   :  { %v23_v3 = vld [vmem:[%s338_s1 + $0x18] sm:$0xff]  ;;  %v24_v4 = vrot.slane %v20_v0, 4  ;;  %v30_v5 = vrot.slane %v21_v1, 4  ;;  %v36_v6 = vrot.slane %v22_v2, 4  ;;  %v52_v7 = vld [vmem:[%s339_s2] sm:$0xff]  ;;  %v53_v8 = vld [vmem:[%s339_s2 + $0x8] sm:$0xff] }
   0x3   :  { %v42_v9 = vrot.slane %v23_v3, 4  ;;  %v54_v10 = vld [vmem:[%s339_s2 + $0x10] sm:$0xff]  ;;  %v55_v11 = vld [vmem:[%s339_s2 + $0x18] sm:$0xff]  ;;  %v56_v12 = vrot.slane %v52_v7, 4  ;;  %v62_v13 = vrot.slane %v53_v8, 4 }
   0x4   :  { %v25_v14 = vadd.f32 %v24_v4, %v20_v0  ;;  %v31_v15 = vadd.f32 %v30_v5, %v21_v1  ;;  %v37_v16 = vadd.f32 %v36_v6, %v22_v2  ;;  %v68_v17 = vrot.slane %v54_v10, 4 }
   0x5   :  { %v43_v18 = vadd.f32 %v42_v9, %v23_v3  ;;  %v57_v19 = vadd.f32 %v56_v12, %v52_v7  ;;  %v63_v20 = vadd.f32 %v62_v13, %v53_v8  ;;  %v74_v21 = vrot.slane %v55_v11, 4 }
   0x6   :  { %v26_v22 = vrot.slane %v25_v14, 2  ;;  %v32_v23 = vrot.slane %v31_v15, 2  ;;  %v38_v24 = vrot.slane %v37_v16, 2  ;;  %v69_v25 = vadd.f32 %v68_v17, %v54_v10 }
   0x7   :  { %v44_v26 = vrot.slane %v43_v18, 2  ;;  %v58_v27 = vrot.slane %v57_v19, 2  ;;  %v64_v28 = vrot.slane %v63_v20, 2  ;;  %v75_v29 = vadd.f32 %v74_v21, %v55_v11 }
   0x8   :  { %v27_v30 = vadd.f32 %v26_v22, %v25_v14  ;;  %v33_v31 = vadd.f32 %v32_v23, %v31_v15  ;;  %v39_v32 = vadd.f32 %v38_v24, %v37_v16  ;;  %v70_v33 = vrot.slane %v69_v25, 2 }
   0x9   :  { %v45_v34 = vadd.f32 %v44_v26, %v43_v18  ;;  %v59_v35 = vadd.f32 %v58_v27, %v57_v19  ;;  %v65_v36 = vadd.f32 %v64_v28, %v63_v20  ;;  %v76_v37 = vrot.slane %v75_v29, 2 }
   0xa   :  { %v28_v38 = vrot.slane %v27_v30, 1  ;;  %v34_v39 = vrot.slane %v33_v31, 1  ;;  %v40_v40 = vrot.slane %v39_v32, 1  ;;  %v71_v41 = vadd.f32 %v70_v33, %v69_v25 }
   0xb   :  { %v46_v42 = vrot.slane %v45_v34, 1  ;;  %v60_v43 = vrot.slane %v59_v35, 1  ;;  %v66_v44 = vrot.slane %v65_v36, 1  ;;  %v77_v45 = vadd.f32 %v76_v37, %v75_v29 }
   0xc   :  { %v29_v46 = vadd.f32 %v28_v38, %v27_v30  ;;  %v35_v47 = vadd.f32 %v34_v39, %v33_v31  ;;  %v41_v48 = vadd.f32 %v40_v40, %v39_v32  ;;  %v72_v49 = vrot.slane %v71_v41, 1  ;;  %v96_v31 = vld [vmem:[%s340_s3] sm:$0xf] }
   0xd   :  { %v47_v50 = vadd.f32 %v46_v42, %v45_v34  ;;  %v61_v51 = vadd.f32 %v60_v43, %v59_v35  ;;  %v67_v52 = vadd.f32 %v66_v44, %v65_v36  ;;  %v78_v53 = vrot.slane %v77_v45, 1 }
   0xe   :  { %v48_v54 = vmul.f32 0.015625, %v29_v46  ;;  %v49_v55 = vmul.f32 0.015625, %v35_v47  ;;  %v50_v56 = vmul.f32 0.015625, %v41_v48  ;;  %v73_v57 = vadd.f32 %v72_v49, %v71_v41 }
   0xf   :  { %v51_v58 = vmul.f32 0.015625, %v47_v50  ;;  %v79_v59 = vadd.f32 %v78_v53, %v77_v45  ;;  %v80_v60 = vmul.f32 0.015625, %v61_v51  ;;  %v81_v61 = vmul.f32 0.015625, %v67_v52  ;;  %v135_v50 = vld [vmem:[%s342_s4] sm:$0xf]  ;;  %v192_v53 = vld [vmem:[%s341_s0 + $0x8] sm:$0xff] }
  0x10   :  { %v82_v62 = vmul.f32 0.015625, %v73_v57  ;;  %v84_v63 = vmul.f32 %v48_v54, %v48_v54  ;;  %v85_v0 = vmul.f32 %v49_v55, %v49_v55  ;;  %v86_v1 = vmul.f32 %v50_v56, %v50_v56  ;;  %v191_v52 = vld [vmem:[%s341_s0] sm:$0xff] }
  0x11   :  { %v83_v2 = vmul.f32 0.015625, %v79_v59  ;;  %v87_v3 = vmul.f32 %v51_v58, %v51_v58  ;;  %v259_v16 = vmov 1966171168   ;;  %v114_v18 = vlaneseq }
  0x12   :  { %v88_v4 = vsub.f32 %v80_v60, %v84_v63  ;;  %v89_v5 = vsub.f32 %v81_v61, %v85_v0  ;;  %v90_v6 = vsub.f32 %v82_v62, %v86_v1  ;;  %v112_v17 = vunpack.c.l.s4 %v259_v16 }
  0x13   :  { %v91_v7 = vsub.f32 %v83_v2, %v87_v3  ;;  %v115_v20 = vshrl.u32 %v114_v18, 7 }
  0x14   :  { %v92_v8 = vmax.f32 %v88_v4, 0.0  ;;  %v93_v9 = vmax.f32 %v89_v5, 0.0  ;;  %v94_v10 = vmax.f32 %v90_v6, 0.0  ;;  %v113_v19 = vunpack.c.0.s8 %v112_v17 }
  0x15   :  { %v95_v11 = vmax.f32 %v91_v7, 0.0  ;;  %v139_v32 = vsub.s32 0, %v115_v20  ;;  %v143_v34 = vsub.s32 1, %v115_v20  ;;  %v147_v35 = vsub.s32 2, %v115_v20 }
  0x16   :  { %v97_v12 = vadd.f32 1e-05, %v92_v8  ;;  %v98_v13 = vadd.f32 1e-05, %v93_v9  ;;  %v99_v14 = vadd.f32 1e-05, %v94_v10  ;;  %v116_v22 = vsub.s32 %v113_v19, %v115_v20 }
  0x17   :  { %v100_v15 = vadd.f32 1e-05, %v95_v11  ;;  %v151_v36 = vsub.s32 3, %v115_v20 }
  0x18   :  { %251 = vrsqrt.f32 %v97_v12 }
  0x19   :  { %253 = vrsqrt.f32 %v98_v13 }
  0x1a   :  { %255 = vrsqrt.f32 %v99_v14 }
  0x1b   :  { %257 = vrsqrt.f32 %v100_v15 }
  0x22   :  { %v252_v21 = vpop.eup %251 }
  0x23   :  { %v254_v23 = vpop.eup %253 }
  0x24   :  { %v256_v24 = vpop.eup %255  ;;  %v109_v25 = vcombine.low %v252_v21, %v254_v23 }
  0x25   :  { %v258_v26 = vpop.eup %257 }
  0x26   :  { %v110_v27 = vcombine.low %v256_v24, %v258_v26  ;;  %v117_v28 = vrot.slane %v109_v25, %v116_v22 }
  0x28   :  { %v124_v29 = vrot.slane %v110_v27, %v116_v22 }
  0x2a   :  { %v125_v30 = vcombine.low %v117_v28, %v124_v29 }
  0x2c   :  { %v132_v33 = vrot.slane %v125_v30, %v116_v22 }
  0x2e   :  { %v134_v37 = vmul.f32 %v132_v33, %v96_v31 }
  0x30   :  { %v140_v38 = vrot.slane %v134_v37, %v139_v32  ;;  %v144_v39 = vrot.slane %v134_v37, %v143_v34  ;;  %v148_v40 = vrot.slane %v134_v37, %v147_v35  ;;  %v152_v41 = vrot.slane %v134_v37, %v151_v36 }
  0x32   :  { %v157_v42 = vmul.f32 %v140_v38, %v48_v54  ;;  %v158_v43 = vmul.f32 %v144_v39, %v49_v55  ;;  %v159_v44 = vmul.f32 %v148_v40, %v50_v56  ;;  %v160_v45 = vmul.f32 %v152_v41, %v51_v58  ;;  %v193_v54 = vld [vmem:[%s341_s0 + $0x10] sm:$0xff]  ;;  %v194_v55 = vld [vmem:[%s341_s0 + $0x18] sm:$0xff] }
  0x33   :  { %v195_v57 = vmul.f32 %v191_v52, %v140_v38  ;;  %v196_v59 = vmul.f32 %v192_v53, %v144_v39  ;;  %v197_v60 = vmul.f32 %v193_v54, %v148_v40  ;;  %v198_v61 = vmul.f32 %v194_v55, %v152_v41 }
  0x34   :  { %v165_v46 = vcombine.low %v157_v42, %v158_v43  ;;  %v166_v47 = vcombine.low %v159_v44, %v160_v45 }
  0x36   :  { %v173_v48 = vrot.slane %v165_v46, %v116_v22  ;;  %v180_v49 = vrot.slane %v166_v47, %v116_v22 }
  0x38   :  { %v181_v51 = vcombine.low %v173_v48, %v180_v49 }
  0x3a   :  { %v188_v56 = vrot.slane %v181_v51, %v116_v22 }
  0x3c   :  { %v190_v58 = vsub.f32 %v135_v50, %v188_v56 }
  0x3e   :  { %v203_v62 = vrot.slane %v190_v58, %v139_v32  ;;  %v207_v63 = vrot.slane %v190_v58, %v143_v34  ;;  %v211_v0 = vrot.slane %v190_v58, %v147_v35  ;;  %v215_v1 = vrot.slane %v190_v58, %v151_v36 }
  0x40   :  { %v220_v2 = vadd.f32 %v203_v62, %v195_v57  ;;  %v221_v3 = vadd.f32 %v207_v63, %v196_v59  ;;  %v222_v4 = vadd.f32 %v211_v0, %v197_v60  ;;  %v223_v5 = vadd.f32 %v215_v1, %v198_v61 }
  0x42   :  { %v248_v6 = vpack.c.bf16 %v221_v3, %v220_v2  ;;  %v249_v7 = vpack.c.bf16 %v223_v5, %v222_v4 }
  0x44   :  { %240 = vst [vmem:[%s343_s5] sm:$0xff] %v248_v6  ;;  %241 = vst [vmem:[%s343_s5 + $0x8] sm:$0xff] %v249_v7 }

// kernel: _lambda_.51
= control target key start
LH: loop header
LB: loop body
LE: loop exit
PB: predicated region body
PF: predicated region fallthrough
CT: control target
= control target key end

     0   :  { %s366_s1 = inlined_call_operand.vmem [shape: f32[8,512], index: 1, kind: input, shape index: {}]   ;;  %s367_s2 = inlined_call_operand.vmem [shape: f32[8,512], index: 2, kind: input, shape index: {}]   ;;  %s368_s3 = inlined_call_operand.vmem [shape: f32[1,512], index: 3, kind: input, shape index: {}]   ;;  %s369_s0 = inlined_call_operand.vmem [shape: f32[8,512], index: 0, kind: input, shape index: {}]   ;;  %s370_s4 = inlined_call_operand.vmem [shape: f32[1,512], index: 4, kind: input, shape index: {}]   ;;  %s371_s5 = inlined_call_operand.vmem [shape: bf16[8,512], index: 5, kind: input, shape index: {}]   ;;  %s372_s6 = inlined_call_operand.vmem [shape: bf16[8,512], index: 6, kind: output, shape index: {}]  }
   0x1   :  { %v23_v0 = vld [vmem:[%s366_s1] sm:$0xff]  ;;  %v24_v1 = vld [vmem:[%s366_s1 + $0x8] sm:$0xff]  ;;  %v25_v2 = vld [vmem:[%s366_s1 + $0x10] sm:$0xff] }
   0x2   :  { %v26_v3 = vld [vmem:[%s366_s1 + $0x18] sm:$0xff]  ;;  %v27_v4 = vrot.slane %v23_v0, 4  ;;  %v33_v5 = vrot.slane %v24_v1, 4  ;;  %v39_v6 = vrot.slane %v25_v2, 4  ;;  %v55_v7 = vld [vmem:[%s367_s2] sm:$0xff]  ;;  %v56_v8 = vld [vmem:[%s367_s2 + $0x8] sm:$0xff] }
   0x3   :  { %v45_v9 = vrot.slane %v26_v3, 4  ;;  %v57_v10 = vld [vmem:[%s367_s2 + $0x10] sm:$0xff]  ;;  %v58_v11 = vld [vmem:[%s367_s2 + $0x18] sm:$0xff]  ;;  %v59_v12 = vrot.slane %v55_v7, 4  ;;  %v65_v13 = vrot.slane %v56_v8, 4 }
   0x4   :  { %v28_v14 = vadd.f32 %v27_v4, %v23_v0  ;;  %v34_v15 = vadd.f32 %v33_v5, %v24_v1  ;;  %v40_v16 = vadd.f32 %v39_v6, %v25_v2  ;;  %v71_v17 = vrot.slane %v57_v10, 4 }
   0x5   :  { %v46_v18 = vadd.f32 %v45_v9, %v26_v3  ;;  %v60_v19 = vadd.f32 %v59_v12, %v55_v7  ;;  %v66_v20 = vadd.f32 %v65_v13, %v56_v8  ;;  %v77_v21 = vrot.slane %v58_v11, 4 }
   0x6   :  { %v29_v22 = vrot.slane %v28_v14, 2  ;;  %v35_v23 = vrot.slane %v34_v15, 2  ;;  %v41_v24 = vrot.slane %v40_v16, 2  ;;  %v72_v25 = vadd.f32 %v71_v17, %v57_v10 }
   0x7   :  { %v47_v26 = vrot.slane %v46_v18, 2  ;;  %v61_v27 = vrot.slane %v60_v19, 2  ;;  %v67_v28 = vrot.slane %v66_v20, 2  ;;  %v78_v29 = vadd.f32 %v77_v21, %v58_v11 }
   0x8   :  { %v30_v30 = vadd.f32 %v29_v22, %v28_v14  ;;  %v36_v31 = vadd.f32 %v35_v23, %v34_v15  ;;  %v42_v32 = vadd.f32 %v41_v24, %v40_v16  ;;  %v73_v33 = vrot.slane %v72_v25, 2 }
   0x9   :  { %v48_v34 = vadd.f32 %v47_v26, %v46_v18  ;;  %v62_v35 = vadd.f32 %v61_v27, %v60_v19  ;;  %v68_v36 = vadd.f32 %v67_v28, %v66_v20  ;;  %v79_v37 = vrot.slane %v78_v29, 2 }
   0xa   :  { %v31_v38 = vrot.slane %v30_v30, 1  ;;  %v37_v39 = vrot.slane %v36_v31, 1  ;;  %v43_v40 = vrot.slane %v42_v32, 1  ;;  %v74_v41 = vadd.f32 %v73_v33, %v72_v25 }
   0xb   :  { %v49_v42 = vrot.slane %v48_v34, 1  ;;  %v63_v43 = vrot.slane %v62_v35, 1  ;;  %v69_v44 = vrot.slane %v68_v36, 1  ;;  %v80_v45 = vadd.f32 %v79_v37, %v78_v29 }
   0xc   :  { %v32_v46 = vadd.f32 %v31_v38, %v30_v30  ;;  %v38_v47 = vadd.f32 %v37_v39, %v36_v31  ;;  %v44_v48 = vadd.f32 %v43_v40, %v42_v32  ;;  %v75_v49 = vrot.slane %v74_v41, 1  ;;  %v99_v31 = vld [vmem:[%s368_s3] sm:$0xf] }
   0xd   :  { %v50_v50 = vadd.f32 %v49_v42, %v48_v34  ;;  %v64_v51 = vadd.f32 %v63_v43, %v62_v35  ;;  %v70_v52 = vadd.f32 %v69_v44, %v68_v36  ;;  %v81_v53 = vrot.slane %v80_v45, 1 }
   0xe   :  { %v51_v54 = vmul.f32 0.015625, %v32_v46  ;;  %v52_v55 = vmul.f32 0.015625, %v38_v47  ;;  %v53_v56 = vmul.f32 0.015625, %v44_v48  ;;  %v76_v57 = vadd.f32 %v75_v49, %v74_v41 }
   0xf   :  { %v54_v58 = vmul.f32 0.015625, %v50_v50  ;;  %v82_v59 = vadd.f32 %v81_v53, %v80_v45  ;;  %v83_v60 = vmul.f32 0.015625, %v64_v51  ;;  %v84_v61 = vmul.f32 0.015625, %v70_v52  ;;  %v138_v50 = vld [vmem:[%s370_s4] sm:$0xf]  ;;  %v195_v53 = vld [vmem:[%s369_s0 + $0x8] sm:$0xff] }
  0x10   :  { %v85_v62 = vmul.f32 0.015625, %v76_v57  ;;  %v87_v63 = vmul.f32 %v51_v54, %v51_v54  ;;  %v88_v0 = vmul.f32 %v52_v55, %v52_v55  ;;  %v89_v1 = vmul.f32 %v53_v56, %v53_v56  ;;  %v194_v52 = vld [vmem:[%s369_s0] sm:$0xff] }
  0x11   :  { %v86_v2 = vmul.f32 0.015625, %v82_v59  ;;  %v90_v3 = vmul.f32 %v54_v58, %v54_v58  ;;  %v276_v16 = vmov 1966171168   ;;  %v117_v18 = vlaneseq  ;;  %v227_v57 = vld [vmem:[%s371_s5] sm:$0xff] }
  0x12   :  { %v91_v4 = vsub.f32 %v83_v60, %v87_v63  ;;  %v92_v5 = vsub.f32 %v84_v61, %v88_v0  ;;  %v93_v6 = vsub.f32 %v85_v62, %v89_v1  ;;  %v115_v17 = vunpack.c.l.s4 %v276_v16 }
  0x13   :  { %v94_v7 = vsub.f32 %v86_v2, %v90_v3  ;;  %v118_v20 = vshrl.u32 %v117_v18, 7  ;;  %v229_v0 = vunpack.c.l.bf16 %v227_v57  ;;  %v230_v1 = vunpack.c.h.bf16 %v227_v57 }
  0x14   :  { %v95_v8 = vmax.f32 %v91_v4, 0.0  ;;  %v96_v9 = vmax.f32 %v92_v5, 0.0  ;;  %v97_v10 = vmax.f32 %v93_v6, 0.0  ;;  %v116_v19 = vunpack.c.0.s8 %v115_v17 }
  0x15   :  { %v98_v11 = vmax.f32 %v94_v7, 0.0  ;;  %v142_v32 = vsub.s32 0, %v118_v20  ;;  %v146_v34 = vsub.s32 1, %v118_v20  ;;  %v150_v35 = vsub.s32 2, %v118_v20 }
  0x16   :  { %v100_v12 = vadd.f32 1e-05, %v95_v8  ;;  %v101_v13 = vadd.f32 1e-05, %v96_v9  ;;  %v102_v14 = vadd.f32 1e-05, %v97_v10  ;;  %v119_v22 = vsub.s32 %v116_v19, %v118_v20 }
  0x17   :  { %v103_v15 = vadd.f32 1e-05, %v98_v11  ;;  %v154_v36 = vsub.s32 3, %v118_v20 }
  0x18   :  { %268 = vrsqrt.f32 %v100_v12 }
  0x19   :  { %270 = vrsqrt.f32 %v101_v13 }
  0x1a   :  { %272 = vrsqrt.f32 %v102_v14 }
  0x1b   :  { %274 = vrsqrt.f32 %v103_v15 }
  0x22   :  { %v269_v21 = vpop.eup %268 }
  0x23   :  { %v271_v23 = vpop.eup %270 }
  0x24   :  { %v273_v24 = vpop.eup %272  ;;  %v112_v25 = vcombine.low %v269_v21, %v271_v23 }
  0x25   :  { %v275_v26 = vpop.eup %274 }
  0x26   :  { %v113_v27 = vcombine.low %v273_v24, %v275_v26  ;;  %v120_v28 = vrot.slane %v112_v25, %v119_v22 }
  0x28   :  { %v127_v29 = vrot.slane %v113_v27, %v119_v22 }
  0x2a   :  { %v128_v30 = vcombine.low %v120_v28, %v127_v29 }
  0x2c   :  { %v135_v33 = vrot.slane %v128_v30, %v119_v22 }
  0x2e   :  { %v137_v37 = vmul.f32 %v135_v33, %v99_v31 }
  0x30   :  { %v143_v38 = vrot.slane %v137_v37, %v142_v32  ;;  %v147_v39 = vrot.slane %v137_v37, %v146_v34  ;;  %v151_v40 = vrot.slane %v137_v37, %v150_v35  ;;  %v155_v41 = vrot.slane %v137_v37, %v154_v36 }
  0x32   :  { %v160_v42 = vmul.f32 %v143_v38, %v51_v54  ;;  %v161_v43 = vmul.f32 %v147_v39, %v52_v55  ;;  %v162_v44 = vmul.f32 %v151_v40, %v53_v56  ;;  %v163_v45 = vmul.f32 %v155_v41, %v54_v58  ;;  %v196_v54 = vld [vmem:[%s369_s0 + $0x10] sm:$0xff]  ;;  %v197_v55 = vld [vmem:[%s369_s0 + $0x18] sm:$0xff]  ;;  %v228_v58 = vld [vmem:[%s371_s5 + $0x8] sm:$0xff] }
  0x33   :  { %v198_v59 = vmul.f32 %v194_v52, %v143_v38  ;;  %v199_v61 = vmul.f32 %v195_v53, %v147_v39  ;;  %v200_v62 = vmul.f32 %v196_v54, %v151_v40  ;;  %v201_v63 = vmul.f32 %v197_v55, %v155_v41 }
  0x34   :  { %v168_v46 = vcombine.low %v160_v42, %v161_v43  ;;  %v169_v47 = vcombine.low %v162_v44, %v163_v45  ;;  %v231_v2 = vunpack.c.l.bf16 %v228_v58  ;;  %v232_v3 = vunpack.c.h.bf16 %v228_v58 }
  0x36   :  { %v176_v48 = vrot.slane %v168_v46, %v119_v22  ;;  %v183_v49 = vrot.slane %v169_v47, %v119_v22 }
  0x38   :  { %v184_v51 = vcombine.low %v176_v48, %v183_v49 }
  0x3a   :  { %v191_v56 = vrot.slane %v184_v51, %v119_v22 }
  0x3c   :  { %v193_v60 = vsub.f32 %v138_v50, %v191_v56 }
  0x3e   :  { %v206_v4 = vrot.slane %v193_v60, %v142_v32  ;;  %v210_v5 = vrot.slane %v193_v60, %v146_v34  ;;  %v214_v6 = vrot.slane %v193_v60, %v150_v35  ;;  %v218_v7 = vrot.slane %v193_v60, %v154_v36 }
  0x40   :  { %v223_v8 = vadd.f32 %v206_v4, %v198_v59  ;;  %v224_v9 = vadd.f32 %v210_v5, %v199_v61  ;;  %v225_v10 = vadd.f32 %v214_v6, %v200_v62  ;;  %v226_v11 = vadd.f32 %v218_v7, %v201_v63 }
  0x42   :  { %v233_v12 = vadd.f32 %v229_v0, %v223_v8  ;;  %v234_v13 = vadd.f32 %v230_v1, %v224_v9  ;;  %v235_v14 = vadd.f32 %v231_v2, %v225_v10  ;;  %v236_v15 = vadd.f32 %v232_v3, %v226_v11 }
  0x44   :  { %v237_v16 = vmax.f32 %v233_v12, 0.0  ;;  %v238_v17 = vmax.f32 %v234_v13, 0.0  ;;  %v239_v18 = vmax.f32 %v235_v14, 0.0  ;;  %v240_v19 = vmax.f32 %v236_v15, 0.0 }
  0x46   :  { %v265_v20 = vpack.c.bf16 %v238_v17, %v237_v16  ;;  %v266_v21 = vpack.c.bf16 %v240_v19, %v239_v18 }
  0x48   :  { %257 = vst [vmem:[%s372_s6] sm:$0xff] %v265_v20  ;;  %258 = vst [vmem:[%s372_s6 + $0x8] sm:$0xff] %v266_v21 }

// kernel: _lambda_.52
= control target key start
LH: loop header
LB: loop body
LE: loop exit
PB: predicated region body
PF: predicated region fallthrough
CT: control target
= control target key end

     0   :  { %v105_v0 = vlaneseq  ;;  %vm26_vm0 = vcmask 1043456   ;;  %v154_v3 = vmov 1983009808   ;;  %vm139_vm1 = vcmask 1041409   ;;  %s190_s0 = inlined_call_operand.vmem [shape: bf16[2,4,512], index: 0, kind: input, shape index: {}]   ;;  %s191_s1 = inlined_call_operand.vmem [shape: f32[2,512], index: 1, kind: output, shape index: {}]  }
   0x1   :  { %v8_v1 = vld [vmem:[%s190_s0] sm:$0xff]  ;;  %v9_v2 = vld [vmem:[%s190_s0 + $0x8] sm:$0xff]  ;;  %v171_v4 = vunpack.c.l.s4 %v154_v3  ;;  %vm141_vm2 = vcmask 1043459   ;;  %vm143_vm3 = vcmask 1045509   ;;  %vm145_vm4 = vcmask 1047559  }
   0x2   :  { %v10_v5 = vunpack.c.l.bf16 %v8_v1  ;;  %v11_v6 = vunpack.c.h.bf16 %v8_v1  ;;  %v12_v7 = vunpack.c.l.bf16 %v9_v2  ;;  %v13_v8 = vunpack.c.h.bf16 %v9_v2 }
   0x3   :  { %v104_v9 = vunpack.c.0.s8 %v171_v4  ;;  %v174_v10 = vshrl.u32 %v105_v0, 7 }
   0x4   :  { %v18_v11 = vcombine.high %v10_v5, %v10_v5  ;;  %v19_v12 = vcombine.high %v11_v6, %v11_v6  ;;  %v20_v13 = vcombine.high %v12_v7, %v12_v7  ;;  %v21_v14 = vcombine.high %v13_v8, %v13_v8 }
   0x5   :  { %v27_v15 = vsel %vm26_vm0, %v10_v5, 0.0  ;;  %v41_v16 = vsel %vm26_vm0, %v11_v6, 0.0  ;;  %v55_v17 = vsel %vm26_vm0, %v12_v7, 0.0  ;;  %v69_v18 = vsel %vm26_vm0, %v13_v8, 0.0 }
   0x6   :  { %v28_v19 = vrot.slane %v27_v15, 4  ;;  %v34_v20 = vsel %vm26_vm0, %v18_v11, 0.0  ;;  %v42_v21 = vrot.slane %v41_v16, 4  ;;  %v48_v22 = vsel %vm26_vm0, %v19_v12, 0.0 }
   0x7   :  { %v35_v23 = vrot.slane %v34_v20, 4  ;;  %v49_v24 = vrot.slane %v48_v22, 4  ;;  %v56_v25 = vrot.slane %v55_v17, 4  ;;  %v62_v26 = vsel %vm26_vm0, %v20_v13, 0.0 }
   0x8   :  { %v29_v27 = vadd.f32 %v28_v19, %v27_v15  ;;  %v43_v28 = vadd.f32 %v42_v21, %v41_v16  ;;  %v63_v29 = vrot.slane %v62_v26, 4  ;;  %v70_v30 = vrot.slane %v69_v18, 4 }
   0x9   :  { %v36_v31 = vadd.f32 %v35_v23, %v34_v20  ;;  %v50_v32 = vadd.f32 %v49_v24, %v48_v22  ;;  %v57_v33 = vadd.f32 %v56_v25, %v55_v17  ;;  %v76_v34 = vsel %vm26_vm0, %v21_v14, 0.0 }
   0xa   :  { %v30_v35 = vrot.slane %v29_v27, 2  ;;  %v44_v36 = vrot.slane %v43_v28, 2  ;;  %v64_v37 = vadd.f32 %v63_v29, %v62_v26  ;;  %v71_v38 = vadd.f32 %v70_v30, %v69_v18 }
   0xb   :  { %v37_v39 = vrot.slane %v36_v31, 2  ;;  %v51_v40 = vrot.slane %v50_v32, 2  ;;  %v58_v41 = vrot.slane %v57_v33, 2  ;;  %v77_v42 = vrot.slane %v76_v34, 4 }
   0xc   :  { %v31_v43 = vadd.f32 %v30_v35, %v29_v27  ;;  %v45_v44 = vadd.f32 %v44_v36, %v43_v28  ;;  %v65_v45 = vrot.slane %v64_v37, 2  ;;  %v72_v46 = vrot.slane %v71_v38, 2 }
   0xd   :  { %v38_v47 = vadd.f32 %v37_v39, %v36_v31  ;;  %v52_v48 = vadd.f32 %v51_v40, %v50_v32  ;;  %v59_v49 = vadd.f32 %v58_v41, %v57_v33  ;;  %v78_v50 = vadd.f32 %v77_v42, %v76_v34 }
   0xe   :  { %v32_v51 = vrot.slane %v31_v43, 1  ;;  %v46_v52 = vrot.slane %v45_v44, 1  ;;  %v66_v53 = vadd.f32 %v65_v45, %v64_v37  ;;  %v73_v54 = vadd.f32 %v72_v46, %v71_v38 }
   0xf   :  { %v39_v55 = vrot.slane %v38_v47, 1  ;;  %v53_v56 = vrot.slane %v52_v48, 1  ;;  %v60_v57 = vrot.slane %v59_v49, 1  ;;  %v79_v58 = vrot.slane %v78_v50, 2 }
  0x10   :  { %v33_v59 = vadd.f32 %v32_v51, %v31_v43  ;;  %v47_v60 = vadd.f32 %v46_v52, %v45_v44  ;;  %v67_v61 = vrot.slane %v66_v53, 1  ;;  %v74_v62 = vrot.slane %v73_v54, 1 }
  0x11   :  { %v40_v63 = vadd.f32 %v39_v55, %v38_v47  ;;  %v54_v0 = vadd.f32 %v53_v56, %v52_v48  ;;  %v61_v1 = vadd.f32 %v60_v57, %v59_v49  ;;  %v80_v2 = vadd.f32 %v79_v58, %v78_v50 }
  0x12   :  { %v68_v3 = vadd.f32 %v67_v61, %v66_v53  ;;  %v75_v5 = vadd.f32 %v74_v62, %v73_v54  ;;  %v84_v6 = vmul.f32 0.25, %v33_v59  ;;  %v86_v7 = vmul.f32 0.25, %v47_v60 }
  0x13   :  { %v81_v8 = vrot.slane %v80_v2, 1  ;;  %v85_v11 = vmul.f32 0.25, %v40_v63  ;;  %v87_v12 = vmul.f32 0.25, %v54_v0  ;;  %v88_v13 = vmul.f32 0.25, %v61_v1 }
  0x14   :  { %v89_v14 = vmul.f32 0.25, %v68_v3  ;;  %v90_v15 = vmul.f32 0.25, %v75_v5  ;;  %v107_v19 = vsub.s32 %v104_v9, %v174_v10 }
  0x15   :  { %v82_v16 = vadd.f32 %v81_v8, %v80_v2  ;;  %v100_v17 = vcombine.low %v84_v6, %v85_v11  ;;  %v101_v18 = vcombine.low %v86_v7, %v87_v12 }
  0x16   :  { %v117_v20 = vcombine.low %v88_v13, %v89_v14 }
  0x17   :  { %v91_v21 = vmul.f32 0.25, %v82_v16  ;;  %v108_v22 = vrot.slane %v100_v17, %v107_v19  ;;  %v115_v23 = vrot.slane %v101_v18, %v107_v19 }
  0x18   :  { %v125_v25 = vrot.slane %v117_v20, %v107_v19 }
  0x19   :  { %v118_v24 = vcombine.low %v90_v15, %v91_v21  ;;  %v116_v27 = vcombine.low %v108_v22, %v115_v23 }
  0x1b   :  { %v132_v26 = vrot.slane %v118_v24, %v107_v19 }
  0x1d   :  { %v133_v28 = vcombine.low %v125_v25, %v132_v26 }
  0x1f   :  { %v138_v29 = vrot.slane %v133_v28, 7 }
  0x21   :  { %v140_v30 = vsel %vm139_vm1, %v138_v29, %v116_v27 }
  0x22   :  { %v142_v31 = vsel %vm141_vm2, %v138_v29, %v140_v30 }
  0x23   :  { %v144_v32 = vsel %vm143_vm3, %v138_v29, %v142_v31 }
  0x24   :  { %v146_v33 = vsel %vm145_vm4, %v138_v29, %v144_v32 }
  0x25   :  { %148 = vst [vmem:[%s191_s1] sm:$0xff] %v146_v33 }

// kernel: _lambda_.53
= control target key start
LH: loop header
LB: loop body
LE: loop exit
PB: predicated region body
PF: predicated region fallthrough
CT: control target
= control target key end

     0   :  { %v100_v30 = vlaneseq  ;;  %v541_v34 = vmov 1966171168   ;;  %s677_s0 = inlined_call_operand.vmem [shape: bf16[2,512], index: 0, kind: input, shape index: {}]   ;;  %s678_s1 = inlined_call_operand.vmem [shape: bf16[512,20], index: 1, kind: input, shape index: {}]   ;;  %s679_s2 = inlined_call_operand.vmem [shape: f32[1,20], index: 2, kind: input, shape index: {}]   ;;  %s680_s3 = inlined_call_operand.hbm [shape: f32[2,20], index: 3, kind: output, shape index: {}]  }
   0x1   :  { %v485_v0 = vld [vmem:[%s678_s1 + $0x40] sm:$0xff]   ;;  %v489_v4 = vld [vmem:[%s678_s1 + $0x48] sm:$0xff]   ;;  %v493_v8 = vld [vmem:[%s678_s1 + $0x50] sm:$0xff]   ;;  %v98_v35 = vunpack.c.l.s4 %v541_v34 }
   0x2   :  { %v486_v1 = vld [vmem:[%s678_s1 + $0xc0] sm:$0xff]   ;;  %439 = vmatprep.subr.bf16.mxu0 %v485_v0  ;;  %v490_v5 = vld [vmem:[%s678_s1 + $0xc8] sm:$0xff]   ;;  %v494_v9 = vld [vmem:[%s678_s1 + $0xd0] sm:$0xff]   ;;  %v101_v36 = vshrl.u32 %v100_v30, 7 }
   0x3   :  { %v487_v2 = vld [vmem:[%s678_s1] sm:$0xff]   ;;  %461 = vmatprep.subr.bf16.mxu1 %v486_v1  ;;  %v491_v6 = vld [vmem:[%s678_s1 + $0x8] sm:$0xff]   ;;  %v495_v10 = vld [vmem:[%s678_s1 + $0x10] sm:$0xff]  }
   0x4   :  { %v488_v3 = vld [vmem:[%s678_s1 + $0x80] sm:$0xff]   ;;  %440 = vmatpush3.bf16.msra.mxu0 %v487_v2  ;;  %v492_v7 = vld [vmem:[%s678_s1 + $0x88] sm:$0xff]   ;;  %v496_v11 = vld [vmem:[%s678_s1 + $0x90] sm:$0xff]  }
   0x5   :  { %462 = vmatpush3.bf16.msra.mxu1 %v488_v3  ;;  %441 = vmatprep.subr.bf16.mxu0 %v489_v4  ;;  %v497_v12 = vld [vmem:[%s678_s1 + $0x58] sm:$0xff]   ;;  %v501_v16 = vld [vmem:[%s678_s1 + $0x60] sm:$0xff]   ;;  %v505_v20 = vld [vmem:[%s678_s1 + $0x68] sm:$0xff]  }
   0x6   :  { %463 = vmatprep.subr.bf16.mxu1 %v490_v5  ;;  %v498_v13 = vld [vmem:[%s678_s1 + $0xd8] sm:$0xff]   ;;  %v502_v17 = vld [vmem:[%s678_s1 + $0xe0] sm:$0xff]   ;;  %v506_v21 = vld [vmem:[%s678_s1 + $0xe8] sm:$0xff]  }
   0x7   :  { %v499_v14 = vld [vmem:[%s678_s1 + $0x18] sm:$0xff]   ;;  %v503_v18 = vld [vmem:[%s678_s1 + $0x20] sm:$0xff]   ;;  %v507_v22 = vld [vmem:[%s678_s1 + $0x28] sm:$0xff]  }
   0x8   :  { %442 = vmatpush3.bf16.msra.mxu0 %v491_v6  ;;  %v500_v15 = vld [vmem:[%s678_s1 + $0x98] sm:$0xff]   ;;  %v504_v19 = vld [vmem:[%s678_s1 + $0xa0] sm:$0xff]   ;;  %v508_v23 = vld [vmem:[%s678_s1 + $0xa8] sm:$0xff]  }
   0x9   :  { %464 = vmatpush3.bf16.msra.mxu1 %v492_v7  ;;  %443 = vmatprep.subr.bf16.mxu0 %v493_v8  ;;  %v509_v24 = vld [vmem:[%s678_s1 + $0x70] sm:$0xff]   ;;  %v513_v28 = vld [vmem:[%s678_s1 + $0x78] sm:$0xff]   ;;  %v406_v33 = vld.sshfl [vmem:[%s677_s0] sm:$0x33 pattern:$0x75316420] }
   0xa   :  { %465 = vmatprep.subr.bf16.mxu1 %v494_v9  ;;  %v510_v25 = vld [vmem:[%s678_s1 + $0xf0] sm:$0xff]   ;;  %v514_v29 = vld [vmem:[%s678_s1 + $0xf8] sm:$0xff]  }
   0xb   :  { %v511_v26 = vld [vmem:[%s678_s1 + $0x30] sm:$0xff]   ;;  %v515_v31 = vld [vmem:[%s678_s1 + $0x38] sm:$0xff]  }
   0xc   :  { %444 = vmatpush3.bf16.msra.mxu0 %v495_v10  ;;  %v512_v27 = vld [vmem:[%s678_s1 + $0xb0] sm:$0xff]   ;;  %v516_v32 = vld [vmem:[%s678_s1 + $0xb8] sm:$0xff]  }
   0xd   :  { %466 = vmatpush3.bf16.msra.mxu1 %v496_v11  ;;  %445 = vmatprep.subr.bf16.mxu0 %v497_v12 }
   0xe   :  { %467 = vmatprep.subr.bf16.mxu1 %v498_v13 }
  0x10   :  { %446 = vmatpush3.bf16.msra.mxu0 %v499_v14 }
  0x11   :  { %468 = vmatpush3.bf16.msra.mxu1 %v500_v15  ;;  %447 = vmatprep.subr.bf16.mxu0 %v501_v16 }
  0x12   :  { %469 = vmatprep.subr.bf16.mxu1 %v502_v17 }
  0x14   :  { %448 = vmatpush3.bf16.msra.mxu0 %v503_v18 }
  0x15   :  { %470 = vmatpush3.bf16.msra.mxu1 %v504_v19  ;;  %449 = vmatprep.subr.bf16.mxu0 %v505_v20 }
  0x16   :  { %471 = vmatprep.subr.bf16.mxu1 %v506_v21 }
  0x18   :  { %450 = vmatpush3.bf16.msra.mxu0 %v507_v22 }
  0x19   :  { %472 = vmatpush3.bf16.msra.mxu1 %v508_v23  ;;  %451 = vmatprep.subr.bf16.mxu0 %v509_v24 }
  0x1a   :  { %473 = vmatprep.subr.bf16.mxu1 %v510_v25 }
  0x1c   :  { %452 = vmatpush3.bf16.msra.mxu0 %v511_v26 }
  0x1d   :  { %474 = vmatpush3.bf16.msra.mxu1 %v512_v27  ;;  %453 = vmatprep.subr.bf16.mxu0 %v513_v28 }
  0x1e   :  { %475 = vmatprep.subr.bf16.mxu1 %v514_v29 }
  0x20   :  { %454 = vmatpush3.bf16.msra.mxu0 %v515_v31 }
  0x21   :  { %476 = vmatpush3.bf16.msra.mxu1 %v516_v32 }
  0x22   :  { %8 = vsyncpa [#allocation3], 0  ;;  %v96_v37 = vcombine.high %v406_v33, %v406_v33  ;;  %v99_v38 = vunpack.c.0.s8 %v98_v35  ;;  %v405_v45 = vld [vmem:[%s679_s2] ss:$0 sm:$0xff]  ;;  %s542_s0 = smov [#allocation2]   ;;  %vm389_vm0 = vcmask 156672  }
  0x23   :  { %s397_s25 = sshll.u32 %s542_s0, 4  ;;  %s398_s25 = int_to_ptr.vmem [resolvable:$true] %s397_s25 }
  0x24   :  { %v102_v39 = vsub.s32 %v99_v38, %v101_v36  ;;  %s517_s26 = scalar_lea.vmem %s398_s25, 32  ;;  %p522_p1 = scmp.lt.s32.totalorder %s398_s25, %s398_s25 }
  0x25   :  { %p518_p0 = scmp.ne.s32.totalorder %s398_s25, %s517_s26  ;;  %p523_p2 = scmp.lt.s32.totalorder %s517_s26, %s517_s26 }
  0x26   :  { %v110_v40 = vrot.slane %v96_v37, %v102_v39  ;;  %v103_v41 = vrot.slane %v406_v33, %v102_v39 }
  0x27   :  { %p524_p3 = por %p523_p2, %p522_p1 }
  0x28   :  { %341 = vmatprep.mubr.bf16.mxu0 %v110_v40  ;;  %v112_v42 = vcombine.high %v110_v40, %v110_v40  ;;  %v111_v43 = vcombine.high %v103_v41, %v103_v41 }
  0x29   :  { %342 = vmatmul.mubr.bf16.vlgmr.msra.gmra.mrb[0].mxu0 %v103_v41  ;;  %p525_p4 = pnand %p524_p3, %p518_p0 }
  0x2a   :  { %381 = vmatprep.mubr.bf16.mxu1 %v112_v42 }
  0x2b   :  { %382 = vmatmul.mubr.bf16.vlgmr.msra.gmra.mrb[0].mxu1 %v111_v43 }
  0xfc   :  { %v455_v44 = vpop.f32.mrb[0].mxu0 }
  0xfd   :  { %v456_v46 = vpop.f32.mrb[1].mxu0 }
  0xfe   :  { %v477_v47 = vpop.f32.mrb[0].mxu1  ;;  %v457_v48 = vadd.f32 %v456_v46, %v455_v44  ;;  %v458_v49 = vpop.f32.mrb[2].mxu0 }
  0xff   :  { %v478_v50 = vpop.f32.mrb[1].mxu1  ;;  %v459_v51 = vpop.f32.mrb[3].mxu0 }
 0x100   :  { %v344_v52 = vadd.f32 %v457_v48, %v405_v45  ;;  %v479_v53 = vadd.f32 %v478_v50, %v477_v47  ;;  %v480_v54 = vpop.f32.mrb[2].mxu1 }
 0x101   :  { %v481_v55 = vpop.f32.mrb[3].mxu1 }
 0x102   :  { %v384_v56 = vadd.f32 %v479_v53, %v344_v52 }
 0x104   :  { %390 = vst.msk [vmem:[#allocation2] sm:$0x3] %vm389_vm0, %v384_v56 }
 0x105   :  { %528 = shalt.err (!%p525_p4)
}
 0x106   :  { %s529_s28 = scalar_lea.hbm %s680_s3, 32 }
 0x107   :  { %p530_p5 = scmp.ne.s32.totalorder %s680_s3, %s529_s28  ;;  %p533_p6 = scmp.lt.u32.totalorder %s529_s28, %s680_s3 }
 0x109   :  { %p535_p7 = pnand %p533_p6, %p530_p5 }
 0x10b   :  { %538 = shalt.err (!%p535_p7)
}
 0x10c   :  { %400 = dma.vmem_to_hbm [thread:$0]  %s398_s25, 32, %s680_s3, [#allocation3]  }
 0x10d   :  { %539 = dma.done.wait [#allocation3], 32  }
 0x10e   :  { %540 = vsyncadd [#allocation3], 4294967264 }
 0x10f   :  { %404 = vsyncpa [#allocation3], 1 }

</bundles_post_ra>
